<compile_context>
chip_gen: v7x
topology: tpu7x:2x2x1
jax: 0.10.0
libtpu: 0.0.40
codegen_flags: <defaults>
</compile_context>

<pallas_src>
import functools

import jax
import jax.numpy as jnp
from jax.experimental import pallas as pl
from jax.experimental.pallas import tpu as pltpu

# ----------------------------- small config ---------------------------------
B = 2            # batch
S = 64           # sequence length  (B*S = 128 rows -> full MXU row fill)
M = B * S        # total token rows fed to the kernel
H = 128          # hidden size (stands in for 768)
NH = 4           # attention heads
DH = H // NH     # head dim
FFN = 256        # intermediate size
L = 2            # transformer layers
VOCAB = 256
MAXPOS = 64
NTYPES = 2
EPS = 1e-5
HEAD_PAD = 128   # lane-dense padding of the 2-way QA head output


# ------------------------------ fused kernel ---------------------------------
def _layer_norm(x, g, b):
    """f32 LayerNorm over the last (lane) axis; g/b are (1, H)."""
    mu = jnp.mean(x, axis=-1, keepdims=True)
    d = x - mu
    var = jnp.mean(d * d, axis=-1, keepdims=True)
    return d * jax.lax.rsqrt(var + EPS) * g + b


def _fused_model_kernel(
    x_ref, bias_ref,
    emb_g_ref, emb_b_ref,
    wqkv_ref, bqkv_ref, wo_ref, bo_ref, ln1g_ref, ln1b_ref,
    w1_ref, b1_ref, w2_ref, b2_ref, ln2g_ref, ln2b_ref,
    wh_ref, bh_ref,
    o_ref,
):
    # --- embeddings LayerNorm (residual-free), f32 ---
    x = _layer_norm(x_ref[...], emb_g_ref[...], emb_b_ref[...])   # (M, H) f32
    bias = bias_ref[...]                                          # (M, M) f32
    # block-diagonal (batch) + key-padding additive mask, lane-dense

    # per-head full-vreg lane masks, built once and hoisted out of all loops
    lane = jax.lax.broadcasted_iota(jnp.int32, (1, H), 1)
    head_masks = [
        jnp.logical_and(lane >= h * DH, lane < (h + 1) * DH).astype(jnp.float32)
        for h in range(NH)
    ]

    # --- encoder layers (static Python loop, weights stacked on axis 0) ---
    for l in range(L):
        xb = x.astype(jnp.bfloat16)
        # fused QKV projection: one (M, 3H) matmul; 1/sqrt(DH) already folded
        # into the Q columns of wqkv at init.
        qkv = jnp.dot(xb, wqkv_ref[l],
                      preferred_element_type=jnp.float32) + bqkv_ref[l]
        q = qkv[:, 0:H]                                # 128-lane aligned slices
        k = qkv[:, H:2 * H].astype(jnp.bfloat16)
        v = qkv[:, 2 * H:3 * H]

        # multi-head attention over all M rows at once; heads selected by
        # full-vreg lane masks (no lane slices / concats), cross-batch and
        # padded keys forbidden by the block-diagonal bias.
        ctx = None
        for h in range(NH):
            qh = (q * head_masks[h]).astype(jnp.bfloat16)          # (M, H)
            s = jax.lax.dot_general(
                qh, k, (((1,), (1,)), ((), ())),
                preferred_element_type=jnp.float32)                # (M, M)
            s = s + bias
            s = s - jnp.max(s, axis=-1, keepdims=True)
            p = jnp.exp(s)
            p = p * pl.reciprocal(jnp.sum(p, axis=-1, keepdims=True),
                                  approx=True)
            vh = (v * head_masks[h]).astype(jnp.bfloat16)          # (M, H)
            ch = jnp.dot(p.astype(jnp.bfloat16), vh,
                         preferred_element_type=jnp.float32)       # (M, H)
            ctx = ch if ctx is None else ctx + ch

        # output projection + residual + LayerNorm (f32)
        attn = jnp.dot(ctx.astype(jnp.bfloat16), wo_ref[l],
                       preferred_element_type=jnp.float32) + bo_ref[l]
        x = _layer_norm(attn + x, ln1g_ref[l], ln1b_ref[l])

        # FFN: up-proj + GELU + down-proj + residual + LayerNorm
        ff = jnp.dot(x.astype(jnp.bfloat16), w1_ref[l],
                     preferred_element_type=jnp.float32) + b1_ref[l]
        ff = jax.nn.gelu(ff, approximate=True)
        ff = jnp.dot(ff.astype(jnp.bfloat16), w2_ref[l],
                     preferred_element_type=jnp.float32) + b2_ref[l]
        x = _layer_norm(ff + x, ln2g_ref[l], ln2b_ref[l])

    # --- QA head: lane-dense (M, 128) slab; real logits live in cols 0..1 ---
    logits = jnp.dot(x.astype(jnp.bfloat16), wh_ref[...],
                     preferred_element_type=jnp.float32) + bh_ref[...]
    o_ref[...] = logits.astype(o_ref.dtype)


def fused_encoder(params, x2d, bias):
    m = x2d.shape[0]

    def full(shape):
        return pl.BlockSpec(shape, lambda i: (0,) * len(shape))

    args = (
        x2d, bias,
        params["emb_ln_g"], params["emb_ln_b"],
        params["wqkv"], params["bqkv"], params["wo"], params["bo"],
        params["ln1_g"], params["ln1_b"],
        params["w1"], params["b1"], params["w2"], params["b2"],
        params["ln2_g"], params["ln2_b"],
        params["wh"], params["bh"],
    )
    return pl.pallas_call(
        _fused_model_kernel,
        grid=(1,),
        in_specs=[full(a.shape) for a in args],
        out_specs=full((m, HEAD_PAD)),
        out_shape=jax.ShapeDtypeStruct((m, HEAD_PAD), jnp.float32),
        compiler_params=pltpu.CompilerParams(
            dimension_semantics=("arbitrary",)),
    )(*args)


# --------------------------- parameters (synthetic) ---------------------------
def init_params(key):
    std = 0.02
    n_keys = 3 + 6 * L + 1
    keys = iter(jax.random.split(key, n_keys))

    def rnd(shape):
        return jax.random.normal(next(keys), shape, jnp.float32) * std

    p = {
        "word_emb": rnd((VOCAB, H)),
        "pos_emb": rnd((MAXPOS, H)),
        "type_emb": rnd((NTYPES, H)),
        "emb_ln_g": jnp.ones((1, H), jnp.float32),
        "emb_ln_b": jnp.zeros((1, H), jnp.float32),
    }

    scale = 1.0 / (DH ** 0.5)
    wqkv, wo, w1, w2 = [], [], [], []
    for _ in range(L):
        wq, wk, wv = rnd((H, H)), rnd((H, H)), rnd((H, H))
        # fold the attention scale into the Q columns (free at runtime)
        wqkv.append(jnp.concatenate([wq * scale, wk, wv], axis=1))   # (H, 3H)
        wo.append(rnd((H, H)))
        w1.append(rnd((H, FFN)))
        w2.append(rnd((FFN, H)))

    # matmul weights in bf16 (MXU-native); biases / LN params stay f32
    p["wqkv"] = jnp.stack(wqkv).astype(jnp.bfloat16)          # (L, H, 3H)
    p["bqkv"] = jnp.zeros((L, 1, 3 * H), jnp.float32)
    p["wo"] = jnp.stack(wo).astype(jnp.bfloat16)              # (L, H, H)
    p["bo"] = jnp.zeros((L, 1, H), jnp.float32)
    p["ln1_g"] = jnp.ones((L, 1, H), jnp.float32)
    p["ln1_b"] = jnp.zeros((L, 1, H), jnp.float32)
    p["w1"] = jnp.stack(w1).astype(jnp.bfloat16)              # (L, H, FFN)
    p["b1"] = jnp.zeros((L, 1, FFN), jnp.float32)
    p["w2"] = jnp.stack(w2).astype(jnp.bfloat16)              # (L, FFN, H)
    p["b2"] = jnp.zeros((L, 1, H), jnp.float32)
    p["ln2_g"] = jnp.ones((L, 1, H), jnp.float32)
    p["ln2_b"] = jnp.zeros((L, 1, H), jnp.float32)

    # self.l0 = nn.Linear(hidden, 2) -> zero-padded to a lane-dense 128 cols
    w_head = rnd((H, 2))
    p["wh"] = jnp.concatenate(
        [w_head, jnp.zeros((H, HEAD_PAD - 2), jnp.float32)],
        axis=1).astype(jnp.bfloat16)                          # (H, 128)
    p["bh"] = jnp.zeros((1, HEAD_PAD), jnp.float32)
    return p


# ------------------------------ forward pass ----------------------------------
def tweet_model_forward(params, ids, mask, token_type_ids):
    b, s = ids.shape
    m = b * s
    # --- embeddings (gathers = JAX glue) ---
    x = (params["word_emb"][ids]
         + params["pos_emb"][jnp.arange(s)][None, :, :]
         + params["type_emb"][token_type_ids])                # (B, S, H) f32
    x2d = x.reshape(m, H)

    # lane-dense (M, M) additive bias: forbid cross-batch attention and
    # padded keys (1 = keep, 0 = pad).  Built once, exact-shape add in-kernel.
    row_batch = jnp.arange(m, dtype=jnp.int32) // s
    same_batch = row_batch[:, None] == row_batch[None, :]     # (M, M)
    keep_key = (mask.reshape(-1) != 0)[None, :]                # (1, M)
    bias = jnp.where(same_batch & keep_key, 0.0, -1e9).astype(jnp.float32)

    # --- one fused Pallas call: emb LN + L encoder layers + QA head ---
    logits = fused_encoder(params, x2d, bias)                 # (M, 128) f32
    logits = logits.reshape(b, s, HEAD_PAD)

    # split(1, dim=-1) + squeeze(-1) in the wrapper (lane-dense store in-kernel)
    start_logits = logits[..., 0]
    end_logits = logits[..., 1]
    return start_logits, end_logits


# --------------------------------- main ---------------------------------------
if __name__ == "__main__":
    root = jax.random.PRNGKey(0)
    k_param, k_ids = jax.random.split(root)

    params = init_params(k_param)

    ids = jax.random.randint(k_ids, (B, S), 0, VOCAB, dtype=jnp.int32)
    mask = jnp.ones((B, S), jnp.int32).at[:, S - 3:].set(0)   # pad last 3
    token_type_ids = jnp.zeros((B, S), jnp.int32)

    fwd = jax.jit(functools.partial(tweet_model_forward, params))
    start_logits, end_logits = fwd(ids, mask, token_type_ids)
    jax.block_until_ready((start_logits, end_logits))

    assert start_logits.shape == (B, S) and end_logits.shape == (B, S)
    assert bool(jnp.all(jnp.isfinite(start_logits)))
    assert bool(jnp.all(jnp.isfinite(end_logits)))
    print("KERNEL_OK")
</pallas_src>

<mosaic_0001>
module attributes {stable_mosaic.version = 11 : i64} {
  func.func @_fused_model_kernel(%arg0: i32, %arg1: memref<128x128xf32, #tpu.memory_space<vmem>>, %arg2: memref<128x128xf32, #tpu.memory_space<vmem>>, %arg3: memref<1x128xf32, #tpu.memory_space<vmem>>, %arg4: memref<1x128xf32, #tpu.memory_space<vmem>>, %arg5: memref<2x128x384xbf16, #tpu.memory_space<vmem>>, %arg6: memref<2x1x384xf32, #tpu.memory_space<vmem>>, %arg7: memref<2x128x128xbf16, #tpu.memory_space<vmem>>, %arg8: memref<2x1x128xf32, #tpu.memory_space<vmem>>, %arg9: memref<2x1x128xf32, #tpu.memory_space<vmem>>, %arg10: memref<2x1x128xf32, #tpu.memory_space<vmem>>, %arg11: memref<2x128x256xbf16, #tpu.memory_space<vmem>>, %arg12: memref<2x1x256xf32, #tpu.memory_space<vmem>>, %arg13: memref<2x256x128xbf16, #tpu.memory_space<vmem>>, %arg14: memref<2x1x128xf32, #tpu.memory_space<vmem>>, %arg15: memref<2x1x128xf32, #tpu.memory_space<vmem>>, %arg16: memref<2x1x128xf32, #tpu.memory_space<vmem>>, %arg17: memref<128x128xbf16, #tpu.memory_space<vmem>>, %arg18: memref<1x128xf32, #tpu.memory_space<vmem>>, %arg19: memref<128x128xf32, #tpu.memory_space<vmem>>) attributes {dimension_semantics = [#tpu.dimension_semantics<arbitrary>], iteration_bounds = array<i64: 1>, scalar_prefetch = 0 : i64, scratch_operands = 0 : i64, tpu.core_type = #tpu.core_type<tc>, window_params = [{pipeline_mode = #tpu.pipeline_mode<synchronous>, transform_indices = @transform_0, window_bounds = array<i64: 128, 128>}, {pipeline_mode = #tpu.pipeline_mode<synchronous>, transform_indices = @transform_1, window_bounds = array<i64: 128, 128>}, {pipeline_mode = #tpu.pipeline_mode<synchronous>, transform_indices = @transform_2, window_bounds = array<i64: 1, 128>}, {pipeline_mode = #tpu.pipeline_mode<synchronous>, transform_indices = @transform_3, window_bounds = array<i64: 1, 128>}, {pipeline_mode = #tpu.pipeline_mode<synchronous>, transform_indices = @transform_4, window_bounds = array<i64: 2, 128, 384>}, {pipeline_mode = #tpu.pipeline_mode<synchronous>, transform_indices = @transform_5, window_bounds = array<i64: 2, 1, 384>}, {pipeline_mode = #tpu.pipeline_mode<synchronous>, transform_indices = @transform_6, window_bounds = array<i64: 2, 128, 128>}, {pipeline_mode = #tpu.pipeline_mode<synchronous>, transform_indices = @transform_7, window_bounds = array<i64: 2, 1, 128>}, {pipeline_mode = #tpu.pipeline_mode<synchronous>, transform_indices = @transform_8, window_bounds = array<i64: 2, 1, 128>}, {pipeline_mode = #tpu.pipeline_mode<synchronous>, transform_indices = @transform_9, window_bounds = array<i64: 2, 1, 128>}, {pipeline_mode = #tpu.pipeline_mode<synchronous>, transform_indices = @transform_10, window_bounds = array<i64: 2, 128, 256>}, {pipeline_mode = #tpu.pipeline_mode<synchronous>, transform_indices = @transform_11, window_bounds = array<i64: 2, 1, 256>}, {pipeline_mode = #tpu.pipeline_mode<synchronous>, transform_indices = @transform_12, window_bounds = array<i64: 2, 256, 128>}, {pipeline_mode = #tpu.pipeline_mode<synchronous>, transform_indices = @transform_13, window_bounds = array<i64: 2, 1, 128>}, {pipeline_mode = #tpu.pipeline_mode<synchronous>, transform_indices = @transform_14, window_bounds = array<i64: 2, 1, 128>}, {pipeline_mode = #tpu.pipeline_mode<synchronous>, transform_indices = @transform_15, window_bounds = array<i64: 2, 1, 128>}, {pipeline_mode = #tpu.pipeline_mode<synchronous>, transform_indices = @transform_16, window_bounds = array<i64: 128, 128>}, {pipeline_mode = #tpu.pipeline_mode<synchronous>, transform_indices = @transform_17, window_bounds = array<i64: 1, 128>}, {pipeline_mode = #tpu.pipeline_mode<synchronous>, transform_indices = @transform_18, window_bounds = array<i64: 128, 128>}]} {
    %c0 = arith.constant 0 : index
    %c0_0 = arith.constant 0 : index
    %0 = vector.load %arg1[%c0, %c0_0] : memref<128x128xf32, #tpu.memory_space<vmem>>, vector<128x128xf32>
    %c0_1 = arith.constant 0 : index
    %c0_2 = arith.constant 0 : index
    %1 = vector.load %arg3[%c0_1, %c0_2] : memref<1x128xf32, #tpu.memory_space<vmem>>, vector<1x128xf32>
    %c0_3 = arith.constant 0 : index
    %c0_4 = arith.constant 0 : index
    %2 = vector.load %arg4[%c0_3, %c0_4] : memref<1x128xf32, #tpu.memory_space<vmem>>, vector<1x128xf32>
    %cst = arith.constant dense<0.000000e+00> : vector<128xf32>
    %3 = vector.multi_reduction <add>, %0, %cst [1] : vector<128x128xf32> to vector<128xf32>
    %4 = vector.shape_cast %3 : vector<128xf32> to vector<128x1xf32>
    %cst_5 = arith.constant 1.280000e+02 : f32
    %5 = vector.broadcast %cst_5 : f32 to vector<128x1xf32>
    %6 = arith.divf %4, %5 : vector<128x1xf32>
    %7 = vector.broadcast %6 : vector<128x1xf32> to vector<128x128xf32>
    %8 = arith.subf %0, %7 : vector<128x128xf32>
    %9 = arith.mulf %8, %8 : vector<128x128xf32>
    %cst_6 = arith.constant dense<0.000000e+00> : vector<128xf32>
    %10 = vector.multi_reduction <add>, %9, %cst_6 [1] : vector<128x128xf32> to vector<128xf32>
    %11 = vector.shape_cast %10 : vector<128xf32> to vector<128x1xf32>
    %cst_7 = arith.constant 1.280000e+02 : f32
    %12 = vector.broadcast %cst_7 : f32 to vector<128x1xf32>
    %13 = arith.divf %11, %12 : vector<128x1xf32>
    %cst_8 = arith.constant 9.99999974E-6 : f32
    %14 = vector.broadcast %cst_8 : f32 to vector<128x1xf32>
    %15 = arith.addf %13, %14 : vector<128x1xf32>
    %16 = math.rsqrt %15 : vector<128x1xf32>
    %17 = vector.broadcast %16 : vector<128x1xf32> to vector<128x128xf32>
    %18 = arith.mulf %8, %17 : vector<128x128xf32>
    %19 = vector.broadcast %1 : vector<1x128xf32> to vector<128x128xf32>
    %20 = arith.mulf %18, %19 : vector<128x128xf32>
    %21 = vector.broadcast %2 : vector<1x128xf32> to vector<128x128xf32>
    %22 = arith.addf %20, %21 : vector<128x128xf32>
    %c0_9 = arith.constant 0 : index
    %c0_10 = arith.constant 0 : index
    %23 = vector.load %arg2[%c0_9, %c0_10] : memref<128x128xf32, #tpu.memory_space<vmem>>, vector<128x128xf32>
    %24 = tpu.iota {dimensions = array<i32: 1>} : vector<1x128xi32>
    %c0_i32 = arith.constant 0 : i32
    %25 = vector.broadcast %c0_i32 : i32 to vector<1x128xi32>
    %26 = arith.cmpi sge, %24, %25 : vector<1x128xi32>
    %c32_i32 = arith.constant 32 : i32
    %27 = vector.broadcast %c32_i32 : i32 to vector<1x128xi32>
    %28 = arith.cmpi slt, %24, %27 : vector<1x128xi32>
    %29 = arith.andi %26, %28 : vector<1x128xi1>
    %30 = arith.extui %29 : vector<1x128xi1> to vector<1x128xi32>
    %31 = arith.sitofp %30 : vector<1x128xi32> to vector<1x128xf32>
    %c32_i32_11 = arith.constant 32 : i32
    %32 = vector.broadcast %c32_i32_11 : i32 to vector<1x128xi32>
    %33 = arith.cmpi sge, %24, %32 : vector<1x128xi32>
    %c64_i32 = arith.constant 64 : i32
    %34 = vector.broadcast %c64_i32 : i32 to vector<1x128xi32>
    %35 = arith.cmpi slt, %24, %34 : vector<1x128xi32>
    %36 = arith.andi %33, %35 : vector<1x128xi1>
    %37 = arith.extui %36 : vector<1x128xi1> to vector<1x128xi32>
    %38 = arith.sitofp %37 : vector<1x128xi32> to vector<1x128xf32>
    %c64_i32_12 = arith.constant 64 : i32
    %39 = vector.broadcast %c64_i32_12 : i32 to vector<1x128xi32>
    %40 = arith.cmpi sge, %24, %39 : vector<1x128xi32>
    %c96_i32 = arith.constant 96 : i32
    %41 = vector.broadcast %c96_i32 : i32 to vector<1x128xi32>
    %42 = arith.cmpi slt, %24, %41 : vector<1x128xi32>
    %43 = arith.andi %40, %42 : vector<1x128xi1>
    %44 = arith.extui %43 : vector<1x128xi1> to vector<1x128xi32>
    %45 = arith.sitofp %44 : vector<1x128xi32> to vector<1x128xf32>
    %c96_i32_13 = arith.constant 96 : i32
    %46 = vector.broadcast %c96_i32_13 : i32 to vector<1x128xi32>
    %47 = arith.cmpi sge, %24, %46 : vector<1x128xi32>
    %c128_i32 = arith.constant 128 : i32
    %48 = vector.broadcast %c128_i32 : i32 to vector<1x128xi32>
    %49 = arith.cmpi slt, %24, %48 : vector<1x128xi32>
    %50 = arith.andi %47, %49 : vector<1x128xi1>
    %51 = arith.extui %50 : vector<1x128xi1> to vector<1x128xi32>
    %52 = arith.sitofp %51 : vector<1x128xi32> to vector<1x128xf32>
    %53 = arith.truncf %22 : vector<128x128xf32> to vector<128x128xbf16>
    %c0_14 = arith.constant 0 : index
    %c0_15 = arith.constant 0 : index
    %c0_16 = arith.constant 0 : index
    %54 = vector.load %arg5[%c0_14, %c0_15, %c0_16] : memref<2x128x384xbf16, #tpu.memory_space<vmem>>, vector<1x128x384xbf16>
    %55 = vector.shape_cast %54 : vector<1x128x384xbf16> to vector<128x384xbf16>
    %cst_17 = arith.constant dense<0.000000e+00> : vector<128x384xf32>
    %56 = tpu.matmul %53, %55, %cst_17 {dimension_numbers = #tpu.dot_dimension_numbers<[1], [0], [0], [1], [0, 0, 1, 1], [], []>} : vector<128x128xbf16>, vector<128x384xbf16>, vector<128x384xf32> -> vector<128x384xf32>
    %c0_18 = arith.constant 0 : index
    %c0_19 = arith.constant 0 : index
    %c0_20 = arith.constant 0 : index
    %57 = vector.load %arg6[%c0_18, %c0_19, %c0_20] : memref<2x1x384xf32, #tpu.memory_space<vmem>>, vector<1x1x384xf32>
    %58 = vector.shape_cast %57 : vector<1x1x384xf32> to vector<1x384xf32>
    %59 = vector.broadcast %58 : vector<1x384xf32> to vector<128x384xf32>
    %60 = arith.addf %56, %59 : vector<128x384xf32>
    %61 = vector.extract_strided_slice %60 {offsets = [0, 0], sizes = [128, 128], strides = [1, 1]} : vector<128x384xf32> to vector<128x128xf32>
    %62 = vector.extract_strided_slice %60 {offsets = [0, 128], sizes = [128, 128], strides = [1, 1]} : vector<128x384xf32> to vector<128x128xf32>
    %63 = arith.truncf %62 : vector<128x128xf32> to vector<128x128xbf16>
    %64 = vector.extract_strided_slice %60 {offsets = [0, 256], sizes = [128, 128], strides = [1, 1]} : vector<128x384xf32> to vector<128x128xf32>
    %65 = vector.broadcast %31 : vector<1x128xf32> to vector<128x128xf32>
    %66 = arith.mulf %61, %65 : vector<128x128xf32>
    %67 = arith.truncf %66 : vector<128x128xf32> to vector<128x128xbf16>
    %cst_21 = arith.constant dense<0.000000e+00> : vector<128x128xf32>
    %68 = tpu.matmul %67, %63, %cst_21 {dimension_numbers = #tpu.dot_dimension_numbers<[1], [1], [0], [0], [0, 0, 1, 0], [], []>} : vector<128x128xbf16>, vector<128x128xbf16>, vector<128x128xf32> -> vector<128x128xf32>
    %69 = arith.addf %68, %23 : vector<128x128xf32>
    %cst_22 = arith.constant dense<0xFF800000> : vector<128xf32>
    %70 = vector.multi_reduction <maximumf>, %69, %cst_22 [1] : vector<128x128xf32> to vector<128xf32>
    %71 = vector.shape_cast %70 : vector<128xf32> to vector<128x1xf32>
    %72 = vector.broadcast %71 : vector<128x1xf32> to vector<128x128xf32>
    %73 = arith.subf %69, %72 : vector<128x128xf32>
    %74 = math.exp %73 : vector<128x128xf32>
    %cst_23 = arith.constant dense<0.000000e+00> : vector<128xf32>
    %75 = vector.multi_reduction <add>, %74, %cst_23 [1] : vector<128x128xf32> to vector<128xf32>
    %76 = vector.shape_cast %75 : vector<128xf32> to vector<128x1xf32>
    %77 = tpu.reciprocal %76 {approx = true} : vector<128x1xf32> -> vector<128x1xf32>
    %78 = vector.broadcast %77 : vector<128x1xf32> to vector<128x128xf32>
    %79 = arith.mulf %74, %78 : vector<128x128xf32>
    %80 = vector.broadcast %31 : vector<1x128xf32> to vector<128x128xf32>
    %81 = arith.mulf %64, %80 : vector<128x128xf32>
    %82 = arith.truncf %81 : vector<128x128xf32> to vector<128x128xbf16>
    %83 = arith.truncf %79 : vector<128x128xf32> to vector<128x128xbf16>
    %cst_24 = arith.constant dense<0.000000e+00> : vector<128x128xf32>
    %84 = tpu.matmul %83, %82, %cst_24 {dimension_numbers = #tpu.dot_dimension_numbers<[1], [0], [0], [1], [0, 0, 1, 1], [], []>} : vector<128x128xbf16>, vector<128x128xbf16>, vector<128x128xf32> -> vector<128x128xf32>
    %85 = vector.broadcast %38 : vector<1x128xf32> to vector<128x128xf32>
    %86 = arith.mulf %61, %85 : vector<128x128xf32>
    %87 = arith.truncf %86 : vector<128x128xf32> to vector<128x128xbf16>
    %cst_25 = arith.constant dense<0.000000e+00> : vector<128x128xf32>
    %88 = tpu.matmul %87, %63, %cst_25 {dimension_numbers = #tpu.dot_dimension_numbers<[1], [1], [0], [0], [0, 0, 1, 0], [], []>} : vector<128x128xbf16>, vector<128x128xbf16>, vector<128x128xf32> -> vector<128x128xf32>
    %89 = arith.addf %88, %23 : vector<128x128xf32>
    %cst_26 = arith.constant dense<0xFF800000> : vector<128xf32>
    %90 = vector.multi_reduction <maximumf>, %89, %cst_26 [1] : vector<128x128xf32> to vector<128xf32>
    %91 = vector.shape_cast %90 : vector<128xf32> to vector<128x1xf32>
    %92 = vector.broadcast %91 : vector<128x1xf32> to vector<128x128xf32>
    %93 = arith.subf %89, %92 : vector<128x128xf32>
    %94 = math.exp %93 : vector<128x128xf32>
    %cst_27 = arith.constant dense<0.000000e+00> : vector<128xf32>
    %95 = vector.multi_reduction <add>, %94, %cst_27 [1] : vector<128x128xf32> to vector<128xf32>
    %96 = vector.shape_cast %95 : vector<128xf32> to vector<128x1xf32>
    %97 = tpu.reciprocal %96 {approx = true} : vector<128x1xf32> -> vector<128x1xf32>
    %98 = vector.broadcast %97 : vector<128x1xf32> to vector<128x128xf32>
    %99 = arith.mulf %94, %98 : vector<128x128xf32>
    %100 = vector.broadcast %38 : vector<1x128xf32> to vector<128x128xf32>
    %101 = arith.mulf %64, %100 : vector<128x128xf32>
    %102 = arith.truncf %101 : vector<128x128xf32> to vector<128x128xbf16>
    %103 = arith.truncf %99 : vector<128x128xf32> to vector<128x128xbf16>
    %cst_28 = arith.constant dense<0.000000e+00> : vector<128x128xf32>
    %104 = tpu.matmul %103, %102, %cst_28 {dimension_numbers = #tpu.dot_dimension_numbers<[1], [0], [0], [1], [0, 0, 1, 1], [], []>} : vector<128x128xbf16>, vector<128x128xbf16>, vector<128x128xf32> -> vector<128x128xf32>
    %105 = arith.addf %84, %104 : vector<128x128xf32>
    %106 = vector.broadcast %45 : vector<1x128xf32> to vector<128x128xf32>
    %107 = arith.mulf %61, %106 : vector<128x128xf32>
    %108 = arith.truncf %107 : vector<128x128xf32> to vector<128x128xbf16>
    %cst_29 = arith.constant dense<0.000000e+00> : vector<128x128xf32>
    %109 = tpu.matmul %108, %63, %cst_29 {dimension_numbers = #tpu.dot_dimension_numbers<[1], [1], [0], [0], [0, 0, 1, 0], [], []>} : vector<128x128xbf16>, vector<128x128xbf16>, vector<128x128xf32> -> vector<128x128xf32>
    %110 = arith.addf %109, %23 : vector<128x128xf32>
    %cst_30 = arith.constant dense<0xFF800000> : vector<128xf32>
    %111 = vector.multi_reduction <maximumf>, %110, %cst_30 [1] : vector<128x128xf32> to vector<128xf32>
    %112 = vector.shape_cast %111 : vector<128xf32> to vector<128x1xf32>
    %113 = vector.broadcast %112 : vector<128x1xf32> to vector<128x128xf32>
    %114 = arith.subf %110, %113 : vector<128x128xf32>
    %115 = math.exp %114 : vector<128x128xf32>
    %cst_31 = arith.constant dense<0.000000e+00> : vector<128xf32>
    %116 = vector.multi_reduction <add>, %115, %cst_31 [1] : vector<128x128xf32> to vector<128xf32>
    %117 = vector.shape_cast %116 : vector<128xf32> to vector<128x1xf32>
    %118 = tpu.reciprocal %117 {approx = true} : vector<128x1xf32> -> vector<128x1xf32>
    %119 = vector.broadcast %118 : vector<128x1xf32> to vector<128x128xf32>
    %120 = arith.mulf %115, %119 : vector<128x128xf32>
    %121 = vector.broadcast %45 : vector<1x128xf32> to vector<128x128xf32>
    %122 = arith.mulf %64, %121 : vector<128x128xf32>
    %123 = arith.truncf %122 : vector<128x128xf32> to vector<128x128xbf16>
    %124 = arith.truncf %120 : vector<128x128xf32> to vector<128x128xbf16>
    %cst_32 = arith.constant dense<0.000000e+00> : vector<128x128xf32>
    %125 = tpu.matmul %124, %123, %cst_32 {dimension_numbers = #tpu.dot_dimension_numbers<[1], [0], [0], [1], [0, 0, 1, 1], [], []>} : vector<128x128xbf16>, vector<128x128xbf16>, vector<128x128xf32> -> vector<128x128xf32>
    %126 = arith.addf %105, %125 : vector<128x128xf32>
    %127 = vector.broadcast %52 : vector<1x128xf32> to vector<128x128xf32>
    %128 = arith.mulf %61, %127 : vector<128x128xf32>
    %129 = arith.truncf %128 : vector<128x128xf32> to vector<128x128xbf16>
    %cst_33 = arith.constant dense<0.000000e+00> : vector<128x128xf32>
    %130 = tpu.matmul %129, %63, %cst_33 {dimension_numbers = #tpu.dot_dimension_numbers<[1], [1], [0], [0], [0, 0, 1, 0], [], []>} : vector<128x128xbf16>, vector<128x128xbf16>, vector<128x128xf32> -> vector<128x128xf32>
    %131 = arith.addf %130, %23 : vector<128x128xf32>
    %cst_34 = arith.constant dense<0xFF800000> : vector<128xf32>
    %132 = vector.multi_reduction <maximumf>, %131, %cst_34 [1] : vector<128x128xf32> to vector<128xf32>
    %133 = vector.shape_cast %132 : vector<128xf32> to vector<128x1xf32>
    %134 = vector.broadcast %133 : vector<128x1xf32> to vector<128x128xf32>
    %135 = arith.subf %131, %134 : vector<128x128xf32>
    %136 = math.exp %135 : vector<128x128xf32>
    %cst_35 = arith.constant dense<0.000000e+00> : vector<128xf32>
    %137 = vector.multi_reduction <add>, %136, %cst_35 [1] : vector<128x128xf32> to vector<128xf32>
    %138 = vector.shape_cast %137 : vector<128xf32> to vector<128x1xf32>
    %139 = tpu.reciprocal %138 {approx = true} : vector<128x1xf32> -> vector<128x1xf32>
    %140 = vector.broadcast %139 : vector<128x1xf32> to vector<128x128xf32>
    %141 = arith.mulf %136, %140 : vector<128x128xf32>
    %142 = vector.broadcast %52 : vector<1x128xf32> to vector<128x128xf32>
    %143 = arith.mulf %64, %142 : vector<128x128xf32>
    %144 = arith.truncf %143 : vector<128x128xf32> to vector<128x128xbf16>
    %145 = arith.truncf %141 : vector<128x128xf32> to vector<128x128xbf16>
    %cst_36 = arith.constant dense<0.000000e+00> : vector<128x128xf32>
    %146 = tpu.matmul %145, %144, %cst_36 {dimension_numbers = #tpu.dot_dimension_numbers<[1], [0], [0], [1], [0, 0, 1, 1], [], []>} : vector<128x128xbf16>, vector<128x128xbf16>, vector<128x128xf32> -> vector<128x128xf32>
    %147 = arith.addf %126, %146 : vector<128x128xf32>
    %148 = arith.truncf %147 : vector<128x128xf32> to vector<128x128xbf16>
    %c0_37 = arith.constant 0 : index
    %c0_38 = arith.constant 0 : index
    %c0_39 = arith.constant 0 : index
    %149 = vector.load %arg7[%c0_37, %c0_38, %c0_39] : memref<2x128x128xbf16, #tpu.memory_space<vmem>>, vector<1x128x128xbf16>
    %150 = vector.shape_cast %149 : vector<1x128x128xbf16> to vector<128x128xbf16>
    %cst_40 = arith.constant dense<0.000000e+00> : vector<128x128xf32>
    %151 = tpu.matmul %148, %150, %cst_40 {dimension_numbers = #tpu.dot_dimension_numbers<[1], [0], [0], [1], [0, 0, 1, 1], [], []>} : vector<128x128xbf16>, vector<128x128xbf16>, vector<128x128xf32> -> vector<128x128xf32>
    %c0_41 = arith.constant 0 : index
    %c0_42 = arith.constant 0 : index
    %c0_43 = arith.constant 0 : index
    %152 = vector.load %arg8[%c0_41, %c0_42, %c0_43] : memref<2x1x128xf32, #tpu.memory_space<vmem>>, vector<1x1x128xf32>
    %153 = vector.shape_cast %152 : vector<1x1x128xf32> to vector<1x128xf32>
    %154 = vector.broadcast %153 : vector<1x128xf32> to vector<128x128xf32>
    %155 = arith.addf %151, %154 : vector<128x128xf32>
    %156 = arith.addf %155, %22 : vector<128x128xf32>
    %c0_44 = arith.constant 0 : index
    %c0_45 = arith.constant 0 : index
    %c0_46 = arith.constant 0 : index
    %157 = vector.load %arg9[%c0_44, %c0_45, %c0_46] : memref<2x1x128xf32, #tpu.memory_space<vmem>>, vector<1x1x128xf32>
    %158 = vector.shape_cast %157 : vector<1x1x128xf32> to vector<1x128xf32>
    %c0_47 = arith.constant 0 : index
    %c0_48 = arith.constant 0 : index
    %c0_49 = arith.constant 0 : index
    %159 = vector.load %arg10[%c0_47, %c0_48, %c0_49] : memref<2x1x128xf32, #tpu.memory_space<vmem>>, vector<1x1x128xf32>
    %160 = vector.shape_cast %159 : vector<1x1x128xf32> to vector<1x128xf32>
    %cst_50 = arith.constant dense<0.000000e+00> : vector<128xf32>
    %161 = vector.multi_reduction <add>, %156, %cst_50 [1] : vector<128x128xf32> to vector<128xf32>
    %162 = vector.shape_cast %161 : vector<128xf32> to vector<128x1xf32>
    %cst_51 = arith.constant 1.280000e+02 : f32
    %163 = vector.broadcast %cst_51 : f32 to vector<128x1xf32>
    %164 = arith.divf %162, %163 : vector<128x1xf32>
    %165 = vector.broadcast %164 : vector<128x1xf32> to vector<128x128xf32>
    %166 = arith.subf %156, %165 : vector<128x128xf32>
    %167 = arith.mulf %166, %166 : vector<128x128xf32>
    %cst_52 = arith.constant dense<0.000000e+00> : vector<128xf32>
    %168 = vector.multi_reduction <add>, %167, %cst_52 [1] : vector<128x128xf32> to vector<128xf32>
    %169 = vector.shape_cast %168 : vector<128xf32> to vector<128x1xf32>
    %cst_53 = arith.constant 1.280000e+02 : f32
    %170 = vector.broadcast %cst_53 : f32 to vector<128x1xf32>
    %171 = arith.divf %169, %170 : vector<128x1xf32>
    %cst_54 = arith.constant 9.99999974E-6 : f32
    %172 = vector.broadcast %cst_54 : f32 to vector<128x1xf32>
    %173 = arith.addf %171, %172 : vector<128x1xf32>
    %174 = math.rsqrt %173 : vector<128x1xf32>
    %175 = vector.broadcast %174 : vector<128x1xf32> to vector<128x128xf32>
    %176 = arith.mulf %166, %175 : vector<128x128xf32>
    %177 = vector.broadcast %158 : vector<1x128xf32> to vector<128x128xf32>
    %178 = arith.mulf %176, %177 : vector<128x128xf32>
    %179 = vector.broadcast %160 : vector<1x128xf32> to vector<128x128xf32>
    %180 = arith.addf %178, %179 : vector<128x128xf32>
    %181 = arith.truncf %180 : vector<128x128xf32> to vector<128x128xbf16>
    %c0_55 = arith.constant 0 : index
    %c0_56 = arith.constant 0 : index
    %c0_57 = arith.constant 0 : index
    %182 = vector.load %arg11[%c0_55, %c0_56, %c0_57] : memref<2x128x256xbf16, #tpu.memory_space<vmem>>, vector<1x128x256xbf16>
    %183 = vector.shape_cast %182 : vector<1x128x256xbf16> to vector<128x256xbf16>
    %cst_58 = arith.constant dense<0.000000e+00> : vector<128x256xf32>
    %184 = tpu.matmul %181, %183, %cst_58 {dimension_numbers = #tpu.dot_dimension_numbers<[1], [0], [0], [1], [0, 0, 1, 1], [], []>} : vector<128x128xbf16>, vector<128x256xbf16>, vector<128x256xf32> -> vector<128x256xf32>
    %c0_59 = arith.constant 0 : index
    %c0_60 = arith.constant 0 : index
    %c0_61 = arith.constant 0 : index
    %185 = vector.load %arg12[%c0_59, %c0_60, %c0_61] : memref<2x1x256xf32, #tpu.memory_space<vmem>>, vector<1x1x256xf32>
    %186 = vector.shape_cast %185 : vector<1x1x256xf32> to vector<1x256xf32>
    %187 = vector.broadcast %186 : vector<1x256xf32> to vector<128x256xf32>
    %188 = arith.addf %184, %187 : vector<128x256xf32>
    %189 = arith.mulf %188, %188 : vector<128x256xf32>
    %190 = arith.mulf %188, %189 : vector<128x256xf32>
    %cst_62 = arith.constant 4.471500e-02 : f32
    %191 = vector.broadcast %cst_62 : f32 to vector<128x256xf32>
    %192 = arith.mulf %191, %190 : vector<128x256xf32>
    %193 = arith.addf %188, %192 : vector<128x256xf32>
    %cst_63 = arith.constant 0.797884583 : f32
    %194 = vector.broadcast %cst_63 : f32 to vector<128x256xf32>
    %195 = arith.mulf %194, %193 : vector<128x256xf32>
    %196 = math.tanh %195 : vector<128x256xf32>
    %cst_64 = arith.constant 1.000000e+00 : f32
    %197 = vector.broadcast %cst_64 : f32 to vector<128x256xf32>
    %198 = arith.addf %197, %196 : vector<128x256xf32>
    %cst_65 = arith.constant 5.000000e-01 : f32
    %199 = vector.broadcast %cst_65 : f32 to vector<128x256xf32>
    %200 = arith.mulf %199, %198 : vector<128x256xf32>
    %201 = arith.mulf %188, %200 : vector<128x256xf32>
    %202 = arith.truncf %201 : vector<128x256xf32> to vector<128x256xbf16>
    %c0_66 = arith.constant 0 : index
    %c0_67 = arith.constant 0 : index
    %c0_68 = arith.constant 0 : index
    %203 = vector.load %arg13[%c0_66, %c0_67, %c0_68] : memref<2x256x128xbf16, #tpu.memory_space<vmem>>, vector<1x256x128xbf16>
    %204 = vector.shape_cast %203 : vector<1x256x128xbf16> to vector<256x128xbf16>
    %cst_69 = arith.constant dense<0.000000e+00> : vector<128x128xf32>
    %205 = tpu.matmul %202, %204, %cst_69 {dimension_numbers = #tpu.dot_dimension_numbers<[1], [0], [0], [1], [0, 0, 1, 1], [], []>} : vector<128x256xbf16>, vector<256x128xbf16>, vector<128x128xf32> -> vector<128x128xf32>
    %c0_70 = arith.constant 0 : index
    %c0_71 = arith.constant 0 : index
    %c0_72 = arith.constant 0 : index
    %206 = vector.load %arg14[%c0_70, %c0_71, %c0_72] : memref<2x1x128xf32, #tpu.memory_space<vmem>>, vector<1x1x128xf32>
    %207 = vector.shape_cast %206 : vector<1x1x128xf32> to vector<1x128xf32>
    %208 = vector.broadcast %207 : vector<1x128xf32> to vector<128x128xf32>
    %209 = arith.addf %205, %208 : vector<128x128xf32>
    %210 = arith.addf %209, %180 : vector<128x128xf32>
    %c0_73 = arith.constant 0 : index
    %c0_74 = arith.constant 0 : index
    %c0_75 = arith.constant 0 : index
    %211 = vector.load %arg15[%c0_73, %c0_74, %c0_75] : memref<2x1x128xf32, #tpu.memory_space<vmem>>, vector<1x1x128xf32>
    %212 = vector.shape_cast %211 : vector<1x1x128xf32> to vector<1x128xf32>
    %c0_76 = arith.constant 0 : index
    %c0_77 = arith.constant 0 : index
    %c0_78 = arith.constant 0 : index
    %213 = vector.load %arg16[%c0_76, %c0_77, %c0_78] : memref<2x1x128xf32, #tpu.memory_space<vmem>>, vector<1x1x128xf32>
    %214 = vector.shape_cast %213 : vector<1x1x128xf32> to vector<1x128xf32>
    %cst_79 = arith.constant dense<0.000000e+00> : vector<128xf32>
    %215 = vector.multi_reduction <add>, %210, %cst_79 [1] : vector<128x128xf32> to vector<128xf32>
    %216 = vector.shape_cast %215 : vector<128xf32> to vector<128x1xf32>
    %cst_80 = arith.constant 1.280000e+02 : f32
    %217 = vector.broadcast %cst_80 : f32 to vector<128x1xf32>
    %218 = arith.divf %216, %217 : vector<128x1xf32>
    %219 = vector.broadcast %218 : vector<128x1xf32> to vector<128x128xf32>
    %220 = arith.subf %210, %219 : vector<128x128xf32>
    %221 = arith.mulf %220, %220 : vector<128x128xf32>
    %cst_81 = arith.constant dense<0.000000e+00> : vector<128xf32>
    %222 = vector.multi_reduction <add>, %221, %cst_81 [1] : vector<128x128xf32> to vector<128xf32>
    %223 = vector.shape_cast %222 : vector<128xf32> to vector<128x1xf32>
    %cst_82 = arith.constant 1.280000e+02 : f32
    %224 = vector.broadcast %cst_82 : f32 to vector<128x1xf32>
    %225 = arith.divf %223, %224 : vector<128x1xf32>
    %cst_83 = arith.constant 9.99999974E-6 : f32
    %226 = vector.broadcast %cst_83 : f32 to vector<128x1xf32>
    %227 = arith.addf %225, %226 : vector<128x1xf32>
    %228 = math.rsqrt %227 : vector<128x1xf32>
    %229 = vector.broadcast %228 : vector<128x1xf32> to vector<128x128xf32>
    %230 = arith.mulf %220, %229 : vector<128x128xf32>
    %231 = vector.broadcast %212 : vector<1x128xf32> to vector<128x128xf32>
    %232 = arith.mulf %230, %231 : vector<128x128xf32>
    %233 = vector.broadcast %214 : vector<1x128xf32> to vector<128x128xf32>
    %234 = arith.addf %232, %233 : vector<128x128xf32>
    %235 = arith.truncf %234 : vector<128x128xf32> to vector<128x128xbf16>
    %c1 = arith.constant 1 : index
    %c0_84 = arith.constant 0 : index
    %c0_85 = arith.constant 0 : index
    %236 = vector.load %arg5[%c1, %c0_84, %c0_85] : memref<2x128x384xbf16, #tpu.memory_space<vmem>>, vector<1x128x384xbf16>
    %237 = vector.shape_cast %236 : vector<1x128x384xbf16> to vector<128x384xbf16>
    %cst_86 = arith.constant dense<0.000000e+00> : vector<128x384xf32>
    %238 = tpu.matmul %235, %237, %cst_86 {dimension_numbers = #tpu.dot_dimension_numbers<[1], [0], [0], [1], [0, 0, 1, 1], [], []>} : vector<128x128xbf16>, vector<128x384xbf16>, vector<128x384xf32> -> vector<128x384xf32>
    %c1_87 = arith.constant 1 : index
    %c0_88 = arith.constant 0 : index
    %c0_89 = arith.constant 0 : index
    %239 = vector.load %arg6[%c1_87, %c0_88, %c0_89] : memref<2x1x384xf32, #tpu.memory_space<vmem>>, vector<1x1x384xf32>
    %240 = vector.shape_cast %239 : vector<1x1x384xf32> to vector<1x384xf32>
    %241 = vector.broadcast %240 : vector<1x384xf32> to vector<128x384xf32>
    %242 = arith.addf %238, %241 : vector<128x384xf32>
    %243 = vector.extract_strided_slice %242 {offsets = [0, 0], sizes = [128, 128], strides = [1, 1]} : vector<128x384xf32> to vector<128x128xf32>
    %244 = vector.extract_strided_slice %242 {offsets = [0, 128], sizes = [128, 128], strides = [1, 1]} : vector<128x384xf32> to vector<128x128xf32>
    %245 = arith.truncf %244 : vector<128x128xf32> to vector<128x128xbf16>
    %246 = vector.extract_strided_slice %242 {offsets = [0, 256], sizes = [128, 128], strides = [1, 1]} : vector<128x384xf32> to vector<128x128xf32>
    %247 = vector.broadcast %31 : vector<1x128xf32> to vector<128x128xf32>
    %248 = arith.mulf %243, %247 : vector<128x128xf32>
    %249 = arith.truncf %248 : vector<128x128xf32> to vector<128x128xbf16>
    %cst_90 = arith.constant dense<0.000000e+00> : vector<128x128xf32>
    %250 = tpu.matmul %249, %245, %cst_90 {dimension_numbers = #tpu.dot_dimension_numbers<[1], [1], [0], [0], [0, 0, 1, 0], [], []>} : vector<128x128xbf16>, vector<128x128xbf16>, vector<128x128xf32> -> vector<128x128xf32>
    %251 = arith.addf %250, %23 : vector<128x128xf32>
    %cst_91 = arith.constant dense<0xFF800000> : vector<128xf32>
    %252 = vector.multi_reduction <maximumf>, %251, %cst_91 [1] : vector<128x128xf32> to vector<128xf32>
    %253 = vector.shape_cast %252 : vector<128xf32> to vector<128x1xf32>
    %254 = vector.broadcast %253 : vector<128x1xf32> to vector<128x128xf32>
    %255 = arith.subf %251, %254 : vector<128x128xf32>
    %256 = math.exp %255 : vector<128x128xf32>
    %cst_92 = arith.constant dense<0.000000e+00> : vector<128xf32>
    %257 = vector.multi_reduction <add>, %256, %cst_92 [1] : vector<128x128xf32> to vector<128xf32>
    %258 = vector.shape_cast %257 : vector<128xf32> to vector<128x1xf32>
    %259 = tpu.reciprocal %258 {approx = true} : vector<128x1xf32> -> vector<128x1xf32>
    %260 = vector.broadcast %259 : vector<128x1xf32> to vector<128x128xf32>
    %261 = arith.mulf %256, %260 : vector<128x128xf32>
    %262 = vector.broadcast %31 : vector<1x128xf32> to vector<128x128xf32>
    %263 = arith.mulf %246, %262 : vector<128x128xf32>
    %264 = arith.truncf %263 : vector<128x128xf32> to vector<128x128xbf16>
    %265 = arith.truncf %261 : vector<128x128xf32> to vector<128x128xbf16>
    %cst_93 = arith.constant dense<0.000000e+00> : vector<128x128xf32>
    %266 = tpu.matmul %265, %264, %cst_93 {dimension_numbers = #tpu.dot_dimension_numbers<[1], [0], [0], [1], [0, 0, 1, 1], [], []>} : vector<128x128xbf16>, vector<128x128xbf16>, vector<128x128xf32> -> vector<128x128xf32>
    %267 = vector.broadcast %38 : vector<1x128xf32> to vector<128x128xf32>
    %268 = arith.mulf %243, %267 : vector<128x128xf32>
    %269 = arith.truncf %268 : vector<128x128xf32> to vector<128x128xbf16>
    %cst_94 = arith.constant dense<0.000000e+00> : vector<128x128xf32>
    %270 = tpu.matmul %269, %245, %cst_94 {dimension_numbers = #tpu.dot_dimension_numbers<[1], [1], [0], [0], [0, 0, 1, 0], [], []>} : vector<128x128xbf16>, vector<128x128xbf16>, vector<128x128xf32> -> vector<128x128xf32>
    %271 = arith.addf %270, %23 : vector<128x128xf32>
    %cst_95 = arith.constant dense<0xFF800000> : vector<128xf32>
    %272 = vector.multi_reduction <maximumf>, %271, %cst_95 [1] : vector<128x128xf32> to vector<128xf32>
    %273 = vector.shape_cast %272 : vector<128xf32> to vector<128x1xf32>
    %274 = vector.broadcast %273 : vector<128x1xf32> to vector<128x128xf32>
    %275 = arith.subf %271, %274 : vector<128x128xf32>
    %276 = math.exp %275 : vector<128x128xf32>
    %cst_96 = arith.constant dense<0.000000e+00> : vector<128xf32>
    %277 = vector.multi_reduction <add>, %276, %cst_96 [1] : vector<128x128xf32> to vector<128xf32>
    %278 = vector.shape_cast %277 : vector<128xf32> to vector<128x1xf32>
    %279 = tpu.reciprocal %278 {approx = true} : vector<128x1xf32> -> vector<128x1xf32>
    %280 = vector.broadcast %279 : vector<128x1xf32> to vector<128x128xf32>
    %281 = arith.mulf %276, %280 : vector<128x128xf32>
    %282 = vector.broadcast %38 : vector<1x128xf32> to vector<128x128xf32>
    %283 = arith.mulf %246, %282 : vector<128x128xf32>
    %284 = arith.truncf %283 : vector<128x128xf32> to vector<128x128xbf16>
    %285 = arith.truncf %281 : vector<128x128xf32> to vector<128x128xbf16>
    %cst_97 = arith.constant dense<0.000000e+00> : vector<128x128xf32>
    %286 = tpu.matmul %285, %284, %cst_97 {dimension_numbers = #tpu.dot_dimension_numbers<[1], [0], [0], [1], [0, 0, 1, 1], [], []>} : vector<128x128xbf16>, vector<128x128xbf16>, vector<128x128xf32> -> vector<128x128xf32>
    %287 = arith.addf %266, %286 : vector<128x128xf32>
    %288 = vector.broadcast %45 : vector<1x128xf32> to vector<128x128xf32>
    %289 = arith.mulf %243, %288 : vector<128x128xf32>
    %290 = arith.truncf %289 : vector<128x128xf32> to vector<128x128xbf16>
    %cst_98 = arith.constant dense<0.000000e+00> : vector<128x128xf32>
    %291 = tpu.matmul %290, %245, %cst_98 {dimension_numbers = #tpu.dot_dimension_numbers<[1], [1], [0], [0], [0, 0, 1, 0], [], []>} : vector<128x128xbf16>, vector<128x128xbf16>, vector<128x128xf32> -> vector<128x128xf32>
    %292 = arith.addf %291, %23 : vector<128x128xf32>
    %cst_99 = arith.constant dense<0xFF800000> : vector<128xf32>
    %293 = vector.multi_reduction <maximumf>, %292, %cst_99 [1] : vector<128x128xf32> to vector<128xf32>
    %294 = vector.shape_cast %293 : vector<128xf32> to vector<128x1xf32>
    %295 = vector.broadcast %294 : vector<128x1xf32> to vector<128x128xf32>
    %296 = arith.subf %292, %295 : vector<128x128xf32>
    %297 = math.exp %296 : vector<128x128xf32>
    %cst_100 = arith.constant dense<0.000000e+00> : vector<128xf32>
    %298 = vector.multi_reduction <add>, %297, %cst_100 [1] : vector<128x128xf32> to vector<128xf32>
    %299 = vector.shape_cast %298 : vector<128xf32> to vector<128x1xf32>
    %300 = tpu.reciprocal %299 {approx = true} : vector<128x1xf32> -> vector<128x1xf32>
    %301 = vector.broadcast %300 : vector<128x1xf32> to vector<128x128xf32>
    %302 = arith.mulf %297, %301 : vector<128x128xf32>
    %303 = vector.broadcast %45 : vector<1x128xf32> to vector<128x128xf32>
    %304 = arith.mulf %246, %303 : vector<128x128xf32>
    %305 = arith.truncf %304 : vector<128x128xf32> to vector<128x128xbf16>
    %306 = arith.truncf %302 : vector<128x128xf32> to vector<128x128xbf16>
    %cst_101 = arith.constant dense<0.000000e+00> : vector<128x128xf32>
    %307 = tpu.matmul %306, %305, %cst_101 {dimension_numbers = #tpu.dot_dimension_numbers<[1], [0], [0], [1], [0, 0, 1, 1], [], []>} : vector<128x128xbf16>, vector<128x128xbf16>, vector<128x128xf32> -> vector<128x128xf32>
    %308 = arith.addf %287, %307 : vector<128x128xf32>
    %309 = vector.broadcast %52 : vector<1x128xf32> to vector<128x128xf32>
    %310 = arith.mulf %243, %309 : vector<128x128xf32>
    %311 = arith.truncf %310 : vector<128x128xf32> to vector<128x128xbf16>
    %cst_102 = arith.constant dense<0.000000e+00> : vector<128x128xf32>
    %312 = tpu.matmul %311, %245, %cst_102 {dimension_numbers = #tpu.dot_dimension_numbers<[1], [1], [0], [0], [0, 0, 1, 0], [], []>} : vector<128x128xbf16>, vector<128x128xbf16>, vector<128x128xf32> -> vector<128x128xf32>
    %313 = arith.addf %312, %23 : vector<128x128xf32>
    %cst_103 = arith.constant dense<0xFF800000> : vector<128xf32>
    %314 = vector.multi_reduction <maximumf>, %313, %cst_103 [1] : vector<128x128xf32> to vector<128xf32>
    %315 = vector.shape_cast %314 : vector<128xf32> to vector<128x1xf32>
    %316 = vector.broadcast %315 : vector<128x1xf32> to vector<128x128xf32>
    %317 = arith.subf %313, %316 : vector<128x128xf32>
    %318 = math.exp %317 : vector<128x128xf32>
    %cst_104 = arith.constant dense<0.000000e+00> : vector<128xf32>
    %319 = vector.multi_reduction <add>, %318, %cst_104 [1] : vector<128x128xf32> to vector<128xf32>
    %320 = vector.shape_cast %319 : vector<128xf32> to vector<128x1xf32>
    %321 = tpu.reciprocal %320 {approx = true} : vector<128x1xf32> -> vector<128x1xf32>
    %322 = vector.broadcast %321 : vector<128x1xf32> to vector<128x128xf32>
    %323 = arith.mulf %318, %322 : vector<128x128xf32>
    %324 = vector.broadcast %52 : vector<1x128xf32> to vector<128x128xf32>
    %325 = arith.mulf %246, %324 : vector<128x128xf32>
    %326 = arith.truncf %325 : vector<128x128xf32> to vector<128x128xbf16>
    %327 = arith.truncf %323 : vector<128x128xf32> to vector<128x128xbf16>
    %cst_105 = arith.constant dense<0.000000e+00> : vector<128x128xf32>
    %328 = tpu.matmul %327, %326, %cst_105 {dimension_numbers = #tpu.dot_dimension_numbers<[1], [0], [0], [1], [0, 0, 1, 1], [], []>} : vector<128x128xbf16>, vector<128x128xbf16>, vector<128x128xf32> -> vector<128x128xf32>
    %329 = arith.addf %308, %328 : vector<128x128xf32>
    %330 = arith.truncf %329 : vector<128x128xf32> to vector<128x128xbf16>
    %c1_106 = arith.constant 1 : index
    %c0_107 = arith.constant 0 : index
    %c0_108 = arith.constant 0 : index
    %331 = vector.load %arg7[%c1_106, %c0_107, %c0_108] : memref<2x128x128xbf16, #tpu.memory_space<vmem>>, vector<1x128x128xbf16>
    %332 = vector.shape_cast %331 : vector<1x128x128xbf16> to vector<128x128xbf16>
    %cst_109 = arith.constant dense<0.000000e+00> : vector<128x128xf32>
    %333 = tpu.matmul %330, %332, %cst_109 {dimension_numbers = #tpu.dot_dimension_numbers<[1], [0], [0], [1], [0, 0, 1, 1], [], []>} : vector<128x128xbf16>, vector<128x128xbf16>, vector<128x128xf32> -> vector<128x128xf32>
    %c1_110 = arith.constant 1 : index
    %c0_111 = arith.constant 0 : index
    %c0_112 = arith.constant 0 : index
    %334 = vector.load %arg8[%c1_110, %c0_111, %c0_112] : memref<2x1x128xf32, #tpu.memory_space<vmem>>, vector<1x1x128xf32>
    %335 = vector.shape_cast %334 : vector<1x1x128xf32> to vector<1x128xf32>
    %336 = vector.broadcast %335 : vector<1x128xf32> to vector<128x128xf32>
    %337 = arith.addf %333, %336 : vector<128x128xf32>
    %338 = arith.addf %337, %234 : vector<128x128xf32>
    %c1_113 = arith.constant 1 : index
    %c0_114 = arith.constant 0 : index
    %c0_115 = arith.constant 0 : index
    %339 = vector.load %arg9[%c1_113, %c0_114, %c0_115] : memref<2x1x128xf32, #tpu.memory_space<vmem>>, vector<1x1x128xf32>
    %340 = vector.shape_cast %339 : vector<1x1x128xf32> to vector<1x128xf32>
    %c1_116 = arith.constant 1 : index
    %c0_117 = arith.constant 0 : index
    %c0_118 = arith.constant 0 : index
    %341 = vector.load %arg10[%c1_116, %c0_117, %c0_118] : memref<2x1x128xf32, #tpu.memory_space<vmem>>, vector<1x1x128xf32>
    %342 = vector.shape_cast %341 : vector<1x1x128xf32> to vector<1x128xf32>
    %cst_119 = arith.constant dense<0.000000e+00> : vector<128xf32>
    %343 = vector.multi_reduction <add>, %338, %cst_119 [1] : vector<128x128xf32> to vector<128xf32>
    %344 = vector.shape_cast %343 : vector<128xf32> to vector<128x1xf32>
    %cst_120 = arith.constant 1.280000e+02 : f32
    %345 = vector.broadcast %cst_120 : f32 to vector<128x1xf32>
    %346 = arith.divf %344, %345 : vector<128x1xf32>
    %347 = vector.broadcast %346 : vector<128x1xf32> to vector<128x128xf32>
    %348 = arith.subf %338, %347 : vector<128x128xf32>
    %349 = arith.mulf %348, %348 : vector<128x128xf32>
    %cst_121 = arith.constant dense<0.000000e+00> : vector<128xf32>
    %350 = vector.multi_reduction <add>, %349, %cst_121 [1] : vector<128x128xf32> to vector<128xf32>
    %351 = vector.shape_cast %350 : vector<128xf32> to vector<128x1xf32>
    %cst_122 = arith.constant 1.280000e+02 : f32
    %352 = vector.broadcast %cst_122 : f32 to vector<128x1xf32>
    %353 = arith.divf %351, %352 : vector<128x1xf32>
    %cst_123 = arith.constant 9.99999974E-6 : f32
    %354 = vector.broadcast %cst_123 : f32 to vector<128x1xf32>
    %355 = arith.addf %353, %354 : vector<128x1xf32>
    %356 = math.rsqrt %355 : vector<128x1xf32>
    %357 = vector.broadcast %356 : vector<128x1xf32> to vector<128x128xf32>
    %358 = arith.mulf %348, %357 : vector<128x128xf32>
    %359 = vector.broadcast %340 : vector<1x128xf32> to vector<128x128xf32>
    %360 = arith.mulf %358, %359 : vector<128x128xf32>
    %361 = vector.broadcast %342 : vector<1x128xf32> to vector<128x128xf32>
    %362 = arith.addf %360, %361 : vector<128x128xf32>
    %363 = arith.truncf %362 : vector<128x128xf32> to vector<128x128xbf16>
    %c1_124 = arith.constant 1 : index
    %c0_125 = arith.constant 0 : index
    %c0_126 = arith.constant 0 : index
    %364 = vector.load %arg11[%c1_124, %c0_125, %c0_126] : memref<2x128x256xbf16, #tpu.memory_space<vmem>>, vector<1x128x256xbf16>
    %365 = vector.shape_cast %364 : vector<1x128x256xbf16> to vector<128x256xbf16>
    %cst_127 = arith.constant dense<0.000000e+00> : vector<128x256xf32>
    %366 = tpu.matmul %363, %365, %cst_127 {dimension_numbers = #tpu.dot_dimension_numbers<[1], [0], [0], [1], [0, 0, 1, 1], [], []>} : vector<128x128xbf16>, vector<128x256xbf16>, vector<128x256xf32> -> vector<128x256xf32>
    %c1_128 = arith.constant 1 : index
    %c0_129 = arith.constant 0 : index
    %c0_130 = arith.constant 0 : index
    %367 = vector.load %arg12[%c1_128, %c0_129, %c0_130] : memref<2x1x256xf32, #tpu.memory_space<vmem>>, vector<1x1x256xf32>
    %368 = vector.shape_cast %367 : vector<1x1x256xf32> to vector<1x256xf32>
    %369 = vector.broadcast %368 : vector<1x256xf32> to vector<128x256xf32>
    %370 = arith.addf %366, %369 : vector<128x256xf32>
    %371 = arith.mulf %370, %370 : vector<128x256xf32>
    %372 = arith.mulf %370, %371 : vector<128x256xf32>
    %cst_131 = arith.constant 4.471500e-02 : f32
    %373 = vector.broadcast %cst_131 : f32 to vector<128x256xf32>
    %374 = arith.mulf %373, %372 : vector<128x256xf32>
    %375 = arith.addf %370, %374 : vector<128x256xf32>
    %cst_132 = arith.constant 0.797884583 : f32
    %376 = vector.broadcast %cst_132 : f32 to vector<128x256xf32>
    %377 = arith.mulf %376, %375 : vector<128x256xf32>
    %378 = math.tanh %377 : vector<128x256xf32>
    %cst_133 = arith.constant 1.000000e+00 : f32
    %379 = vector.broadcast %cst_133 : f32 to vector<128x256xf32>
    %380 = arith.addf %379, %378 : vector<128x256xf32>
    %cst_134 = arith.constant 5.000000e-01 : f32
    %381 = vector.broadcast %cst_134 : f32 to vector<128x256xf32>
    %382 = arith.mulf %381, %380 : vector<128x256xf32>
    %383 = arith.mulf %370, %382 : vector<128x256xf32>
    %384 = arith.truncf %383 : vector<128x256xf32> to vector<128x256xbf16>
    %c1_135 = arith.constant 1 : index
    %c0_136 = arith.constant 0 : index
    %c0_137 = arith.constant 0 : index
    %385 = vector.load %arg13[%c1_135, %c0_136, %c0_137] : memref<2x256x128xbf16, #tpu.memory_space<vmem>>, vector<1x256x128xbf16>
    %386 = vector.shape_cast %385 : vector<1x256x128xbf16> to vector<256x128xbf16>
    %cst_138 = arith.constant dense<0.000000e+00> : vector<128x128xf32>
    %387 = tpu.matmul %384, %386, %cst_138 {dimension_numbers = #tpu.dot_dimension_numbers<[1], [0], [0], [1], [0, 0, 1, 1], [], []>} : vector<128x256xbf16>, vector<256x128xbf16>, vector<128x128xf32> -> vector<128x128xf32>
    %c1_139 = arith.constant 1 : index
    %c0_140 = arith.constant 0 : index
    %c0_141 = arith.constant 0 : index
    %388 = vector.load %arg14[%c1_139, %c0_140, %c0_141] : memref<2x1x128xf32, #tpu.memory_space<vmem>>, vector<1x1x128xf32>
    %389 = vector.shape_cast %388 : vector<1x1x128xf32> to vector<1x128xf32>
    %390 = vector.broadcast %389 : vector<1x128xf32> to vector<128x128xf32>
    %391 = arith.addf %387, %390 : vector<128x128xf32>
    %392 = arith.addf %391, %362 : vector<128x128xf32>
    %c1_142 = arith.constant 1 : index
    %c0_143 = arith.constant 0 : index
    %c0_144 = arith.constant 0 : index
    %393 = vector.load %arg15[%c1_142, %c0_143, %c0_144] : memref<2x1x128xf32, #tpu.memory_space<vmem>>, vector<1x1x128xf32>
    %394 = vector.shape_cast %393 : vector<1x1x128xf32> to vector<1x128xf32>
    %c1_145 = arith.constant 1 : index
    %c0_146 = arith.constant 0 : index
    %c0_147 = arith.constant 0 : index
    %395 = vector.load %arg16[%c1_145, %c0_146, %c0_147] : memref<2x1x128xf32, #tpu.memory_space<vmem>>, vector<1x1x128xf32>
    %396 = vector.shape_cast %395 : vector<1x1x128xf32> to vector<1x128xf32>
    %cst_148 = arith.constant dense<0.000000e+00> : vector<128xf32>
    %397 = vector.multi_reduction <add>, %392, %cst_148 [1] : vector<128x128xf32> to vector<128xf32>
    %398 = vector.shape_cast %397 : vector<128xf32> to vector<128x1xf32>
    %cst_149 = arith.constant 1.280000e+02 : f32
    %399 = vector.broadcast %cst_149 : f32 to vector<128x1xf32>
    %400 = arith.divf %398, %399 : vector<128x1xf32>
    %401 = vector.broadcast %400 : vector<128x1xf32> to vector<128x128xf32>
    %402 = arith.subf %392, %401 : vector<128x128xf32>
    %403 = arith.mulf %402, %402 : vector<128x128xf32>
    %cst_150 = arith.constant dense<0.000000e+00> : vector<128xf32>
    %404 = vector.multi_reduction <add>, %403, %cst_150 [1] : vector<128x128xf32> to vector<128xf32>
    %405 = vector.shape_cast %404 : vector<128xf32> to vector<128x1xf32>
    %cst_151 = arith.constant 1.280000e+02 : f32
    %406 = vector.broadcast %cst_151 : f32 to vector<128x1xf32>
    %407 = arith.divf %405, %406 : vector<128x1xf32>
    %cst_152 = arith.constant 9.99999974E-6 : f32
    %408 = vector.broadcast %cst_152 : f32 to vector<128x1xf32>
    %409 = arith.addf %407, %408 : vector<128x1xf32>
    %410 = math.rsqrt %409 : vector<128x1xf32>
    %411 = vector.broadcast %410 : vector<128x1xf32> to vector<128x128xf32>
    %412 = arith.mulf %402, %411 : vector<128x128xf32>
    %413 = vector.broadcast %394 : vector<1x128xf32> to vector<128x128xf32>
    %414 = arith.mulf %412, %413 : vector<128x128xf32>
    %415 = vector.broadcast %396 : vector<1x128xf32> to vector<128x128xf32>
    %416 = arith.addf %414, %415 : vector<128x128xf32>
    %417 = arith.truncf %416 : vector<128x128xf32> to vector<128x128xbf16>
    %c0_153 = arith.constant 0 : index
    %c0_154 = arith.constant 0 : index
    %418 = vector.load %arg17[%c0_153, %c0_154] : memref<128x128xbf16, #tpu.memory_space<vmem>>, vector<128x128xbf16>
    %cst_155 = arith.constant dense<0.000000e+00> : vector<128x128xf32>
    %419 = tpu.matmul %417, %418, %cst_155 {dimension_numbers = #tpu.dot_dimension_numbers<[1], [0], [0], [1], [0, 0, 1, 1], [], []>} : vector<128x128xbf16>, vector<128x128xbf16>, vector<128x128xf32> -> vector<128x128xf32>
    %c0_156 = arith.constant 0 : index
    %c0_157 = arith.constant 0 : index
    %420 = vector.load %arg18[%c0_156, %c0_157] : memref<1x128xf32, #tpu.memory_space<vmem>>, vector<1x128xf32>
    %421 = vector.broadcast %420 : vector<1x128xf32> to vector<128x128xf32>
    %422 = arith.addf %419, %421 : vector<128x128xf32>
    %c0_158 = arith.constant 0 : index
    %c0_159 = arith.constant 0 : index
    %423 = vector.load %arg19[%c0_158, %c0_159] : memref<128x128xf32, #tpu.memory_space<vmem>>, vector<128x128xf32>
    tpu.vector_store %arg19[%c0_158, %c0_159], %422 {strides = array<i32>} : memref<128x128xf32, #tpu.memory_space<vmem>>, vector<128x128xf32>,
    return
  }
  func.func @transform_0(%arg0: i32) -> (i32, i32) {
    %c0_i32 = arith.constant 0 : i32
    %c0_i32_0 = arith.constant 0 : i32
    %c0_i32_1 = arith.constant 0 : i32
    return %c0_i32, %c0_i32_0 : i32, i32
  }
  func.func @transform_1(%arg0: i32) -> (i32, i32) {
    %c0_i32 = arith.constant 0 : i32
    %c0_i32_0 = arith.constant 0 : i32
    %c0_i32_1 = arith.constant 0 : i32
    return %c0_i32, %c0_i32_0 : i32, i32
  }
  func.func @transform_2(%arg0: i32) -> (i32, i32) {
    %c0_i32 = arith.constant 0 : i32
    %c0_i32_0 = arith.constant 0 : i32
    %c0_i32_1 = arith.constant 0 : i32
    return %c0_i32, %c0_i32_0 : i32, i32
  }
  func.func @transform_3(%arg0: i32) -> (i32, i32) {
    %c0_i32 = arith.constant 0 : i32
    %c0_i32_0 = arith.constant 0 : i32
    %c0_i32_1 = arith.constant 0 : i32
    return %c0_i32, %c0_i32_0 : i32, i32
  }
  func.func @transform_4(%arg0: i32) -> (i32, i32, i32) {
    %c0_i32 = arith.constant 0 : i32
    %c0_i32_0 = arith.constant 0 : i32
    %c0_i32_1 = arith.constant 0 : i32
    %c0_i32_2 = arith.constant 0 : i32
    return %c0_i32, %c0_i32_0, %c0_i32_1 : i32, i32, i32
  }
  func.func @transform_5(%arg0: i32) -> (i32, i32, i32) {
    %c0_i32 = arith.constant 0 : i32
    %c0_i32_0 = arith.constant 0 : i32
    %c0_i32_1 = arith.constant 0 : i32
    %c0_i32_2 = arith.constant 0 : i32
    return %c0_i32, %c0_i32_0, %c0_i32_1 : i32, i32, i32
  }
  func.func @transform_6(%arg0: i32) -> (i32, i32, i32) {
    %c0_i32 = arith.constant 0 : i32
    %c0_i32_0 = arith.constant 0 : i32
    %c0_i32_1 = arith.constant 0 : i32
    %c0_i32_2 = arith.constant 0 : i32
    return %c0_i32, %c0_i32_0, %c0_i32_1 : i32, i32, i32
  }
  func.func @transform_7(%arg0: i32) -> (i32, i32, i32) {
    %c0_i32 = arith.constant 0 : i32
    %c0_i32_0 = arith.constant 0 : i32
    %c0_i32_1 = arith.constant 0 : i32
    %c0_i32_2 = arith.constant 0 : i32
    return %c0_i32, %c0_i32_0, %c0_i32_1 : i32, i32, i32
  }
  func.func @transform_8(%arg0: i32) -> (i32, i32, i32) {
    %c0_i32 = arith.constant 0 : i32
    %c0_i32_0 = arith.constant 0 : i32
    %c0_i32_1 = arith.constant 0 : i32
    %c0_i32_2 = arith.constant 0 : i32
    return %c0_i32, %c0_i32_0, %c0_i32_1 : i32, i32, i32
  }
  func.func @transform_9(%arg0: i32) -> (i32, i32, i32) {
    %c0_i32 = arith.constant 0 : i32
    %c0_i32_0 = arith.constant 0 : i32
    %c0_i32_1 = arith.constant 0 : i32
    %c0_i32_2 = arith.constant 0 : i32
    return %c0_i32, %c0_i32_0, %c0_i32_1 : i32, i32, i32
  }
  func.func @transform_10(%arg0: i32) -> (i32, i32, i32) {
    %c0_i32 = arith.constant 0 : i32
    %c0_i32_0 = arith.constant 0 : i32
    %c0_i32_1 = arith.constant 0 : i32
    %c0_i32_2 = arith.constant 0 : i32
    return %c0_i32, %c0_i32_0, %c0_i32_1 : i32, i32, i32
  }
  func.func @transform_11(%arg0: i32) -> (i32, i32, i32) {
    %c0_i32 = arith.constant 0 : i32
    %c0_i32_0 = arith.constant 0 : i32
    %c0_i32_1 = arith.constant 0 : i32
    %c0_i32_2 = arith.constant 0 : i32
    return %c0_i32, %c0_i32_0, %c0_i32_1 : i32, i32, i32
  }
  func.func @transform_12(%arg0: i32) -> (i32, i32, i32) {
    %c0_i32 = arith.constant 0 : i32
    %c0_i32_0 = arith.constant 0 : i32
    %c0_i32_1 = arith.constant 0 : i32
    %c0_i32_2 = arith.constant 0 : i32
    return %c0_i32, %c0_i32_0, %c0_i32_1 : i32, i32, i32
  }
  func.func @transform_13(%arg0: i32) -> (i32, i32, i32) {
    %c0_i32 = arith.constant 0 : i32
    %c0_i32_0 = arith.constant 0 : i32
    %c0_i32_1 = arith.constant 0 : i32
    %c0_i32_2 = arith.constant 0 : i32
    return %c0_i32, %c0_i32_0, %c0_i32_1 : i32, i32, i32
  }
  func.func @transform_14(%arg0: i32) -> (i32, i32, i32) {
    %c0_i32 = arith.constant 0 : i32
    %c0_i32_0 = arith.constant 0 : i32
    %c0_i32_1 = arith.constant 0 : i32
    %c0_i32_2 = arith.constant 0 : i32
    return %c0_i32, %c0_i32_0, %c0_i32_1 : i32, i32, i32
  }
  func.func @transform_15(%arg0: i32) -> (i32, i32, i32) {
    %c0_i32 = arith.constant 0 : i32
    %c0_i32_0 = arith.constant 0 : i32
    %c0_i32_1 = arith.constant 0 : i32
    %c0_i32_2 = arith.constant 0 : i32
    return %c0_i32, %c0_i32_0, %c0_i32_1 : i32, i32, i32
  }
  func.func @transform_16(%arg0: i32) -> (i32, i32) {
    %c0_i32 = arith.constant 0 : i32
    %c0_i32_0 = arith.constant 0 : i32
    %c0_i32_1 = arith.constant 0 : i32
    return %c0_i32, %c0_i32_0 : i32, i32
  }
  func.func @transform_17(%arg0: i32) -> (i32, i32) {
    %c0_i32 = arith.constant 0 : i32
    %c0_i32_0 = arith.constant 0 : i32
    %c0_i32_1 = arith.constant 0 : i32
    return %c0_i32, %c0_i32_0 : i32, i32
  }
  func.func @transform_18(%arg0: i32) -> (i32, i32) {
    %c0_i32 = arith.constant 0 : i32
    %c0_i32_0 = arith.constant 0 : i32
    %c0_i32_1 = arith.constant 0 : i32
    return %c0_i32, %c0_i32_0 : i32, i32
  }
}

</mosaic_0001>

<bundles_post_ra>
// kernel: tweet_model_forward.1
= control target key start
LH: loop header
LB: loop body
LE: loop exit
PB: predicated region body
PF: predicated region fallthrough
CT: control target
= control target key end

     0   :  { %s15168_s0 = inlined_call_operand.vmem [shape: f32[128,128], index: 0, kind: input, shape index: {}]   ;;  %s15169_s4 = inlined_call_operand.vmem [shape: bf16[2,128,384], index: 4, kind: input, shape index: {}]   ;;  %s15170_s2 = inlined_call_operand.vmem [shape: f32[1,128], index: 2, kind: input, shape index: {}]   ;;  %s15171_s3 = inlined_call_operand.vmem [shape: f32[1,128], index: 3, kind: input, shape index: {}, may-alias: {3,17}]   ;;  %s15172_s5 = inlined_call_operand.vmem [shape: f32[2,1,384], index: 5, kind: input, shape index: {}]   ;;  %s15173_s1 = inlined_call_operand.vmem [shape: f32[128,128], index: 1, kind: input, shape index: {}]   ;;  %s15174_s6 = inlined_call_operand.vmem [shape: bf16[2,128,128], index: 6, kind: input, shape index: {}]   ;;  %s15175_s7 = inlined_call_operand.vmem [shape: f32[2,1,128], index: 7, kind: input, shape index: {}, may-alias: {7,9,13,15}]   ;;  %s15176_s10 = inlined_call_operand.vmem [shape: bf16[2,128,256], index: 10, kind: input, shape index: {}]   ;;  %s15177_s8 = inlined_call_operand.vmem [shape: f32[2,1,128], index: 8, kind: input, shape index: {}, may-alias: {8,14}]   ;;  %s15178_s9 = inlined_call_operand.vmem [shape: f32[2,1,128], index: 9, kind: input, shape index: {}, may-alias: {7,9,13,15}]   ;;  %s15179_s12 = inlined_call_operand.vmem [shape: bf16[2,256,128], index: 12, kind: input, shape index: {}]   ;;  %s15180_s11 = inlined_call_operand.vmem [shape: f32[2,1,256], index: 11, kind: input, shape index: {}]   ;;  %s15181_s13 = inlined_call_operand.vmem [shape: f32[2,1,128], index: 13, kind: input, shape index: {}, may-alias: {7,9,13,15}]   ;;  %s15182_s14 = inlined_call_operand.vmem [shape: f32[2,1,128], index: 14, kind: input, shape index: {}, may-alias: {8,14}]   ;;  %s15183_s15 = inlined_call_operand.vmem [shape: f32[2,1,128], index: 15, kind: input, shape index: {}, may-alias: {7,9,13,15}]   ;;  %s15184_s16 = inlined_call_operand.vmem [shape: bf16[128,128], index: 16, kind: input, shape index: {}]   ;;  %s15185_s17 = inlined_call_operand.vmem [shape: f32[1,128], index: 17, kind: input, shape index: {}, may-alias: {3,17}]   ;;  %s15186_s18 = inlined_call_operand.vmem [shape: f32[128,128], index: 18, kind: output, shape index: {}]  }
   0x1   :  { %15441 = sst [smem:[#allocation92_spill]] %s15168_s0 }
   0x2   :  { %15442 = sst [smem:[#allocation93_spill]] %s15169_s4  ;;  %s15444_s29 = sld [smem:[#allocation92_spill]] }
   0x3   :  { %15443 = sst [smem:[#allocation94_spill]] %s15170_s2  ;;  %s15445_s20 = sld [smem:[#allocation93_spill]] }
   0x4   :  { %s15448_s25 = sld [smem:[#allocation94_spill]] }
   0x8   :  { %v60_v0 = vld [vmem:[%s15444_s29] sm:$0xff]  ;;  %v62_v1 = vld [vmem:[%s15444_s29 + $0x10] sm:$0xff]  ;;  %v61_v2 = vld [vmem:[%s15444_s29 + $0x8] sm:$0xff] }
   0x9   :  { %78 = vadd.xlane.f32.xlu0 %v60_v0  ;;  %82 = vadd.xlane.f32.xlu1 %v62_v1  ;;  %v63_v3 = vld [vmem:[%s15444_s29 + $0x18] sm:$0xff]  ;;  %v64_v4 = vld [vmem:[%s15444_s29 + $0x20] sm:$0xff]  ;;  %v65_v5 = vld [vmem:[%s15444_s29 + $0x28] sm:$0xff] }
   0xa   :  { %v10012_v6 = vld [vmem:[%s15444_s29 + $0x30] sm:$0xff]  ;;  %v10017_v7 = vld [vmem:[%s15444_s29 + $0x38] sm:$0xff]  ;;  %v10024_v8 = vld [vmem:[%s15444_s29 + $0x40] sm:$0xff] }
   0xb   :  { %v10029_v9 = vld [vmem:[%s15444_s29 + $0x48] sm:$0xff]  ;;  %v10036_v10 = vld [vmem:[%s15444_s29 + $0x50] sm:$0xff]  ;;  %v10041_v11 = vld [vmem:[%s15444_s29 + $0x58] sm:$0xff] }
   0xc   :  { %v10048_v12 = vld [vmem:[%s15444_s29 + $0x60] sm:$0xff]  ;;  %v10053_v13 = vld [vmem:[%s15444_s29 + $0x68] sm:$0xff]  ;;  %v10060_v14 = vld [vmem:[%s15444_s29 + $0x70] sm:$0xff] }
   0xd   :  { %80 = vadd.xlane.f32.xlu0 %v61_v2  ;;  %84 = vadd.xlane.f32.xlu1 %v63_v3  ;;  %v10065_v15 = vld [vmem:[%s15444_s29 + $0x78] sm:$0xff]  ;;  %v8910_v16 = vld [vmem:[%s15445_s20 + $0x4] ss:$12 sps:$4 sm:$0xff]   ;;  %v8912_v17 = vld [vmem:[%s15445_s20] ss:$12 sps:$4 sm:$0xff]  }
   0xe   :  { %522 = vmatprep.subr.bf16.mxu0 %v8910_v16  ;;  %v8913_v18 = vld [vmem:[%s15445_s20 + $0x1c] ss:$12 sps:$4 sm:$0xff]   ;;  %v8916_v58 = vld [vmem:[%s15445_s20 + $0x18] ss:$12 sps:$4 sm:$0xff]  }
   0xf   :  { %523 = vmatpush1.bf16.msra.mxu0 %v8912_v17  ;;  %v8915_v19 = vld [vmem:[%s15445_s20 + $0x8] ss:$12 sps:$4 sm:$0xff]  }
  0x10   :  { %524 = vmatprep.subr.bf16.mxu0 %v8913_v18  ;;  %8124 = vmatprep.subr.bf16.mxu1 %v8915_v19  ;;  %v8921_v18 = vld [vmem:[%s15445_s20 + $0x4c] ss:$12 sps:$4 sm:$0xff]  }
  0x11   :  { %86 = vadd.xlane.f32.xlu0 %v64_v4  ;;  %88 = vadd.xlane.f32.xlu1 %v65_v5 }
  0x12   :  { %8125 = vmatpush3.bf16.msra.mxu1 %v8915_v19  ;;  %v8923_v19 = vld [vmem:[%s15445_s20 + $0x38] ss:$12 sps:$4 sm:$0xff]  }
  0x13   :  { %525 = vmatpush1.bf16.msra.mxu0 %v8916_v58 }
  0x15   :  { %90 = vadd.xlane.f32.xlu0 %v10012_v6  ;;  %92 = vadd.xlane.f32.xlu1 %v10017_v7 }
  0x19   :  { %94 = vadd.xlane.f32.xlu0 %v10024_v8  ;;  %96 = vadd.xlane.f32.xlu1 %v10029_v9 }
  0x1d   :  { %98 = vadd.xlane.f32.xlu0 %v10036_v10  ;;  %100 = vadd.xlane.f32.xlu1 %v10041_v11 }
  0x21   :  { %102 = vadd.xlane.f32.xlu0 %v10048_v12  ;;  %104 = vadd.xlane.f32.xlu1 %v10053_v13 }
  0x25   :  { %106 = vadd.xlane.f32.xlu0 %v10060_v14  ;;  %108 = vadd.xlane.f32.xlu1 %v10065_v15 }
  0x96   :  { %v79_v20 = vpop.xlane.xlu0 %78  ;;  %v83_v21 = vpop.xlane.xlu1 %82 }
  0x97   :  { %v111_v22 = vmul.f32 0.0078125, %v79_v20  ;;  %v113_v23 = vmul.f32 0.0078125, %v83_v21 }
  0x99   :  { %v10081_v24 = vsub.f32 %v60_v0, %v111_v22  ;;  %v10083_v25 = vsub.f32 %v62_v1, %v113_v23  ;;  %v8917_v0 = vld [vmem:[%s15445_s20 + $0x34] ss:$12 sps:$4 sm:$0xff]  }
  0x9a   :  { %v81_v26 = vpop.xlane.xlu0 %80  ;;  %v85_v27 = vpop.xlane.xlu1 %84  ;;  %v8919_v1 = vld [vmem:[%s15445_s20 + $0x20] ss:$12 sps:$4 sm:$0xff]   ;;  %526 = vmatprep.subr.bf16.mxu0 %v8917_v0  ;;  %v8924_v22 = vld [vmem:[%s15445_s20 + $0x48] ss:$12 sps:$4 sm:$0xff]  }
  0x9b   :  { %v112_v28 = vmul.f32 0.0078125, %v81_v26  ;;  %v143_v29 = vmul.f32 %v10081_v24, %v10081_v24  ;;  %v114_v30 = vmul.f32 0.0078125, %v85_v27  ;;  %v145_v31 = vmul.f32 %v10083_v25, %v10083_v25  ;;  %8126 = vmatprep.subr.bf16.mxu1 %v8919_v1 }
  0x9c   :  { %8127 = vmatpush3.bf16.msra.mxu1 %v8919_v1 }
  0x9d   :  { %159 = vadd.xlane.f32.xlu0 %v143_v29  ;;  %v10089_v32 = vsub.f32 %v61_v2, %v112_v28  ;;  %v10091_v33 = vsub.f32 %v63_v3, %v114_v30  ;;  %8128 = vmatprep.subr.bf16.mxu1 %v8923_v19  ;;  %v8925_v29 = vld [vmem:[%s15445_s20 + $0x64] ss:$12 sps:$4 sm:$0xff]  }
  0x9e   :  { %v87_v34 = vpop.xlane.xlu0 %86  ;;  %v89_v35 = vpop.xlane.xlu1 %88  ;;  %v8927_v30 = vld [vmem:[%s15445_s20 + $0x50] ss:$12 sps:$4 sm:$0xff]  }
  0x9f   :  { %v115_v36 = vmul.f32 0.0078125, %v87_v34  ;;  %v144_v37 = vmul.f32 %v10089_v32, %v10089_v32  ;;  %v116_v38 = vmul.f32 0.0078125, %v89_v35  ;;  %v146_v39 = vmul.f32 %v10091_v33, %v10091_v33  ;;  %v8931_v35 = vld [vmem:[%s15445_s20 + $0x68] ss:$12 sps:$4 sm:$0xff]  }
  0xa0   :  { %8129 = vmatpush3.bf16.msra.mxu1 %v8923_v19 }
  0xa1   :  { %163 = vadd.xlane.f32.xlu0 %v145_v31  ;;  %161 = vadd.xlane.f32.xlu1 %v144_v37  ;;  %v10097_v40 = vsub.f32 %v64_v4, %v115_v36  ;;  %v10099_v41 = vsub.f32 %v65_v5, %v116_v38  ;;  %v8928_v31 = vld [vmem:[%s15445_s20 + $0x60] ss:$12 sps:$4 sm:$0xff]   ;;  %v8932_v36 = vld [vmem:[%s15445_s20 + $0x78] ss:$12 sps:$4 sm:$0xff]  }
  0xa2   :  { %v91_v42 = vpop.xlane.xlu0 %90  ;;  %v93_v43 = vpop.xlane.xlu1 %92  ;;  %8130 = vmatprep.subr.bf16.mxu1 %v8927_v30  ;;  %v8933_v37 = vld [vmem:[%s15445_s20 + $0x94] ss:$12 sps:$4 sm:$0xff]  }
  0xa3   :  { %v117_v44 = vmul.f32 0.0078125, %v91_v42  ;;  %v147_v45 = vmul.f32 %v10097_v40, %v10097_v40  ;;  %v118_v46 = vmul.f32 0.0078125, %v93_v43  ;;  %v148_v47 = vmul.f32 %v10099_v41, %v10099_v41  ;;  %v8935_v38 = vld [vmem:[%s15445_s20 + $0x80] ss:$12 sps:$4 sm:$0xff]   ;;  %v8939_v43 = vld [vmem:[%s15445_s20 + $0x98] ss:$12 sps:$4 sm:$0xff]  }
  0xa4   :  { %8131 = vmatpush3.bf16.msra.mxu1 %v8927_v30  ;;  %v8937_v42 = vld [vmem:[%s15445_s20 + $0xac] ss:$12 sps:$4 sm:$0xff]  }
  0xa5   :  { %165 = vadd.xlane.f32.xlu1 %v146_v39  ;;  %167 = vadd.xlane.f32.xlu0 %v147_v45  ;;  %v10106_v48 = vsub.f32 %v10012_v6, %v117_v44  ;;  %v10109_v49 = vsub.f32 %v10017_v7, %v118_v46  ;;  %v8920_v7 = vld [vmem:[%s15445_s20 + $0x30] ss:$12 sps:$4 sm:$0xff]   ;;  %v8940_v44 = vld [vmem:[%s15445_s20 + $0xa8] ss:$12 sps:$4 sm:$0xff]   ;;  %v15190_v46 = vmov 0  }
  0xa6   :  { %v95_v50 = vpop.xlane.xlu0 %94  ;;  %v97_v51 = vpop.xlane.xlu1 %96  ;;  %527 = vmatpush1.bf16.msra.mxu0 %v8920_v7  ;;  %8132 = vmatprep.subr.bf16.mxu1 %v8931_v35  ;;  %v8936_v39 = vld [vmem:[%s15445_s20 + $0x90] ss:$12 sps:$4 sm:$0xff]  }
  0xa7   :  { %v119_v52 = vmul.f32 0.0078125, %v95_v50  ;;  %v149_v53 = vmul.f32 %v10106_v48, %v10106_v48  ;;  %v120_v54 = vmul.f32 0.0078125, %v97_v51  ;;  %v150_v55 = vmul.f32 %v10109_v49, %v10109_v49  ;;  %528 = vmatprep.subr.bf16.mxu0 %v8921_v18  ;;  %v8941_v45 = vld [vmem:[%s15445_s20 + $0xb0] ss:$12 sps:$4 sm:$0xff]   ;;  %554 = vmatprep.mubr.bf16.mxu0 %v15190_v46 }
  0xa8   :  { %8133 = vmatpush3.bf16.msra.mxu1 %v8931_v35  ;;  %v9895_v51 = vmov 0.0  }
  0xa9   :  { %169 = vadd.xlane.f32.xlu1 %v148_v47  ;;  %171 = vadd.xlane.f32.xlu0 %v149_v53  ;;  %v10116_v56 = vsub.f32 %v10024_v8, %v119_v52  ;;  %v10119_v57 = vsub.f32 %v10029_v9, %v120_v54  ;;  %v315_v47 = vlaneseq }
  0xaa   :  { %v99_v59 = vpop.xlane.xlu0 %98  ;;  %v101_v60 = vpop.xlane.xlu1 %100  ;;  %529 = vmatpush1.bf16.msra.mxu0 %v8924_v22  ;;  %8134 = vmatprep.subr.bf16.mxu1 %v8935_v38 }
  0xab   :  { %v121_v61 = vmul.f32 0.0078125, %v99_v59  ;;  %v151_v62 = vmul.f32 %v10116_v56, %v10116_v56  ;;  %v122_v63 = vmul.f32 0.0078125, %v101_v60  ;;  %v152_v2 = vmul.f32 %v10119_v57, %v10119_v57  ;;  %530 = vmatprep.subr.bf16.mxu0 %v8925_v29  ;;  %v10232_v29 = vld [vmem:[%s15448_s25] ss:$0 sm:$0xff] }
  0xac   :  { %8135 = vmatpush3.bf16.msra.mxu1 %v8935_v38  ;;  %v10217_v50 = vand.u32 127, %v315_v47 }
  0xad   :  { %173 = vadd.xlane.f32.xlu1 %v150_v55  ;;  %175 = vadd.xlane.f32.xlu0 %v151_v62  ;;  %v10135_v3 = vsub.f32 %v10036_v10, %v121_v61  ;;  %v10138_v4 = vsub.f32 %v10041_v11, %v122_v63 }
  0xae   :  { %v103_v5 = vpop.xlane.xlu0 %102  ;;  %v105_v6 = vpop.xlane.xlu1 %104  ;;  %531 = vmatpush1.bf16.msra.mxu0 %v8928_v31  ;;  %8136 = vmatprep.subr.bf16.mxu1 %v8939_v43  ;;  %vm327_vm0 = vcmp.ge.s32.totalorder %v10217_v50, 64  ;;  %vm328_vm1 = vcmp.lt.s32.totalorder %v10217_v50, 96  ;;  %vm332_vm2 = vcmp.ge.s32.totalorder %v10217_v50, 96  ;;  %vm322_vm4 = vcmp.ge.s32.totalorder %v10217_v50, 32 }
  0xaf   :  { %v123_v8 = vmul.f32 0.0078125, %v103_v5  ;;  %v153_v9 = vmul.f32 %v10135_v3, %v10135_v3  ;;  %v124_v16 = vmul.f32 0.0078125, %v105_v6  ;;  %v154_v10 = vmul.f32 %v10138_v4, %v10138_v4  ;;  %vm329_vm3 = vmand %vm327_vm0, %vm328_vm1 }
  0xb0   :  { %8137 = vmatpush3.bf16.msra.mxu1 %v8939_v43  ;;  %v10223_v52 = vsel %vm332_vm2, 1.0, %v9895_v51  ;;  %v10226_v53 = vsel %vm329_vm3, 1.0, %v9895_v51  ;;  %vm323_vm5 = vcmp.lt.s32.totalorder %v10217_v50, 64  ;;  %vm318_vm6 = vcmp.lt.s32.totalorder %v10217_v50, 32 }
  0xb1   :  { %177 = vadd.xlane.f32.xlu1 %v152_v2  ;;  %179 = vadd.xlane.f32.xlu0 %v153_v9  ;;  %v10148_v11 = vsub.f32 %v10048_v12, %v123_v8  ;;  %v10151_v17 = vsub.f32 %v10053_v13, %v124_v16  ;;  %15446 = vst [vmem:[#allocation2_spill] sm:$0xff] %v10223_v52  ;;  %15447 = vst [vmem:[#allocation3_spill] sm:$0xff] %v10226_v53 }
  0xb2   :  { %v107_v20 = vpop.xlane.xlu0 %106  ;;  %v109_v21 = vpop.xlane.xlu1 %108  ;;  %8138 = vmatprep.subr.bf16.mxu1 %v8941_v45  ;;  %vm324_vm7 = vmand %vm322_vm4, %vm323_vm5 }
  0xb3   :  { %v125_v23 = vmul.f32 0.0078125, %v107_v20  ;;  %v155_v12 = vmul.f32 %v10148_v11, %v10148_v11  ;;  %v126_v13 = vmul.f32 0.0078125, %v109_v21  ;;  %v156_v26 = vmul.f32 %v10151_v17, %v10151_v17 }
  0xb4   :  { %8139 = vmatpush3.bf16.msra.mxu1 %v8941_v45 }
  0xb5   :  { %181 = vadd.xlane.f32.xlu1 %v154_v10  ;;  %183 = vadd.xlane.f32.xlu0 %v155_v12  ;;  %v10167_v27 = vsub.f32 %v10060_v14, %v125_v23  ;;  %v10170_v28 = vsub.f32 %v10065_v15, %v126_v13  ;;  %v8929_v15 = vld [vmem:[%s15445_s20 + $0x7c] ss:$12 sps:$4 sm:$0xff]  }
  0xb6   :  { %532 = vmatprep.subr.bf16.mxu0 %v8929_v15 }
  0xb7   :  { %v157_v34 = vmul.f32 %v10167_v27, %v10167_v27  ;;  %v158_v14 = vmul.f32 %v10170_v28, %v10170_v28  ;;  %533 = vmatpush1.bf16.msra.mxu0 %v8932_v36 }
  0xb8   :  { %534 = vmatprep.subr.bf16.mxu0 %v8933_v37 }
  0xb9   :  { %185 = vadd.xlane.f32.xlu1 %v156_v26  ;;  %187 = vadd.xlane.f32.xlu0 %v157_v34 }
  0xbb   :  { %535 = vmatpush1.bf16.msra.mxu0 %v8936_v39  ;;  %v10239_v39 = vld [vmem:[%s15171_s3] ss:$0 sm:$0xff] }
  0xbc   :  { %536 = vmatprep.subr.bf16.mxu0 %v8937_v42 }
  0xbd   :  { %189 = vadd.xlane.f32.xlu1 %v158_v14 }
  0xbf   :  { %537 = vmatpush1.bf16.msra.mxu0 %v8940_v44 }
 0x12a   :  { %v160_v54 = vpop.xlane.xlu0 %159 }
 0x12b   :  { %v191_v55 = vmul.f32 0.0078125, %v160_v54 }
 0x12d   :  { %v207_v58 = vadd.f32 1e-05, %v191_v55 }
 0x12e   :  { %v162_v59 = vpop.xlane.xlu1 %161  ;;  %v164_v60 = vpop.xlane.xlu0 %163 }
 0x12f   :  { %9078 = vrsqrt.f32 %v207_v58  ;;  %v192_v61 = vmul.f32 0.0078125, %v162_v59  ;;  %v193_v62 = vmul.f32 0.0078125, %v164_v60 }
 0x131   :  { %v208_v63 = vadd.f32 1e-05, %v192_v61  ;;  %v209_v0 = vadd.f32 1e-05, %v193_v62 }
 0x132   :  { %v166_v1 = vpop.xlane.xlu1 %165  ;;  %v168_v2 = vpop.xlane.xlu0 %167 }
 0x133   :  { %9080 = vrsqrt.f32 %v208_v63  ;;  %v194_v5 = vmul.f32 0.0078125, %v166_v1  ;;  %v195_v6 = vmul.f32 0.0078125, %v168_v2 }
 0x134   :  { %9082 = vrsqrt.f32 %v209_v0 }
 0x135   :  { %v210_v7 = vadd.f32 1e-05, %v194_v5  ;;  %v211_v8 = vadd.f32 1e-05, %v195_v6 }
 0x136   :  { %v170_v9 = vpop.xlane.xlu1 %169  ;;  %v172_v16 = vpop.xlane.xlu0 %171 }
 0x137   :  { %9084 = vrsqrt.f32 %v210_v7  ;;  %v196_v10 = vmul.f32 0.0078125, %v170_v9  ;;  %v197_v18 = vmul.f32 0.0078125, %v172_v16 }
 0x138   :  { %9086 = vrsqrt.f32 %v211_v8 }
 0x139   :  { %v9079_v19 = vpop.eup %9078  ;;  %v212_v20 = vadd.f32 1e-05, %v196_v10  ;;  %v213_v21 = vadd.f32 1e-05, %v197_v18 }
 0x13a   :  { %v174_v22 = vpop.xlane.xlu1 %173  ;;  %v176_v23 = vpop.xlane.xlu0 %175  ;;  %v239_v12 = vmul.f32 %v9079_v19, %v10081_v24 }
 0x13b   :  { %9088 = vrsqrt.f32 %v212_v20  ;;  %v198_v13 = vmul.f32 0.0078125, %v174_v22  ;;  %v199_v26 = vmul.f32 0.0078125, %v176_v23 }
 0x13c   :  { %9090 = vrsqrt.f32 %v213_v21  ;;  %v261_v37 = vmul.f32 %v10232_v29, %v239_v12 }
 0x13d   :  { %v9081_v30 = vpop.eup %9080  ;;  %v214_v31 = vadd.f32 1e-05, %v198_v13  ;;  %v215_v34 = vadd.f32 1e-05, %v199_v26 }
 0x13e   :  { %v9083_v14 = vpop.eup %9082  ;;  %v178_v15 = vpop.xlane.xlu1 %177  ;;  %v240_v36 = vmul.f32 %v9081_v30, %v10089_v32  ;;  %v10245_v60 = vadd.f32 %v10239_v39, %v261_v37 }
 0x13f   :  { %v180_v35 = vpop.xlane.xlu0 %179  ;;  %9092 = vrsqrt.f32 %v214_v31  ;;  %v200_v24 = vmul.f32 0.0078125, %v178_v15  ;;  %v241_v42 = vmul.f32 %v9083_v14, %v10083_v25 }
 0x140   :  { %v201_v38 = vmul.f32 0.0078125, %v180_v35  ;;  %9094 = vrsqrt.f32 %v215_v34  ;;  %v262_v43 = vmul.f32 %v10232_v29, %v240_v36  ;;  %15449 = vst [vmem:[#allocation4_spill] sm:$0xff] %v10245_v60 }
 0x141   :  { %v9085_v44 = vpop.eup %9084  ;;  %v216_v45 = vadd.f32 1e-05, %v200_v24  ;;  %v263_v32 = vmul.f32 %v10232_v29, %v241_v42 }
 0x142   :  { %v217_v54 = vadd.f32 1e-05, %v201_v38  ;;  %v9087_v55 = vpop.eup %9086  ;;  %v182_v58 = vpop.xlane.xlu1 %181  ;;  %v10248_v61 = vadd.f32 %v10239_v39, %v262_v43  ;;  %v242_v62 = vmul.f32 %v9085_v44, %v10091_v33 }
 0x143   :  { %v184_v59 = vpop.xlane.xlu0 %183  ;;  %9096 = vrsqrt.f32 %v216_v45  ;;  %v202_v25 = vmul.f32 0.0078125, %v182_v58  ;;  %v243_v2 = vmul.f32 %v9087_v55, %v10097_v40  ;;  %v10256_v8 = vadd.f32 %v10239_v39, %v263_v32 }
 0x144   :  { %15450 = vst [vmem:[#allocation5_spill] sm:$0xff] %v10248_v61  ;;  %v203_v63 = vmul.f32 0.0078125, %v184_v59  ;;  %9098 = vrsqrt.f32 %v217_v54  ;;  %v337_v0 = vpack.c.bf16 %v10248_v61, %v10245_v60  ;;  %v264_v1 = vmul.f32 %v10232_v29, %v242_v62 }
 0x145   :  { %v9089_v5 = vpop.eup %9088  ;;  %v218_v6 = vadd.f32 1e-05, %v202_v25  ;;  %15451 = vst [vmem:[#allocation6_spill] sm:$0xff] %v10256_v8  ;;  %v265_v19 = vmul.f32 %v10232_v29, %v243_v2 }
 0x146   :  { %v219_v7 = vadd.f32 1e-05, %v203_v63  ;;  %v9091_v9 = vpop.eup %9090  ;;  %v186_v16 = vpop.xlane.xlu1 %185  ;;  %555 = vmatmul.mubr.bf16.vlgmr.msra.gmra.mrb[0].mxu0 %v337_v0  ;;  %8140 = vmatprep.mubr.bf16.mxu1 %v337_v0  ;;  %v10259_v10 = vadd.f32 %v10239_v39, %v264_v1  ;;  %v244_v18 = vmul.f32 %v9089_v5, %v10099_v41 }
 0x147   :  { %v188_v33 = vpop.xlane.xlu0 %187  ;;  %9100 = vrsqrt.f32 %v218_v6  ;;  %v204_v40 = vmul.f32 0.0078125, %v186_v16  ;;  %564 = vmatprep.mubr.bf16.mxu0 %v15190_v46  ;;  %v245_v21 = vmul.f32 %v9091_v9, %v10106_v48  ;;  %v10270_v34 = vadd.f32 %v10239_v39, %v265_v19 }
 0x148   :  { %15452 = vst [vmem:[#allocation7_spill] sm:$0xff] %v10259_v10  ;;  %v205_v20 = vmul.f32 0.0078125, %v188_v33  ;;  %9102 = vrsqrt.f32 %v219_v7  ;;  %v338_v22 = vpack.c.bf16 %v10259_v10, %v10256_v8  ;;  %v266_v23 = vmul.f32 %v10232_v29, %v244_v18 }
 0x149   :  { %v9093_v12 = vpop.eup %9092  ;;  %v220_v13 = vadd.f32 1e-05, %v204_v40  ;;  %v267_v41 = vmul.f32 %v10232_v29, %v245_v21  ;;  %15453 = vst [vmem:[#allocation8_spill] sm:$0xff] %v10270_v34 }
 0x14a   :  { %v221_v26 = vadd.f32 1e-05, %v205_v20  ;;  %v9095_v30 = vpop.eup %9094  ;;  %v190_v31 = vpop.xlane.xlu1 %189  ;;  %8141 = vmatmul.mubr.bf16.vlgmr.msra.gmra.mrb[0].mxu1 %v338_v22  ;;  %v10273_v14 = vadd.f32 %v10239_v39, %v266_v23  ;;  %v246_v48 = vmul.f32 %v9093_v12, %v10109_v49  ;;  %v377_v23 = vld [vmem:[%s15172_s5] sm:$0x7] }
 0x14b   :  { %9104 = vrsqrt.f32 %v220_v13  ;;  %v206_v15 = vmul.f32 0.0078125, %v190_v31  ;;  %v247_v35 = vmul.f32 %v9095_v30, %v10116_v56  ;;  %v10281_v42 = vadd.f32 %v10239_v39, %v267_v41 }
 0x14c   :  { %15454 = vst [vmem:[#allocation9_spill] sm:$0xff] %v10273_v14  ;;  %9106 = vrsqrt.f32 %v221_v26  ;;  %v339_v36 = vpack.c.bf16 %v10273_v14, %v10270_v34  ;;  %v268_v37 = vmul.f32 %v10232_v29, %v246_v48  ;;  %v10364_v30 = vsel %vm318_vm6, 1.0, %v9895_v51 }
 0x14d   :  { %v9097_v24 = vpop.eup %9096  ;;  %v222_v38 = vadd.f32 1e-05, %v206_v15  ;;  %15455 = vst [vmem:[#allocation10_spill] sm:$0xff] %v10281_v42  ;;  %v269_v56 = vmul.f32 %v10232_v29, %v247_v35  ;;  %15468 = vst [vmem:[#allocation23_spill] sm:$0xff] %v10364_v30  ;;  %v10367_v31 = vsel %vm324_vm7, 1.0, %v9895_v51 }
 0x14e   :  { %v9099_v43 = vpop.eup %9098  ;;  %565 = vmatmul.mubr.bf16.gmra.mrb[4].mxu0 %v338_v22  ;;  %8144 = vmatprep.mubr.bf16.mxu1 %v339_v36  ;;  %v10284_v49 = vadd.f32 %v10239_v39, %v268_v37  ;;  %v248_v44 = vmul.f32 %v9097_v24, %v10119_v57  ;;  %15469 = vst [vmem:[#allocation24_spill] sm:$0xff] %v10367_v31 }
 0x14f   :  { %9108 = vrsqrt.f32 %v222_v38  ;;  %574 = vmatprep.mubr.bf16.mxu0 %v15190_v46  ;;  %v249_v45 = vmul.f32 %v9099_v43, %v10135_v3  ;;  %v10295_v62 = vadd.f32 %v10239_v39, %v269_v56 }
 0x150   :  { %15456 = vst [vmem:[#allocation11_spill] sm:$0xff] %v10284_v49  ;;  %v340_v54 = vpack.c.bf16 %v10284_v49, %v10281_v42  ;;  %v270_v32 = vmul.f32 %v10232_v29, %v248_v44 }
 0x151   :  { %v9101_v55 = vpop.eup %9100  ;;  %v271_v58 = vmul.f32 %v10232_v29, %v249_v45  ;;  %15457 = vst [vmem:[#allocation12_spill] sm:$0xff] %v10295_v62 }
 0x152   :  { %v9103_v59 = vpop.eup %9102  ;;  %8145 = vmatmul.mubr.bf16.gmra.mrb[4].mxu1 %v340_v54  ;;  %v10298_v57 = vadd.f32 %v10239_v39, %v270_v32  ;;  %v250_v25 = vmul.f32 %v9101_v55, %v10138_v4 }
 0x153   :  { %v251_v3 = vmul.f32 %v9103_v59, %v10148_v11  ;;  %v10306_v2 = vadd.f32 %v10239_v39, %v271_v58 }
 0x154   :  { %15458 = vst [vmem:[#allocation13_spill] sm:$0xff] %v10298_v57  ;;  %v341_v63 = vpack.c.bf16 %v10298_v57, %v10295_v62  ;;  %v272_v0 = vmul.f32 %v10232_v29, %v250_v25 }
 0x155   :  { %v9105_v1 = vpop.eup %9104  ;;  %15459 = vst [vmem:[#allocation14_spill] sm:$0xff] %v10306_v2  ;;  %v273_v4 = vmul.f32 %v10232_v29, %v251_v3 }
 0x156   :  { %v9107_v5 = vpop.eup %9106  ;;  %575 = vmatmul.mubr.bf16.gmra.mrb[8].mxu0 %v339_v36  ;;  %8148 = vmatprep.mubr.bf16.mxu1 %v341_v63  ;;  %v10309_v6 = vadd.f32 %v10239_v39, %v272_v0  ;;  %v252_v7 = vmul.f32 %v9105_v1, %v10151_v17 }
 0x157   :  { %584 = vmatprep.mubr.bf16.mxu0 %v15190_v46  ;;  %v253_v11 = vmul.f32 %v9107_v5, %v10167_v27  ;;  %v10319_v18 = vadd.f32 %v10239_v39, %v273_v4 }
 0x158   :  { %15460 = vst [vmem:[#allocation15_spill] sm:$0xff] %v10309_v6  ;;  %v342_v9 = vpack.c.bf16 %v10309_v6, %v10306_v2  ;;  %v274_v16 = vmul.f32 %v10232_v29, %v252_v7 }
 0x159   :  { %v9109_v33 = vpop.eup %9108  ;;  %15461 = vst [vmem:[#allocation16_spill] sm:$0xff] %v10319_v18  ;;  %v275_v40 = vmul.f32 %v10232_v29, %v253_v11 }
 0x15a   :  { %8149 = vmatmul.mubr.bf16.gmra.mrb[8].mxu1 %v342_v9  ;;  %v10322_v19 = vadd.f32 %v10239_v39, %v274_v16  ;;  %v254_v17 = vmul.f32 %v9109_v33, %v10170_v28 }
 0x15b   :  { %v10330_v21 = vadd.f32 %v10239_v39, %v275_v40 }
 0x15c   :  { %15462 = vst [vmem:[#allocation17_spill] sm:$0xff] %v10322_v19  ;;  %v343_v27 = vpack.c.bf16 %v10322_v19, %v10319_v18  ;;  %v276_v20 = vmul.f32 %v10232_v29, %v254_v17  ;;  %v10342_v29 = vshrl.u32 %v315_v47, 7 }
 0x15d   :  { %15463 = vst [vmem:[#allocation18_spill] sm:$0xff] %v10330_v21 }
 0x15e   :  { %585 = vmatmul.mubr.bf16.gmra.mrb[12].mxu0 %v340_v54  ;;  %8152 = vmatprep.mubr.bf16.mxu1 %v343_v27  ;;  %v10333_v22 = vadd.f32 %v10239_v39, %v276_v20  ;;  %15465 = vst [vmem:[#allocation20_spill] sm:$0xff] %v10342_v29  ;;  %v10345_v39 = vsub.s32 0, %v10342_v29  ;;  %v10353_v12 = vsub.s32 1, %v10342_v29  ;;  %v15189_v47 = vsub.s32 2, %v10342_v29 }
 0x15f   :  { %594 = vmatprep.mubr.bf16.mxu0 %v15190_v46 }
 0x160   :  { %15464 = vst [vmem:[#allocation19_spill] sm:$0xff] %v10333_v22  ;;  %v344_v28 = vpack.c.bf16 %v10333_v22, %v10330_v21  ;;  %15466 = vst [vmem:[#allocation21_spill] sm:$0xff] %v10345_v39  ;;  %v10356_v13 = vrot.slane %v377_v23, %v10345_v39  ;;  %v10361_v26 = vrot.slane %v377_v23, %v10353_v12 }
 0x161   :  { %15467 = vst [vmem:[#allocation22_spill] sm:$0xff] %v10353_v12  ;;  %v10372_v35 = vrot.slane %v377_v23, %v15189_v47 }
 0x162   :  { %8153 = vmatmul.mubr.bf16.gmra.mrb[12].mxu1 %v344_v28 }
 0x166   :  { %595 = vmatmul.mubr.bf16.gmra.mrb[16].mxu0 %v341_v63 }
 0x167   :  { %604 = vmatprep.mubr.bf16.mxu0 %v15190_v46 }
 0x16e   :  { %605 = vmatmul.mubr.bf16.gmra.mrb[20].mxu0 %v342_v9 }
 0x16f   :  { %614 = vmatprep.mubr.bf16.mxu0 %v15190_v46 }
 0x176   :  { %615 = vmatmul.mubr.bf16.gmra.mrb[24].mxu0 %v343_v27 }
 0x177   :  { %624 = vmatprep.mubr.bf16.mxu0 %v15190_v46 }
 0x17e   :  { %625 = vmatmul.mubr.bf16.gmra.mrb[28].mxu0 %v344_v28 }
 0x219   :  { %v556_v41 = vpop.f32.mrb[0].mxu0 }
 0x21a   :  { %v557_v48 = vadd.f32 %v556_v41, %v10356_v13  ;;  %v558_v15 = vpop.f32.mrb[1].mxu0 }
 0x21b   :  { %v560_v36 = vpop.f32.mrb[2].mxu0  ;;  %v559_v50 = vadd.f32 %v558_v15, %v10361_v26 }
 0x21c   :  { %v561_v37 = vadd.f32 %v560_v36, %v10356_v13  ;;  %v562_v24 = vpop.f32.mrb[3].mxu0  ;;  %v740_v44 = vmul.f32 %v10364_v30, %v557_v48  ;;  %v1037_v51 = vmul.f32 %v10367_v31, %v557_v48  ;;  %v10380_v56 = vmul.f32 %v10226_v53, %v557_v48 }
 0x21d   :  { %v563_v38 = vadd.f32 %v562_v24, %v10361_v26  ;;  %v8142_v43 = vpop.f32.mrb[0].mxu1  ;;  %v10396_v63 = vmul.f32 %v10223_v52, %v557_v48 }
 0x21e   :  { %15470 = vst [vmem:[#allocation25_spill] sm:$0xff] %v10380_v56  ;;  %v10383_v45 = vadd.f32 %v8142_v43, %v10372_v35  ;;  %v669_v54 = vpop.f32.mrb[1].mxu1  ;;  %v741_v32 = vmul.f32 %v10364_v30, %v561_v37  ;;  %v1038_v55 = vmul.f32 %v10367_v31, %v561_v37  ;;  %v10388_v58 = vmul.f32 %v10226_v53, %v561_v37 }
 0x21f   :  { %v10390_v59 = vpack.c.bf16 %v563_v38, %v559_v50  ;;  %v10393_v25 = vadd.f32 %v669_v54, %v10372_v35  ;;  %v8143_v3 = vpop.f32.mrb[2].mxu1  ;;  %15472 = vst [vmem:[#allocation27_spill] sm:$0xff] %v10396_v63  ;;  %v10399_v0 = vmul.f32 %v10223_v52, %v561_v37 }
 0x220   :  { %15471 = vst [vmem:[#allocation26_spill] sm:$0xff] %v10388_v58  ;;  %v10402_v1 = vadd.f32 %v8143_v3, %v10372_v35  ;;  %v672_v5 = vpop.f32.mrb[3].mxu1  ;;  %v756_v7 = vpack.c.bf16 %v741_v32, %v740_v44  ;;  %v1053_v4 = vpack.c.bf16 %v1038_v55, %v1037_v51  ;;  %v1304_v11 = vmul.f32 %v10367_v31, %v10383_v45 }
 0x221   :  { %15473 = vst [vmem:[#allocation28_spill] sm:$0xff] %v10399_v0  ;;  %v10407_v9 = vadd.f32 %v672_v5, %v10372_v35  ;;  %v566_v16 = vpop.f32.mrb[4].mxu0  ;;  %8156 = vmatprep.subr.bf16.mxu0 %v10390_v59  ;;  %8188 = vmatprep.subr.bf16.mxu1 %v10390_v59  ;;  %v1302_v33 = vmul.f32 %v10367_v31, %v10393_v25 }
 0x222   :  { %v567_v40 = vadd.f32 %v566_v16, %v10356_v13  ;;  %v568_v27 = vpop.f32.mrb[5].mxu0  ;;  %8157 = vmatpush3.bf16.xpose.msra.mxu0 %v10390_v59  ;;  %8172 = vmatprep.mubr.bf16.mxu0 %v756_v7  ;;  %v1305_v20 = vmul.f32 %v10367_v31, %v10402_v1  ;;  %v1005_v28 = vmul.f32 %v10364_v30, %v10393_v25 }
 0x223   :  { %v569_v23 = vadd.f32 %v568_v27, %v10361_v26  ;;  %8189 = vmatpush3.bf16.xpose.msra.mxu1 %v10390_v59  ;;  %8204 = vmatprep.mubr.bf16.mxu1 %v1053_v4  ;;  %v570_v41 = vpop.f32.mrb[6].mxu0  ;;  %v1303_v48 = vmul.f32 %v10367_v31, %v10407_v9  ;;  %v1006_v15 = vmul.f32 %v10364_v30, %v10407_v9 }
 0x224   :  { %v10428_v36 = vmul.f32 %v10364_v30, %v567_v40  ;;  %v10431_v50 = vmul.f32 %v10367_v31, %v567_v40  ;;  %v10434_v37 = vmul.f32 %v10226_v53, %v567_v40  ;;  %v10437_v24 = vmul.f32 %v10223_v52, %v567_v40  ;;  %v572_v38 = vpop.f32.mrb[7].mxu0 }
 0x225   :  { %v571_v43 = vadd.f32 %v570_v41, %v10356_v13  ;;  %v573_v44 = vadd.f32 %v572_v38, %v10361_v26  ;;  %v8146_v51 = vpop.f32.mrb[4].mxu1  ;;  %v10441_v54 = vpack.c.bf16 %v1303_v48, %v1302_v33  ;;  %v10443_v32 = vpack.c.bf16 %v1305_v20, %v1304_v11 }
 0x226   :  { %15474 = vst [vmem:[#allocation29_spill] sm:$0xff] %v10434_v37  ;;  %15475 = vst [vmem:[#allocation30_spill] sm:$0xff] %v10437_v24  ;;  %v10446_v55 = vadd.f32 %v8146_v51, %v10372_v35  ;;  %v685_v3 = vpop.f32.mrb[5].mxu1  ;;  %v10448_v5 = vpack.c.bf16 %v1006_v15, %v1005_v28  ;;  %v10454_v4 = vmul.f32 %v10364_v30, %v10383_v45 }
 0x227   :  { %v10457_v16 = vmul.f32 %v10364_v30, %v571_v43  ;;  %v10460_v33 = vmul.f32 %v10367_v31, %v571_v43  ;;  %v10463_v11 = vmul.f32 %v10226_v53, %v571_v43  ;;  %v10466_v40 = vmul.f32 %v10223_v52, %v571_v43  ;;  %v8147_v27 = vpop.f32.mrb[6].mxu1 }
 0x228   :  { %15476 = vst [vmem:[#allocation31_spill] sm:$0xff] %v10448_v5  ;;  %v10468_v20 = vpack.c.bf16 %v573_v44, %v569_v23  ;;  %v10471_v28 = vadd.f32 %v685_v3, %v10372_v35  ;;  %v10474_v41 = vadd.f32 %v8147_v27, %v10372_v35  ;;  %v688_v48 = vpop.f32.mrb[7].mxu1  ;;  %v1308_v15 = vmul.f32 %v10367_v31, %v10446_v55 }
 0x229   :  { %15477 = vst [vmem:[#allocation32_spill] sm:$0xff] %v10463_v11  ;;  %15478 = vst [vmem:[#allocation33_spill] sm:$0xff] %v10466_v40  ;;  %v576_v51 = vpop.f32.mrb[8].mxu0  ;;  %v10487_v3 = vadd.f32 %v688_v48, %v10372_v35 }
 0x22a   :  { %v577_v27 = vadd.f32 %v576_v51, %v10356_v13  ;;  %8158 = vmatprep.subr.bf16.mxu0 %v10468_v20  ;;  %8190 = vmatprep.subr.bf16.mxu1 %v10468_v20  ;;  %v578_v47 = vpop.f32.mrb[9].mxu0  ;;  %v1306_v46 = vmul.f32 %v10367_v31, %v10471_v28  ;;  %v1309_v48 = vmul.f32 %v10367_v31, %v10474_v41 }
 0x22b   :  { %v579_v7 = vadd.f32 %v578_v47, %v10361_v26  ;;  %8159 = vmatpush3.bf16.xpose.msra.mxu0 %v10468_v20  ;;  %8191 = vmatpush3.bf16.xpose.msra.mxu1 %v10468_v20  ;;  %v580_v44 = vpop.f32.mrb[10].mxu0  ;;  %v1008_v51 = vmul.f32 %v10364_v30, %v10402_v1  ;;  %v1307_v47 = vmul.f32 %v10367_v31, %v10487_v3 }
 0x22c   :  { %v581_v23 = vadd.f32 %v580_v44, %v10356_v13  ;;  %v582_v17 = vpop.f32.mrb[11].mxu0  ;;  %v10503_v43 = vmul.f32 %v10364_v30, %v577_v27  ;;  %v10506_v38 = vmul.f32 %v10367_v31, %v577_v27  ;;  %v10511_v39 = vpack.c.bf16 %v1309_v48, %v1308_v15 }
 0x22d   :  { %v583_v29 = vadd.f32 %v582_v17, %v10361_v26  ;;  %v8150_v12 = vpop.f32.mrb[8].mxu1  ;;  %v10514_v22 = vmul.f32 %v10226_v53, %v577_v27  ;;  %v10517_v44 = vmul.f32 %v10223_v52, %v577_v27  ;;  %v10528_v17 = vpack.c.bf16 %v1307_v47, %v1306_v46 }
 0x22e   :  { %15479 = vst [vmem:[#allocation34_spill] sm:$0xff] %v10511_v39  ;;  %v10520_v21 = vadd.f32 %v8150_v12, %v10372_v35  ;;  %v701_v19 = vpop.f32.mrb[9].mxu1  ;;  %v10523_v18 = vmul.f32 %v10364_v30, %v581_v23  ;;  %v10526_v6 = vmul.f32 %v10367_v31, %v581_v23  ;;  %v10536_v27 = vmul.f32 %v10226_v53, %v581_v23 }
 0x22f   :  { %15480 = vst [vmem:[#allocation35_spill] sm:$0xff] %v10514_v22  ;;  %15481 = vst [vmem:[#allocation36_spill] sm:$0xff] %v10517_v44  ;;  %v10530_v15 = vpack.c.bf16 %v583_v29, %v579_v7  ;;  %v10533_v48 = vadd.f32 %v701_v19, %v10372_v35  ;;  %v8151_v2 = vpop.f32.mrb[10].mxu1  ;;  %v10539_v12 = vmul.f32 %v10223_v52, %v581_v23 }
 0x230   :  { %15483 = vst [vmem:[#allocation38_spill] sm:$0xff] %v10536_v27  ;;  %v10542_v57 = vadd.f32 %v8151_v2, %v10372_v35  ;;  %v704_v62 = vpop.f32.mrb[11].mxu1  ;;  %v1312_v19 = vmul.f32 %v10367_v31, %v10520_v21  ;;  %v10565_v42 = vpack.c.bf16 %v1008_v51, %v10454_v4  ;;  %v1009_v23 = vmul.f32 %v10364_v30, %v10471_v28 }
 0x231   :  { %15482 = vst [vmem:[#allocation37_spill] sm:$0xff] %v10530_v15  ;;  %15484 = vst [vmem:[#allocation39_spill] sm:$0xff] %v10539_v12  ;;  %v10551_v7 = vadd.f32 %v704_v62, %v10372_v35  ;;  %v586_v47 = vpop.f32.mrb[12].mxu0  ;;  %8160 = vmatprep.subr.bf16.mxu0 %v10530_v15  ;;  %8192 = vmatprep.subr.bf16.mxu1 %v10530_v15  ;;  %v1310_v2 = vmul.f32 %v10367_v31, %v10533_v48 }
 0x232   :  { %v587_v46 = vadd.f32 %v586_v47, %v10356_v13  ;;  %v588_v29 = vpop.f32.mrb[13].mxu0  ;;  %v1313_v49 = vmul.f32 %v10367_v31, %v10542_v57  ;;  %15485 = vst [vmem:[#allocation40_spill] sm:$0xff] %v10565_v42 }
 0x233   :  { %v589_v14 = vadd.f32 %v588_v29, %v10361_v26  ;;  %8161 = vmatpush3.bf16.xpose.msra.mxu0 %v10530_v15  ;;  %8193 = vmatpush3.bf16.xpose.msra.mxu1 %v10530_v15  ;;  %v590_v34 = vpop.f32.mrb[14].mxu0  ;;  %v1311_v47 = vmul.f32 %v10367_v31, %v10551_v7 }
 0x234   :  { %v591_v10 = vadd.f32 %v590_v34, %v10356_v13  ;;  %v592_v8 = vpop.f32.mrb[15].mxu0  ;;  %v10576_v62 = vmul.f32 %v10364_v30, %v587_v46  ;;  %v10579_v4 = vmul.f32 %v10367_v31, %v587_v46  ;;  %v10581_v51 = vpack.c.bf16 %v1313_v49, %v1312_v19 }
 0x235   :  { %v593_v29 = vadd.f32 %v592_v8, %v10361_v26  ;;  %v8154_v61 = vpop.f32.mrb[12].mxu1  ;;  %v10584_v60 = vpack.c.bf16 %v1311_v47, %v1310_v2  ;;  %v10587_v42 = vmul.f32 %v10226_v53, %v587_v46  ;;  %v10590_v44 = vmul.f32 %v10223_v52, %v587_v46 }
 0x236   :  { %15486 = vst [vmem:[#allocation41_spill] sm:$0xff] %v10581_v51  ;;  %v10593_v34 = vadd.f32 %v8154_v61, %v10372_v35  ;;  %v717_v12 = vpop.f32.mrb[13].mxu1  ;;  %v10596_v24 = vmul.f32 %v10364_v30, %v591_v10  ;;  %v10599_v49 = vmul.f32 %v10367_v31, %v591_v10  ;;  %v10602_v8 = vmul.f32 %v10226_v53, %v591_v10 }
 0x237   :  { %15487 = vst [vmem:[#allocation42_spill] sm:$0xff] %v10584_v60  ;;  %15488 = vst [vmem:[#allocation43_spill] sm:$0xff] %v10587_v42  ;;  %v10604_v19 = vpack.c.bf16 %v593_v29, %v589_v14  ;;  %v10607_v2 = vadd.f32 %v717_v12, %v10372_v35  ;;  %v8155_v46 = vpop.f32.mrb[14].mxu1  ;;  %v10610_v47 = vmul.f32 %v10223_v52, %v591_v10 }
 0x238   :  { %15489 = vst [vmem:[#allocation44_spill] sm:$0xff] %v10590_v44  ;;  %15490 = vst [vmem:[#allocation45_spill] sm:$0xff] %v10602_v8  ;;  %v1010_v61 = vmul.f32 %v10364_v30, %v10487_v3  ;;  %v10615_v40 = vadd.f32 %v8155_v46, %v10372_v35  ;;  %v720_v63 = vpop.f32.mrb[15].mxu1  ;;  %v1316_v12 = vmul.f32 %v10367_v31, %v10593_v34 }
 0x239   :  { %15491 = vst [vmem:[#allocation46_spill] sm:$0xff] %v10604_v19  ;;  %15492 = vst [vmem:[#allocation47_spill] sm:$0xff] %v10610_v47  ;;  %v10624_v29 = vadd.f32 %v720_v63, %v10372_v35  ;;  %v596_v10 = vpop.f32.mrb[16].mxu0  ;;  %8162 = vmatprep.subr.bf16.mxu0 %v10604_v19  ;;  %8194 = vmatprep.subr.bf16.mxu1 %v10604_v19  ;;  %v1314_v46 = vmul.f32 %v10367_v31, %v10607_v2 }
 0x23a   :  { %v597_v22 = vadd.f32 %v596_v10, %v10356_v13  ;;  %v598_v14 = vpop.f32.mrb[17].mxu0  ;;  %v1317_v27 = vmul.f32 %v10367_v31, %v10615_v40  ;;  %v10637_v63 = vpack.c.bf16 %v1010_v61, %v1009_v23  ;;  %v1011_v10 = vmul.f32 %v10364_v30, %v10446_v55 }
 0x23b   :  { %v599_v37 = vadd.f32 %v598_v14, %v10361_v26  ;;  %8163 = vmatpush3.bf16.xpose.msra.mxu0 %v10604_v19  ;;  %8195 = vmatpush3.bf16.xpose.msra.mxu1 %v10604_v19  ;;  %v600_v11 = vpop.f32.mrb[18].mxu0  ;;  %v1315_v0 = vmul.f32 %v10367_v31, %v10624_v29 }
 0x23c   :  { %15493 = vst [vmem:[#allocation48_spill] sm:$0xff] %v10637_v63  ;;  %v601_v42 = vadd.f32 %v600_v11, %v10356_v13  ;;  %v602_v8 = vpop.f32.mrb[19].mxu0  ;;  %v10648_v35 = vmul.f32 %v10364_v30, %v597_v22  ;;  %v10651_v23 = vmul.f32 %v10367_v31, %v597_v22  ;;  %v10653_v61 = vpack.c.bf16 %v1317_v27, %v1316_v12 }
 0x23d   :  { %v603_v14 = vadd.f32 %v602_v8, %v10361_v26  ;;  %v10656_v63 = vpack.c.bf16 %v1315_v0, %v1314_v46  ;;  %v10659_v44 = vmul.f32 %v10226_v53, %v597_v22  ;;  %v10662_v47 = vmul.f32 %v10223_v52, %v597_v22 }
 0x23e   :  { %15494 = vst [vmem:[#allocation49_spill] sm:$0xff] %v10653_v61  ;;  %v10665_v11 = vmul.f32 %v10364_v30, %v601_v42  ;;  %v10668_v5 = vmul.f32 %v10367_v31, %v601_v42  ;;  %v10671_v56 = vmul.f32 %v10226_v53, %v601_v42  ;;  %v10674_v27 = vmul.f32 %v10223_v52, %v601_v42 }
 0x23f   :  { %15495 = vst [vmem:[#allocation50_spill] sm:$0xff] %v10656_v63  ;;  %15496 = vst [vmem:[#allocation51_spill] sm:$0xff] %v10659_v44  ;;  %v10676_v0 = vpack.c.bf16 %v603_v14, %v599_v37  ;;  %v1012_v8 = vmul.f32 %v10364_v30, %v10474_v41  ;;  %v1013_v22 = vmul.f32 %v10364_v30, %v10533_v48 }
 0x240   :  { %15497 = vst [vmem:[#allocation52_spill] sm:$0xff] %v10662_v47  ;;  %15498 = vst [vmem:[#allocation53_spill] sm:$0xff] %v10671_v56  ;;  %v1014_v12 = vmul.f32 %v10364_v30, %v10551_v7  ;;  %v1015_v46 = vmul.f32 %v10364_v30, %v10520_v21  ;;  %v1016_v42 = vmul.f32 %v10364_v30, %v10542_v57 }
 0x241   :  { %15499 = vst [vmem:[#allocation54_spill] sm:$0xff] %v10674_v27  ;;  %15500 = vst [vmem:[#allocation55_spill] sm:$0xff] %v10676_v0  ;;  %v606_v14 = vpop.f32.mrb[20].mxu0  ;;  %8164 = vmatprep.subr.bf16.mxu0 %v10676_v0  ;;  %8196 = vmatprep.subr.bf16.mxu1 %v10676_v0  ;;  %v10694_v58 = vpack.c.bf16 %v1012_v8, %v1011_v10  ;;  %v1017_v37 = vmul.f32 %v10364_v30, %v10607_v2 }
 0x242   :  { %v10696_v63 = vpack.c.bf16 %v1014_v12, %v1013_v22  ;;  %v607_v61 = vadd.f32 %v606_v14, %v10356_v13  ;;  %v608_v19 = vpop.f32.mrb[21].mxu0  ;;  %v1018_v47 = vmul.f32 %v10364_v30, %v10624_v29  ;;  %v1019_v22 = vmul.f32 %v10364_v30, %v10593_v34 }
 0x243   :  { %15501 = vst [vmem:[#allocation56_spill] sm:$0xff] %v10694_v58  ;;  %v609_v10 = vadd.f32 %v608_v19, %v10361_v26  ;;  %8165 = vmatpush3.bf16.xpose.msra.mxu0 %v10676_v0  ;;  %8197 = vmatpush3.bf16.xpose.msra.mxu1 %v10676_v0  ;;  %v610_v8 = vpop.f32.mrb[22].mxu0  ;;  %v1020_v12 = vmul.f32 %v10364_v30, %v10615_v40 }
 0x244   :  { %15502 = vst [vmem:[#allocation57_spill] sm:$0xff] %v10696_v63  ;;  %v611_v14 = vadd.f32 %v610_v8, %v10356_v13  ;;  %v612_v63 = vpop.f32.mrb[23].mxu0  ;;  %v10716_v58 = vmul.f32 %v10364_v30, %v607_v61  ;;  %v10719_v27 = vmul.f32 %v10367_v31, %v607_v61  ;;  %v10722_v19 = vmul.f32 %v10226_v53, %v607_v61 }
 0x245   :  { %v613_v44 = vadd.f32 %v612_v63, %v10361_v26  ;;  %v10726_v56 = vmul.f32 %v10223_v52, %v607_v61  ;;  %v10728_v0 = vpack.c.bf16 %v1016_v42, %v1015_v46  ;;  %v10730_v51 = vpack.c.bf16 %v1018_v47, %v1017_v37 }
 0x246   :  { %15503 = vst [vmem:[#allocation58_spill] sm:$0xff] %v10719_v27  ;;  %15504 = vst [vmem:[#allocation59_spill] sm:$0xff] %v10722_v19  ;;  %v10733_v8 = vmul.f32 %v10364_v30, %v611_v14  ;;  %v10736_v60 = vmul.f32 %v10367_v31, %v611_v14  ;;  %v10739_v15 = vmul.f32 %v10226_v53, %v611_v14 }
 0x247   :  { %15505 = vst [vmem:[#allocation60_spill] sm:$0xff] %v10726_v56  ;;  %15506 = vst [vmem:[#allocation61_spill] sm:$0xff] %v10728_v0  ;;  %v10742_v39 = vmul.f32 %v10223_v52, %v611_v14  ;;  %v10744_v63 = vpack.c.bf16 %v613_v44, %v609_v10  ;;  %v10746_v61 = vpack.c.bf16 %v1020_v12, %v1019_v22 }
 0x248   :  { %15507 = vst [vmem:[#allocation62_spill] sm:$0xff] %v10730_v51  ;;  %15508 = vst [vmem:[#allocation63_spill] sm:$0xff] %v10736_v60  ;;  %v1793_v47 = vmul.f32 %v10226_v53, %v10393_v25  ;;  %v1794_v46 = vmul.f32 %v10226_v53, %v10407_v9  ;;  %v1795_v12 = vmul.f32 %v10226_v53, %v10383_v45 }
 0x249   :  { %15509 = vst [vmem:[#allocation64_spill] sm:$0xff] %v10739_v15  ;;  %15510 = vst [vmem:[#allocation65_spill] sm:$0xff] %v10742_v39  ;;  %v616_v10 = vpop.f32.mrb[24].mxu0  ;;  %8166 = vmatprep.subr.bf16.mxu0 %v10744_v63  ;;  %8198 = vmatprep.subr.bf16.mxu1 %v10744_v63  ;;  %v1796_v42 = vmul.f32 %v10226_v53, %v10402_v1  ;;  %v1797_v14 = vmul.f32 %v10226_v53, %v10471_v28 }
 0x24a   :  { %15511 = vst [vmem:[#allocation66_spill] sm:$0xff] %v10744_v63  ;;  %15512 = vst [vmem:[#allocation67_spill] sm:$0xff] %v10746_v61  ;;  %v10762_v22 = vpack.c.bf16 %v1794_v46, %v1793_v47  ;;  %v617_v37 = vadd.f32 %v616_v10, %v10356_v13  ;;  %v618_v61 = vpop.f32.mrb[25].mxu0  ;;  %v1798_v44 = vmul.f32 %v10226_v53, %v10487_v3 }
 0x24b   :  { %v1799_v51 = vmul.f32 %v10226_v53, %v10446_v55  ;;  %v619_v47 = vadd.f32 %v618_v61, %v10361_v26  ;;  %8167 = vmatpush3.bf16.xpose.msra.mxu0 %v10744_v63  ;;  %8199 = vmatpush3.bf16.xpose.msra.mxu1 %v10744_v63  ;;  %v620_v46 = vpop.f32.mrb[26].mxu0  ;;  %v1800_v10 = vmul.f32 %v10226_v53, %v10474_v41 }
 0x24c   :  { %15513 = vst [vmem:[#allocation68_spill] sm:$0xff] %v10762_v22  ;;  %v10778_v22 = vpack.c.bf16 %v1796_v42, %v1795_v12  ;;  %v621_v0 = vadd.f32 %v620_v46, %v10356_v13  ;;  %v622_v56 = vpop.f32.mrb[27].mxu0  ;;  %v10784_v39 = vmul.f32 %v10364_v30, %v617_v37  ;;  %v10787_v19 = vmul.f32 %v10367_v31, %v617_v37 }
 0x24d   :  { %v10790_v61 = vmul.f32 %v10226_v53, %v617_v37  ;;  %v623_v15 = vadd.f32 %v622_v56, %v10361_v26  ;;  %v10794_v42 = vmul.f32 %v10223_v52, %v617_v37  ;;  %v10796_v12 = vpack.c.bf16 %v1798_v44, %v1797_v14 }
 0x24e   :  { %15514 = vst [vmem:[#allocation69_spill] sm:$0xff] %v10778_v22  ;;  %15515 = vst [vmem:[#allocation70_spill] sm:$0xff] %v10784_v39  ;;  %v10798_v22 = vpack.c.bf16 %v1800_v10, %v1799_v51  ;;  %v10801_v46 = vmul.f32 %v10364_v30, %v621_v0  ;;  %v10804_v63 = vmul.f32 %v10367_v31, %v621_v0 }
 0x24f   :  { %15516 = vst [vmem:[#allocation71_spill] sm:$0xff] %v10787_v19  ;;  %15517 = vst [vmem:[#allocation72_spill] sm:$0xff] %v10790_v61  ;;  %v10807_v27 = vmul.f32 %v10226_v53, %v621_v0  ;;  %v10810_v60 = vmul.f32 %v10223_v52, %v621_v0  ;;  %v10812_v56 = vpack.c.bf16 %v623_v15, %v619_v47 }
 0x250   :  { %15518 = vst [vmem:[#allocation73_spill] sm:$0xff] %v10794_v42  ;;  %15519 = vst [vmem:[#allocation74_spill] sm:$0xff] %v10796_v12  ;;  %v1801_v37 = vmul.f32 %v10226_v53, %v10533_v48  ;;  %v1802_v51 = vmul.f32 %v10226_v53, %v10551_v7  ;;  %v1803_v14 = vmul.f32 %v10226_v53, %v10520_v21 }
 0x251   :  { %15520 = vst [vmem:[#allocation75_spill] sm:$0xff] %v10798_v22  ;;  %15521 = vst [vmem:[#allocation76_spill] sm:$0xff] %v10804_v63  ;;  %v626_v47 = vpop.f32.mrb[28].mxu0  ;;  %8168 = vmatprep.subr.bf16.mxu0 %v10812_v56  ;;  %8200 = vmatprep.subr.bf16.mxu1 %v10812_v56  ;;  %v1804_v12 = vmul.f32 %v10226_v53, %v10542_v57  ;;  %v1805_v44 = vmul.f32 %v10226_v53, %v10607_v2 }
 0x252   :  { %15522 = vst [vmem:[#allocation77_spill] sm:$0xff] %v10807_v27  ;;  %15523 = vst [vmem:[#allocation78_spill] sm:$0xff] %v10810_v60  ;;  %v10830_v22 = vpack.c.bf16 %v1802_v51, %v1801_v37  ;;  %v627_v10 = vadd.f32 %v626_v47, %v10356_v13  ;;  %v628_v19 = vpop.f32.mrb[29].mxu0  ;;  %v1806_v0 = vmul.f32 %v10226_v53, %v10624_v29 }
 0x253   :  { %15524 = vst [vmem:[#allocation79_spill] sm:$0xff] %v10812_v56  ;;  %v1807_v15 = vmul.f32 %v10226_v53, %v10593_v34  ;;  %v1808_v42 = vmul.f32 %v10226_v53, %v10615_v40  ;;  %v629_v37 = vadd.f32 %v628_v19, %v10361_v26  ;;  %8169 = vmatpush3.bf16.xpose.msra.mxu0 %v10812_v56  ;;  %v630_v51 = vpop.f32.mrb[30].mxu0 }
 0x254   :  { %15525 = vst [vmem:[#allocation80_spill] sm:$0xff] %v10830_v22  ;;  %8201 = vmatpush3.bf16.xpose.msra.mxu1 %v10812_v56  ;;  %v10846_v22 = vpack.c.bf16 %v1804_v12, %v1803_v14  ;;  %v2203_v47 = vmul.f32 %v10223_v52, %v10393_v25  ;;  %v631_v60 = vadd.f32 %v630_v51, %v10356_v13  ;;  %v632_v61 = vpop.f32.mrb[31].mxu0 }
 0x255   :  { %v10852_v27 = vmul.f32 %v10364_v30, %v627_v10  ;;  %v10855_v63 = vmul.f32 %v10367_v31, %v627_v10  ;;  %v10858_v19 = vmul.f32 %v10226_v53, %v627_v10  ;;  %v633_v56 = vadd.f32 %v632_v61, %v10361_v26 }
 0x256   :  { %15526 = vst [vmem:[#allocation81_spill] sm:$0xff] %v10846_v22  ;;  %v10862_v12 = vmul.f32 %v10223_v52, %v627_v10  ;;  %v10864_v14 = vpack.c.bf16 %v1806_v0, %v1805_v44  ;;  %v10866_v25 = vpack.c.bf16 %v1808_v42, %v1807_v15  ;;  %v10869_v13 = vmul.f32 %v10364_v30, %v631_v60 }
 0x257   :  { %v10872_v51 = vmul.f32 %v10367_v31, %v631_v60  ;;  %v10875_v22 = vmul.f32 %v10226_v53, %v631_v60  ;;  %v10878_v39 = vmul.f32 %v10223_v52, %v631_v60  ;;  %v10880_v26 = vpack.c.bf16 %v633_v56, %v629_v37  ;;  %v11254_v53 = vld [vmem:[%s15173_s1 + $0x60] sm:$0xff] }
 0x258   :  { %15527 = vst [vmem:[#allocation82_spill] sm:$0xff] %v10864_v14  ;;  %15528 = vst [vmem:[#allocation83_spill] sm:$0xff] %v10866_v25  ;;  %v2204_v61 = vmul.f32 %v10223_v52, %v10407_v9  ;;  %v2205_v42 = vmul.f32 %v10223_v52, %v10383_v45  ;;  %v2206_v44 = vmul.f32 %v10223_v52, %v10402_v1 }
 0x259   :  { %v763_v10 = vpack.c.bf16 %v10869_v13, %v10852_v27  ;;  %v1060_v0 = vpack.c.bf16 %v10872_v51, %v10855_v63  ;;  %v1551_v60 = vpack.c.bf16 %v10875_v22, %v10858_v19  ;;  %v1961_v56 = vpack.c.bf16 %v10878_v39, %v10862_v12  ;;  %8170 = vmatprep.subr.bf16.mxu0 %v10880_v26  ;;  %v15589_v22 = vld [vmem:[#allocation33_spill] sm:$0xff]  ;;  %v15590_v19 = vld [vmem:[#allocation30_spill] sm:$0xff] }
 0x25a   :  { %8202 = vmatprep.subr.bf16.mxu1 %v10880_v26  ;;  %v10898_v45 = vpack.c.bf16 %v2204_v61, %v2203_v47  ;;  %v10900_v9 = vpack.c.bf16 %v2206_v44, %v2205_v42  ;;  %v2207_v1 = vmul.f32 %v10223_v52, %v10471_v28  ;;  %v2208_v27 = vmul.f32 %v10223_v52, %v10487_v3 }
 0x25b   :  { %v2209_v63 = vmul.f32 %v10223_v52, %v10446_v55  ;;  %v2210_v15 = vmul.f32 %v10223_v52, %v10474_v41  ;;  %v2211_v37 = vmul.f32 %v10223_v52, %v10533_v48  ;;  %8171 = vmatpush3.bf16.xpose.msra.mxu0 %v10880_v26  ;;  %v2212_v47 = vmul.f32 %v10223_v52, %v10551_v7 }
 0x25c   :  { %15529 = vst [vmem:[#allocation84_spill] sm:$0xff] %v10898_v45  ;;  %15530 = vst [vmem:[#allocation85_spill] sm:$0xff] %v10900_v9  ;;  %8203 = vmatpush3.bf16.xpose.msra.mxu1 %v10880_v26  ;;  %v2213_v28 = vmul.f32 %v10223_v52, %v10520_v21  ;;  %v2214_v3 = vmul.f32 %v10223_v52, %v10542_v57  ;;  %8220 = vmatprep.subr.bf16.mxu0 %v10441_v54 }
 0x25d   :  { %8284 = vmatprep.subr.bf16.mxu1 %v10390_v59  ;;  %v10922_v55 = vpack.c.bf16 %v2208_v27, %v2207_v1  ;;  %v10924_v41 = vpack.c.bf16 %v2210_v15, %v2209_v63  ;;  %v10926_v48 = vpack.c.bf16 %v2212_v47, %v2211_v37  ;;  %v2215_v7 = vmul.f32 %v10223_v52, %v10607_v2  ;;  %v15564_v1 = vld [vmem:[#allocation55_spill] sm:$0xff]  ;;  %v15568_v63 = vld [vmem:[#allocation32_spill] sm:$0xff]  ;;  %v15569_v15 = vld [vmem:[#allocation29_spill] sm:$0xff] }
 0x25e   :  { %v10928_v13 = vpack.c.bf16 %v2214_v3, %v2213_v28  ;;  %v2216_v21 = vmul.f32 %v10223_v52, %v10624_v29  ;;  %v2217_v57 = vmul.f32 %v10223_v52, %v10593_v34  ;;  %v2218_v51 = vmul.f32 %v10223_v52, %v10615_v40  ;;  %v15550_v40 = vld [vmem:[#allocation58_spill] sm:$0xff]  ;;  %v15565_v27 = vld [vmem:[#allocation31_spill] sm:$0xff] }
 0x25f   :  { %15531 = vst [vmem:[#allocation86_spill] sm:$0xff] %v10922_v55  ;;  %15532 = vst [vmem:[#allocation87_spill] sm:$0xff] %v10924_v41  ;;  %v15537_v44 = vpack.c.bf16 %v10457_v16, %v10428_v36  ;;  %v15538_v2 = vpack.c.bf16 %v10460_v33, %v10431_v50  ;;  %v15539_v29 = vpack.c.bf16 %v10523_v18, %v10503_v43  ;;  %v15549_v33 = vld [vmem:[#allocation63_spill] sm:$0xff]  ;;  %v15571_v47 = vld [vmem:[#allocation38_spill] sm:$0xff] }
 0x260   :  { %15533 = vst [vmem:[#allocation88_spill] sm:$0xff] %v10926_v48  ;;  %15534 = vst [vmem:[#allocation89_spill] sm:$0xff] %v10928_v13  ;;  %v10938_v61 = vpack.c.bf16 %v2216_v21, %v2215_v7  ;;  %v10940_v42 = vpack.c.bf16 %v2218_v51, %v2217_v57  ;;  %v15540_v34 = vpack.c.bf16 %v10526_v6, %v10506_v38  ;;  %v15552_v38 = vld [vmem:[#allocation70_spill] sm:$0xff]  ;;  %v15572_v28 = vld [vmem:[#allocation35_spill] sm:$0xff] }
 0x261   :  { %v15541_v18 = vpack.c.bf16 %v10596_v24, %v10576_v62  ;;  %v15542_v6 = vpack.c.bf16 %v10599_v49, %v10579_v4  ;;  %v15543_v36 = vpack.c.bf16 %v10665_v11, %v10648_v35  ;;  %v15544_v50 = vpack.c.bf16 %v10668_v5, %v10651_v23  ;;  %v15546_v24 = vld [vmem:[#allocation37_spill] sm:$0xff]  ;;  %v15555_v62 = vld [vmem:[#allocation71_spill] sm:$0xff]  ;;  %v15559_v35 = vld [vmem:[#allocation50_spill] sm:$0xff] }
 0x262   :  { %15535 = vst [vmem:[#allocation90_spill] sm:$0xff] %v10938_v61  ;;  %15536 = vst [vmem:[#allocation91_spill] sm:$0xff] %v10940_v42  ;;  %8173 = vmatmul.mubr.bf16.vlgmr.msra.gmra.mrb[32].mxu0 %v15537_v44  ;;  %v15548_v16 = vpack.c.bf16 %v10733_v8, %v10716_v58  ;;  %v15551_v5 = vpack.c.bf16 %v15549_v33, %v15550_v40  ;;  %v15553_v43 = vpack.c.bf16 %v10801_v46, %v15552_v38  ;;  %v15557_v49 = vld [vmem:[#allocation41_spill] sm:$0xff]  ;;  %v15558_v58 = vld [vmem:[#allocation46_spill] sm:$0xff] }
 0x263   :  { %8205 = vmatmul.mubr.bf16.vlgmr.msra.gmra.mrb[16].mxu1 %v15538_v2  ;;  %8176 = vmatprep.mubr.bf16.mxu0 %v15539_v29  ;;  %v15560_v23 = vld [vmem:[#allocation26_spill] sm:$0xff]  ;;  %v15561_v11 = vld [vmem:[#allocation25_spill] sm:$0xff]  ;;  %v15570_v37 = vpack.c.bf16 %v15568_v63, %v15569_v15  ;;  %v15573_v3 = vpack.c.bf16 %v15571_v47, %v15572_v28  ;;  %v15575_v21 = vld [vmem:[#allocation43_spill] sm:$0xff] }
 0x264   :  { %8208 = vmatprep.mubr.bf16.mxu1 %v15540_v34  ;;  %8221 = vmatpush3.bf16.msra.mxu0 %v10441_v54  ;;  %v15545_v54 = vld [vmem:[#allocation34_spill] sm:$0xff]  ;;  %v15562_v8 = vpack.c.bf16 %v15560_v23, %v15561_v11  ;;  %v15563_v46 = vld [vmem:[#allocation49_spill] sm:$0xff]  ;;  %v15578_v44 = vld [vmem:[#allocation51_spill] sm:$0xff]  ;;  %v15607_v23 = vmov 0  }
 0x265   :  { %8285 = vmatpush3.bf16.xpose.msra.mxu1 %v10390_v59  ;;  %8222 = vmatprep.subr.bf16.mxu0 %v10443_v32  ;;  %v15574_v7 = vld [vmem:[#allocation45_spill] sm:$0xff]  ;;  %v15580_v29 = vld [vmem:[#allocation64_spill] sm:$0xff]  ;;  %v15581_v34 = vld [vmem:[#allocation59_spill] sm:$0xff] }
 0x266   :  { %8286 = vmatprep.subr.bf16.mxu1 %v10468_v20  ;;  %v15576_v57 = vpack.c.bf16 %v15574_v7, %v15575_v21  ;;  %v15577_v51 = vld [vmem:[#allocation53_spill] sm:$0xff]  ;;  %v15595_v33 = vld [vmem:[#allocation47_spill] sm:$0xff]  ;;  %v15596_v40 = vld [vmem:[#allocation44_spill] sm:$0xff] }
 0x267   :  { %v15579_v2 = vpack.c.bf16 %v15577_v51, %v15578_v44  ;;  %v15598_v38 = vld [vmem:[#allocation54_spill] sm:$0xff]  ;;  %v11077_v11 = vld [vmem:[%s15173_s1 + $0x10] sm:$0xff]  ;;  %v11107_v7 = vld [vmem:[%s15173_s1 + $0x8] sm:$0xff] }
 0x268   :  { %8223 = vmatpush3.bf16.msra.mxu0 %v10443_v32  ;;  %v15547_v32 = vld [vmem:[#allocation42_spill] sm:$0xff] }
 0x269   :  { %8224 = vmatprep.subr.bf16.mxu0 %v10528_v17  ;;  %v11098_v28 = vld [vmem:[%s15173_s1] sm:$0xff] }
 0x26a   :  { %8177 = vmatmul.mubr.bf16.gmra.mrb[36].mxu0 %v15541_v18  ;;  %v15582_v18 = vpack.c.bf16 %v15580_v29, %v15581_v34 }
 0x26b   :  { %8209 = vmatmul.mubr.bf16.gmra.mrb[20].mxu1 %v15542_v6  ;;  %8180 = vmatprep.mubr.bf16.mxu0 %v15543_v36  ;;  %v15583_v6 = vld [vmem:[#allocation77_spill] sm:$0xff] }
 0x26c   :  { %8212 = vmatprep.mubr.bf16.mxu1 %v15544_v50  ;;  %8225 = vmatpush3.bf16.msra.mxu0 %v10528_v17  ;;  %v15554_v17 = vld [vmem:[#allocation76_spill] sm:$0xff]  ;;  %v15587_v50 = vld [vmem:[#allocation27_spill] sm:$0xff] }
 0x26d   :  { %8287 = vmatpush3.bf16.xpose.msra.mxu1 %v10468_v20  ;;  %8226 = vmatprep.subr.bf16.mxu0 %v15545_v54  ;;  %v15556_v4 = vpack.c.bf16 %v15554_v17, %v15555_v62  ;;  %v15601_v62 = vld [vmem:[#allocation65_spill] sm:$0xff] }
 0x26e   :  { %8288 = vmatprep.subr.bf16.mxu1 %v15546_v24 }
 0x270   :  { %8227 = vmatpush3.bf16.msra.mxu0 %v15545_v54 }
 0x271   :  { %8228 = vmatprep.subr.bf16.mxu0 %v15547_v32 }
 0x272   :  { %8181 = vmatmul.mubr.bf16.gmra.mrb[40].mxu0 %v15548_v16 }
 0x273   :  { %8213 = vmatmul.mubr.bf16.gmra.mrb[24].mxu1 %v15551_v5  ;;  %8184 = vmatprep.mubr.bf16.mxu0 %v15553_v43  ;;  %v15597_v5 = vpack.c.bf16 %v15595_v33, %v15596_v40  ;;  %v15599_v43 = vld [vmem:[#allocation52_spill] sm:$0xff] }
 0x274   :  { %8216 = vmatprep.mubr.bf16.mxu1 %v15556_v4  ;;  %8229 = vmatpush3.bf16.msra.mxu0 %v15547_v32  ;;  %v15593_v32 = vld [vmem:[#allocation36_spill] sm:$0xff]  ;;  %v15600_v17 = vpack.c.bf16 %v15598_v38, %v15599_v43 }
 0x275   :  { %8289 = vmatpush3.bf16.xpose.msra.mxu1 %v15546_v24  ;;  %8230 = vmatprep.subr.bf16.mxu0 %v15557_v49  ;;  %v15602_v4 = vld [vmem:[#allocation60_spill] sm:$0xff] }
 0x276   :  { %8290 = vmatprep.subr.bf16.mxu1 %v15558_v58 }
 0x278   :  { %8231 = vmatpush3.bf16.msra.mxu0 %v15557_v49  ;;  %v15603_v49 = vpack.c.bf16 %v15601_v62, %v15602_v4  ;;  %v11159_v4 = vld [vmem:[%s15173_s1 + $0x28] sm:$0xff] }
 0x279   :  { %8232 = vmatprep.subr.bf16.mxu0 %v15559_v35 }
 0x27a   :  { %8185 = vmatmul.mubr.bf16.gmra.mrb[44].mxu0 %v763_v10  ;;  %v15566_v10 = vld [vmem:[#allocation66_spill] sm:$0xff] }
 0x27b   :  { %8217 = vmatmul.mubr.bf16.gmra.mrb[28].mxu1 %v1060_v0  ;;  %v15567_v0 = vld [vmem:[#allocation79_spill] sm:$0xff] }
 0x27c   :  { %8300 = vmatprep.mubr.bf16.mxu1 %v15562_v8  ;;  %8233 = vmatpush3.bf16.msra.mxu0 %v15559_v35 }
 0x27d   :  { %8291 = vmatpush3.bf16.xpose.msra.mxu1 %v15558_v58  ;;  %8234 = vmatprep.subr.bf16.mxu0 %v15563_v46 }
 0x27e   :  { %8292 = vmatprep.subr.bf16.mxu1 %v15564_v1 }
 0x280   :  { %8235 = vmatpush3.bf16.msra.mxu0 %v15563_v46 }
 0x281   :  { %8252 = vmatprep.subr.bf16.mxu0 %v15565_v27 }
 0x285   :  { %8293 = vmatpush3.bf16.xpose.msra.mxu1 %v15564_v1 }
 0x286   :  { %8294 = vmatprep.subr.bf16.mxu1 %v15566_v10 }
 0x28d   :  { %8295 = vmatpush3.bf16.xpose.msra.mxu1 %v15566_v10 }
 0x28e   :  { %8296 = vmatprep.subr.bf16.mxu1 %v15567_v0 }
 0x295   :  { %8297 = vmatpush3.bf16.xpose.msra.mxu1 %v15567_v0 }
 0x296   :  { %8298 = vmatprep.subr.bf16.mxu1 %v10880_v26 }
 0x29d   :  { %8299 = vmatpush3.bf16.xpose.msra.mxu1 %v10880_v26 }
 0x29e   :  { %8348 = vmatprep.subr.bf16.mxu1 %v10390_v59 }
 0x2a4   :  { %8301 = vmatmul.mubr.bf16.vlgmr.msra.gmra.mrb[32].mxu1 %v15570_v37 }
 0x2a5   :  { %8304 = vmatprep.mubr.bf16.mxu1 %v15573_v3  ;;  %8349 = vmatpush3.bf16.xpose.msra.mxu1 %v10390_v59  ;;  %v15584_v59 = vld [vmem:[#allocation72_spill] sm:$0xff] }
 0x2a6   :  { %8350 = vmatprep.subr.bf16.mxu1 %v10468_v20  ;;  %v15585_v36 = vpack.c.bf16 %v15583_v6, %v15584_v59 }
 0x2ac   :  { %8305 = vmatmul.mubr.bf16.gmra.mrb[36].mxu1 %v15576_v57 }
 0x2ad   :  { %8308 = vmatprep.mubr.bf16.mxu1 %v15579_v2  ;;  %8351 = vmatpush3.bf16.xpose.msra.mxu1 %v10468_v20  ;;  %v15586_v20 = vld [vmem:[#allocation28_spill] sm:$0xff] }
 0x2ae   :  { %8352 = vmatprep.subr.bf16.mxu1 %v15546_v24  ;;  %v15588_v54 = vpack.c.bf16 %v15586_v20, %v15587_v50  ;;  %v11124_v20 = vld [vmem:[%s15173_s1 + $0x30] sm:$0xff] }
 0x2b4   :  { %8309 = vmatmul.mubr.bf16.gmra.mrb[40].mxu1 %v15582_v18 }
 0x2b5   :  { %8312 = vmatprep.mubr.bf16.mxu1 %v15585_v36  ;;  %8353 = vmatpush3.bf16.xpose.msra.mxu1 %v15546_v24  ;;  %v15592_v24 = vld [vmem:[#allocation39_spill] sm:$0xff] }
 0x2b6   :  { %8354 = vmatprep.subr.bf16.mxu1 %v15558_v58  ;;  %v15594_v16 = vpack.c.bf16 %v15592_v24, %v15593_v32 }
 0x2bc   :  { %8313 = vmatmul.mubr.bf16.gmra.mrb[44].mxu1 %v1551_v60  ;;  %v15591_v60 = vpack.c.bf16 %v15589_v22, %v15590_v19 }
 0x2bd   :  { %8355 = vmatpush3.bf16.xpose.msra.mxu1 %v15558_v58  ;;  %8364 = vmatprep.mubr.bf16.mxu1 %v15588_v54  ;;  %v15605_v58 = vld [vmem:[#allocation73_spill] sm:$0xff] }
 0x2be   :  { %8356 = vmatprep.subr.bf16.mxu1 %v15564_v1  ;;  %v11133_v54 = vld [vmem:[%s15173_s1 + $0x38] sm:$0xff] }
 0x2c5   :  { %8357 = vmatpush3.bf16.xpose.msra.mxu1 %v15564_v1  ;;  %v11082_v1 = vld [vmem:[%s15173_s1 + $0x18] sm:$0xff] }
 0x2c6   :  { %8358 = vmatprep.subr.bf16.mxu1 %v15566_v10 }
 0x2cd   :  { %8359 = vmatpush3.bf16.xpose.msra.mxu1 %v15566_v10 }
 0x2ce   :  { %8360 = vmatprep.subr.bf16.mxu1 %v15567_v0 }
 0x2d5   :  { %8361 = vmatpush3.bf16.xpose.msra.mxu1 %v15567_v0 }
 0x2d6   :  { %8362 = vmatprep.subr.bf16.mxu1 %v10880_v26 }
 0x2dd   :  { %8363 = vmatpush3.bf16.xpose.msra.mxu1 %v10880_v26  ;;  %v15604_v26 = vld [vmem:[#allocation78_spill] sm:$0xff] }
 0x2de   :  { %v15606_v35 = vpack.c.bf16 %v15604_v26, %v15605_v58 }
 0x2e4   :  { %8365 = vmatmul.mubr.bf16.vlgmr.msra.gmra.mrb[48].mxu1 %v15591_v60 }
 0x2e5   :  { %8368 = vmatprep.mubr.bf16.mxu1 %v15594_v16 }
 0x2ec   :  { %8369 = vmatmul.mubr.bf16.gmra.mrb[52].mxu1 %v15597_v5 }
 0x2ed   :  { %8372 = vmatprep.mubr.bf16.mxu1 %v15600_v17  ;;  %v11150_v17 = vld [vmem:[%s15173_s1 + $0x20] sm:$0xff] }
 0x2f4   :  { %8373 = vmatmul.mubr.bf16.gmra.mrb[56].mxu1 %v15603_v49 }
 0x2f5   :  { %8376 = vmatprep.mubr.bf16.mxu1 %v15606_v35 }
 0x2fc   :  { %8377 = vmatmul.mubr.bf16.gmra.mrb[60].mxu1 %v1961_v56 }
 0x2fd   :  { %2910 = vmatprep.mubr.bf16.mxu1 %v15607_v23 }
 0x335   :  { %v8174_v8 = vpop.f32.mrb[32].mxu0 }
 0x336   :  { %v8206_v46 = vpop.f32.mrb[16].mxu1  ;;  %v798_v0 = vpop.f32.mrb[33].mxu0  ;;  %v11092_v47 = vadd.f32 %v8174_v8, %v11077_v11 }
 0x337   :  { %v11085_v10 = vadd.f32 %v8206_v46, %v11077_v11  ;;  %v1095_v39 = vpop.f32.mrb[17].mxu1  ;;  %v8175_v12 = vpop.f32.mrb[34].mxu0  ;;  %v11118_v36 = vadd.f32 %v798_v0, %v11098_v28 }
 0x338   :  { %v8207_v56 = vpop.f32.mrb[18].mxu1  ;;  %v801_v15 = vpop.f32.mrb[35].mxu0  ;;  %v11101_v3 = vadd.f32 %v8175_v12, %v11082_v1  ;;  %v11110_v51 = vadd.f32 %v1095_v39, %v11098_v28 }
 0x339   :  { %v11088_v63 = vadd.f32 %v8207_v56, %v11082_v1  ;;  %1162 = vmax.xlane.f32.xlu0 %v11085_v10  ;;  %v1098_v37 = vpop.f32.mrb[19].mxu1  ;;  %v11127_v50 = vadd.f32 %v801_v15, %v11107_v7 }
 0x33a   :  { %v11114_v18 = vadd.f32 %v1098_v37, %v11107_v7  ;;  %v11176_v37 = vld [vmem:[%s15173_s1 + $0x50] sm:$0xff] }
 0x33b   :  { %1164 = vmax.xlane.f32.xlu1 %v11088_v63 }
 0x33d   :  { %865 = vmax.xlane.f32.xlu0 %v11092_v47  ;;  %v8178_v21 = vpop.f32.mrb[36].mxu0 }
 0x33e   :  { %v8210_v57 = vpop.f32.mrb[20].mxu1  ;;  %v814_v2 = vpop.f32.mrb[37].mxu0  ;;  %v11144_v43 = vadd.f32 %v8178_v21, %v11124_v20 }
 0x33f   :  { %v1111_v44 = vpop.f32.mrb[21].mxu1  ;;  %867 = vmax.xlane.f32.xlu1 %v11101_v3  ;;  %v8179_v29 = vpop.f32.mrb[38].mxu0  ;;  %v11136_v60 = vadd.f32 %v8210_v57, %v11124_v20  ;;  %v11170_v15 = vadd.f32 %v814_v2, %v11150_v17  ;;  %v11185_v57 = vld [vmem:[%s15173_s1 + $0x58] sm:$0xff] }
 0x340   :  { %v8211_v34 = vpop.f32.mrb[22].mxu1  ;;  %v817_v59 = vpop.f32.mrb[39].mxu0  ;;  %v11153_v62 = vadd.f32 %v8179_v29, %v11133_v54  ;;  %v11162_v58 = vadd.f32 %v1111_v44, %v11150_v17 }
 0x341   :  { %v1114_v6 = vpop.f32.mrb[23].mxu1  ;;  %1158 = vmax.xlane.f32.xlu0 %v11110_v51  ;;  %v11140_v40 = vadd.f32 %v8211_v34, %v11133_v54  ;;  %v11179_v21 = vadd.f32 %v817_v59, %v11159_v4  ;;  %v11202_v34 = vld [vmem:[%s15173_s1 + $0x40] sm:$0xff]  ;;  %v11211_v59 = vld [vmem:[%s15173_s1 + $0x48] sm:$0xff] }
 0x342   :  { %v11166_v39 = vadd.f32 %v1114_v6, %v11159_v4 }
 0x343   :  { %1160 = vmax.xlane.f32.xlu1 %v11114_v18 }
 0x345   :  { %861 = vmax.xlane.f32.xlu0 %v11118_v36  ;;  %v8182_v22 = vpop.f32.mrb[40].mxu0 }
 0x346   :  { %v8214_v19 = vpop.f32.mrb[24].mxu1  ;;  %v830_v24 = vpop.f32.mrb[41].mxu0  ;;  %v11196_v29 = vadd.f32 %v8182_v22, %v11176_v37 }
 0x347   :  { %v1127_v32 = vpop.f32.mrb[25].mxu1  ;;  %863 = vmax.xlane.f32.xlu1 %v11127_v50  ;;  %v8183_v16 = vpop.f32.mrb[42].mxu0  ;;  %v11188_v44 = vadd.f32 %v8214_v19, %v11176_v37 }
 0x348   :  { %v8215_v33 = vpop.f32.mrb[26].mxu1  ;;  %v833_v5 = vpop.f32.mrb[43].mxu0  ;;  %v11205_v6 = vadd.f32 %v8183_v16, %v11185_v57  ;;  %v11214_v22 = vadd.f32 %v1127_v32, %v11202_v34  ;;  %v11222_v16 = vadd.f32 %v830_v24, %v11202_v34 }
 0x349   :  { %v1130_v38 = vpop.f32.mrb[27].mxu1  ;;  %1170 = vmax.xlane.f32.xlu0 %v11136_v60  ;;  %v11192_v2 = vadd.f32 %v8215_v33, %v11185_v57  ;;  %v11228_v33 = vld [vmem:[%s15173_s1 + $0x70] sm:$0xff]  ;;  %v11231_v32 = vadd.f32 %v833_v5, %v11211_v59 }
 0x34a   :  { %v11218_v19 = vadd.f32 %v1130_v38, %v11211_v59  ;;  %v11237_v38 = vld [vmem:[%s15173_s1 + $0x78] sm:$0xff] }
 0x34b   :  { %1172 = vmax.xlane.f32.xlu1 %v11140_v40 }
 0x34d   :  { %873 = vmax.xlane.f32.xlu0 %v11144_v43  ;;  %v8186_v49 = vpop.f32.mrb[44].mxu0 }
 0x34e   :  { %v8218_v26 = vpop.f32.mrb[28].mxu1  ;;  %v846_v35 = vpop.f32.mrb[45].mxu0  ;;  %v11248_v5 = vadd.f32 %v8186_v49, %v11228_v33 }
 0x34f   :  { %875 = vmax.xlane.f32.xlu1 %v11153_v62  ;;  %v1143_v8 = vpop.f32.mrb[29].mxu1  ;;  %v8187_v46 = vpop.f32.mrb[46].mxu0  ;;  %v11240_v24 = vadd.f32 %v8218_v26, %v11228_v33 }
 0x350   :  { %v8219_v0 = vpop.f32.mrb[30].mxu1  ;;  %v849_v12 = vpop.f32.mrb[47].mxu0  ;;  %v11257_v26 = vadd.f32 %v8187_v46, %v11237_v38  ;;  %v11266_v49 = vadd.f32 %v1143_v8, %v11254_v53  ;;  %v11274_v46 = vadd.f32 %v846_v35, %v11254_v53 }
 0x351   :  { %1166 = vmax.xlane.f32.xlu0 %v11162_v58  ;;  %v1146_v56 = vpop.f32.mrb[31].mxu1  ;;  %v11244_v52 = vadd.f32 %v8219_v0, %v11237_v38  ;;  %v11263_v0 = vld [vmem:[%s15173_s1 + $0x68] sm:$0xff] }
 0x352   :  { %v11270_v31 = vadd.f32 %v1146_v56, %v11263_v0  ;;  %v11278_v30 = vadd.f32 %v849_v12, %v11263_v0 }
 0x353   :  { %1168 = vmax.xlane.f32.xlu1 %v11166_v39 }
 0x355   :  { %869 = vmax.xlane.f32.xlu0 %v11170_v15 }
 0x357   :  { %871 = vmax.xlane.f32.xlu1 %v11179_v21 }
 0x359   :  { %1178 = vmax.xlane.f32.xlu0 %v11188_v44 }
 0x35b   :  { %1180 = vmax.xlane.f32.xlu1 %v11192_v2 }
 0x35d   :  { %881 = vmax.xlane.f32.xlu0 %v11196_v29 }
 0x35f   :  { %883 = vmax.xlane.f32.xlu1 %v11205_v6 }
 0x361   :  { %1174 = vmax.xlane.f32.xlu0 %v11214_v22 }
 0x363   :  { %1176 = vmax.xlane.f32.xlu1 %v11218_v19 }
 0x365   :  { %877 = vmax.xlane.f32.xlu0 %v11222_v16 }
 0x367   :  { %879 = vmax.xlane.f32.xlu1 %v11231_v32 }
 0x369   :  { %1186 = vmax.xlane.f32.xlu0 %v11240_v24 }
 0x36b   :  { %1188 = vmax.xlane.f32.xlu1 %v11244_v52 }
 0x36d   :  { %889 = vmax.xlane.f32.xlu0 %v11248_v5 }
 0x36f   :  { %891 = vmax.xlane.f32.xlu1 %v11257_v26 }
 0x371   :  { %1182 = vmax.xlane.f32.xlu0 %v11266_v49 }
 0x373   :  { %1184 = vmax.xlane.f32.xlu1 %v11270_v31 }
 0x375   :  { %885 = vmax.xlane.f32.xlu0 %v11274_v46 }
 0x377   :  { %v8302_v23 = vpop.f32.mrb[32].mxu1  ;;  %887 = vmax.xlane.f32.xlu1 %v11278_v30 }
 0x378   :  { %v11283_v8 = vadd.f32 %v8302_v23, %v11077_v11  ;;  %v1586_v56 = vpop.f32.mrb[33].mxu1 }
 0x379   :  { %v8303_v42 = vpop.f32.mrb[34].mxu1  ;;  %v11290_v13 = vadd.f32 %v1586_v56, %v11098_v28 }
 0x37a   :  { %v11286_v61 = vadd.f32 %v8303_v42, %v11082_v1  ;;  %v1589_v35 = vpop.f32.mrb[35].mxu1  ;;  %1653 = vmax.xlane.f32.xlu0 %v11283_v8 }
 0x37b   :  { %v11294_v12 = vadd.f32 %v1589_v35, %v11107_v7 }
 0x37c   :  { %1655 = vmax.xlane.f32.xlu1 %v11286_v61 }
 0x37e   :  { %1649 = vmax.xlane.f32.xlu0 %v11290_v13 }
 0x37f   :  { %v8306_v23 = vpop.f32.mrb[36].mxu1 }
 0x380   :  { %v11298_v48 = vadd.f32 %v8306_v23, %v11124_v20  ;;  %v1602_v41 = vpop.f32.mrb[37].mxu1  ;;  %1651 = vmax.xlane.f32.xlu1 %v11294_v12 }
 0x381   :  { %v8307_v42 = vpop.f32.mrb[38].mxu1  ;;  %v11306_v9 = vadd.f32 %v1602_v41, %v11150_v17 }
 0x382   :  { %15608 = vst [vmem:[#allocation34_spill] sm:$0xff] %v11298_v48  ;;  %v11302_v55 = vadd.f32 %v8307_v42, %v11133_v54  ;;  %v1605_v56 = vpop.f32.mrb[39].mxu1  ;;  %1661 = vmax.xlane.f32.xlu0 %v11298_v48 }
 0x383   :  { %v11310_v35 = vadd.f32 %v1605_v56, %v11159_v4 }
 0x384   :  { %15609 = vst [vmem:[#allocation37_spill] sm:$0xff] %v11302_v55  ;;  %1663 = vmax.xlane.f32.xlu1 %v11302_v55 }
 0x386   :  { %1657 = vmax.xlane.f32.xlu0 %v11306_v9 }
 0x387   :  { %v8310_v23 = vpop.f32.mrb[40].mxu1 }
 0x388   :  { %v11314_v45 = vadd.f32 %v8310_v23, %v11176_v37  ;;  %v1618_v25 = vpop.f32.mrb[41].mxu1  ;;  %1659 = vmax.xlane.f32.xlu1 %v11310_v35 }
 0x389   :  { %v8311_v42 = vpop.f32.mrb[42].mxu1  ;;  %v11322_v27 = vadd.f32 %v1618_v25, %v11202_v34 }
 0x38a   :  { %15610 = vst [vmem:[#allocation42_spill] sm:$0xff] %v11314_v45  ;;  %v11318_v14 = vadd.f32 %v8311_v42, %v11185_v57  ;;  %v1621_v41 = vpop.f32.mrb[43].mxu1  ;;  %1669 = vmax.xlane.f32.xlu0 %v11314_v45 }
 0x38b   :  { %15612 = vst [vmem:[#allocation58_spill] sm:$0xff] %v11322_v27  ;;  %v11326_v56 = vadd.f32 %v1621_v41, %v11211_v59 }
 0x38c   :  { %15611 = vst [vmem:[#allocation63_spill] sm:$0xff] %v11318_v14  ;;  %1671 = vmax.xlane.f32.xlu1 %v11318_v14 }
 0x38d   :  { %15613 = vst [vmem:[#allocation70_spill] sm:$0xff] %v11326_v56 }
 0x38e   :  { %1665 = vmax.xlane.f32.xlu0 %v11322_v27 }
 0x38f   :  { %v8314_v23 = vpop.f32.mrb[44].mxu1 }
 0x390   :  { %v11330_v55 = vadd.f32 %v8314_v23, %v11228_v33  ;;  %v1634_v48 = vpop.f32.mrb[45].mxu1  ;;  %1667 = vmax.xlane.f32.xlu1 %v11326_v56 }
 0x391   :  { %v8315_v42 = vpop.f32.mrb[46].mxu1  ;;  %v11338_v14 = vadd.f32 %v1634_v48, %v11254_v53 }
 0x392   :  { %15614 = vst [vmem:[#allocation76_spill] sm:$0xff] %v11330_v55  ;;  %v11334_v45 = vadd.f32 %v8315_v42, %v11237_v38  ;;  %v1637_v25 = vpop.f32.mrb[47].mxu1  ;;  %1677 = vmax.xlane.f32.xlu0 %v11330_v55 }
 0x393   :  { %v11342_v41 = vadd.f32 %v1637_v25, %v11263_v0 }
 0x394   :  { %15615 = vst [vmem:[#allocation71_spill] sm:$0xff] %v11334_v45  ;;  %1679 = vmax.xlane.f32.xlu1 %v11334_v45 }
 0x395   :  { %15616 = vst [vmem:[#allocation41_spill] sm:$0xff] %v11342_v41 }
 0x396   :  { %1673 = vmax.xlane.f32.xlu0 %v11338_v14 }
 0x398   :  { %1675 = vmax.xlane.f32.xlu1 %v11342_v41 }
 0x3b7   :  { %v8366_v23 = vpop.f32.mrb[48].mxu1 }
 0x3b8   :  { %v11347_v56 = vadd.f32 %v8366_v23, %v11077_v11  ;;  %v1996_v42 = vpop.f32.mrb[49].mxu1 }
 0x3b9   :  { %v8367_v27 = vpop.f32.mrb[50].mxu1  ;;  %v11354_v45 = vadd.f32 %v1996_v42, %v11098_v28 }
 0x3ba   :  { %v11350_v55 = vadd.f32 %v8367_v27, %v11082_v1  ;;  %v1999_v48 = vpop.f32.mrb[51].mxu1  ;;  %2063 = vmax.xlane.f32.xlu0 %v11347_v56 }
 0x3bb   :  { %15618 = vst [vmem:[#allocation50_spill] sm:$0xff] %v11354_v45  ;;  %v11358_v25 = vadd.f32 %v1999_v48, %v11107_v7 }
 0x3bc   :  { %15617 = vst [vmem:[#allocation46_spill] sm:$0xff] %v11350_v55  ;;  %2065 = vmax.xlane.f32.xlu1 %v11350_v55 }
 0x3bd   :  { %15619 = vst [vmem:[#allocation26_spill] sm:$0xff] %v11358_v25 }
 0x3be   :  { %2059 = vmax.xlane.f32.xlu0 %v11354_v45 }
 0x3bf   :  { %v8370_v11 = vpop.f32.mrb[52].mxu1 }
 0x3c0   :  { %v11362_v23 = vadd.f32 %v8370_v11, %v11124_v20  ;;  %v2012_v41 = vpop.f32.mrb[53].mxu1  ;;  %2061 = vmax.xlane.f32.xlu1 %v11358_v25 }
 0x3c1   :  { %v8371_v27 = vpop.f32.mrb[54].mxu1  ;;  %v11370_v42 = vadd.f32 %v2012_v41, %v11150_v17 }
 0x3c2   :  { %15620 = vst [vmem:[#allocation25_spill] sm:$0xff] %v11362_v23  ;;  %v11366_v1 = vadd.f32 %v8371_v27, %v11133_v54  ;;  %v2015_v28 = vpop.f32.mrb[55].mxu1  ;;  %2071 = vmax.xlane.f32.xlu0 %v11362_v23 }
 0x3c3   :  { %15622 = vst [vmem:[#allocation55_spill] sm:$0xff] %v11370_v42  ;;  %v11374_v7 = vadd.f32 %v2015_v28, %v11159_v4 }
 0x3c4   :  { %15621 = vst [vmem:[#allocation49_spill] sm:$0xff] %v11366_v1  ;;  %2073 = vmax.xlane.f32.xlu1 %v11366_v1 }
 0x3c5   :  { %15623 = vst [vmem:[#allocation66_spill] sm:$0xff] %v11374_v7 }
 0x3c6   :  { %2067 = vmax.xlane.f32.xlu0 %v11370_v42  ;;  %v1163_v20 = vpop.xlane.xlu0 %1162 }
 0x3c7   :  { %v1192_v48 = vsub.f32 %v11085_v10, %v1163_v20  ;;  %v11378_v11 = vpop.f32.mrb[56].mxu1 }
 0x3c8   :  { %v11380_v54 = vpop.f32.mrb[57].mxu1  ;;  %2069 = vmax.xlane.f32.xlu1 %v11374_v7  ;;  %v1165_v27 = vpop.xlane.xlu1 %1164 }
 0x3c9   :  { %v1210_v23 = vmul.f32 1.442695, %v1192_v48  ;;  %v1193_v17 = vsub.f32 %v11088_v63, %v1165_v27  ;;  %v11384_v41 = vpop.f32.mrb[58].mxu1 }
 0x3ca   :  { %v11386_v1 = vpop.f32.mrb[59].mxu1  ;;  %v866_v4 = vpop.xlane.xlu0 %865 }
 0x3cb   :  { %9110 = vpow2.f32 %v1210_v23  ;;  %v1212_v28 = vmul.f32 1.442695, %v1193_v17  ;;  %v895_v42 = vsub.f32 %v11092_v47, %v866_v4 }
 0x3cc   :  { %v868_v10 = vpop.xlane.xlu1 %867 }
 0x3cd   :  { %9112 = vpow2.f32 %v1212_v28  ;;  %v913_v20 = vmul.f32 1.442695, %v895_v42  ;;  %v896_v25 = vsub.f32 %v11101_v3, %v868_v10 }
 0x3ce   :  { %v1159_v55 = vpop.xlane.xlu0 %1158 }
 0x3cf   :  { %9114 = vpow2.f32 %v913_v20  ;;  %v915_v7 = vmul.f32 1.442695, %v896_v25  ;;  %v1190_v48 = vsub.f32 %v11110_v51, %v1159_v55  ;;  %v11391_v63 = vpop.f32.mrb[60].mxu1 }
 0x3d0   :  { %v11393_v27 = vpop.f32.mrb[61].mxu1  ;;  %v1161_v45 = vpop.xlane.xlu1 %1160 }
 0x3d1   :  { %9116 = vpow2.f32 %v915_v7  ;;  %v1206_v23 = vmul.f32 1.442695, %v1190_v48  ;;  %v1191_v17 = vsub.f32 %v11114_v18, %v1161_v45  ;;  %v11396_v47 = vpop.f32.mrb[62].mxu1 }
 0x3d2   :  { %v11398_v4 = vpop.f32.mrb[63].mxu1  ;;  %v862_v42 = vpop.xlane.xlu0 %861 }
 0x3d3   :  { %9118 = vpow2.f32 %v1206_v23  ;;  %v1208_v3 = vmul.f32 1.442695, %v1191_v17  ;;  %v893_v25 = vsub.f32 %v11118_v36, %v862_v42 }
 0x3d4   :  { %v864_v28 = vpop.xlane.xlu1 %863 }
 0x3d5   :  { %v11401_v55 = vpop.eup %9110  ;;  %9120 = vpow2.f32 %v1208_v3  ;;  %v909_v51 = vmul.f32 1.442695, %v893_v25  ;;  %v894_v10 = vsub.f32 %v11127_v50, %v864_v28 }
 0x3d6   :  { %v1171_v7 = vpop.xlane.xlu0 %1170  ;;  %1242 = vadd.xlane.f32.xlu0 %v11401_v55 }
 0x3d7   :  { %v11405_v45 = vpop.eup %9112  ;;  %9122 = vpow2.f32 %v909_v51  ;;  %v911_v18 = vmul.f32 1.442695, %v894_v10  ;;  %v1196_v20 = vsub.f32 %v11136_v60, %v1171_v7 }
 0x3d8   :  { %v1173_v48 = vpop.xlane.xlu1 %1172  ;;  %1244 = vadd.xlane.f32.xlu1 %v11405_v45 }
 0x3d9   :  { %v11409_v36 = vpop.eup %9114  ;;  %9124 = vpow2.f32 %v911_v18  ;;  %v1218_v23 = vmul.f32 1.442695, %v1196_v20  ;;  %v1197_v17 = vsub.f32 %v11140_v40, %v1173_v48 }
 0x3da   :  { %15624 = vst [vmem:[#allocation79_spill] sm:$0xff] %v11409_v36  ;;  %v11412_v42 = vpop.xlane.xlu0 %873  ;;  %945 = vadd.xlane.f32.xlu0 %v11409_v36 }
 0x3db   :  { %v11415_v50 = vpop.eup %9116  ;;  %9126 = vpow2.f32 %v1218_v23  ;;  %v1220_v3 = vmul.f32 1.442695, %v1197_v17 }
 0x3dc   :  { %15625 = vst [vmem:[#allocation32_spill] sm:$0xff] %v11415_v50  ;;  %v11417_v25 = vpop.xlane.xlu1 %875  ;;  %947 = vadd.xlane.f32.xlu1 %v11415_v50 }
 0x3dd   :  { %v11420_v60 = vpop.eup %9118  ;;  %9128 = vpow2.f32 %v1220_v3 }
 0x3de   :  { %v1167_v28 = vpop.xlane.xlu0 %1166  ;;  %1238 = vadd.xlane.f32.xlu0 %v11420_v60 }
 0x3df   :  { %v11423_v51 = vpop.eup %9120  ;;  %v1194_v40 = vsub.f32 %v11162_v58, %v1167_v28 }
 0x3e0   :  { %v1169_v10 = vpop.xlane.xlu1 %1168  ;;  %1240 = vadd.xlane.f32.xlu1 %v11423_v51 }
 0x3e1   :  { %v11427_v7 = vpop.eup %9122  ;;  %v1214_v18 = vmul.f32 1.442695, %v1194_v40  ;;  %v1195_v20 = vsub.f32 %v11166_v39, %v1169_v10 }
 0x3e2   :  { %15626 = vst [vmem:[#allocation29_spill] sm:$0xff] %v11427_v7  ;;  %v870_v48 = vpop.xlane.xlu0 %869  ;;  %941 = vadd.xlane.f32.xlu0 %v11427_v7 }
 0x3e3   :  { %v11431_v23 = vpop.eup %9124  ;;  %9130 = vpow2.f32 %v1214_v18  ;;  %v1216_v17 = vmul.f32 1.442695, %v1195_v20  ;;  %v897_v3 = vsub.f32 %v11170_v15, %v870_v48 }
 0x3e4   :  { %15627 = vst [vmem:[#allocation38_spill] sm:$0xff] %v11431_v23  ;;  %v872_v36 = vpop.xlane.xlu1 %871  ;;  %943 = vadd.xlane.f32.xlu1 %v11431_v23 }
 0x3e5   :  { %v11435_v58 = vpop.eup %9126  ;;  %9132 = vpow2.f32 %v1216_v17  ;;  %v917_v28 = vmul.f32 1.442695, %v897_v3  ;;  %v898_v40 = vsub.f32 %v11179_v21, %v872_v36 }
 0x3e6   :  { %v1179_v50 = vpop.xlane.xlu0 %1178  ;;  %1250 = vadd.xlane.f32.xlu0 %v11435_v58 }
 0x3e7   :  { %v11439_v39 = vpop.eup %9128  ;;  %9134 = vpow2.f32 %v917_v28  ;;  %v919_v10 = vmul.f32 1.442695, %v898_v40  ;;  %v1200_v18 = vsub.f32 %v11188_v44, %v1179_v50 }
 0x3e8   :  { %v1181_v20 = vpop.xlane.xlu1 %1180  ;;  %1252 = vadd.xlane.f32.xlu1 %v11439_v39 }
 0x3e9   :  { %9136 = vpow2.f32 %v919_v10  ;;  %v1226_v15 = vmul.f32 1.442695, %v1200_v18  ;;  %v1201_v48 = vsub.f32 %v11192_v2, %v1181_v20 }
 0x3ea   :  { %v11444_v17 = vpop.xlane.xlu0 %881 }
 0x3eb   :  { %9138 = vpow2.f32 %v1226_v15  ;;  %v1228_v21 = vmul.f32 1.442695, %v1201_v48 }
 0x3ec   :  { %v11446_v36 = vpop.xlane.xlu1 %883 }
 0x3ed   :  { %v11448_v3 = vpop.eup %9130  ;;  %9140 = vpow2.f32 %v1228_v21 }
 0x3ee   :  { %v1175_v28 = vpop.xlane.xlu0 %1174  ;;  %1246 = vadd.xlane.f32.xlu0 %v11448_v3 }
 0x3ef   :  { %v11451_v44 = vpop.eup %9132  ;;  %v1198_v50 = vsub.f32 %v11214_v22, %v1175_v28 }
 0x3f0   :  { %v1177_v40 = vpop.xlane.xlu1 %1176  ;;  %1248 = vadd.xlane.f32.xlu1 %v11451_v44 }
 0x3f1   :  { %v11455_v2 = vpop.eup %9134  ;;  %v1222_v10 = vmul.f32 1.442695, %v1198_v50  ;;  %v1199_v18 = vsub.f32 %v11218_v19, %v1177_v40 }
 0x3f2   :  { %15628 = vst [vmem:[#allocation35_spill] sm:$0xff] %v11455_v2  ;;  %v878_v20 = vpop.xlane.xlu0 %877  ;;  %949 = vadd.xlane.f32.xlu0 %v11455_v2 }
 0x3f3   :  { %v11459_v15 = vpop.eup %9136  ;;  %9142 = vpow2.f32 %v1222_v10  ;;  %v1224_v48 = vmul.f32 1.442695, %v1199_v18 }
 0x3f4   :  { %15629 = vst [vmem:[#allocation45_spill] sm:$0xff] %v11459_v15  ;;  %v880_v21 = vpop.xlane.xlu1 %879  ;;  %951 = vadd.xlane.f32.xlu1 %v11459_v15 }
 0x3f5   :  { %v11462_v7 = vpop.eup %9138  ;;  %9144 = vpow2.f32 %v1224_v48 }
 0x3f6   :  { %15630 = vst [vmem:[#allocation43_spill] sm:$0xff] %v11462_v7  ;;  %v1187_v22 = vpop.xlane.xlu0 %1186  ;;  %1258 = vadd.xlane.f32.xlu0 %v11462_v7 }
 0x3f7   :  { %v11465_v28 = vpop.eup %9140  ;;  %v1204_v19 = vsub.f32 %v11240_v24, %v1187_v22  ;;  %v899_v24 = vsub.f32 %v11144_v43, %v11412_v42  ;;  %v901_v42 = vsub.f32 %v11222_v16, %v878_v20  ;;  %v904_v16 = vsub.f32 %v11205_v6, %v11446_v36 }
 0x3f8   :  { %15631 = vst [vmem:[#allocation53_spill] sm:$0xff] %v11465_v28  ;;  %v1189_v50 = vpop.xlane.xlu1 %1188  ;;  %1260 = vadd.xlane.f32.xlu1 %v11465_v28  ;;  %v11520_v36 = vadd.f32 %v11386_v1, %v11211_v59  ;;  %v11532_v59 = vadd.f32 %v11384_v41, %v11185_v57 }
 0x3f9   :  { %v1234_v40 = vmul.f32 1.442695, %v1204_v19  ;;  %v1205_v10 = vsub.f32 %v11244_v52, %v1189_v50  ;;  %v900_v52 = vsub.f32 %v11153_v62, %v11417_v25  ;;  %v902_v25 = vsub.f32 %v11231_v32, %v880_v21 }
 0x3fa   :  { %v11470_v18 = vpop.xlane.xlu0 %889 }
 0x3fb   :  { %9146 = vpow2.f32 %v1234_v40  ;;  %v1236_v2 = vmul.f32 1.442695, %v1205_v10  ;;  %v923_v28 = vmul.f32 1.442695, %v900_v52  ;;  %v927_v32 = vmul.f32 1.442695, %v902_v25 }
 0x3fc   :  { %v892_v15 = vpop.xlane.xlu1 %891 }
 0x3fd   :  { %v11472_v23 = vpop.eup %9142  ;;  %9148 = vpow2.f32 %v1236_v2  ;;  %v921_v2 = vmul.f32 1.442695, %v899_v24  ;;  %v908_v6 = vsub.f32 %v11257_v26, %v892_v15 }
 0x3fe   :  { %15632 = vst [vmem:[#allocation51_spill] sm:$0xff] %v11472_v23  ;;  %v1183_v48 = vpop.xlane.xlu0 %1182  ;;  %1254 = vadd.xlane.f32.xlu0 %v11472_v23 }
 0x3ff   :  { %v11475_v7 = vpop.eup %9144  ;;  %v1202_v22 = vsub.f32 %v11266_v49, %v1183_v48  ;;  %v939_v26 = vmul.f32 1.442695, %v908_v6 }
 0x400   :  { %v1185_v19 = vpop.xlane.xlu1 %1184  ;;  %1256 = vadd.xlane.f32.xlu1 %v11475_v7 }
 0x401   :  { %v1230_v50 = vmul.f32 1.442695, %v1202_v22  ;;  %v1203_v40 = vsub.f32 %v11270_v31, %v1185_v19  ;;  %v903_v22 = vsub.f32 %v11196_v29, %v11444_v17  ;;  %v925_v19 = vmul.f32 1.442695, %v901_v42 }
 0x402   :  { %v886_v49 = vpop.xlane.xlu0 %885  ;;  %v11514_v29 = vadd.f32 %v11380_v54, %v11202_v34  ;;  %v11527_v54 = vadd.f32 %v11378_v11, %v11176_v37 }
 0x403   :  { %9150 = vpow2.f32 %v1230_v50  ;;  %v1232_v10 = vmul.f32 1.442695, %v1203_v40  ;;  %v929_v21 = vmul.f32 1.442695, %v903_v22  ;;  %v905_v50 = vsub.f32 %v11274_v46, %v886_v49 }
 0x404   :  { %v888_v62 = vpop.xlane.xlu1 %887  ;;  %v931_v40 = vmul.f32 1.442695, %v904_v16  ;;  %v907_v46 = vsub.f32 %v11248_v5, %v11470_v18 }
 0x405   :  { %v11484_v23 = vpop.eup %9146  ;;  %9152 = vpow2.f32 %v1232_v10  ;;  %v933_v34 = vmul.f32 1.442695, %v905_v50  ;;  %v906_v37 = vsub.f32 %v11278_v30, %v888_v62 }
 0x406   :  { %1266 = vadd.xlane.f32.xlu0 %v11484_v23  ;;  %9154 = vpow2.f32 %v921_v2  ;;  %v937_v15 = vmul.f32 1.442695, %v907_v46 }
 0x407   :  { %v11487_v43 = vpop.eup %9148  ;;  %9156 = vpow2.f32 %v923_v28  ;;  %v11494_v48 = vpop.xlane.xlu0 %1653  ;;  %v935_v18 = vmul.f32 1.442695, %v906_v37 }
 0x408   :  { %1268 = vadd.xlane.f32.xlu1 %v11487_v43  ;;  %9158 = vpow2.f32 %v925_v19  ;;  %v1683_v16 = vsub.f32 %v11283_v8, %v11494_v48  ;;  %v11571_v48 = vadd.f32 %v11393_v27, %v11254_v53  ;;  %v11581_v53 = vadd.f32 %v11391_v63, %v11228_v33  ;;  %v15634_v27 = vld [vmem:[#allocation37_spill] sm:$0xff] }
 0x409   :  { %v11501_v52 = vpop.xlane.xlu1 %1655  ;;  %9160 = vpow2.f32 %v927_v32 }
 0x40a   :  { %9162 = vpow2.f32 %v929_v21  ;;  %v1684_v50 = vsub.f32 %v11286_v61, %v11501_v52 }
 0x40b   :  { %v1650_v17 = vpop.xlane.xlu0 %1649  ;;  %9164 = vpow2.f32 %v931_v40  ;;  %v1701_v40 = vmul.f32 1.442695, %v1683_v16 }
 0x40c   :  { %9166 = vpow2.f32 %v933_v34  ;;  %v1681_v25 = vsub.f32 %v11290_v13, %v1650_v17 }
 0x40d   :  { %v11491_v31 = vpop.eup %9150  ;;  %v1652_v2 = vpop.xlane.xlu1 %1651  ;;  %9168 = vpow2.f32 %v939_v26 }
 0x40e   :  { %1262 = vadd.xlane.f32.xlu0 %v11491_v31  ;;  %9170 = vpow2.f32 %v937_v15  ;;  %v1682_v62 = vsub.f32 %v11294_v12, %v1652_v2  ;;  %v1697_v32 = vmul.f32 1.442695, %v1681_v25  ;;  %v11565_v12 = vadd.f32 %v11398_v4, %v11263_v0  ;;  %v15633_v4 = vld [vmem:[#allocation34_spill] sm:$0xff] }
 0x40f   :  { %v11497_v24 = vpop.eup %9152  ;;  %v1662_v1 = vpop.xlane.xlu0 %1661  ;;  %9172 = vpow2.f32 %v935_v18  ;;  %v1703_v2 = vmul.f32 1.442695, %v1684_v50  ;;  %v15638_v50 = vld [vmem:[#allocation63_spill] sm:$0xff] }
 0x410   :  { %1264 = vadd.xlane.f32.xlu1 %v11497_v24  ;;  %v11504_v28 = vpop.eup %9154  ;;  %v1699_v17 = vmul.f32 1.442695, %v1682_v62  ;;  %9174 = vpow2.f32 %v1697_v32  ;;  %v1687_v46 = vsub.f32 %v15633_v4, %v1662_v1  ;;  %v15635_v1 = vld [vmem:[#allocation58_spill] sm:$0xff]  ;;  %v15639_v4 = vld [vmem:[#allocation41_spill] sm:$0xff] }
 0x411   :  { %v11509_v20 = vpop.eup %9156  ;;  %v1664_v10 = vpop.xlane.xlu1 %1663 }
 0x412   :  { %953 = vadd.xlane.f32.xlu0 %v11504_v28  ;;  %v11536_v5 = vpop.eup %9158  ;;  %9176 = vpow2.f32 %v1699_v17  ;;  %v1688_v34 = vsub.f32 %v15634_v27, %v1664_v10  ;;  %v1709_v37 = vmul.f32 1.442695, %v1687_v46  ;;  %v15636_v10 = vld [vmem:[#allocation70_spill] sm:$0xff] }
 0x413   :  { %v11540_v11 = vpop.eup %9160  ;;  %v1658_v57 = vpop.xlane.xlu0 %1657  ;;  %9178 = vpow2.f32 %v1701_v40 }
 0x414   :  { %955 = vadd.xlane.f32.xlu1 %v11509_v20  ;;  %v11543_v41 = vpop.eup %9162  ;;  %v1685_v8 = vsub.f32 %v11306_v9, %v1658_v57  ;;  %9180 = vpow2.f32 %v1703_v2  ;;  %v1711_v63 = vmul.f32 1.442695, %v1688_v34 }
 0x415   :  { %v1660_v49 = vpop.xlane.xlu1 %1659  ;;  %v11546_v42 = vpop.eup %9164 }
 0x416   :  { %2075 = vmax.xlane.f32.xlu0 %v11514_v29  ;;  %v11550_v30 = vpop.eup %9166  ;;  %v1686_v61 = vsub.f32 %v11310_v35, %v1660_v49  ;;  %v1705_v9 = vmul.f32 1.442695, %v1685_v8  ;;  %v11587_v35 = vadd.f32 %v11396_v47, %v11237_v38  ;;  %v15637_v47 = vld [vmem:[#allocation42_spill] sm:$0xff] }
 0x417   :  { %v1670_v22 = vpop.xlane.xlu0 %1669  ;;  %v11554_v19 = vpop.eup %9168 }
 0x418   :  { %2077 = vmax.xlane.f32.xlu1 %v11520_v36  ;;  %v11559_v13 = vpop.eup %9170  ;;  %v1707_v26 = vmul.f32 1.442695, %v1686_v61  ;;  %9182 = vpow2.f32 %v1705_v9  ;;  %v1691_v25 = vsub.f32 %v15637_v47, %v1670_v22  ;;  %v15640_v9 = vld [vmem:[#allocation76_spill] sm:$0xff] }
 0x419   :  { %v1672_v21 = vpop.xlane.xlu1 %1671  ;;  %v11576_v0 = vpop.eup %9172 }
 0x41a   :  { %2079 = vmax.xlane.f32.xlu0 %v11527_v54  ;;  %v11592_v33 = vpop.eup %9174  ;;  %9184 = vpow2.f32 %v1707_v26  ;;  %v1692_v17 = vsub.f32 %v15638_v50, %v1672_v21  ;;  %v1717_v2 = vmul.f32 1.442695, %v1691_v25 }
 0x41b   :  { %v1666_v6 = vpop.xlane.xlu0 %1665  ;;  %9186 = vpow2.f32 %v1709_v37 }
 0x41c   :  { %2081 = vmax.xlane.f32.xlu1 %v11532_v59  ;;  %v1689_v57 = vsub.f32 %v15635_v1, %v1666_v6  ;;  %v11596_v38 = vpop.eup %9176  ;;  %9188 = vpow2.f32 %v1711_v63 }
 0x41d   :  { %v1668_v52 = vpop.xlane.xlu1 %1667  ;;  %v11600_v32 = vpop.eup %9178 }
 0x41e   :  { %957 = vadd.xlane.f32.xlu0 %v11536_v5  ;;  %v1690_v49 = vsub.f32 %v15636_v10, %v1668_v52  ;;  %v1713_v62 = vmul.f32 1.442695, %v1689_v57  ;;  %v11604_v6 = vpop.eup %9180  ;;  %v1719_v52 = vmul.f32 1.442695, %v1692_v17  ;;  %v15642_v17 = vld [vmem:[#allocation50_spill] sm:$0xff] }
 0x41f   :  { %v1678_v15 = vpop.xlane.xlu0 %1677 }
 0x420   :  { %959 = vadd.xlane.f32.xlu1 %v11540_v11  ;;  %v1715_v40 = vmul.f32 1.442695, %v1690_v49  ;;  %9190 = vpow2.f32 %v1713_v62  ;;  %v1695_v27 = vsub.f32 %v15640_v9, %v1678_v15 }
 0x421   :  { %v1680_v18 = vpop.xlane.xlu1 %1679 }
 0x422   :  { %961 = vadd.xlane.f32.xlu0 %v11543_v41  ;;  %v11608_v22 = vpop.eup %9182  ;;  %9192 = vpow2.f32 %v1715_v40  ;;  %v1725_v63 = vmul.f32 1.442695, %v1695_v27 }
 0x423   :  { %v1674_v16 = vpop.xlane.xlu0 %1673  ;;  %9194 = vpow2.f32 %v1717_v2 }
 0x424   :  { %963 = vadd.xlane.f32.xlu1 %v11546_v42  ;;  %v1693_v61 = vsub.f32 %v11338_v14, %v1674_v16  ;;  %v11612_v21 = vpop.eup %9184  ;;  %9196 = vpow2.f32 %v1719_v52  ;;  %v15641_v14 = vld [vmem:[#allocation71_spill] sm:$0xff] }
 0x425   :  { %v1676_v8 = vpop.xlane.xlu1 %1675  ;;  %v11616_v26 = vpop.eup %9186  ;;  %v1696_v37 = vsub.f32 %v15641_v14, %v1680_v18 }
 0x426   :  { %965 = vadd.xlane.f32.xlu0 %v11550_v30  ;;  %v1694_v46 = vsub.f32 %v15639_v4, %v1676_v8  ;;  %v1721_v34 = vmul.f32 1.442695, %v1693_v61  ;;  %v11620_v57 = vpop.eup %9188  ;;  %v15643_v61 = vld [vmem:[#allocation46_spill] sm:$0xff] }
 0x427   :  { %v1727_v15 = vmul.f32 1.442695, %v1696_v37 }
 0x428   :  { %971 = vadd.xlane.f32.xlu1 %v11554_v19  ;;  %v1723_v1 = vmul.f32 1.442695, %v1694_v46  ;;  %9198 = vpow2.f32 %v1721_v34  ;;  %v15644_v46 = vld [vmem:[#allocation26_spill] sm:$0xff] }
 0x42a   :  { %969 = vadd.xlane.f32.xlu0 %v11559_v13  ;;  %v11623_v10 = vpop.eup %9190  ;;  %9200 = vpow2.f32 %v1723_v1 }
 0x42b   :  { %9202 = vpow2.f32 %v1725_v63 }
 0x42c   :  { %2085 = vmax.xlane.f32.xlu1 %v11565_v12  ;;  %v11626_v49 = vpop.eup %9192  ;;  %9204 = vpow2.f32 %v1727_v15 }
 0x42d   :  { %v11629_v18 = vpop.eup %9194 }
 0x42e   :  { %2083 = vmax.xlane.f32.xlu0 %v11571_v48  ;;  %v11632_v62 = vpop.eup %9196 }
 0x430   :  { %967 = vadd.xlane.f32.xlu1 %v11576_v0 }
 0x432   :  { %2087 = vmax.xlane.f32.xlu0 %v11581_v53  ;;  %v11637_v8 = vpop.eup %9198 }
 0x434   :  { %2089 = vmax.xlane.f32.xlu1 %v11587_v35  ;;  %v11642_v27 = vpop.eup %9200 }
 0x435   :  { %15645 = vst [vmem:[#allocation64_spill] sm:$0xff] %v11642_v27  ;;  %v11645_v37 = vpop.eup %9202 }
 0x436   :  { %1729 = vadd.xlane.f32.xlu0 %v11592_v33  ;;  %15646 = vst [vmem:[#allocation59_spill] sm:$0xff] %v11645_v37  ;;  %v11648_v15 = vpop.eup %9204 }
 0x438   :  { %1731 = vadd.xlane.f32.xlu1 %v11596_v38 }
 0x43a   :  { %1733 = vadd.xlane.f32.xlu0 %v11600_v32 }
 0x43c   :  { %1735 = vadd.xlane.f32.xlu1 %v11604_v6 }
 0x43e   :  { %1737 = vadd.xlane.f32.xlu0 %v11608_v22 }
 0x440   :  { %1739 = vadd.xlane.f32.xlu1 %v11612_v21 }
 0x442   :  { %1741 = vadd.xlane.f32.xlu0 %v11616_v26 }
 0x444   :  { %1743 = vadd.xlane.f32.xlu1 %v11620_v57 }
 0x446   :  { %1745 = vadd.xlane.f32.xlu0 %v11623_v10 }
 0x447   :  { %v2064_v47 = vpop.xlane.xlu0 %2063 }
 0x448   :  { %1747 = vadd.xlane.f32.xlu1 %v11626_v49  ;;  %v2093_v50 = vsub.f32 %v11347_v56, %v2064_v47 }
 0x449   :  { %v2066_v25 = vpop.xlane.xlu1 %2065 }
 0x44a   :  { %1749 = vadd.xlane.f32.xlu0 %v11629_v18  ;;  %v2094_v52 = vsub.f32 %v15643_v61, %v2066_v25  ;;  %v2111_v14 = vmul.f32 1.442695, %v2093_v50  ;;  %v15647_v25 = vld [vmem:[#allocation25_spill] sm:$0xff] }
 0x44b   :  { %v2060_v16 = vpop.xlane.xlu0 %2059 }
 0x44c   :  { %v2091_v40 = vsub.f32 %v15642_v17, %v2060_v16  ;;  %1751 = vadd.xlane.f32.xlu1 %v11632_v62  ;;  %v2113_v63 = vmul.f32 1.442695, %v2094_v52  ;;  %v15648_v17 = vld [vmem:[#allocation55_spill] sm:$0xff] }
 0x44d   :  { %v2062_v2 = vpop.xlane.xlu1 %2061 }
 0x44e   :  { %v2107_v4 = vmul.f32 1.442695, %v2091_v40  ;;  %v2092_v9 = vsub.f32 %v15644_v46, %v2062_v2  ;;  %1753 = vadd.xlane.f32.xlu0 %v11637_v8  ;;  %v15649_v2 = vld [vmem:[#allocation49_spill] sm:$0xff]  ;;  %v15650_v46 = vld [vmem:[#allocation66_spill] sm:$0xff] }
 0x44f   :  { %v2072_v34 = vpop.xlane.xlu0 %2071 }
 0x450   :  { %9206 = vpow2.f32 %v2107_v4  ;;  %v2109_v56 = vmul.f32 1.442695, %v2092_v9  ;;  %1755 = vadd.xlane.f32.xlu1 %v11642_v27  ;;  %v2097_v16 = vsub.f32 %v15647_v25, %v2072_v34 }
 0x451   :  { %v2074_v1 = vpop.xlane.xlu1 %2073 }
 0x452   :  { %9208 = vpow2.f32 %v2109_v56  ;;  %1757 = vadd.xlane.f32.xlu0 %v11645_v37  ;;  %v2098_v61 = vsub.f32 %v15649_v2, %v2074_v1  ;;  %v2119_v9 = vmul.f32 1.442695, %v2097_v16 }
 0x453   :  { %v2068_v47 = vpop.xlane.xlu0 %2067  ;;  %9210 = vpow2.f32 %v2111_v14 }
 0x454   :  { %v2095_v40 = vsub.f32 %v15648_v17, %v2068_v47  ;;  %1759 = vadd.xlane.f32.xlu1 %v11648_v15  ;;  %9212 = vpow2.f32 %v2113_v63  ;;  %v2121_v27 = vmul.f32 1.442695, %v2098_v61 }
 0x455   :  { %v2070_v50 = vpop.xlane.xlu1 %2069 }
 0x456   :  { %v2115_v4 = vmul.f32 1.442695, %v2095_v40  ;;  %v2096_v52 = vsub.f32 %v15650_v46, %v2070_v50 }
 0x458   :  { %9214 = vpow2.f32 %v2115_v4  ;;  %v2117_v56 = vmul.f32 1.442695, %v2096_v52 }
 0x45a   :  { %v11655_v37 = vpop.eup %9206  ;;  %9216 = vpow2.f32 %v2117_v56 }
 0x45b   :  { %15651 = vst [vmem:[#allocation77_spill] sm:$0xff] %v11655_v37  ;;  %2139 = vadd.xlane.f32.xlu0 %v11655_v37  ;;  %9218 = vpow2.f32 %v2119_v9  ;;  %v15659_v37 = vld [vmem:[#allocation31_spill] sm:$0xff] }
 0x45c   :  { %v11658_v34 = vpop.eup %9208  ;;  %9220 = vpow2.f32 %v2121_v27 }
 0x45d   :  { %15652 = vst [vmem:[#allocation72_spill] sm:$0xff] %v11658_v34  ;;  %2141 = vadd.xlane.f32.xlu1 %v11658_v34  ;;  %v11661_v14 = vpop.eup %9210 }
 0x45e   :  { %15653 = vst [vmem:[#allocation28_spill] sm:$0xff] %v11661_v14  ;;  %v11664_v1 = vpop.eup %9212 }
 0x45f   :  { %2143 = vadd.xlane.f32.xlu0 %v11661_v14  ;;  %15654 = vst [vmem:[#allocation27_spill] sm:$0xff] %v11664_v1 }
 0x461   :  { %2145 = vadd.xlane.f32.xlu1 %v11664_v1 }
 0x462   :  { %v11667_v63 = vpop.eup %9214 }
 0x463   :  { %15655 = vst [vmem:[#allocation33_spill] sm:$0xff] %v11667_v63  ;;  %2147 = vadd.xlane.f32.xlu0 %v11667_v63  ;;  %v1243_v47 = vpop.xlane.xlu0 %1242 }
 0x464   :  { %v11670_v25 = vpop.eup %9216 }
 0x465   :  { %15656 = vst [vmem:[#allocation30_spill] sm:$0xff] %v11670_v25  ;;  %2149 = vadd.xlane.f32.xlu1 %v11670_v25  ;;  %v1245_v16 = vpop.xlane.xlu1 %1244  ;;  %v11673_v17 = vpop.eup %9218 }
 0x466   :  { %15657 = vst [vmem:[#allocation39_spill] sm:$0xff] %v11673_v17  ;;  %v11678_v40 = vpop.eup %9220  ;;  %9222 = vrcp.f32 %v1245_v16 }
 0x467   :  { %2151 = vadd.xlane.f32.xlu0 %v11673_v17  ;;  %v11676_v27 = vpop.xlane.xlu0 %945  ;;  %15658 = vst [vmem:[#allocation36_spill] sm:$0xff] %v11678_v40 }
 0x469   :  { %2153 = vadd.xlane.f32.xlu1 %v11678_v40  ;;  %v11681_v50 = vpop.xlane.xlu1 %947 }
 0x46b   :  { %v1239_v2 = vpop.xlane.xlu0 %1238 }
 0x46c   :  { %9224 = vrcp.f32 %v1239_v2 }
 0x46d   :  { %9226 = vrcp.f32 %v1243_v47  ;;  %v1241_v61 = vpop.xlane.xlu1 %1240 }
 0x46e   :  { %9228 = vrcp.f32 %v1241_v61 }
 0x46f   :  { %v11683_v4 = vpop.xlane.xlu0 %941 }
 0x470   :  { %v9223_v52 = vpop.eup %9222 }
 0x471   :  { %v11685_v46 = vpop.xlane.xlu1 %943  ;;  %v1289_v63 = vmul.f32 %v9223_v52, %v11405_v45  ;;  %v15660_v45 = vld [vmem:[#allocation40_spill] sm:$0xff] }
 0x473   :  { %v1251_v17 = vpop.xlane.xlu0 %1250 }
 0x475   :  { %v1253_v40 = vpop.xlane.xlu1 %1252 }
 0x476   :  { %v9225_v9 = vpop.eup %9224  ;;  %9230 = vrcp.f32 %v1253_v40 }
 0x477   :  { %v9227_v56 = vpop.eup %9226  ;;  %v1286_v1 = vmul.f32 %v9225_v9, %v11420_v60 }
 0x478   :  { %v9229_v25 = vpop.eup %9228  ;;  %v1288_v47 = vmul.f32 %v9227_v56, %v11401_v55  ;;  %v15661_v55 = vld [vmem:[#allocation48_spill] sm:$0xff] }
 0x479   :  { %v1287_v16 = vmul.f32 %v9229_v25, %v11423_v51 }
 0x47a   :  { %v1327_v14 = vpack.c.bf16 %v1289_v63, %v1288_v47 }
 0x47b   :  { %v1247_v2 = vpop.xlane.xlu0 %1246  ;;  %v1326_v61 = vpack.c.bf16 %v1287_v16, %v1286_v1 }
 0x47c   :  { %9232 = vrcp.f32 %v1247_v2  ;;  %v15663_v2 = vld [vmem:[#allocation57_spill] sm:$0xff] }
 0x47d   :  { %9234 = vrcp.f32 %v1251_v17  ;;  %v1249_v34 = vpop.xlane.xlu1 %1248  ;;  %8236 = vmatprep.mubr.bf16.mxu0 %v1326_v61 }
 0x47e   :  { %9236 = vrcp.f32 %v1249_v34  ;;  %8237 = vmatmul.mubr.bf16.vlgmr.msra.gmra.mrb[48].mxu0 %v1327_v14  ;;  %v15662_v14 = vld [vmem:[#allocation56_spill] sm:$0xff] }
 0x47f   :  { %8253 = vmatpush3.bf16.msra.mxu0 %v15659_v37  ;;  %v11693_v52 = vpop.xlane.xlu0 %949 }
 0x480   :  { %8254 = vmatprep.subr.bf16.mxu0 %v15660_v45  ;;  %v9231_v51 = vpop.eup %9230 }
 0x481   :  { %v952_v60 = vpop.xlane.xlu1 %951  ;;  %v1293_v37 = vmul.f32 %v9231_v51, %v11439_v39  ;;  %v15664_v39 = vld [vmem:[#allocation61_spill] sm:$0xff] }
 0x483   :  { %8255 = vmatpush3.bf16.msra.mxu0 %v15660_v45  ;;  %v1259_v63 = vpop.xlane.xlu0 %1258 }
 0x484   :  { %8256 = vmatprep.subr.bf16.mxu0 %v15661_v55 }
 0x485   :  { %v1261_v34 = vpop.xlane.xlu1 %1260 }
 0x486   :  { %v9233_v1 = vpop.eup %9232  ;;  %9238 = vrcp.f32 %v1261_v34 }
 0x487   :  { %v9235_v25 = vpop.eup %9234  ;;  %8257 = vmatpush3.bf16.msra.mxu0 %v15661_v55  ;;  %v1290_v40 = vmul.f32 %v9233_v1, %v11448_v3 }
 0x488   :  { %v9237_v17 = vpop.eup %9236  ;;  %8258 = vmatprep.subr.bf16.mxu0 %v15662_v14  ;;  %v1292_v56 = vmul.f32 %v9235_v25, %v11435_v58  ;;  %v15665_v58 = vld [vmem:[#allocation62_spill] sm:$0xff] }
 0x489   :  { %v1291_v9 = vmul.f32 %v9237_v17, %v11451_v44  ;;  %v15667_v17 = vld [vmem:[#allocation53_spill] sm:$0xff] }
 0x48a   :  { %v1329_v61 = vpack.c.bf16 %v1293_v37, %v1292_v56 }
 0x48b   :  { %8259 = vmatpush3.bf16.msra.mxu0 %v15662_v14  ;;  %v1255_v16 = vpop.xlane.xlu0 %1254  ;;  %v1328_v47 = vpack.c.bf16 %v1291_v9, %v1290_v40  ;;  %v15668_v14 = vld [vmem:[#allocation51_spill] sm:$0xff] }
 0x48c   :  { %8260 = vmatprep.subr.bf16.mxu0 %v15663_v2  ;;  %9240 = vrcp.f32 %v1255_v16  ;;  %v15669_v9 = vld [vmem:[#allocation43_spill] sm:$0xff] }
 0x48d   :  { %9242 = vrcp.f32 %v1259_v63  ;;  %v1257_v45 = vpop.xlane.xlu1 %1256  ;;  %8240 = vmatprep.mubr.bf16.mxu0 %v1328_v47  ;;  %v15666_v63 = vld [vmem:[#allocation67_spill] sm:$0xff] }
 0x48e   :  { %9244 = vrcp.f32 %v1257_v45  ;;  %8241 = vmatmul.mubr.bf16.gmra.mrb[52].mxu0 %v1329_v61 }
 0x48f   :  { %8261 = vmatpush3.bf16.msra.mxu0 %v15663_v2  ;;  %9246 = vrcp.f32 %v11683_v4  ;;  %v15670_v2 = vld [vmem:[#allocation68_spill] sm:$0xff] }
 0x490   :  { %8262 = vmatprep.subr.bf16.mxu0 %v15664_v39  ;;  %v9239_v3 = vpop.eup %9238  ;;  %9248 = vrcp.f32 %v11685_v46 }
 0x491   :  { %v1297_v34 = vmul.f32 %v9239_v3, %v15667_v17 }
 0x493   :  { %8263 = vmatpush3.bf16.msra.mxu0 %v15664_v39  ;;  %v1267_v51 = vpop.xlane.xlu0 %1266 }
 0x494   :  { %8264 = vmatprep.subr.bf16.mxu0 %v15665_v58 }
 0x495   :  { %v1269_v25 = vpop.xlane.xlu1 %1268 }
 0x496   :  { %v9241_v44 = vpop.eup %9240  ;;  %9250 = vrcp.f32 %v1269_v25 }
 0x497   :  { %v9243_v55 = vpop.eup %9242  ;;  %8265 = vmatpush3.bf16.msra.mxu0 %v15665_v58  ;;  %v1294_v37 = vmul.f32 %v9241_v44, %v15668_v14 }
 0x498   :  { %v9245_v1 = vpop.eup %9244  ;;  %8266 = vmatprep.subr.bf16.mxu0 %v15666_v63  ;;  %v1296_v56 = vmul.f32 %v9243_v55, %v15669_v9 }
 0x499   :  { %v1295_v40 = vmul.f32 %v9245_v1, %v11475_v7  ;;  %v9247_v39 = vpop.eup %9246 }
 0x49a   :  { %v1331_v61 = vpack.c.bf16 %v1297_v34, %v1296_v56  ;;  %v9249_v58 = vpop.eup %9248 }
 0x49b   :  { %8267 = vmatpush3.bf16.msra.mxu0 %v15666_v63  ;;  %v1263_v16 = vpop.xlane.xlu0 %1262  ;;  %v1330_v47 = vpack.c.bf16 %v1295_v40, %v1294_v37  ;;  %v15671_v40 = vld [vmem:[#allocation38_spill] sm:$0xff] }
 0x49c   :  { %8316 = vmatprep.subr.bf16.mxu0 %v15670_v2  ;;  %9252 = vrcp.f32 %v1263_v16 }
 0x49d   :  { %9254 = vrcp.f32 %v1267_v51  ;;  %v1265_v45 = vpop.xlane.xlu1 %1264  ;;  %8244 = vmatprep.mubr.bf16.mxu0 %v1330_v47 }
 0x49e   :  { %9256 = vrcp.f32 %v1265_v45  ;;  %8245 = vmatmul.mubr.bf16.gmra.mrb[56].mxu0 %v1331_v61 }
 0x49f   :  { %v954_v4 = vpop.xlane.xlu0 %953  ;;  %9258 = vrcp.f32 %v11681_v50 }
 0x4a0   :  { %9260 = vrcp.f32 %v952_v60  ;;  %v9251_v44 = vpop.eup %9250 }
 0x4a1   :  { %v956_v7 = vpop.xlane.xlu1 %955  ;;  %9262 = vrcp.f32 %v11676_v27  ;;  %v1301_v60 = vmul.f32 %v9251_v44, %v11487_v43 }
 0x4a2   :  { %9264 = vrcp.f32 %v11693_v52  ;;  %v990_v52 = vmul.f32 %v9249_v58, %v15671_v40 }
 0x4a3   :  { %v2076_v46 = vpop.xlane.xlu0 %2075 }
 0x4a4   :  { %v2099_v3 = vsub.f32 %v11514_v29, %v2076_v46 }
 0x4a5   :  { %v2078_v55 = vpop.xlane.xlu1 %2077 }
 0x4a6   :  { %v9253_v1 = vpop.eup %9252  ;;  %v2123_v51 = vmul.f32 1.442695, %v2099_v3  ;;  %v2100_v25 = vsub.f32 %v11520_v36, %v2078_v55 }
 0x4a7   :  { %v9255_v63 = vpop.eup %9254  ;;  %v2080_v17 = vpop.xlane.xlu0 %2079  ;;  %v1298_v27 = vmul.f32 %v9253_v1, %v11491_v31 }
 0x4a8   :  { %v9257_v34 = vpop.eup %9256  ;;  %9266 = vpow2.f32 %v2123_v51  ;;  %v2125_v50 = vmul.f32 1.442695, %v2100_v25  ;;  %v2101_v14 = vsub.f32 %v11527_v54, %v2080_v17  ;;  %v1300_v56 = vmul.f32 %v9255_v63, %v11484_v23  ;;  %v15672_v54 = vld [vmem:[#allocation29_spill] sm:$0xff]  ;;  %v15675_v51 = vld [vmem:[#allocation79_spill] sm:$0xff] }
 0x4a9   :  { %9268 = vrcp.f32 %v954_v4  ;;  %v2082_v29 = vpop.xlane.xlu1 %2081  ;;  %v1299_v37 = vmul.f32 %v9257_v34, %v11497_v24  ;;  %v989_v61 = vmul.f32 %v9247_v39, %v15672_v54  ;;  %v9259_v4 = vpop.eup %9258  ;;  %v15674_v39 = vld [vmem:[#allocation45_spill] sm:$0xff]  ;;  %v15676_v34 = vld [vmem:[#allocation35_spill] sm:$0xff] }
 0x4aa   :  { %9270 = vpow2.f32 %v2125_v50  ;;  %v2127_v9 = vmul.f32 1.442695, %v2101_v14  ;;  %v2102_v36 = vsub.f32 %v11532_v59, %v2082_v29  ;;  %v1333_v45 = vpack.c.bf16 %v1301_v60, %v1300_v56  ;;  %v9261_v46 = vpop.eup %9260  ;;  %v15677_v56 = vld [vmem:[#allocation69_spill] sm:$0xff] }
 0x4ab   :  { %9272 = vrcp.f32 %v956_v7  ;;  %v958_v16 = vpop.xlane.xlu0 %957  ;;  %v1332_v47 = vpack.c.bf16 %v1299_v37, %v1298_v27  ;;  %v1029_v24 = vpack.c.bf16 %v990_v52, %v989_v61  ;;  %v9263_v58 = vpop.eup %9262  ;;  %v15673_v7 = vld [vmem:[#allocation32_spill] sm:$0xff]  ;;  %v994_v55 = vmul.f32 %v9261_v46, %v15674_v39 }
 0x4ac   :  { %9274 = vpow2.f32 %v2127_v9  ;;  %v2129_v43 = vmul.f32 1.442695, %v2102_v36  ;;  %v9265_v59 = vpop.eup %9264  ;;  %v992_v3 = vmul.f32 %v9259_v4, %v15673_v7  ;;  %v991_v25 = vmul.f32 %v9263_v58, %v15675_v51 }
 0x4ad   :  { %9276 = vrcp.f32 %v958_v16  ;;  %v960_v31 = vpop.xlane.xlu1 %959  ;;  %8248 = vmatprep.mubr.bf16.mxu0 %v1332_v47  ;;  %v993_v50 = vmul.f32 %v9265_v59, %v15676_v34  ;;  %v15679_v59 = vld [vmem:[#allocation75_spill] sm:$0xff] }
 0x4ae   :  { %9278 = vpow2.f32 %v2129_v43  ;;  %8249 = vmatmul.mubr.bf16.gmra.mrb[60].mxu0 %v1333_v45  ;;  %v1030_v60 = vpack.c.bf16 %v992_v3, %v991_v25 }
 0x4af   :  { %9280 = vrcp.f32 %v960_v31  ;;  %8268 = vmatprep.mubr.bf16.mxu0 %v1029_v24  ;;  %v962_v23 = vpop.xlane.xlu0 %961  ;;  %v1031_v37 = vpack.c.bf16 %v994_v55, %v993_v50  ;;  %v15678_v24 = vld [vmem:[#allocation74_spill] sm:$0xff] }
 0x4b1   :  { %v964_v44 = vpop.xlane.xlu1 %963 }
 0x4b2   :  { %v11734_v1 = vpop.eup %9266  ;;  %9282 = vrcp.f32 %v964_v44 }
 0x4b3   :  { %v9269_v63 = vpop.eup %9268  ;;  %2155 = vadd.xlane.f32.xlu0 %v11734_v1  ;;  %v966_v17 = vpop.xlane.xlu0 %965  ;;  %9284 = vrcp.f32 %v962_v23 }
 0x4b4   :  { %v11739_v14 = vpop.eup %9270  ;;  %v995_v43 = vmul.f32 %v9269_v63, %v11504_v28  ;;  %9286 = vrcp.f32 %v966_v17  ;;  %v15680_v63 = vld [vmem:[#allocation80_spill] sm:$0xff] }
 0x4b5   :  { %v9273_v29 = vpop.eup %9272  ;;  %2157 = vadd.xlane.f32.xlu1 %v11739_v14  ;;  %v972_v27 = vpop.xlane.xlu1 %971 }
 0x4b6   :  { %v11742_v40 = vpop.eup %9274  ;;  %8269 = vmatmul.mubr.bf16.vlgmr.msra.gmra.mrb[48].mxu0 %v1030_v60  ;;  %v996_v16 = vmul.f32 %v9273_v29, %v11509_v20  ;;  %v15681_v60 = vld [vmem:[#allocation81_spill] sm:$0xff] }
 0x4b7   :  { %v9277_v52 = vpop.eup %9276  ;;  %8317 = vmatpush3.bf16.msra.mxu0 %v15670_v2  ;;  %8272 = vmatprep.mubr.bf16.mxu0 %v1031_v37  ;;  %v970_v9 = vpop.xlane.xlu0 %969 }
 0x4b8   :  { %v11745_v36 = vpop.eup %9278  ;;  %8318 = vmatprep.subr.bf16.mxu0 %v15677_v56  ;;  %2159 = vadd.xlane.f32.xlu0 %v11742_v40  ;;  %v997_v4 = vmul.f32 %v9277_v52, %v11536_v5  ;;  %9288 = vrcp.f32 %v970_v9  ;;  %v1032_v46 = vpack.c.bf16 %v996_v16, %v995_v43 }
 0x4b9   :  { %v9281_v47 = vpop.eup %9280  ;;  %2161 = vadd.xlane.f32.xlu1 %v11745_v36  ;;  %v2086_v54 = vpop.xlane.xlu1 %2085  ;;  %9290 = vrcp.f32 %v972_v27 }
 0x4ba   :  { %v2104_v61 = vsub.f32 %v11565_v12, %v2086_v54  ;;  %v998_v2 = vmul.f32 %v9281_v47, %v11540_v11  ;;  %v15682_v54 = vld [vmem:[#allocation82_spill] sm:$0xff] }
 0x4bb   :  { %8319 = vmatpush3.bf16.msra.mxu0 %v15677_v56  ;;  %v2084_v45 = vpop.xlane.xlu0 %2083 }
 0x4bc   :  { %v2133_v31 = vmul.f32 1.442695, %v2104_v61  ;;  %8320 = vmatprep.subr.bf16.mxu0 %v15678_v24  ;;  %v2103_v20 = vsub.f32 %v11571_v48, %v2084_v45  ;;  %v9283_v58 = vpop.eup %9282  ;;  %v1033_v23 = vpack.c.bf16 %v998_v2, %v997_v4  ;;  %v15683_v4 = vld [vmem:[#allocation83_spill] sm:$0xff] }
 0x4bd   :  { %v968_v12 = vpop.xlane.xlu1 %967  ;;  %v9285_v11 = vpop.eup %9284  ;;  %v1000_v48 = vmul.f32 %v9283_v58, %v11546_v42 }
 0x4be   :  { %9292 = vpow2.f32 %v2133_v31  ;;  %v2131_v28 = vmul.f32 1.442695, %v2103_v20  ;;  %8273 = vmatmul.mubr.bf16.gmra.mrb[52].mxu0 %v1032_v46  ;;  %v999_v55 = vmul.f32 %v9285_v11, %v11543_v41  ;;  %v9287_v34 = vpop.eup %9286 }
 0x4bf   :  { %9294 = vrcp.f32 %v968_v12  ;;  %8321 = vmatpush3.bf16.msra.mxu0 %v15678_v24  ;;  %8276 = vmatprep.mubr.bf16.mxu0 %v1033_v23  ;;  %v2088_v5 = vpop.xlane.xlu0 %2087  ;;  %v1001_v9 = vmul.f32 %v9287_v34, %v11550_v30 }
 0x4c0   :  { %9296 = vpow2.f32 %v2131_v28  ;;  %8322 = vmatprep.subr.bf16.mxu0 %v15679_v59  ;;  %v2105_v7 = vsub.f32 %v11581_v53, %v2088_v5  ;;  %v1034_v17 = vpack.c.bf16 %v1000_v48, %v999_v55  ;;  %v15684_v5 = vld [vmem:[#allocation84_spill] sm:$0xff] }
 0x4c1   :  { %v2090_v3 = vpop.xlane.xlu1 %2089 }
 0x4c2   :  { %v2135_v44 = vmul.f32 1.442695, %v2105_v7  ;;  %v2106_v39 = vsub.f32 %v11587_v35, %v2090_v3  ;;  %v9289_v53 = vpop.eup %9288 }
 0x4c3   :  { %8323 = vmatpush3.bf16.msra.mxu0 %v15679_v59  ;;  %v1730_v51 = vpop.xlane.xlu0 %1729  ;;  %v9291_v42 = vpop.eup %9290  ;;  %v1003_v37 = vmul.f32 %v9289_v53, %v11559_v13 }
 0x4c4   :  { %9298 = vpow2.f32 %v2135_v44  ;;  %v2137_v25 = vmul.f32 1.442695, %v2106_v39  ;;  %8324 = vmatprep.subr.bf16.mxu0 %v15680_v63  ;;  %v1004_v47 = vmul.f32 %v9291_v42, %v11554_v19 }
 0x4c5   :  { %9300 = vrcp.f32 %v1730_v51  ;;  %v1732_v50 = vpop.xlane.xlu1 %1731 }
 0x4c6   :  { %9302 = vpow2.f32 %v2137_v25  ;;  %8277 = vmatmul.mubr.bf16.gmra.mrb[56].mxu0 %v1034_v17  ;;  %v1036_v13 = vpack.c.bf16 %v1004_v47, %v1003_v37  ;;  %v15688_v47 = vld [vmem:[#allocation88_spill] sm:$0xff] }
 0x4c7   :  { %9304 = vrcp.f32 %v1732_v50  ;;  %8325 = vmatpush3.bf16.msra.mxu0 %v15680_v63  ;;  %v1734_v35 = vpop.xlane.xlu0 %1733 }
 0x4c8   :  { %v11767_v41 = vpop.eup %9292  ;;  %8326 = vmatprep.subr.bf16.mxu0 %v15681_v60  ;;  %9306 = vrcp.f32 %v1734_v35 }
 0x4c9   :  { %v9295_v29 = vpop.eup %9294  ;;  %2165 = vadd.xlane.f32.xlu1 %v11767_v41  ;;  %v1736_v27 = vpop.xlane.xlu1 %1735 }
 0x4ca   :  { %v11772_v52 = vpop.eup %9296  ;;  %9308 = vrcp.f32 %v1736_v27  ;;  %v1002_v56 = vmul.f32 %v9295_v29, %v11576_v0 }
 0x4cb   :  { %8327 = vmatpush3.bf16.msra.mxu0 %v15681_v60  ;;  %2163 = vadd.xlane.f32.xlu0 %v11772_v52  ;;  %v1738_v16 = vpop.xlane.xlu0 %1737 }
 0x4cc   :  { %8328 = vmatprep.subr.bf16.mxu0 %v15682_v54  ;;  %9310 = vrcp.f32 %v1738_v16  ;;  %v1035_v61 = vpack.c.bf16 %v1002_v56, %v1001_v9 }
 0x4cd   :  { %v1740_v43 = vpop.xlane.xlu1 %1739 }
 0x4ce   :  { %v11780_v2 = vpop.eup %9298  ;;  %9312 = vrcp.f32 %v1740_v43  ;;  %8280 = vmatprep.mubr.bf16.mxu0 %v1035_v61  ;;  %v15689_v43 = vld [vmem:[#allocation64_spill] sm:$0xff] }
 0x4cf   :  { %v9301_v30 = vpop.eup %9300  ;;  %8281 = vmatmul.mubr.bf16.gmra.mrb[60].mxu0 %v1036_v13  ;;  %2167 = vadd.xlane.f32.xlu0 %v11780_v2  ;;  %v1742_v0 = vpop.xlane.xlu0 %1741 }
 0x4d0   :  { %v11783_v45 = vpop.eup %9302  ;;  %8329 = vmatpush3.bf16.msra.mxu0 %v15682_v54  ;;  %9314 = vrcp.f32 %v1742_v0  ;;  %v1777_v20 = vmul.f32 %v9301_v30, %v11592_v33 }
 0x4d1   :  { %v9305_v19 = vpop.eup %9304  ;;  %8330 = vmatprep.subr.bf16.mxu0 %v15683_v4  ;;  %2169 = vadd.xlane.f32.xlu1 %v11783_v45  ;;  %v1744_v31 = vpop.xlane.xlu1 %1743 }
 0x4d2   :  { %v9307_v24 = vpop.eup %9306  ;;  %9316 = vrcp.f32 %v1744_v31  ;;  %v1778_v46 = vmul.f32 %v9305_v19, %v11596_v38  ;;  %v15691_v31 = vld [vmem:[#allocation59_spill] sm:$0xff] }
 0x4d3   :  { %v1746_v58 = vpop.xlane.xlu0 %1745  ;;  %v1779_v28 = vmul.f32 %v9307_v24, %v11600_v32  ;;  %v15685_v32 = vld [vmem:[#allocation85_spill] sm:$0xff] }
 0x4d4   :  { %v9309_v12 = vpop.eup %9308  ;;  %8331 = vmatpush3.bf16.msra.mxu0 %v15683_v4  ;;  %9318 = vrcp.f32 %v1746_v58  ;;  %v1817_v23 = vpack.c.bf16 %v1778_v46, %v1777_v20 }
 0x4d5   :  { %v1780_v11 = vmul.f32 %v9309_v12, %v11604_v6  ;;  %8380 = vmatprep.subr.bf16.mxu0 %v15684_v5  ;;  %v1748_v59 = vpop.xlane.xlu1 %1747 }
 0x4d6   :  { %v9311_v7 = vpop.eup %9310  ;;  %9320 = vrcp.f32 %v1748_v59  ;;  %8332 = vmatprep.mubr.bf16.mxu0 %v1817_v23 }
 0x4d7   :  { %v1750_v48 = vpop.xlane.xlu0 %1749  ;;  %v1818_v33 = vpack.c.bf16 %v1780_v11, %v1779_v28  ;;  %v1781_v44 = vmul.f32 %v9311_v7, %v11608_v22  ;;  %v15686_v22 = vld [vmem:[#allocation86_spill] sm:$0xff]  ;;  %v15693_v11 = vld [vmem:[#allocation91_spill] sm:$0xff] }
 0x4d8   :  { %v9313_v3 = vpop.eup %9312  ;;  %9322 = vrcp.f32 %v1750_v48  ;;  %v15694_v48 = vld [vmem:[#allocation77_spill] sm:$0xff] }
 0x4d9   :  { %v1752_v38 = vpop.xlane.xlu1 %1751  ;;  %8333 = vmatmul.mubr.bf16.vlgmr.msra.gmra.mrb[48].mxu0 %v1818_v33  ;;  %v1782_v39 = vmul.f32 %v9313_v3, %v11612_v21  ;;  %v15695_v3 = vld [vmem:[#allocation72_spill] sm:$0xff] }
 0x4da   :  { %v9315_v55 = vpop.eup %9314  ;;  %9324 = vrcp.f32 %v1752_v38  ;;  %8381 = vmatpush3.bf16.msra.mxu0 %v15684_v5 }
 0x4db   :  { %8382 = vmatprep.subr.bf16.mxu0 %v15685_v32  ;;  %v1754_v6 = vpop.xlane.xlu0 %1753  ;;  %v1819_v51 = vpack.c.bf16 %v1782_v39, %v1781_v44  ;;  %v1783_v17 = vmul.f32 %v9315_v55, %v11616_v26  ;;  %v15687_v26 = vld [vmem:[#allocation87_spill] sm:$0xff] }
 0x4dc   :  { %v9317_v25 = vpop.eup %9316  ;;  %9326 = vrcp.f32 %v1754_v6 }
 0x4dd   :  { %v1756_v63 = vpop.xlane.xlu1 %1755  ;;  %8336 = vmatprep.mubr.bf16.mxu0 %v1819_v51  ;;  %v1784_v34 = vmul.f32 %v9317_v25, %v11620_v57  ;;  %v15697_v51 = vld [vmem:[#allocation27_spill] sm:$0xff] }
 0x4de   :  { %v9319_v50 = vpop.eup %9318  ;;  %9328 = vrcp.f32 %v1756_v63  ;;  %8383 = vmatpush3.bf16.msra.mxu0 %v15685_v32  ;;  %v15696_v32 = vld [vmem:[#allocation28_spill] sm:$0xff] }
 0x4df   :  { %8384 = vmatprep.subr.bf16.mxu0 %v15686_v22  ;;  %v1758_v21 = vpop.xlane.xlu0 %1757  ;;  %v1820_v53 = vpack.c.bf16 %v1784_v34, %v1783_v17  ;;  %v1785_v60 = vmul.f32 %v9319_v50, %v11623_v10  ;;  %v8943_v34 = vld [vmem:[%s15174_s6 + $0x8] sm:$0xff]  }
 0x4e0   :  { %v9321_v42 = vpop.eup %9320  ;;  %9330 = vrcp.f32 %v1758_v21 }
 0x4e1   :  { %v1760_v35 = vpop.xlane.xlu1 %1759  ;;  %8337 = vmatmul.mubr.bf16.gmra.mrb[52].mxu0 %v1820_v53  ;;  %v1786_v29 = vmul.f32 %v9321_v42, %v11626_v49  ;;  %v15699_v53 = vld [vmem:[#allocation30_spill] sm:$0xff] }
 0x4e2   :  { %v9323_v27 = vpop.eup %9322  ;;  %9332 = vrcp.f32 %v1760_v35  ;;  %8385 = vmatpush3.bf16.msra.mxu0 %v15686_v22  ;;  %v15698_v22 = vld [vmem:[#allocation33_spill] sm:$0xff] }
 0x4e3   :  { %8386 = vmatprep.subr.bf16.mxu0 %v15687_v26  ;;  %v1821_v57 = vpack.c.bf16 %v1786_v29, %v1785_v60  ;;  %v1787_v9 = vmul.f32 %v9323_v27, %v11629_v18  ;;  %v15690_v18 = vld [vmem:[#allocation89_spill] sm:$0xff]  ;;  %v8944_v29 = vld [vmem:[%s15174_s6 + $0x10] sm:$0xff]  }
 0x4e4   :  { %v9325_v37 = vpop.eup %9324 }
 0x4e5   :  { %8340 = vmatprep.mubr.bf16.mxu0 %v1821_v57  ;;  %v1788_v56 = vmul.f32 %v9325_v37, %v11632_v62  ;;  %v15701_v37 = vld [vmem:[#allocation36_spill] sm:$0xff] }
 0x4e6   :  { %v9327_v16 = vpop.eup %9326  ;;  %8387 = vmatpush3.bf16.msra.mxu0 %v15687_v26  ;;  %v15700_v26 = vld [vmem:[#allocation39_spill] sm:$0xff] }
 0x4e7   :  { %8388 = vmatprep.subr.bf16.mxu0 %v15688_v47  ;;  %v1822_v10 = vpack.c.bf16 %v1788_v56, %v1787_v9  ;;  %v1789_v61 = vmul.f32 %v9327_v16, %v11637_v8  ;;  %v15692_v8 = vld [vmem:[#allocation90_spill] sm:$0xff]  ;;  %v8945_v16 = vld [vmem:[%s15174_s6 + $0x18] sm:$0xff]  }
 0x4e8   :  { %v9329_v49 = vpop.eup %9328  ;;  %v2140_v54 = vpop.xlane.xlu0 %2139 }
 0x4e9   :  { %9334 = vrcp.f32 %v2140_v54  ;;  %8341 = vmatmul.mubr.bf16.gmra.mrb[56].mxu0 %v1822_v10  ;;  %v1790_v13 = vmul.f32 %v9329_v49, %v15689_v43  ;;  %v8947_v10 = vld [vmem:[%s15174_s6 + $0x28] sm:$0xff]   ;;  %v8948_v49 = vld [vmem:[%s15174_s6 + $0x30] sm:$0xff]  }
 0x4ea   :  { %v9331_v30 = vpop.eup %9330  ;;  %v2142_v0 = vpop.xlane.xlu1 %2141  ;;  %8389 = vmatpush3.bf16.msra.mxu0 %v15688_v47  ;;  %v8946_v47 = vld [vmem:[%s15174_s6 + $0x20] sm:$0xff]  }
 0x4eb   :  { %9336 = vrcp.f32 %v2142_v0  ;;  %8390 = vmatprep.subr.bf16.mxu0 %v15690_v18  ;;  %v1823_v62 = vpack.c.bf16 %v1790_v13, %v1789_v61  ;;  %v1791_v24 = vmul.f32 %v9331_v30, %v15691_v31 }
 0x4ec   :  { %v9333_v19 = vpop.eup %9332  ;;  %v2144_v4 = vpop.xlane.xlu0 %2143 }
 0x4ed   :  { %9338 = vrcp.f32 %v2144_v4  ;;  %8344 = vmatprep.mubr.bf16.mxu0 %v1823_v62  ;;  %v1792_v20 = vmul.f32 %v9333_v19, %v11648_v15  ;;  %v8942_v15 = vld [vmem:[%s15174_s6] sm:$0xff]  }
 0x4ee   :  { %v2146_v46 = vpop.xlane.xlu1 %2145  ;;  %8391 = vmatpush3.bf16.msra.mxu0 %v15690_v18 }
 0x4ef   :  { %9340 = vrcp.f32 %v2146_v46  ;;  %8392 = vmatprep.subr.bf16.mxu0 %v15692_v8  ;;  %v1824_v58 = vpack.c.bf16 %v1792_v20, %v1791_v24 }
 0x4f0   :  { %v2148_v12 = vpop.xlane.xlu0 %2147 }
 0x4f1   :  { %9342 = vrcp.f32 %v2148_v12  ;;  %8345 = vmatmul.mubr.bf16.gmra.mrb[60].mxu0 %v1824_v58 }
 0x4f2   :  { %v2150_v23 = vpop.xlane.xlu1 %2149  ;;  %8393 = vmatpush3.bf16.msra.mxu0 %v15692_v8  ;;  %v8949_v8 = vld [vmem:[%s15174_s6 + $0x38] sm:$0xff]  }
 0x4f3   :  { %v9335_v28 = vpop.eup %9334  ;;  %9344 = vrcp.f32 %v2150_v23  ;;  %8394 = vmatprep.subr.bf16.mxu0 %v15693_v11 }
 0x4f4   :  { %v2152_v5 = vpop.xlane.xlu0 %2151  ;;  %v2187_v33 = vmul.f32 %v9335_v28, %v15694_v48 }
 0x4f5   :  { %v9337_v59 = vpop.eup %9336  ;;  %9346 = vrcp.f32 %v2152_v5 }
 0x4f6   :  { %v2154_v7 = vpop.xlane.xlu1 %2153  ;;  %8395 = vmatpush3.bf16.msra.mxu0 %v15693_v11  ;;  %v2188_v38 = vmul.f32 %v9337_v59, %v15695_v3 }
 0x4f7   :  { %v9339_v44 = vpop.eup %9338  ;;  %9348 = vrcp.f32 %v2154_v7  ;;  %8412 = vmatprep.subr.bf16.mxu0 %v8942_v15 }
 0x4f8   :  { %v2227_v39 = vpack.c.bf16 %v2188_v38, %v2187_v33  ;;  %v2189_v6 = vmul.f32 %v9339_v44, %v15696_v32 }
 0x4f9   :  { %v9341_v55 = vpop.eup %9340 }
 0x4fa   :  { %v2190_v25 = vmul.f32 %v9341_v55, %v15697_v51  ;;  %8396 = vmatprep.mubr.bf16.mxu0 %v2227_v39 }
 0x4fb   :  { %v9343_v63 = vpop.eup %9342 }
 0x4fc   :  { %v2228_v17 = vpack.c.bf16 %v2190_v25, %v2189_v6  ;;  %v2191_v21 = vmul.f32 %v9343_v63, %v15698_v22 }
 0x4fd   :  { %v9345_v50 = vpop.eup %9344 }
 0x4fe   :  { %8397 = vmatmul.mubr.bf16.vlgmr.msra.gmra.mrb[48].mxu0 %v2228_v17  ;;  %v2192_v42 = vmul.f32 %v9345_v50, %v15699_v53 }
 0x4ff   :  { %v9347_v35 = vpop.eup %9346  ;;  %8413 = vmatpush3.bf16.msra.mxu0 %v8942_v15 }
 0x500   :  { %v2229_v60 = vpack.c.bf16 %v2192_v42, %v2191_v21  ;;  %8414 = vmatprep.subr.bf16.mxu0 %v8943_v34  ;;  %v2193_v57 = vmul.f32 %v9347_v35, %v15700_v26 }
 0x501   :  { %v9349_v27 = vpop.eup %9348 }
 0x502   :  { %8400 = vmatprep.mubr.bf16.mxu0 %v2229_v60  ;;  %v2194_v9 = vmul.f32 %v9349_v27, %v15701_v37 }
 0x503   :  { %8415 = vmatpush3.bf16.msra.mxu0 %v8943_v34 }
 0x504   :  { %v2230_v56 = vpack.c.bf16 %v2194_v9, %v2193_v57  ;;  %8416 = vmatprep.subr.bf16.mxu0 %v8944_v29 }
 0x506   :  { %8401 = vmatmul.mubr.bf16.gmra.mrb[52].mxu0 %v2230_v56 }
 0x507   :  { %8417 = vmatpush3.bf16.msra.mxu0 %v8944_v29  ;;  %v7431_v29 = vld [vmem:[%s15175_s7] ss:$0 sm:$0xff] }
 0x508   :  { %8418 = vmatprep.subr.bf16.mxu0 %v8945_v16 }
 0x50b   :  { %8419 = vmatpush3.bf16.msra.mxu0 %v8945_v16  ;;  %v15702_v16 = vld [vmem:[#allocation4_spill] sm:$0xff] }
 0x50c   :  { %8420 = vmatprep.subr.bf16.mxu0 %v8946_v47 }
 0x50f   :  { %8421 = vmatpush3.bf16.msra.mxu0 %v8946_v47 }
 0x510   :  { %8422 = vmatprep.subr.bf16.mxu0 %v8947_v10 }
 0x513   :  { %8423 = vmatpush3.bf16.msra.mxu0 %v8947_v10 }
 0x514   :  { %8424 = vmatprep.subr.bf16.mxu0 %v8948_v49 }
 0x517   :  { %8425 = vmatpush3.bf16.msra.mxu0 %v8948_v49 }
 0x518   :  { %8426 = vmatprep.subr.bf16.mxu0 %v8949_v8 }
 0x51b   :  { %8427 = vmatpush3.bf16.msra.mxu0 %v8949_v8 }
 0x540   :  { %v2156_v54 = vpop.xlane.xlu0 %2155 }
 0x541   :  { %9350 = vrcp.f32 %v2156_v54  ;;  %v15703_v54 = vld [vmem:[#allocation5_spill] sm:$0xff] }
 0x542   :  { %v2158_v61 = vpop.xlane.xlu1 %2157 }
 0x543   :  { %9352 = vrcp.f32 %v2158_v61 }
 0x545   :  { %v2160_v43 = vpop.xlane.xlu0 %2159 }
 0x546   :  { %9354 = vrcp.f32 %v2160_v43  ;;  %v2162_v13 = vpop.xlane.xlu1 %2161  ;;  %v15704_v43 = vld [vmem:[#allocation6_spill] sm:$0xff] }
 0x547   :  { %9356 = vrcp.f32 %v2162_v13 }
 0x54b   :  { %v9351_v30 = vpop.eup %9350 }
 0x54c   :  { %v2195_v18 = vmul.f32 %v9351_v30, %v11734_v1 }
 0x54d   :  { %v9353_v0 = vpop.eup %9352 }
 0x54e   :  { %v2196_v62 = vmul.f32 %v9353_v0, %v11739_v14 }
 0x550   :  { %v9355_v19 = vpop.eup %9354  ;;  %v2231_v4 = vpack.c.bf16 %v2196_v62, %v2195_v18  ;;  %v15705_v18 = vld [vmem:[#allocation7_spill] sm:$0xff] }
 0x551   :  { %v9357_v31 = vpop.eup %9356  ;;  %v2197_v24 = vmul.f32 %v9355_v19, %v11742_v40 }
 0x552   :  { %8404 = vmatprep.mubr.bf16.mxu0 %v2231_v4  ;;  %v2198_v20 = vmul.f32 %v9357_v31, %v11745_v36 }
 0x554   :  { %v2232_v46 = vpack.c.bf16 %v2198_v20, %v2197_v24  ;;  %v15706_v20 = vld [vmem:[#allocation8_spill] sm:$0xff] }
 0x556   :  { %v2166_v58 = vpop.xlane.xlu1 %2165  ;;  %8405 = vmatmul.mubr.bf16.gmra.mrb[56].mxu0 %v2232_v46 }
 0x557   :  { %9358 = vrcp.f32 %v2166_v58 }
 0x558   :  { %v2164_v1 = vpop.xlane.xlu0 %2163 }
 0x559   :  { %9360 = vrcp.f32 %v2164_v1  ;;  %v15707_v1 = vld [vmem:[#allocation9_spill] sm:$0xff] }
 0x55c   :  { %v2168_v14 = vpop.xlane.xlu0 %2167 }
 0x55d   :  { %9362 = vrcp.f32 %v2168_v14 }
 0x55e   :  { %v2170_v12 = vpop.xlane.xlu1 %2169 }
 0x55f   :  { %9364 = vrcp.f32 %v2170_v12  ;;  %v15708_v12 = vld [vmem:[#allocation10_spill] sm:$0xff] }
 0x561   :  { %v9359_v23 = vpop.eup %9358 }
 0x562   :  { %v2200_v28 = vmul.f32 %v9359_v23, %v11767_v41 }
 0x563   :  { %v9361_v40 = vpop.eup %9360 }
 0x564   :  { %v2199_v36 = vmul.f32 %v9361_v40, %v11772_v52  ;;  %v15709_v40 = vld [vmem:[#allocation11_spill] sm:$0xff] }
 0x566   :  { %v2233_v11 = vpack.c.bf16 %v2200_v28, %v2199_v36 }
 0x567   :  { %v9363_v15 = vpop.eup %9362 }
 0x568   :  { %8408 = vmatprep.mubr.bf16.mxu0 %v2233_v11  ;;  %v2201_v59 = vmul.f32 %v9363_v15, %v11780_v2 }
 0x569   :  { %v9365_v5 = vpop.eup %9364 }
 0x56a   :  { %v2202_v7 = vmul.f32 %v9365_v5, %v11783_v45 }
 0x56c   :  { %v2234_v48 = vpack.c.bf16 %v2202_v7, %v2201_v59 }
 0x56e   :  { %8409 = vmatmul.mubr.bf16.gmra.mrb[60].mxu0 %v2234_v48  ;;  %v15710_v48 = vld [vmem:[#allocation12_spill] sm:$0xff] }
 0x5d1   :  { %v8398_v33 = vpop.f32.mrb[48].mxu0 }
 0x5d2   :  { %v2269_v3 = vpop.f32.mrb[49].mxu0 }
 0x5d3   :  { %v8399_v38 = vpop.f32.mrb[50].mxu0 }
 0x5d4   :  { %v2349_v44 = vpack.c.bf16 %v8399_v38, %v8398_v33  ;;  %v2272_v39 = vpop.f32.mrb[51].mxu0 }
 0x5d5   :  { %v2348_v55 = vpack.c.bf16 %v2272_v39, %v2269_v3 }
 0x5d7   :  { %8428 = vmatprep.mubr.bf16.mxu0 %v2348_v55  ;;  %v15712_v55 = vld [vmem:[#allocation14_spill] sm:$0xff] }
 0x5d8   :  { %8429 = vmatmul.mubr.bf16.vlgmr.msra.gmra.mrb[64].mxu0 %v2349_v44  ;;  %v15711_v44 = vld [vmem:[#allocation13_spill] sm:$0xff] }
 0x5d9   :  { %v8402_v52 = vpop.f32.mrb[52].mxu0 }
 0x5da   :  { %v2285_v41 = vpop.f32.mrb[53].mxu0 }
 0x5db   :  { %v8403_v32 = vpop.f32.mrb[54].mxu0 }
 0x5dc   :  { %v2351_v6 = vpack.c.bf16 %v8403_v32, %v8402_v52  ;;  %v2288_v51 = vpop.f32.mrb[55].mxu0 }
 0x5dd   :  { %v2350_v25 = vpack.c.bf16 %v2288_v51, %v2285_v41  ;;  %v15713_v41 = vld [vmem:[#allocation15_spill] sm:$0xff] }
 0x5df   :  { %8432 = vmatprep.mubr.bf16.mxu0 %v2350_v25 }
 0x5e0   :  { %8433 = vmatmul.mubr.bf16.gmra.mrb[68].mxu0 %v2351_v6 }
 0x629   :  { %v8406_v2 = vpop.f32.mrb[56].mxu0 }
 0x62a   :  { %v2301_v45 = vpop.f32.mrb[57].mxu0 }
 0x62b   :  { %v8407_v63 = vpop.f32.mrb[58].mxu0 }
 0x62c   :  { %v2353_v17 = vpack.c.bf16 %v8407_v63, %v8406_v2  ;;  %v2304_v34 = vpop.f32.mrb[59].mxu0 }
 0x62d   :  { %v2352_v50 = vpack.c.bf16 %v2304_v34, %v2301_v45 }
 0x62f   :  { %8436 = vmatprep.mubr.bf16.mxu0 %v2352_v50 }
 0x630   :  { %8437 = vmatmul.mubr.bf16.gmra.mrb[72].mxu0 %v2353_v17  ;;  %v15714_v17 = vld [vmem:[#allocation16_spill] sm:$0xff] }
 0x641   :  { %v8410_v22 = vpop.f32.mrb[60].mxu0 }
 0x642   :  { %v2317_v21 = vpop.f32.mrb[61].mxu0 }
 0x643   :  { %v8411_v53 = vpop.f32.mrb[62].mxu0 }
 0x644   :  { %v2355_v42 = vpack.c.bf16 %v8411_v53, %v8410_v22  ;;  %v2320_v35 = vpop.f32.mrb[63].mxu0 }
 0x645   :  { %v2354_v60 = vpack.c.bf16 %v2320_v35, %v2317_v21  ;;  %v15715_v21 = vld [vmem:[#allocation17_spill] sm:$0xff] }
 0x647   :  { %8440 = vmatprep.mubr.bf16.mxu0 %v2354_v60  ;;  %v15717_v60 = vld [vmem:[#allocation19_spill] sm:$0xff] }
 0x648   :  { %8441 = vmatmul.mubr.bf16.gmra.mrb[76].mxu0 %v2355_v42  ;;  %v15716_v42 = vld [vmem:[#allocation18_spill] sm:$0xff] }
 0x6ab   :  { %v8430_v27 = vpop.f32.mrb[64].mxu0 }
 0x6ac   :  { %v2461_v26 = vpop.f32.mrb[65].mxu0  ;;  %v2470_v56 = vadd.f32 %v8430_v27, %v7431_v29 }
 0x6ad   :  { %v2462_v57 = vadd.f32 %v7431_v29, %v2461_v26  ;;  %v8431_v37 = vpop.f32.mrb[66].mxu0  ;;  %v8952_v26 = vld [vmem:[%s15176_s10 + $0x4] ss:$8 sps:$4 sm:$0xff]  }
 0x6ae   :  { %v2464_v9 = vpop.f32.mrb[67].mxu0  ;;  %v2473_v49 = vadd.f32 %v8431_v37, %v7431_v29  ;;  %v11872_v13 = vadd.f32 %v2470_v56, %v15704_v43  ;;  %v8953_v37 = vld [vmem:[%s15176_s10 + $0x10] ss:$8 sps:$4 sm:$0xff]   ;;  %2878 = vmatprep.subr.bf16.mxu1 %v8952_v26 }
 0x6af   :  { %v11865_v47 = vadd.f32 %v2462_v57, %v15702_v16  ;;  %v2465_v10 = vadd.f32 %v7431_v29, %v2464_v9  ;;  %v8955_v9 = vld [vmem:[%s15176_s10 + $0x14] ss:$8 sps:$4 sm:$0xff]  }
 0x6b0   :  { %v11876_v62 = vadd.f32 %v2473_v49, %v15705_v18 }
 0x6b1   :  { %v11868_v61 = vadd.f32 %v2465_v10, %v15703_v54  ;;  %2542 = vadd.xlane.f32.xlu0 %v11865_v47 }
 0x6b3   :  { %v8434_v30 = vpop.f32.mrb[68].mxu0  ;;  %2544 = vadd.xlane.f32.xlu1 %v11868_v61 }
 0x6b4   :  { %v2477_v0 = vpop.f32.mrb[69].mxu0  ;;  %v2486_v24 = vadd.f32 %v8434_v30, %v7431_v29 }
 0x6b5   :  { %v2478_v19 = vadd.f32 %v7431_v29, %v2477_v0  ;;  %v8435_v4 = vpop.f32.mrb[70].mxu0  ;;  %2546 = vadd.xlane.f32.xlu0 %v11872_v13 }
 0x6b6   :  { %v2480_v31 = vpop.f32.mrb[71].mxu0  ;;  %v2489_v58 = vadd.f32 %v8435_v4, %v7431_v29  ;;  %v11888_v23 = vadd.f32 %v2486_v24, %v15708_v12 }
 0x6b7   :  { %v11880_v46 = vadd.f32 %v2478_v19, %v15706_v20  ;;  %v2481_v8 = vadd.f32 %v7431_v29, %v2480_v31  ;;  %2548 = vadd.xlane.f32.xlu1 %v11876_v62 }
 0x6b8   :  { %v11892_v36 = vadd.f32 %v2489_v58, %v15709_v40 }
 0x6b9   :  { %v11884_v14 = vadd.f32 %v2481_v8, %v15707_v1  ;;  %2550 = vadd.xlane.f32.xlu0 %v11880_v46 }
 0x6bb   :  { %2552 = vadd.xlane.f32.xlu1 %v11884_v14 }
 0x6bd   :  { %2554 = vadd.xlane.f32.xlu0 %v11888_v23 }
 0x6bf   :  { %2556 = vadd.xlane.f32.xlu1 %v11892_v36 }
 0x703   :  { %v8438_v28 = vpop.f32.mrb[72].mxu0 }
 0x704   :  { %v2493_v11 = vpop.f32.mrb[73].mxu0  ;;  %v2502_v7 = vadd.f32 %v8438_v28, %v7431_v29 }
 0x705   :  { %v2494_v15 = vadd.f32 %v7431_v29, %v2493_v11  ;;  %v8439_v5 = vpop.f32.mrb[74].mxu0 }
 0x706   :  { %v2496_v59 = vpop.f32.mrb[75].mxu0  ;;  %v2505_v38 = vadd.f32 %v8439_v5, %v7431_v29  ;;  %v11904_v52 = vadd.f32 %v2502_v7, %v15712_v55  ;;  %v8967_v55 = vld [vmem:[%s15176_s10 + $0x54] ss:$8 sps:$4 sm:$0xff]  }
 0x707   :  { %v11897_v33 = vadd.f32 %v2494_v15, %v15710_v48  ;;  %v2497_v3 = vadd.f32 %v7431_v29, %v2496_v59  ;;  %v8958_v48 = vld [vmem:[%s15176_s10 + $0x24] ss:$8 sps:$4 sm:$0xff]  }
 0x708   :  { %v11908_v32 = vadd.f32 %v2505_v38, %v15713_v41  ;;  %v8964_v38 = vld [vmem:[%s15176_s10 + $0x44] ss:$8 sps:$4 sm:$0xff]   ;;  %v8965_v41 = vld [vmem:[%s15176_s10 + $0x50] ss:$8 sps:$4 sm:$0xff]  }
 0x709   :  { %v11900_v39 = vadd.f32 %v2497_v3, %v15711_v44  ;;  %2558 = vadd.xlane.f32.xlu0 %v11897_v33  ;;  %v8959_v3 = vld [vmem:[%s15176_s10 + $0x30] ss:$8 sps:$4 sm:$0xff]   ;;  %v8962_v44 = vld [vmem:[%s15176_s10 + $0x40] ss:$8 sps:$4 sm:$0xff]  }
 0x70b   :  { %2560 = vadd.xlane.f32.xlu1 %v11900_v39 }
 0x70d   :  { %2562 = vadd.xlane.f32.xlu0 %v11904_v52 }
 0x70f   :  { %2564 = vadd.xlane.f32.xlu1 %v11908_v32 }
 0x71b   :  { %v8442_v6 = vpop.f32.mrb[76].mxu0 }
 0x71c   :  { %v2509_v51 = vpop.f32.mrb[77].mxu0  ;;  %v2518_v63 = vadd.f32 %v8442_v6, %v7431_v29  ;;  %v8970_v6 = vld [vmem:[%s15176_s10 + $0x64] ss:$8 sps:$4 sm:$0xff]  }
 0x71d   :  { %v2510_v25 = vadd.f32 %v7431_v29, %v2509_v51  ;;  %v8443_v2 = vpop.f32.mrb[78].mxu0  ;;  %v8968_v51 = vld [vmem:[%s15176_s10 + $0x60] ss:$8 sps:$4 sm:$0xff]  }
 0x71e   :  { %v2512_v45 = vpop.f32.mrb[79].mxu0  ;;  %v2521_v22 = vadd.f32 %v8443_v2, %v7431_v29  ;;  %v11920_v35 = vadd.f32 %v2518_v63, %v15716_v42  ;;  %v8971_v2 = vld [vmem:[%s15176_s10 + $0x70] ss:$8 sps:$4 sm:$0xff]  }
 0x71f   :  { %v11913_v34 = vadd.f32 %v2510_v25, %v15714_v17  ;;  %v2513_v50 = vadd.f32 %v7431_v29, %v2512_v45  ;;  %v8950_v29 = vld [vmem:[%s15176_s10] ss:$8 sps:$4 sm:$0xff]   ;;  %v8973_v25 = vld [vmem:[%s15176_s10 + $0x74] ss:$8 sps:$4 sm:$0xff]  }
 0x720   :  { %v11924_v27 = vadd.f32 %v2521_v22, %v15717_v60  ;;  %2879 = vmatpush1.bf16.msra.mxu1 %v8950_v29 }
 0x721   :  { %v11916_v53 = vadd.f32 %v2513_v50, %v15715_v21  ;;  %2566 = vadd.xlane.f32.xlu0 %v11913_v34  ;;  %2880 = vmatprep.subr.bf16.mxu1 %v8955_v9 }
 0x723   :  { %2568 = vadd.xlane.f32.xlu1 %v11916_v53 }
 0x724   :  { %2881 = vmatpush1.bf16.msra.mxu1 %v8953_v37 }
 0x725   :  { %2570 = vadd.xlane.f32.xlu0 %v11920_v35  ;;  %2882 = vmatprep.subr.bf16.mxu1 %v8958_v48 }
 0x727   :  { %2572 = vadd.xlane.f32.xlu1 %v11924_v27 }
 0x73e   :  { %v2543_v57 = vpop.xlane.xlu0 %2542 }
 0x73f   :  { %v2574_v56 = vmul.f32 0.0078125, %v2543_v57 }
 0x740   :  { %v2545_v16 = vpop.xlane.xlu1 %2544 }
 0x741   :  { %v11941_v10 = vsub.f32 %v11865_v47, %v2574_v56  ;;  %v2575_v49 = vmul.f32 0.0078125, %v2545_v16 }
 0x742   :  { %v2547_v54 = vpop.xlane.xlu0 %2546 }
 0x743   :  { %v11944_v43 = vsub.f32 %v11868_v61, %v2575_v49  ;;  %v2576_v30 = vmul.f32 0.0078125, %v2547_v54  ;;  %v2606_v0 = vmul.f32 %v11941_v10, %v11941_v10 }
 0x744   :  { %v2549_v18 = vpop.xlane.xlu1 %2548 }
 0x745   :  { %v11949_v19 = vsub.f32 %v11872_v13, %v2576_v30  ;;  %v2577_v4 = vmul.f32 0.0078125, %v2549_v18  ;;  %2622 = vadd.xlane.f32.xlu0 %v2606_v0  ;;  %v2607_v47 = vmul.f32 %v11944_v43, %v11944_v43 }
 0x746   :  { %v2551_v31 = vpop.xlane.xlu0 %2550 }
 0x747   :  { %v11954_v24 = vsub.f32 %v11876_v62, %v2577_v4  ;;  %v2578_v61 = vmul.f32 0.0078125, %v2551_v31  ;;  %2624 = vadd.xlane.f32.xlu1 %v2607_v47  ;;  %v2608_v20 = vmul.f32 %v11949_v19, %v11949_v19 }
 0x748   :  { %v2553_v8 = vpop.xlane.xlu1 %2552 }
 0x749   :  { %v11959_v58 = vsub.f32 %v11880_v46, %v2578_v61  ;;  %v2579_v13 = vmul.f32 0.0078125, %v2553_v8  ;;  %2626 = vadd.xlane.f32.xlu0 %v2608_v20  ;;  %v2609_v1 = vmul.f32 %v11954_v24, %v11954_v24 }
 0x74a   :  { %v2555_v12 = vpop.xlane.xlu0 %2554 }
 0x74b   :  { %v11964_v40 = vsub.f32 %v11884_v14, %v2579_v13  ;;  %v2580_v62 = vmul.f32 0.0078125, %v2555_v12  ;;  %2628 = vadd.xlane.f32.xlu1 %v2609_v1  ;;  %v2610_v28 = vmul.f32 %v11959_v58, %v11959_v58 }
 0x74c   :  { %v2557_v11 = vpop.xlane.xlu1 %2556 }
 0x74d   :  { %v11969_v15 = vsub.f32 %v11888_v23, %v2580_v62  ;;  %v2581_v46 = vmul.f32 0.0078125, %v2557_v11  ;;  %2630 = vadd.xlane.f32.xlu0 %v2610_v28  ;;  %v2611_v5 = vmul.f32 %v11964_v40, %v11964_v40  ;;  %v8956_v23 = vld [vmem:[%s15176_s10 + $0x20] ss:$8 sps:$4 sm:$0xff]  }
 0x74e   :  { %2883 = vmatpush1.bf16.msra.mxu1 %v8956_v23 }
 0x74f   :  { %v11974_v59 = vsub.f32 %v11892_v36, %v2581_v46  ;;  %2632 = vadd.xlane.f32.xlu1 %v2611_v5  ;;  %v2612_v14 = vmul.f32 %v11969_v15, %v11969_v15  ;;  %v8961_v36 = vld [vmem:[%s15176_s10 + $0x34] ss:$8 sps:$4 sm:$0xff]  }
 0x750   :  { %2884 = vmatprep.subr.bf16.mxu1 %v8961_v36 }
 0x751   :  { %2634 = vadd.xlane.f32.xlu0 %v2612_v14  ;;  %v2613_v7 = vmul.f32 %v11974_v59, %v11974_v59 }
 0x752   :  { %2885 = vmatpush1.bf16.msra.mxu1 %v8959_v3 }
 0x753   :  { %2636 = vadd.xlane.f32.xlu1 %v2613_v7  ;;  %2886 = vmatprep.subr.bf16.mxu1 %v8964_v38 }
 0x756   :  { %2887 = vmatpush1.bf16.msra.mxu1 %v8962_v44 }
 0x757   :  { %2888 = vmatprep.subr.bf16.mxu1 %v8967_v55 }
 0x75a   :  { %2889 = vmatpush1.bf16.msra.mxu1 %v8965_v41 }
 0x75b   :  { %2890 = vmatprep.subr.bf16.mxu1 %v8970_v6 }
 0x75e   :  { %2891 = vmatpush1.bf16.msra.mxu1 %v8968_v51  ;;  %v12059_v51 = vld [vmem:[%s15177_s8] ss:$0 sm:$0xff] }
 0x75f   :  { %2892 = vmatprep.subr.bf16.mxu1 %v8973_v25 }
 0x762   :  { %2893 = vmatpush1.bf16.msra.mxu1 %v8971_v2 }
 0x796   :  { %v2559_v45 = vpop.xlane.xlu0 %2558 }
 0x797   :  { %v2582_v63 = vmul.f32 0.0078125, %v2559_v45 }
 0x798   :  { %v2561_v17 = vpop.xlane.xlu1 %2560 }
 0x799   :  { %v12017_v50 = vsub.f32 %v11897_v33, %v2582_v63  ;;  %v2583_v22 = vmul.f32 0.0078125, %v2561_v17 }
 0x79a   :  { %v2563_v21 = vpop.xlane.xlu0 %2562 }
 0x79b   :  { %v12020_v42 = vsub.f32 %v11900_v39, %v2583_v22  ;;  %v2584_v60 = vmul.f32 0.0078125, %v2563_v21  ;;  %v2614_v29 = vmul.f32 %v12017_v50, %v12017_v50 }
 0x79c   :  { %v2565_v26 = vpop.xlane.xlu1 %2564 }
 0x79d   :  { %v12025_v57 = vsub.f32 %v11904_v52, %v2584_v60  ;;  %v2585_v37 = vmul.f32 0.0078125, %v2565_v26  ;;  %2638 = vadd.xlane.f32.xlu0 %v2614_v29  ;;  %v2615_v9 = vmul.f32 %v12020_v42, %v12020_v42  ;;  %v12067_v29 = vld [vmem:[%s15178_s9] ss:$0 sm:$0xff] }
 0x79f   :  { %v12030_v33 = vsub.f32 %v11908_v32, %v2585_v37  ;;  %2640 = vadd.xlane.f32.xlu1 %v2615_v9  ;;  %v2616_v39 = vmul.f32 %v12025_v57, %v12025_v57 }
 0x7a1   :  { %2642 = vadd.xlane.f32.xlu0 %v2616_v39  ;;  %v2617_v56 = vmul.f32 %v12030_v33, %v12030_v33 }
 0x7a3   :  { %2644 = vadd.xlane.f32.xlu1 %v2617_v56 }
 0x7ae   :  { %v2567_v16 = vpop.xlane.xlu0 %2566 }
 0x7af   :  { %v2586_v52 = vmul.f32 0.0078125, %v2567_v16 }
 0x7b0   :  { %v2569_v49 = vpop.xlane.xlu1 %2568 }
 0x7b1   :  { %v12037_v54 = vsub.f32 %v11913_v34, %v2586_v52  ;;  %v2587_v30 = vmul.f32 0.0078125, %v2569_v49 }
 0x7b2   :  { %v2571_v0 = vpop.xlane.xlu0 %2570 }
 0x7b3   :  { %v12040_v32 = vsub.f32 %v11916_v53, %v2587_v30  ;;  %v2588_v18 = vmul.f32 0.0078125, %v2571_v0  ;;  %v2618_v4 = vmul.f32 %v12037_v54, %v12037_v54 }
 0x7b4   :  { %v2573_v47 = vpop.xlane.xlu1 %2572 }
 0x7b5   :  { %v12045_v31 = vsub.f32 %v11920_v35, %v2588_v18  ;;  %v2589_v61 = vmul.f32 0.0078125, %v2573_v47  ;;  %2646 = vadd.xlane.f32.xlu0 %v2618_v4  ;;  %v2619_v20 = vmul.f32 %v12040_v32, %v12040_v32  ;;  %v15718_v18 = vmov 0  }
 0x7b7   :  { %v12050_v34 = vsub.f32 %v11924_v27, %v2589_v61  ;;  %2648 = vadd.xlane.f32.xlu1 %v2619_v20  ;;  %v2620_v53 = vmul.f32 %v12045_v31, %v12045_v31 }
 0x7b9   :  { %2650 = vadd.xlane.f32.xlu0 %v2620_v53  ;;  %v2621_v8 = vmul.f32 %v12050_v34, %v12050_v34 }
 0x7bb   :  { %2652 = vadd.xlane.f32.xlu1 %v2621_v8 }
 0x7d2   :  { %v2623_v13 = vpop.xlane.xlu0 %2622 }
 0x7d3   :  { %v2654_v35 = vmul.f32 0.0078125, %v2623_v13 }
 0x7d4   :  { %v2625_v1 = vpop.xlane.xlu1 %2624 }
 0x7d5   :  { %v2670_v12 = vadd.f32 1e-05, %v2654_v35  ;;  %v2655_v62 = vmul.f32 0.0078125, %v2625_v1 }
 0x7d6   :  { %v2627_v28 = vpop.xlane.xlu0 %2626 }
 0x7d7   :  { %9366 = vrsqrt.f32 %v2670_v12  ;;  %v2671_v11 = vadd.f32 1e-05, %v2655_v62  ;;  %v2656_v46 = vmul.f32 0.0078125, %v2627_v28 }
 0x7d8   :  { %v2629_v27 = vpop.xlane.xlu1 %2628 }
 0x7d9   :  { %9368 = vrsqrt.f32 %v2671_v11  ;;  %v2672_v5 = vadd.f32 1e-05, %v2656_v46  ;;  %v2657_v14 = vmul.f32 0.0078125, %v2629_v27 }
 0x7da   :  { %v2631_v7 = vpop.xlane.xlu0 %2630 }
 0x7db   :  { %9370 = vrsqrt.f32 %v2672_v5  ;;  %v2673_v23 = vadd.f32 1e-05, %v2657_v14  ;;  %v2658_v48 = vmul.f32 0.0078125, %v2631_v7 }
 0x7dc   :  { %v2633_v36 = vpop.xlane.xlu1 %2632 }
 0x7dd   :  { %9372 = vrsqrt.f32 %v2673_v23  ;;  %v2659_v3 = vmul.f32 0.0078125, %v2633_v36  ;;  %v2674_v38 = vadd.f32 1e-05, %v2658_v48 }
 0x7de   :  { %v2635_v55 = vpop.xlane.xlu0 %2634 }
 0x7df   :  { %v2675_v44 = vadd.f32 1e-05, %v2659_v3  ;;  %v2660_v63 = vmul.f32 0.0078125, %v2635_v55 }
 0x7e0   :  { %v2637_v41 = vpop.xlane.xlu1 %2636 }
 0x7e1   :  { %v9367_v6 = vpop.eup %9366  ;;  %9374 = vrsqrt.f32 %v2675_v44  ;;  %v2661_v25 = vmul.f32 0.0078125, %v2637_v41  ;;  %v2676_v9 = vadd.f32 1e-05, %v2660_v63 }
 0x7e2   :  { %v2702_v2 = vmul.f32 %v9367_v6, %v11941_v10  ;;  %9376 = vrsqrt.f32 %v2674_v38 }
 0x7e3   :  { %v9369_v45 = vpop.eup %9368  ;;  %v2677_v60 = vadd.f32 1e-05, %v2661_v25 }
 0x7e4   :  { %v2724_v17 = vmul.f32 %v12059_v51, %v2702_v2  ;;  %v2703_v22 = vmul.f32 %v9369_v45, %v11944_v43 }
 0x7e5   :  { %v9371_v21 = vpop.eup %9370  ;;  %9378 = vrsqrt.f32 %v2677_v60 }
 0x7e6   :  { %v2725_v26 = vmul.f32 %v12059_v51, %v2703_v22  ;;  %v12071_v10 = vadd.f32 %v12067_v29, %v2724_v17  ;;  %v2704_v56 = vmul.f32 %v9371_v21, %v11949_v19  ;;  %9380 = vrsqrt.f32 %v2676_v9 }
 0x7e7   :  { %v9373_v37 = vpop.eup %9372 }
 0x7e8   :  { %v12074_v39 = vadd.f32 %v12067_v29, %v2725_v26  ;;  %v2705_v43 = vmul.f32 %v9373_v37, %v11954_v24  ;;  %v2726_v30 = vmul.f32 %v12059_v51, %v2704_v56 }
 0x7ea   :  { %v2762_v16 = vpack.c.bf16 %v12074_v39, %v12071_v10  ;;  %v2727_v52 = vmul.f32 %v12059_v51, %v2705_v43  ;;  %v12088_v24 = vadd.f32 %v12067_v29, %v2726_v30 }
 0x7eb   :  { %v9375_v49 = vpop.eup %9374 }
 0x7ec   :  { %2911 = vmatmul.mubr.bf16.vlgmr.msra.gmra.mrb[64].mxu1 %v2762_v16  ;;  %v9377_v0 = vpop.eup %9376  ;;  %v12084_v4 = vadd.f32 %v12067_v29, %v2727_v52  ;;  %v2707_v19 = vmul.f32 %v9375_v49, %v11964_v40 }
 0x7ed   :  { %2920 = vmatprep.mubr.bf16.mxu1 %v15718_v18  ;;  %v2706_v47 = vmul.f32 %v9377_v0, %v11959_v58 }
 0x7ee   :  { %v2763_v61 = vpack.c.bf16 %v12084_v4, %v12088_v24  ;;  %v2729_v20 = vmul.f32 %v12059_v51, %v2707_v19 }
 0x7ef   :  { %v9379_v53 = vpop.eup %9378  ;;  %v2728_v8 = vmul.f32 %v12059_v51, %v2706_v47 }
 0x7f0   :  { %v9381_v13 = vpop.eup %9380  ;;  %v12097_v35 = vadd.f32 %v12067_v29, %v2729_v20  ;;  %v2709_v40 = vmul.f32 %v9379_v53, %v11974_v59 }
 0x7f1   :  { %v12101_v1 = vadd.f32 %v12067_v29, %v2728_v8  ;;  %v2708_v58 = vmul.f32 %v9381_v13, %v11969_v15 }
 0x7f2   :  { %v2731_v62 = vmul.f32 %v12059_v51, %v2709_v40 }
 0x7f3   :  { %v2764_v12 = vpack.c.bf16 %v12097_v35, %v12101_v1  ;;  %v2730_v28 = vmul.f32 %v12059_v51, %v2708_v58 }
 0x7f4   :  { %2921 = vmatmul.mubr.bf16.gmra.mrb[68].mxu1 %v2763_v61  ;;  %v12110_v11 = vadd.f32 %v12067_v29, %v2731_v62 }
 0x7f5   :  { %2930 = vmatprep.mubr.bf16.mxu1 %v15718_v18  ;;  %v12113_v59 = vadd.f32 %v12067_v29, %v2730_v28 }
 0x7f7   :  { %v2765_v46 = vpack.c.bf16 %v12110_v11, %v12113_v59 }
 0x7fc   :  { %2931 = vmatmul.mubr.bf16.gmra.mrb[72].mxu1 %v2764_v12 }
 0x7fd   :  { %2940 = vmatprep.mubr.bf16.mxu1 %v15718_v18 }
 0x804   :  { %2941 = vmatmul.mubr.bf16.gmra.mrb[76].mxu1 %v2765_v46 }
 0x805   :  { %2950 = vmatprep.mubr.bf16.mxu1 %v15718_v18 }
 0x82a   :  { %v2639_v15 = vpop.xlane.xlu0 %2638 }
 0x82b   :  { %v2662_v27 = vmul.f32 0.0078125, %v2639_v15 }
 0x82c   :  { %v2641_v5 = vpop.xlane.xlu1 %2640 }
 0x82d   :  { %v2678_v14 = vadd.f32 1e-05, %v2662_v27  ;;  %v2663_v7 = vmul.f32 0.0078125, %v2641_v5 }
 0x82e   :  { %v2643_v23 = vpop.xlane.xlu0 %2642 }
 0x82f   :  { %9382 = vrsqrt.f32 %v2678_v14  ;;  %v2679_v48 = vadd.f32 1e-05, %v2663_v7  ;;  %v2664_v36 = vmul.f32 0.0078125, %v2643_v23 }
 0x830   :  { %v2645_v3 = vpop.xlane.xlu1 %2644 }
 0x831   :  { %9384 = vrsqrt.f32 %v2679_v48  ;;  %v2680_v38 = vadd.f32 1e-05, %v2664_v36  ;;  %v2665_v44 = vmul.f32 0.0078125, %v2645_v3 }
 0x833   :  { %9386 = vrsqrt.f32 %v2680_v38  ;;  %v2681_v55 = vadd.f32 1e-05, %v2665_v44  ;;  %v8978_v38 = vld [vmem:[%s15179_s12 + $0x50] sm:$0xff]  }
 0x834   :  { %v8979_v44 = vld [vmem:[%s15179_s12 + $0x10] sm:$0xff]  }
 0x835   :  { %9388 = vrsqrt.f32 %v2681_v55  ;;  %v8980_v55 = vld [vmem:[%s15179_s12 + $0x58] sm:$0xff]  }
 0x839   :  { %v9383_v41 = vpop.eup %9382 }
 0x83a   :  { %v2710_v6 = vmul.f32 %v9383_v41, %v12017_v50  ;;  %v8981_v41 = vld [vmem:[%s15179_s12 + $0x18] sm:$0xff]  }
 0x83b   :  { %v9385_v25 = vpop.eup %9384 }
 0x83c   :  { %v2711_v2 = vmul.f32 %v9385_v25, %v12020_v42  ;;  %v2732_v45 = vmul.f32 %v12059_v51, %v2710_v6  ;;  %v8982_v6 = vld [vmem:[%s15179_s12 + $0x60] sm:$0xff]  }
 0x83d   :  { %v9387_v63 = vpop.eup %9386  ;;  %v8983_v25 = vld [vmem:[%s15179_s12 + $0x20] sm:$0xff]  }
 0x83e   :  { %v2733_v17 = vmul.f32 %v12059_v51, %v2711_v2  ;;  %v12123_v21 = vadd.f32 %v12067_v29, %v2732_v45  ;;  %v2712_v26 = vmul.f32 %v9387_v63, %v12025_v57  ;;  %v8984_v2 = vld [vmem:[%s15179_s12 + $0x68] sm:$0xff]   ;;  %v8986_v63 = vld [vmem:[%s15179_s12 + $0x70] sm:$0xff]  }
 0x83f   :  { %v9389_v22 = vpop.eup %9388  ;;  %v8985_v45 = vld [vmem:[%s15179_s12 + $0x28] sm:$0xff]  }
 0x840   :  { %v12126_v60 = vadd.f32 %v12067_v29, %v2733_v17  ;;  %v2713_v37 = vmul.f32 %v9389_v22, %v12030_v33  ;;  %v2734_v16 = vmul.f32 %v12059_v51, %v2712_v26  ;;  %v8987_v17 = vld [vmem:[%s15179_s12 + $0x30] sm:$0xff]   ;;  %v8988_v22 = vld [vmem:[%s15179_s12 + $0x78] sm:$0xff]  }
 0x841   :  { %v8989_v26 = vld [vmem:[%s15179_s12 + $0x38] sm:$0xff]  }
 0x842   :  { %v2647_v50 = vpop.xlane.xlu0 %2646  ;;  %v2766_v42 = vpack.c.bf16 %v12126_v60, %v12123_v21  ;;  %v2735_v9 = vmul.f32 %v12059_v51, %v2713_v37  ;;  %v12139_v47 = vadd.f32 %v12067_v29, %v2734_v16  ;;  %v2786_v37 = vld [vmem:[%s15180_s11] sm:$0x3] }
 0x843   :  { %v2666_v56 = vmul.f32 0.0078125, %v2647_v50  ;;  %v15719_v50 = vld [vmem:[#allocation21_spill] sm:$0xff] }
 0x844   :  { %v2649_v43 = vpop.xlane.xlu1 %2648  ;;  %2951 = vmatmul.mubr.bf16.gmra.mrb[80].mxu1 %v2766_v42  ;;  %v12136_v57 = vadd.f32 %v12067_v29, %v2735_v9  ;;  %v12222_v42 = vrot.slane %v2786_v37, %v15719_v50  ;;  %v15720_v9 = vld [vmem:[#allocation22_spill] sm:$0xff] }
 0x845   :  { %v2682_v52 = vadd.f32 1e-05, %v2666_v56  ;;  %v2667_v49 = vmul.f32 0.0078125, %v2649_v43  ;;  %2960 = vmatprep.mubr.bf16.mxu1 %v15718_v18  ;;  %v12225_v56 = vrot.slane %v2786_v37, %v15720_v9 }
 0x846   :  { %v2651_v30 = vpop.xlane.xlu0 %2650  ;;  %v2767_v53 = vpack.c.bf16 %v12136_v57, %v12139_v47 }
 0x847   :  { %9390 = vrsqrt.f32 %v2682_v52  ;;  %v2683_v33 = vadd.f32 1e-05, %v2667_v49  ;;  %v2668_v0 = vmul.f32 0.0078125, %v2651_v30 }
 0x848   :  { %v2653_v19 = vpop.xlane.xlu1 %2652 }
 0x849   :  { %9392 = vrsqrt.f32 %v2683_v33  ;;  %v2684_v61 = vadd.f32 1e-05, %v2668_v0  ;;  %v2669_v20 = vmul.f32 0.0078125, %v2653_v19 }
 0x84b   :  { %9394 = vrsqrt.f32 %v2684_v61  ;;  %v2685_v8 = vadd.f32 1e-05, %v2669_v20 }
 0x84c   :  { %2961 = vmatmul.mubr.bf16.gmra.mrb[84].mxu1 %v2767_v53 }
 0x84d   :  { %9396 = vrsqrt.f32 %v2685_v8  ;;  %2970 = vmatprep.mubr.bf16.mxu1 %v15718_v18 }
 0x851   :  { %v9391_v13 = vpop.eup %9390 }
 0x852   :  { %v2714_v40 = vmul.f32 %v9391_v13, %v12037_v54 }
 0x853   :  { %v9393_v58 = vpop.eup %9392 }
 0x854   :  { %v2715_v12 = vmul.f32 %v9393_v58, %v12040_v32  ;;  %v2736_v62 = vmul.f32 %v12059_v51, %v2714_v40 }
 0x855   :  { %v9395_v28 = vpop.eup %9394 }
 0x856   :  { %v2737_v46 = vmul.f32 %v12059_v51, %v2715_v12  ;;  %v12149_v27 = vadd.f32 %v12067_v29, %v2736_v62  ;;  %v2716_v14 = vmul.f32 %v9395_v28, %v12045_v31  ;;  %v8974_v31 = vld [vmem:[%s15179_s12 + $0x40] sm:$0xff]  }
 0x857   :  { %v9397_v15 = vpop.eup %9396  ;;  %7820 = vmatprep.subr.bf16.mxu0 %v8974_v31 }
 0x858   :  { %v12152_v5 = vadd.f32 %v12067_v29, %v2737_v46  ;;  %v2717_v7 = vmul.f32 %v9397_v15, %v12050_v34  ;;  %v2738_v23 = vmul.f32 %v12059_v51, %v2716_v14  ;;  %v8975_v34 = vld [vmem:[%s15179_s12] sm:$0xff]  }
 0x859   :  { %7821 = vmatpush3.bf16.msra.mxu0 %v8975_v34 }
 0x85a   :  { %v2768_v54 = vpack.c.bf16 %v12152_v5, %v12149_v27  ;;  %v2739_v32 = vmul.f32 %v12059_v51, %v2717_v7  ;;  %v12165_v36 = vadd.f32 %v12067_v29, %v2738_v23  ;;  %v8976_v51 = vld [vmem:[%s15179_s12 + $0x48] sm:$0xff]  }
 0x85b   :  { %7822 = vmatprep.subr.bf16.mxu0 %v8976_v51 }
 0x85c   :  { %2971 = vmatmul.mubr.bf16.gmra.mrb[88].mxu1 %v2768_v54  ;;  %v12162_v48 = vadd.f32 %v12067_v29, %v2739_v32  ;;  %v8977_v29 = vld [vmem:[%s15179_s12 + $0x8] sm:$0xff]  }
 0x85d   :  { %2980 = vmatprep.mubr.bf16.mxu1 %v15718_v18  ;;  %7823 = vmatpush3.bf16.msra.mxu0 %v8977_v29 }
 0x85e   :  { %v2769_v3 = vpack.c.bf16 %v12162_v48, %v12165_v36  ;;  %7824 = vmatprep.subr.bf16.mxu0 %v8978_v38 }
 0x861   :  { %7825 = vmatpush3.bf16.msra.mxu0 %v8979_v44 }
 0x862   :  { %7826 = vmatprep.subr.bf16.mxu0 %v8980_v55 }
 0x864   :  { %2981 = vmatmul.mubr.bf16.gmra.mrb[92].mxu1 %v2769_v3 }
 0x865   :  { %3984 = vmatprep.mubr.bf16.mxu1 %v15718_v18  ;;  %7827 = vmatpush3.bf16.msra.mxu0 %v8981_v41 }
 0x866   :  { %7828 = vmatprep.subr.bf16.mxu0 %v8982_v6 }
 0x869   :  { %7829 = vmatpush3.bf16.msra.mxu0 %v8983_v25 }
 0x86a   :  { %7830 = vmatprep.subr.bf16.mxu0 %v8984_v2 }
 0x86d   :  { %7831 = vmatpush3.bf16.msra.mxu0 %v8985_v45 }
 0x86e   :  { %7832 = vmatprep.subr.bf16.mxu0 %v8986_v63 }
 0x871   :  { %7833 = vmatpush3.bf16.msra.mxu0 %v8987_v17 }
 0x872   :  { %7834 = vmatprep.subr.bf16.mxu0 %v8988_v22 }
 0x875   :  { %7835 = vmatpush3.bf16.msra.mxu0 %v8989_v26 }
 0x8bf   :  { %v2912_v43 = vpop.f32.mrb[64].mxu1 }
 0x8c0   :  { %v12228_v16 = vadd.f32 %v2912_v43, %v12222_v42  ;;  %v2914_v52 = vpop.f32.mrb[65].mxu1 }
 0x8c1   :  { %v12231_v49 = vadd.f32 %v2914_v52, %v12225_v56  ;;  %v2916_v30 = vpop.f32.mrb[66].mxu1 }
 0x8c2   :  { %v2991_v33 = vmul.f32 %v12228_v16, %v12228_v16  ;;  %v12236_v0 = vadd.f32 %v2916_v30, %v12222_v42  ;;  %v2918_v19 = vpop.f32.mrb[67].mxu1 }
 0x8c3   :  { %v2992_v61 = vmul.f32 %v12231_v49, %v12231_v49  ;;  %v12241_v20 = vadd.f32 %v2918_v19, %v12225_v56 }
 0x8c4   :  { %v3023_v53 = vmul.f32 %v2991_v33, %v12228_v16  ;;  %v2993_v8 = vmul.f32 %v12236_v0, %v12236_v0 }
 0x8c5   :  { %v3024_v13 = vmul.f32 %v2992_v61, %v12231_v49  ;;  %v2994_v40 = vmul.f32 %v12241_v20, %v12241_v20 }
 0x8c6   :  { %v3055_v58 = vmul.f32 0.044715, %v3023_v53  ;;  %v3025_v12 = vmul.f32 %v2993_v8, %v12236_v0 }
 0x8c7   :  { %v3056_v62 = vmul.f32 0.044715, %v3024_v13  ;;  %v3026_v28 = vmul.f32 %v2994_v40, %v12241_v20  ;;  %v2922_v46 = vpop.f32.mrb[68].mxu1 }
 0x8c8   :  { %v3087_v15 = vadd.f32 %v3055_v58, %v12228_v16  ;;  %v3057_v14 = vmul.f32 0.044715, %v3025_v12  ;;  %v12253_v7 = vadd.f32 %v2922_v46, %v12222_v42  ;;  %v2924_v54 = vpop.f32.mrb[69].mxu1 }
 0x8c9   :  { %v3088_v32 = vadd.f32 %v3056_v62, %v12231_v49  ;;  %v3058_v23 = vmul.f32 0.044715, %v3026_v28  ;;  %v12257_v31 = vadd.f32 %v2924_v54, %v12225_v56  ;;  %v2926_v34 = vpop.f32.mrb[70].mxu1 }
 0x8ca   :  { %v3119_v3 = vmul.f32 0.7978846, %v3087_v15  ;;  %v3089_v51 = vadd.f32 %v3057_v14, %v12236_v0  ;;  %v2995_v29 = vmul.f32 %v12253_v7, %v12253_v7  ;;  %v12263_v38 = vadd.f32 %v2926_v34, %v12222_v42  ;;  %v2928_v44 = vpop.f32.mrb[71].mxu1 }
 0x8cb   :  { %v3120_v55 = vmul.f32 0.7978846, %v3088_v32  ;;  %v3090_v41 = vadd.f32 %v3058_v23, %v12241_v20  ;;  %v2996_v6 = vmul.f32 %v12257_v31, %v12257_v31  ;;  %v12269_v25 = vadd.f32 %v2928_v44, %v12225_v56 }
 0x8cc   :  { %9398 = vtanh.f32 %v3119_v3  ;;  %v3121_v2 = vmul.f32 0.7978846, %v3089_v51  ;;  %v3027_v45 = vmul.f32 %v2995_v29, %v12253_v7  ;;  %v2997_v63 = vmul.f32 %v12263_v38, %v12263_v38 }
 0x8cd   :  { %9400 = vtanh.f32 %v3120_v55  ;;  %v3122_v17 = vmul.f32 0.7978846, %v3090_v41  ;;  %v3028_v22 = vmul.f32 %v2996_v6, %v12257_v31  ;;  %v2998_v26 = vmul.f32 %v12269_v25, %v12269_v25 }
 0x8ce   :  { %9402 = vtanh.f32 %v3121_v2  ;;  %v3059_v37 = vmul.f32 0.044715, %v3027_v45  ;;  %v3029_v43 = vmul.f32 %v2997_v63, %v12263_v38 }
 0x8cf   :  { %v3060_v52 = vmul.f32 0.044715, %v3028_v22  ;;  %v3030_v30 = vmul.f32 %v2998_v26, %v12269_v25  ;;  %v2932_v33 = vpop.f32.mrb[72].mxu1  ;;  %9404 = vtanh.f32 %v3122_v17 }
 0x8d0   :  { %v3091_v19 = vadd.f32 %v3059_v37, %v12253_v7  ;;  %v3061_v61 = vmul.f32 0.044715, %v3029_v43  ;;  %v12281_v53 = vadd.f32 %v2932_v33, %v12222_v42  ;;  %v2934_v8 = vpop.f32.mrb[73].mxu1 }
 0x8d1   :  { %v3092_v13 = vadd.f32 %v3060_v52, %v12257_v31  ;;  %v3062_v40 = vmul.f32 0.044715, %v3030_v30  ;;  %v12285_v58 = vadd.f32 %v2934_v8, %v12225_v56  ;;  %v2936_v12 = vpop.f32.mrb[74].mxu1 }
 0x8d2   :  { %v3123_v62 = vmul.f32 0.7978846, %v3091_v19  ;;  %v3093_v28 = vadd.f32 %v3061_v61, %v12263_v38  ;;  %v2999_v46 = vmul.f32 %v12281_v53, %v12281_v53  ;;  %v12291_v15 = vadd.f32 %v2936_v12, %v12222_v42  ;;  %v2938_v14 = vpop.f32.mrb[75].mxu1 }
 0x8d3   :  { %v3124_v54 = vmul.f32 0.7978846, %v3092_v13  ;;  %v3094_v32 = vadd.f32 %v3062_v40, %v12269_v25  ;;  %v3000_v23 = vmul.f32 %v12285_v58, %v12285_v58  ;;  %v12297_v34 = vadd.f32 %v2938_v14, %v12225_v56 }
 0x8d4   :  { %9406 = vtanh.f32 %v3123_v62  ;;  %v3125_v3 = vmul.f32 0.7978846, %v3093_v28  ;;  %v3031_v51 = vmul.f32 %v2999_v46, %v12281_v53  ;;  %v3001_v29 = vmul.f32 %v12291_v15, %v12291_v15 }
 0x8d5   :  { %9408 = vtanh.f32 %v3124_v54  ;;  %v3126_v44 = vmul.f32 0.7978846, %v3094_v32  ;;  %v3032_v55 = vmul.f32 %v3000_v23, %v12285_v58  ;;  %v3002_v41 = vmul.f32 %v12297_v34, %v12297_v34 }
 0x8d6   :  { %v9399_v6 = vpop.eup %9398  ;;  %9410 = vtanh.f32 %v3125_v3  ;;  %v3063_v2 = vmul.f32 0.044715, %v3031_v51  ;;  %v3033_v45 = vmul.f32 %v3001_v29, %v12291_v15 }
 0x8d7   :  { %v9401_v63 = vpop.eup %9400  ;;  %v3183_v17 = vadd.f32 1.0, %v9399_v6  ;;  %9412 = vtanh.f32 %v3126_v44  ;;  %v3064_v22 = vmul.f32 0.044715, %v3032_v55  ;;  %v3034_v26 = vmul.f32 %v3002_v41, %v12297_v34  ;;  %v2942_v37 = vpop.f32.mrb[76].mxu1 }
 0x8d8   :  { %v9403_v43 = vpop.eup %9402  ;;  %v3095_v52 = vadd.f32 %v3063_v2, %v12281_v53  ;;  %v3065_v30 = vmul.f32 0.044715, %v3033_v45  ;;  %v12309_v33 = vadd.f32 %v2942_v37, %v12222_v42  ;;  %v2944_v19 = vpop.f32.mrb[77].mxu1  ;;  %v3184_v61 = vadd.f32 1.0, %v9401_v63 }
 0x8d9   :  { %v3215_v8 = vmul.f32 0.5, %v3183_v17  ;;  %v3185_v13 = vadd.f32 1.0, %v9403_v43  ;;  %v3096_v40 = vadd.f32 %v3064_v22, %v12285_v58  ;;  %v3066_v12 = vmul.f32 0.044715, %v3034_v26  ;;  %v2946_v62 = vpop.f32.mrb[78].mxu1  ;;  %v9405_v23 = vpop.eup %9404 }
 0x8da   :  { %v3127_v28 = vmul.f32 0.7978846, %v3095_v52  ;;  %v3097_v46 = vadd.f32 %v3065_v30, %v12291_v15  ;;  %v3003_v14 = vmul.f32 %v12309_v33, %v12309_v33  ;;  %v12316_v54 = vadd.f32 %v2944_v19, %v12225_v56  ;;  %v2948_v32 = vpop.f32.mrb[79].mxu1 }
 0x8db   :  { %v3247_v3 = vmul.f32 %v3215_v8, %v12228_v16  ;;  %v3217_v51 = vmul.f32 0.5, %v3185_v13  ;;  %v3128_v29 = vmul.f32 0.7978846, %v3096_v40  ;;  %v3098_v44 = vadd.f32 %v3066_v12, %v12297_v34 }
 0x8dc   :  { %9414 = vtanh.f32 %v3127_v28  ;;  %v3129_v55 = vmul.f32 0.7978846, %v3097_v46  ;;  %v3035_v41 = vmul.f32 %v3003_v14, %v12309_v33  ;;  %v3004_v6 = vmul.f32 %v12316_v54, %v12316_v54 }
 0x8dd   :  { %v3249_v2 = vmul.f32 %v3217_v51, %v12236_v0  ;;  %9416 = vtanh.f32 %v3128_v29  ;;  %v3130_v45 = vmul.f32 0.7978846, %v3098_v44  ;;  %v12325_v63 = vadd.f32 %v2946_v62, %v12222_v42 }
 0x8de   :  { %v9407_v17 = vpop.eup %9406  ;;  %9418 = vtanh.f32 %v3129_v55  ;;  %v3067_v16 = vmul.f32 0.044715, %v3035_v41  ;;  %v3036_v22 = vmul.f32 %v3004_v6, %v12316_v54  ;;  %v12329_v26 = vadd.f32 %v2948_v32, %v12225_v56 }
 0x8df   :  { %v9409_v37 = vpop.eup %9408  ;;  %v3279_v43 = vpack.c.bf16 %v3249_v2, %v3247_v3  ;;  %9420 = vtanh.f32 %v3130_v45  ;;  %v3005_v52 = vmul.f32 %v12325_v63, %v12325_v63  ;;  %v3186_v0 = vadd.f32 1.0, %v9405_v23 }
 0x8e0   :  { %v9411_v30 = vpop.eup %9410  ;;  %v3099_v19 = vadd.f32 %v3067_v16, %v12309_v33  ;;  %v3068_v8 = vmul.f32 0.044715, %v3036_v22  ;;  %v3006_v13 = vmul.f32 %v12329_v26, %v12329_v26  ;;  %v3216_v40 = vmul.f32 0.5, %v3184_v61 }
 0x8e1   :  { %v9413_v12 = vpop.eup %9412  ;;  %v3037_v62 = vmul.f32 %v3005_v52, %v12325_v63  ;;  %v3218_v28 = vmul.f32 0.5, %v3186_v0  ;;  %v3188_v46 = vadd.f32 1.0, %v9409_v37  ;;  %v3187_v14 = vadd.f32 1.0, %v9407_v17 }
 0x8e2   :  { %v3131_v32 = vmul.f32 0.7978846, %v3099_v19  ;;  %v3100_v3 = vadd.f32 %v3068_v8, %v12316_v54  ;;  %v3038_v51 = vmul.f32 %v3006_v13, %v12329_v26  ;;  %v3248_v23 = vmul.f32 %v3216_v40, %v12231_v49 }
 0x8e3   :  { %v3069_v29 = vmul.f32 0.044715, %v3037_v62  ;;  %v3250_v44 = vmul.f32 %v3218_v28, %v12241_v20  ;;  %v3190_v55 = vadd.f32 1.0, %v9413_v12  ;;  %v3220_v41 = vmul.f32 0.5, %v3188_v46 }
 0x8e4   :  { %9422 = vtanh.f32 %v3131_v32  ;;  %v3132_v61 = vmul.f32 0.7978846, %v3100_v3  ;;  %v3070_v6 = vmul.f32 0.044715, %v3038_v51  ;;  %v3189_v2 = vadd.f32 1.0, %v9411_v30 }
 0x8e5   :  { %v3101_v45 = vadd.f32 %v3069_v29, %v12325_v63  ;;  %v3280_v16 = vpack.c.bf16 %v3250_v44, %v3248_v23  ;;  %v3222_v17 = vmul.f32 0.5, %v3190_v55  ;;  %v3219_v52 = vmul.f32 0.5, %v3187_v14 }
 0x8e6   :  { %v9415_v22 = vpop.eup %9414  ;;  %9424 = vtanh.f32 %v3132_v61  ;;  %v3102_v37 = vadd.f32 %v3070_v6, %v12329_v26  ;;  %v3221_v0 = vmul.f32 0.5, %v3189_v2  ;;  %v3252_v20 = vmul.f32 %v3220_v41, %v12257_v31 }
 0x8e7   :  { %v9417_v49 = vpop.eup %9416  ;;  %v3133_v19 = vmul.f32 0.7978846, %v3101_v45  ;;  %3462 = vmatprep.mubr.bf16.mxu0 %v3280_v16  ;;  %v3254_v8 = vmul.f32 %v3222_v17, %v12269_v25  ;;  %v3191_v13 = vadd.f32 1.0, %v9415_v22  ;;  %v3251_v12 = vmul.f32 %v3219_v52, %v12253_v7 }
 0x8e8   :  { %v9419_v40 = vpop.eup %9418  ;;  %v3134_v30 = vmul.f32 0.7978846, %v3102_v37  ;;  %3463 = vmatmul.mubr.bf16.vlgmr.msra.gmra.mrb[80].mxu0 %v3279_v43  ;;  %v3253_v62 = vmul.f32 %v3221_v0, %v12263_v38  ;;  %v3192_v28 = vadd.f32 1.0, %v9417_v49 }
 0x8e9   :  { %v9421_v46 = vpop.eup %9420  ;;  %9426 = vtanh.f32 %v3133_v19  ;;  %v3282_v14 = vpack.c.bf16 %v3254_v8, %v3252_v20  ;;  %v3193_v32 = vadd.f32 1.0, %v9419_v40  ;;  %v3223_v3 = vmul.f32 0.5, %v3191_v13 }
 0x8ea   :  { %9428 = vtanh.f32 %v3134_v30  ;;  %v3281_v51 = vpack.c.bf16 %v3253_v62, %v3251_v12  ;;  %v3194_v23 = vadd.f32 1.0, %v9421_v46  ;;  %v3224_v31 = vmul.f32 0.5, %v3192_v28 }
 0x8eb   :  { %3470 = vmatprep.mubr.bf16.mxu0 %v3282_v14  ;;  %v3225_v25 = vmul.f32 0.5, %v3193_v32  ;;  %v3255_v44 = vmul.f32 %v3223_v3, %v12281_v53 }
 0x8ec   :  { %v3226_v29 = vmul.f32 0.5, %v3194_v23  ;;  %v3256_v38 = vmul.f32 %v3224_v31, %v12285_v58 }
 0x8ed   :  { %v3257_v43 = vmul.f32 %v3225_v25, %v12291_v15 }
 0x8ee   :  { %v9423_v7 = vpop.eup %9422  ;;  %v3258_v55 = vmul.f32 %v3226_v29, %v12297_v34 }
 0x8ef   :  { %v3283_v41 = vpack.c.bf16 %v3257_v43, %v3255_v44  ;;  %v3195_v2 = vadd.f32 1.0, %v9423_v7 }
 0x8f0   :  { %v9425_v61 = vpop.eup %9424  ;;  %3471 = vmatmul.mubr.bf16.gmra.mrb[84].mxu0 %v3281_v51  ;;  %v3284_v6 = vpack.c.bf16 %v3258_v55, %v3256_v38 }
 0x8f1   :  { %v3196_v45 = vadd.f32 1.0, %v9425_v61  ;;  %v3227_v37 = vmul.f32 0.5, %v3195_v2 }
 0x8f2   :  { %3478 = vmatprep.mubr.bf16.mxu0 %v3284_v6 }
 0x8f3   :  { %v9427_v16 = vpop.eup %9426  ;;  %v3228_v53 = vmul.f32 0.5, %v3196_v45  ;;  %v3259_v58 = vmul.f32 %v3227_v37, %v12309_v33 }
 0x8f4   :  { %v9429_v17 = vpop.eup %9428  ;;  %v3197_v22 = vadd.f32 1.0, %v9427_v16 }
 0x8f5   :  { %v3198_v52 = vadd.f32 1.0, %v9429_v17  ;;  %v3260_v49 = vmul.f32 %v3228_v53, %v12316_v54 }
 0x8f6   :  { %v3229_v0 = vmul.f32 0.5, %v3197_v22 }
 0x8f7   :  { %v3230_v15 = vmul.f32 0.5, %v3198_v52 }
 0x8f8   :  { %3479 = vmatmul.mubr.bf16.gmra.mrb[88].mxu0 %v3283_v41  ;;  %v3261_v34 = vmul.f32 %v3229_v0, %v12325_v63 }
 0x8f9   :  { %v3262_v19 = vmul.f32 %v3230_v15, %v12329_v26 }
 0x8fa   :  { %v3285_v20 = vpack.c.bf16 %v3261_v34, %v3259_v58 }
 0x8fb   :  { %v3286_v8 = vpack.c.bf16 %v3262_v19, %v3260_v49 }
 0x8fd   :  { %3486 = vmatprep.mubr.bf16.mxu0 %v3286_v8 }
 0x900   :  { %3487 = vmatmul.mubr.bf16.gmra.mrb[92].mxu0 %v3285_v20 }
 0x917   :  { %v2952_v13 = vpop.f32.mrb[80].mxu1 }
 0x918   :  { %v12356_v40 = vadd.f32 %v2952_v13, %v12222_v42  ;;  %v2954_v30 = vpop.f32.mrb[81].mxu1 }
 0x919   :  { %v12359_v12 = vadd.f32 %v2954_v30, %v12225_v56  ;;  %v2956_v62 = vpop.f32.mrb[82].mxu1 }
 0x91a   :  { %v3007_v33 = vmul.f32 %v12356_v40, %v12356_v40  ;;  %v12364_v54 = vadd.f32 %v2956_v62, %v12222_v42  ;;  %v2958_v63 = vpop.f32.mrb[83].mxu1 }
 0x91b   :  { %v3008_v26 = vmul.f32 %v12359_v12, %v12359_v12  ;;  %v12369_v28 = vadd.f32 %v2958_v63, %v12225_v56 }
 0x91c   :  { %v3039_v46 = vmul.f32 %v3007_v33, %v12356_v40  ;;  %v3009_v14 = vmul.f32 %v12364_v54, %v12364_v54 }
 0x91d   :  { %v3040_v32 = vmul.f32 %v3008_v26, %v12359_v12  ;;  %v3010_v3 = vmul.f32 %v12369_v28, %v12369_v28 }
 0x91e   :  { %v3071_v51 = vmul.f32 0.044715, %v3039_v46  ;;  %v3041_v23 = vmul.f32 %v3009_v14, %v12364_v54 }
 0x91f   :  { %v3072_v31 = vmul.f32 0.044715, %v3040_v32  ;;  %v3042_v25 = vmul.f32 %v3010_v3, %v12369_v28  ;;  %v2962_v29 = vpop.f32.mrb[84].mxu1 }
 0x920   :  { %v3103_v44 = vadd.f32 %v3071_v51, %v12356_v40  ;;  %v3073_v43 = vmul.f32 0.044715, %v3041_v23  ;;  %v12381_v7 = vadd.f32 %v2962_v29, %v12222_v42  ;;  %v2964_v38 = vpop.f32.mrb[85].mxu1 }
 0x921   :  { %v3104_v55 = vadd.f32 %v3072_v31, %v12359_v12  ;;  %v3074_v41 = vmul.f32 0.044715, %v3042_v25  ;;  %v12385_v61 = vadd.f32 %v2964_v38, %v12225_v56  ;;  %v2966_v6 = vpop.f32.mrb[86].mxu1 }
 0x922   :  { %v3135_v2 = vmul.f32 0.7978846, %v3103_v44  ;;  %v3105_v45 = vadd.f32 %v3073_v43, %v12364_v54  ;;  %v3011_v16 = vmul.f32 %v12381_v7, %v12381_v7  ;;  %v12391_v17 = vadd.f32 %v2966_v6, %v12222_v42  ;;  %v2968_v22 = vpop.f32.mrb[87].mxu1 }
 0x923   :  { %v3136_v37 = vmul.f32 0.7978846, %v3104_v55  ;;  %v3106_v52 = vadd.f32 %v3074_v41, %v12369_v28  ;;  %v3012_v53 = vmul.f32 %v12385_v61, %v12385_v61  ;;  %v12397_v0 = vadd.f32 %v2968_v22, %v12225_v56 }
 0x924   :  { %9430 = vtanh.f32 %v3135_v2  ;;  %v3137_v15 = vmul.f32 0.7978846, %v3105_v45  ;;  %v3043_v58 = vmul.f32 %v3011_v16, %v12381_v7  ;;  %v3013_v34 = vmul.f32 %v12391_v17, %v12391_v17 }
 0x925   :  { %9432 = vtanh.f32 %v3136_v37  ;;  %v3138_v49 = vmul.f32 0.7978846, %v3106_v52  ;;  %v3044_v19 = vmul.f32 %v3012_v53, %v12385_v61  ;;  %v3014_v20 = vmul.f32 %v12397_v0, %v12397_v0 }
 0x926   :  { %9434 = vtanh.f32 %v3137_v15  ;;  %v3075_v8 = vmul.f32 0.044715, %v3043_v58  ;;  %v3045_v13 = vmul.f32 %v3013_v34, %v12391_v17 }
 0x927   :  { %9436 = vtanh.f32 %v3138_v49  ;;  %v3076_v30 = vmul.f32 0.044715, %v3044_v19  ;;  %v3046_v62 = vmul.f32 %v3014_v20, %v12397_v0 }
 0x928   :  { %v3107_v33 = vadd.f32 %v3075_v8, %v12381_v7  ;;  %v3077_v63 = vmul.f32 0.044715, %v3045_v13 }
 0x929   :  { %v3108_v26 = vadd.f32 %v3076_v30, %v12385_v61  ;;  %v3078_v46 = vmul.f32 0.044715, %v3046_v62 }
 0x92a   :  { %v3139_v14 = vmul.f32 0.7978846, %v3107_v33  ;;  %v3109_v3 = vadd.f32 %v3077_v63, %v12391_v17 }
 0x92b   :  { %v3140_v32 = vmul.f32 0.7978846, %v3108_v26  ;;  %v3110_v51 = vadd.f32 %v3078_v46, %v12397_v0 }
 0x92c   :  { %9438 = vtanh.f32 %v3139_v14  ;;  %v3141_v29 = vmul.f32 0.7978846, %v3109_v3 }
 0x92d   :  { %9440 = vtanh.f32 %v3140_v32  ;;  %v3142_v23 = vmul.f32 0.7978846, %v3110_v51 }
 0x92e   :  { %v9431_v31 = vpop.eup %9430 }
 0x92f   :  { %v9433_v25 = vpop.eup %9432  ;;  %v2972_v44 = vpop.f32.mrb[88].mxu1  ;;  %v3199_v43 = vadd.f32 1.0, %v9431_v31  ;;  %9442 = vtanh.f32 %v3142_v23 }
 0x930   :  { %v9435_v38 = vpop.eup %9434  ;;  %v12412_v55 = vadd.f32 %v2972_v44, %v12222_v42  ;;  %v2974_v41 = vpop.f32.mrb[89].mxu1  ;;  %v3200_v6 = vadd.f32 1.0, %v9433_v25  ;;  %9444 = vtanh.f32 %v3141_v29 }
 0x931   :  { %v9437_v2 = vpop.eup %9436  ;;  %v12415_v45 = vadd.f32 %v2974_v41, %v12225_v56  ;;  %v2976_v16 = vpop.f32.mrb[90].mxu1  ;;  %v3201_v22 = vadd.f32 1.0, %v9435_v38  ;;  %v3231_v37 = vmul.f32 0.5, %v3199_v43 }
 0x932   :  { %v3015_v52 = vmul.f32 %v12412_v55, %v12412_v55  ;;  %v12420_v53 = vadd.f32 %v2976_v16, %v12222_v42  ;;  %v2978_v15 = vpop.f32.mrb[91].mxu1  ;;  %v3202_v58 = vadd.f32 1.0, %v9437_v2  ;;  %v3232_v34 = vmul.f32 0.5, %v3200_v6 }
 0x933   :  { %v3016_v49 = vmul.f32 %v12415_v45, %v12415_v45  ;;  %v12425_v19 = vadd.f32 %v2978_v15, %v12225_v56  ;;  %v3233_v20 = vmul.f32 0.5, %v3201_v22  ;;  %v3263_v63 = vmul.f32 %v3231_v37, %v12356_v40 }
 0x934   :  { %v3047_v8 = vmul.f32 %v3015_v52, %v12412_v55  ;;  %v3017_v13 = vmul.f32 %v12420_v53, %v12420_v53  ;;  %v3234_v30 = vmul.f32 0.5, %v3202_v58  ;;  %v3264_v3 = vmul.f32 %v3232_v34, %v12359_v12 }
 0x935   :  { %v3048_v62 = vmul.f32 %v3016_v49, %v12415_v45  ;;  %v3018_v33 = vmul.f32 %v12425_v19, %v12425_v19  ;;  %v3265_v26 = vmul.f32 %v3233_v20, %v12364_v54 }
 0x936   :  { %v9439_v46 = vpop.eup %9438  ;;  %v3079_v14 = vmul.f32 0.044715, %v3047_v8  ;;  %v3049_v32 = vmul.f32 %v3017_v13, %v12420_v53  ;;  %v3266_v51 = vmul.f32 %v3234_v30, %v12369_v28 }
 0x937   :  { %v9441_v23 = vpop.eup %9440  ;;  %v3080_v31 = vmul.f32 0.044715, %v3048_v62  ;;  %v3050_v25 = vmul.f32 %v3018_v33, %v12425_v19  ;;  %v2982_v29 = vpop.f32.mrb[92].mxu1  ;;  %v3287_v44 = vpack.c.bf16 %v3265_v26, %v3263_v63  ;;  %v3203_v43 = vadd.f32 1.0, %v9439_v46 }
 0x938   :  { %v3111_v38 = vadd.f32 %v3079_v14, %v12412_v55  ;;  %v3081_v40 = vmul.f32 0.044715, %v3049_v32  ;;  %v12441_v54 = vadd.f32 %v2982_v29, %v12222_v42  ;;  %v2984_v41 = vpop.f32.mrb[93].mxu1  ;;  %v3288_v6 = vpack.c.bf16 %v3266_v51, %v3264_v3 }
 0x939   :  { %v3112_v2 = vadd.f32 %v3080_v31, %v12415_v45  ;;  %v3082_v12 = vmul.f32 0.044715, %v3050_v25  ;;  %v12445_v28 = vadd.f32 %v2984_v41, %v12225_v56  ;;  %v2986_v16 = vpop.f32.mrb[94].mxu1  ;;  %v3204_v22 = vadd.f32 1.0, %v9441_v23  ;;  %v9443_v49 = vpop.eup %9442 }
 0x93a   :  { %v3143_v37 = vmul.f32 0.7978846, %v3111_v38  ;;  %v3113_v52 = vadd.f32 %v3081_v40, %v12420_v53  ;;  %v3019_v15 = vmul.f32 %v12441_v54, %v12441_v54  ;;  %v12451_v58 = vadd.f32 %v2986_v16, %v12222_v42  ;;  %v2988_v34 = vpop.f32.mrb[95].mxu1  ;;  %3494 = vmatprep.mubr.bf16.mxu0 %v3288_v6  ;;  %v9445_v63 = vpop.eup %9444 }
 0x93b   :  { %v3144_v20 = vmul.f32 0.7978846, %v3112_v2  ;;  %v3114_v8 = vadd.f32 %v3082_v12, %v12425_v19  ;;  %v3020_v13 = vmul.f32 %v12445_v28, %v12445_v28  ;;  %v12457_v30 = vadd.f32 %v2988_v34, %v12225_v56  ;;  %3495 = vmatmul.mubr.bf16.gmra.mrb[96].mxu0 %v3287_v44 }
 0x93c   :  { %9446 = vtanh.f32 %v3143_v37  ;;  %v3145_v62 = vmul.f32 0.7978846, %v3113_v52  ;;  %v3051_v33 = vmul.f32 %v3019_v15, %v12441_v54  ;;  %v3021_v42 = vmul.f32 %v12451_v58, %v12451_v58 }
 0x93d   :  { %9448 = vtanh.f32 %v3144_v20  ;;  %v3146_v26 = vmul.f32 0.7978846, %v3114_v8  ;;  %v3052_v46 = vmul.f32 %v3020_v13, %v12445_v28  ;;  %v3022_v14 = vmul.f32 %v12457_v30, %v12457_v30 }
 0x93e   :  { %9450 = vtanh.f32 %v3145_v62  ;;  %v3083_v32 = vmul.f32 0.044715, %v3051_v33  ;;  %v3053_v56 = vmul.f32 %v3021_v42, %v12451_v58  ;;  %v3206_v3 = vadd.f32 1.0, %v9443_v49 }
 0x93f   :  { %9452 = vtanh.f32 %v3146_v26  ;;  %v3084_v51 = vmul.f32 0.044715, %v3052_v46  ;;  %v3054_v23 = vmul.f32 %v3022_v14, %v12457_v30  ;;  %v3236_v31 = vmul.f32 0.5, %v3204_v22 }
 0x940   :  { %v3115_v25 = vadd.f32 %v3083_v32, %v12441_v54  ;;  %v3085_v29 = vmul.f32 0.044715, %v3053_v56  ;;  %v3238_v44 = vmul.f32 0.5, %v3206_v3  ;;  %v3205_v38 = vadd.f32 1.0, %v9445_v63 }
 0x941   :  { %v3116_v40 = vadd.f32 %v3084_v51, %v12445_v28  ;;  %v3086_v41 = vmul.f32 0.044715, %v3054_v23  ;;  %v3268_v6 = vmul.f32 %v3236_v31, %v12385_v61  ;;  %v3235_v2 = vmul.f32 0.5, %v3203_v43 }
 0x942   :  { %v3147_v12 = vmul.f32 0.7978846, %v3115_v25  ;;  %v3117_v16 = vadd.f32 %v3085_v29, %v12451_v58  ;;  %v3270_v37 = vmul.f32 %v3238_v44, %v12397_v0  ;;  %v3237_v52 = vmul.f32 0.5, %v3205_v38 }
 0x943   :  { %v3148_v15 = vmul.f32 0.7978846, %v3116_v40  ;;  %v3118_v22 = vadd.f32 %v3086_v41, %v12457_v30  ;;  %v3267_v34 = vmul.f32 %v3235_v2, %v12381_v7 }
 0x944   :  { %9454 = vtanh.f32 %v3147_v12  ;;  %v3149_v49 = vmul.f32 0.7978846, %v3117_v16  ;;  %v3290_v20 = vpack.c.bf16 %v3270_v37, %v3268_v6  ;;  %v3269_v8 = vmul.f32 %v3237_v52, %v12391_v17 }
 0x945   :  { %9456 = vtanh.f32 %v3148_v15  ;;  %v3150_v13 = vmul.f32 0.7978846, %v3118_v22 }
 0x946   :  { %v9447_v61 = vpop.eup %9446  ;;  %9458 = vtanh.f32 %v3149_v49  ;;  %3502 = vmatprep.mubr.bf16.mxu0 %v3290_v20  ;;  %v3289_v43 = vpack.c.bf16 %v3269_v8, %v3267_v34  ;;  %v12486_v20 = vld [vmem:[%s15181_s13] ss:$0 sm:$0xff] }
 0x947   :  { %v9449_v62 = vpop.eup %9448  ;;  %9460 = vtanh.f32 %v3150_v13  ;;  %v3207_v0 = vadd.f32 1.0, %v9447_v61 }
 0x948   :  { %v9451_v33 = vpop.eup %9450  ;;  %3503 = vmatmul.mubr.bf16.gmra.mrb[100].mxu0 %v3289_v43  ;;  %v3208_v42 = vadd.f32 1.0, %v9449_v62 }
 0x949   :  { %v9453_v63 = vpop.eup %9452  ;;  %v3209_v26 = vadd.f32 1.0, %v9451_v33  ;;  %v3239_v7 = vmul.f32 0.5, %v3207_v0 }
 0x94a   :  { %v3210_v46 = vadd.f32 1.0, %v9453_v63  ;;  %v3240_v14 = vmul.f32 0.5, %v3208_v42 }
 0x94b   :  { %v3241_v32 = vmul.f32 0.5, %v3209_v26  ;;  %v3271_v17 = vmul.f32 %v3239_v7, %v12412_v55 }
 0x94c   :  { %v3242_v56 = vmul.f32 0.5, %v3210_v46  ;;  %v3272_v23 = vmul.f32 %v3240_v14, %v12415_v45 }
 0x94d   :  { %v3273_v3 = vmul.f32 %v3241_v32, %v12420_v53 }
 0x94e   :  { %v9455_v51 = vpop.eup %9454  ;;  %v3274_v31 = vmul.f32 %v3242_v56, %v12425_v19 }
 0x94f   :  { %v9457_v25 = vpop.eup %9456  ;;  %v3291_v29 = vpack.c.bf16 %v3273_v3, %v3271_v17  ;;  %v3211_v44 = vadd.f32 1.0, %v9455_v51 }
 0x950   :  { %v9459_v38 = vpop.eup %9458  ;;  %v3292_v40 = vpack.c.bf16 %v3274_v31, %v3272_v23  ;;  %v3212_v41 = vadd.f32 1.0, %v9457_v25 }
 0x951   :  { %v9461_v6 = vpop.eup %9460  ;;  %v3213_v2 = vadd.f32 1.0, %v9459_v38  ;;  %v3243_v12 = vmul.f32 0.5, %v3211_v44 }
 0x952   :  { %3510 = vmatprep.mubr.bf16.mxu0 %v3292_v40  ;;  %v3214_v16 = vadd.f32 1.0, %v9461_v6  ;;  %v3244_v37 = vmul.f32 0.5, %v3212_v41 }
 0x953   :  { %3511 = vmatmul.mubr.bf16.gmra.mrb[104].mxu0 %v3291_v29  ;;  %v3245_v55 = vmul.f32 0.5, %v3213_v2  ;;  %v3275_v52 = vmul.f32 %v3243_v12, %v12441_v54 }
 0x954   :  { %v3246_v53 = vmul.f32 0.5, %v3214_v16  ;;  %v3276_v19 = vmul.f32 %v3244_v37, %v12445_v28 }
 0x955   :  { %v3277_v45 = vmul.f32 %v3245_v55, %v12451_v58 }
 0x956   :  { %v3278_v15 = vmul.f32 %v3246_v53, %v12457_v30 }
 0x957   :  { %v3293_v22 = vpack.c.bf16 %v3277_v45, %v3275_v52 }
 0x958   :  { %v3294_v34 = vpack.c.bf16 %v3278_v15, %v3276_v19 }
 0x95a   :  { %3518 = vmatprep.mubr.bf16.mxu0 %v3294_v34 }
 0x95b   :  { %3519 = vmatmul.mubr.bf16.gmra.mrb[108].mxu0 %v3293_v22 }
 0x9bb   :  { %v7836_v49 = vpop.f32.mrb[80].mxu0 }
 0x9bc   :  { %v7837_v8 = vpop.f32.mrb[81].mxu0 }
 0x9bd   :  { %v7838_v13 = vadd.f32 %v7837_v8, %v7836_v49  ;;  %v7839_v61 = vpop.f32.mrb[82].mxu0 }
 0x9be   :  { %v7840_v54 = vpop.f32.mrb[83].mxu0 }
 0x9bf   :  { %v3465_v58 = vadd.f32 %v7838_v13, %v12486_v20  ;;  %v7841_v43 = vadd.f32 %v7840_v54, %v7839_v61 }
 0x9c1   :  { %v3468_v28 = vadd.f32 %v7841_v43, %v12486_v20  ;;  %v12491_v30 = vadd.f32 %v3465_v58, %v12071_v10 }
 0x9c3   :  { %3545 = vadd.xlane.f32.xlu0 %v12491_v30  ;;  %v7842_v62 = vpop.f32.mrb[84].mxu0  ;;  %v12495_v0 = vadd.f32 %v3468_v28, %v12074_v39 }
 0x9c4   :  { %v7843_v33 = vpop.f32.mrb[85].mxu0 }
 0x9c5   :  { %v7844_v42 = vadd.f32 %v7843_v33, %v7842_v62  ;;  %3547 = vadd.xlane.f32.xlu1 %v12495_v0  ;;  %v7845_v63 = vpop.f32.mrb[86].mxu0 }
 0x9c6   :  { %v7846_v26 = vpop.f32.mrb[87].mxu0 }
 0x9c7   :  { %v3473_v7 = vadd.f32 %v7844_v42, %v12486_v20  ;;  %v7847_v46 = vadd.f32 %v7846_v26, %v7845_v63 }
 0x9c9   :  { %v3476_v14 = vadd.f32 %v7847_v46, %v12486_v20  ;;  %v12501_v10 = vadd.f32 %v3473_v7, %v12088_v24 }
 0x9cb   :  { %3549 = vadd.xlane.f32.xlu0 %v12501_v10  ;;  %v7848_v32 = vpop.f32.mrb[88].mxu0  ;;  %v12505_v39 = vadd.f32 %v3476_v14, %v12084_v4 }
 0x9cc   :  { %v7849_v56 = vpop.f32.mrb[89].mxu0 }
 0x9cd   :  { %v7850_v17 = vadd.f32 %v7849_v56, %v7848_v32  ;;  %3551 = vadd.xlane.f32.xlu1 %v12505_v39  ;;  %v7851_v3 = vpop.f32.mrb[90].mxu0 }
 0x9ce   :  { %v7852_v51 = vpop.f32.mrb[91].mxu0 }
 0x9cf   :  { %v3481_v23 = vadd.f32 %v7850_v17, %v12486_v20  ;;  %v7853_v31 = vadd.f32 %v7852_v51, %v7851_v3 }
 0x9d1   :  { %v3484_v25 = vadd.f32 %v7853_v31, %v12486_v20  ;;  %v12511_v24 = vadd.f32 %v3481_v23, %v12101_v1 }
 0x9d3   :  { %3553 = vadd.xlane.f32.xlu0 %v12511_v24  ;;  %v7854_v29 = vpop.f32.mrb[92].mxu0  ;;  %v12515_v4 = vadd.f32 %v3484_v25, %v12097_v35  ;;  %v8992_v25 = vld [vmem:[%s15445_s20 + $0xc4] ss:$12 sps:$4 sm:$0xff]  }
 0x9d4   :  { %v7855_v44 = vpop.f32.mrb[93].mxu0  ;;  %3952 = vmatprep.subr.bf16.mxu1 %v8992_v25  ;;  %v9020_v25 = vld [vmem:[%s15445_s20 + $0x158] ss:$12 sps:$4 sm:$0xff]  }
 0x9d5   :  { %v7856_v38 = vadd.f32 %v7855_v44, %v7854_v29  ;;  %3555 = vadd.xlane.f32.xlu1 %v12515_v4  ;;  %v7857_v40 = vpop.f32.mrb[94].mxu0 }
 0x9d6   :  { %v7858_v41 = vpop.f32.mrb[95].mxu0 }
 0x9d7   :  { %v3489_v6 = vadd.f32 %v7856_v38, %v12486_v20  ;;  %v7859_v2 = vadd.f32 %v7858_v41, %v7857_v40 }
 0x9d9   :  { %v3492_v12 = vadd.f32 %v7859_v2, %v12486_v20  ;;  %v12521_v1 = vadd.f32 %v3489_v6, %v12113_v59 }
 0x9db   :  { %3557 = vadd.xlane.f32.xlu0 %v12521_v1  ;;  %v12525_v16 = vadd.f32 %v3492_v12, %v12110_v11 }
 0x9dd   :  { %3559 = vadd.xlane.f32.xlu1 %v12525_v16 }
 0xa0e   :  { %v7860_v35 = vpop.f32.mrb[96].mxu0 }
 0xa0f   :  { %v7861_v37 = vpop.f32.mrb[97].mxu0 }
 0xa10   :  { %v7862_v55 = vadd.f32 %v7861_v37, %v7860_v35  ;;  %v7863_v53 = vpop.f32.mrb[98].mxu0 }
 0xa11   :  { %v7864_v52 = vpop.f32.mrb[99].mxu0 }
 0xa12   :  { %v3497_v45 = vadd.f32 %v7862_v55, %v12486_v20  ;;  %v7865_v19 = vadd.f32 %v7864_v52, %v7863_v53 }
 0xa14   :  { %v3500_v15 = vadd.f32 %v7865_v19, %v12486_v20  ;;  %v12531_v59 = vadd.f32 %v3497_v45, %v12123_v21 }
 0xa16   :  { %3561 = vadd.xlane.f32.xlu0 %v12531_v59  ;;  %v12535_v11 = vadd.f32 %v3500_v15, %v12126_v60 }
 0xa18   :  { %3563 = vadd.xlane.f32.xlu1 %v12535_v11 }
 0xa1b   :  { %v7866_v22 = vpop.f32.mrb[100].mxu0 }
 0xa1c   :  { %v7867_v34 = vpop.f32.mrb[101].mxu0 }
 0xa1d   :  { %v7868_v49 = vadd.f32 %v7867_v34, %v7866_v22  ;;  %v7869_v8 = vpop.f32.mrb[102].mxu0 }
 0xa1e   :  { %v7870_v13 = vpop.f32.mrb[103].mxu0 }
 0xa1f   :  { %v3505_v61 = vadd.f32 %v7868_v49, %v12486_v20  ;;  %v7871_v54 = vadd.f32 %v7870_v13, %v7869_v8 }
 0xa21   :  { %v3508_v58 = vadd.f32 %v7871_v54, %v12486_v20  ;;  %v12541_v21 = vadd.f32 %v3505_v61, %v12139_v47 }
 0xa23   :  { %3565 = vadd.xlane.f32.xlu0 %v12541_v21  ;;  %v12545_v60 = vadd.f32 %v3508_v58, %v12136_v57 }
 0xa25   :  { %3567 = vadd.xlane.f32.xlu1 %v12545_v60 }
 0xa26   :  { %v7872_v43 = vpop.f32.mrb[104].mxu0 }
 0xa27   :  { %v7873_v28 = vpop.f32.mrb[105].mxu0 }
 0xa28   :  { %v7874_v62 = vadd.f32 %v7873_v28, %v7872_v43  ;;  %v7875_v33 = vpop.f32.mrb[106].mxu0  ;;  %v8996_v28 = vld [vmem:[%s15445_s20 + $0xf0] ss:$12 sps:$4 sm:$0xff]  }
 0xa29   :  { %v7876_v42 = vpop.f32.mrb[107].mxu0 }
 0xa2a   :  { %v3513_v63 = vadd.f32 %v7874_v62, %v12486_v20  ;;  %v7877_v26 = vadd.f32 %v7876_v42, %v7875_v33  ;;  %v9002_v62 = vld [vmem:[%s15445_s20 + $0x10c] ss:$12 sps:$4 sm:$0xff]   ;;  %v9000_v42 = vld [vmem:[%s15445_s20 + $0x108] ss:$12 sps:$4 sm:$0xff]  }
 0xa2b   :  { %v9003_v33 = vld [vmem:[%s15445_s20 + $0xe0] ss:$12 sps:$4 sm:$0xff]  }
 0xa2c   :  { %v3516_v7 = vadd.f32 %v7877_v26, %v12486_v20  ;;  %v12551_v47 = vadd.f32 %v3513_v63, %v12149_v27  ;;  %v9006_v63 = vld [vmem:[%s15445_s20 + $0x124] ss:$12 sps:$4 sm:$0xff]  }
 0xa2d   :  { %v9007_v26 = vld [vmem:[%s15445_s20 + $0xf8] ss:$12 sps:$4 sm:$0xff]  }
 0xa2e   :  { %3569 = vadd.xlane.f32.xlu0 %v12551_v47  ;;  %v7878_v46 = vpop.f32.mrb[108].mxu0  ;;  %v12555_v57 = vadd.f32 %v3516_v7, %v12152_v5  ;;  %v8990_v5 = vld [vmem:[%s15445_s20 + $0xc0] ss:$12 sps:$4 sm:$0xff]  }
 0xa2f   :  { %v7879_v14 = vpop.f32.mrb[109].mxu0  ;;  %3953 = vmatpush1.bf16.msra.mxu1 %v8990_v5  ;;  %v9004_v7 = vld [vmem:[%s15445_s20 + $0x120] ss:$12 sps:$4 sm:$0xff]   ;;  %v9016_v5 = vld [vmem:[%s15445_s20 + $0x168] ss:$12 sps:$4 sm:$0xff]  }
 0xa30   :  { %v7880_v32 = vadd.f32 %v7879_v14, %v7878_v46  ;;  %3571 = vadd.xlane.f32.xlu1 %v12555_v57  ;;  %v7881_v56 = vpop.f32.mrb[110].mxu0  ;;  %v9010_v46 = vld [vmem:[%s15445_s20 + $0x13c] ss:$12 sps:$4 sm:$0xff]  }
 0xa31   :  { %v7882_v17 = vpop.f32.mrb[111].mxu0  ;;  %v9011_v14 = vld [vmem:[%s15445_s20 + $0x110] ss:$12 sps:$4 sm:$0xff]  }
 0xa32   :  { %v3521_v3 = vadd.f32 %v7880_v32, %v12486_v20  ;;  %v7883_v51 = vadd.f32 %v7882_v17, %v7881_v56  ;;  %v9008_v32 = vld [vmem:[%s15445_s20 + $0x138] ss:$12 sps:$4 sm:$0xff]   ;;  %v9014_v56 = vld [vmem:[%s15445_s20 + $0x154] ss:$12 sps:$4 sm:$0xff]  }
 0xa33   :  { %v9015_v17 = vld [vmem:[%s15445_s20 + $0x128] ss:$12 sps:$4 sm:$0xff]  }
 0xa34   :  { %v3524_v23 = vadd.f32 %v7883_v51, %v12486_v20  ;;  %v12561_v27 = vadd.f32 %v3521_v3, %v12165_v36  ;;  %v8995_v36 = vld [vmem:[%s15445_s20 + $0xdc] ss:$12 sps:$4 sm:$0xff]   ;;  %v9018_v51 = vld [vmem:[%s15445_s20 + $0x16c] ss:$12 sps:$4 sm:$0xff]  }
 0xa35   :  { %3954 = vmatprep.subr.bf16.mxu1 %v8995_v36  ;;  %v9012_v3 = vld [vmem:[%s15445_s20 + $0x150] ss:$12 sps:$4 sm:$0xff]  }
 0xa36   :  { %3573 = vadd.xlane.f32.xlu0 %v12561_v27  ;;  %v12565_v31 = vadd.f32 %v3524_v23, %v12162_v48  ;;  %v8993_v48 = vld [vmem:[%s15445_s20 + $0xd8] ss:$12 sps:$4 sm:$0xff]   ;;  %v9019_v23 = vld [vmem:[%s15445_s20 + $0x140] ss:$12 sps:$4 sm:$0xff]   ;;  %v9021_v36 = vld [vmem:[%s15445_s20 + $0x170] ss:$12 sps:$4 sm:$0xff]  }
 0xa37   :  { %3955 = vmatpush1.bf16.msra.mxu1 %v8993_v48 }
 0xa38   :  { %3575 = vadd.xlane.f32.xlu1 %v12565_v31 }
 0xa50   :  { %v3546_v20 = vpop.xlane.xlu0 %3545 }
 0xa51   :  { %v3577_v29 = vmul.f32 0.0078125, %v3546_v20 }
 0xa52   :  { %v3548_v44 = vpop.xlane.xlu1 %3547 }
 0xa53   :  { %v12581_v38 = vsub.f32 %v12491_v30, %v3577_v29  ;;  %v3578_v40 = vmul.f32 0.0078125, %v3548_v44 }
 0xa55   :  { %v12584_v41 = vsub.f32 %v12495_v0, %v3578_v40  ;;  %v3609_v6 = vmul.f32 %v12581_v38, %v12581_v38 }
 0xa57   :  { %3625 = vadd.xlane.f32.xlu0 %v3609_v6  ;;  %v3610_v2 = vmul.f32 %v12584_v41, %v12584_v41 }
 0xa58   :  { %v3550_v12 = vpop.xlane.xlu0 %3549 }
 0xa59   :  { %v3579_v35 = vmul.f32 0.0078125, %v3550_v12  ;;  %3627 = vadd.xlane.f32.xlu1 %v3610_v2 }
 0xa5a   :  { %v3552_v37 = vpop.xlane.xlu1 %3551 }
 0xa5b   :  { %v12591_v55 = vsub.f32 %v12501_v10, %v3579_v35  ;;  %v3580_v30 = vmul.f32 0.0078125, %v3552_v37 }
 0xa5d   :  { %v12594_v53 = vsub.f32 %v12505_v39, %v3580_v30  ;;  %v3611_v0 = vmul.f32 %v12591_v55, %v12591_v55 }
 0xa5f   :  { %3629 = vadd.xlane.f32.xlu0 %v3611_v0  ;;  %v3612_v52 = vmul.f32 %v12594_v53, %v12594_v53 }
 0xa60   :  { %v3554_v45 = vpop.xlane.xlu0 %3553 }
 0xa61   :  { %v3581_v19 = vmul.f32 0.0078125, %v3554_v45  ;;  %3631 = vadd.xlane.f32.xlu1 %v3612_v52 }
 0xa62   :  { %v3556_v15 = vpop.xlane.xlu1 %3555 }
 0xa63   :  { %v12601_v22 = vsub.f32 %v12511_v24, %v3581_v19  ;;  %v3582_v10 = vmul.f32 0.0078125, %v3556_v15 }
 0xa65   :  { %v12604_v34 = vsub.f32 %v12515_v4, %v3582_v10  ;;  %v3613_v39 = vmul.f32 %v12601_v22, %v12601_v22 }
 0xa67   :  { %3633 = vadd.xlane.f32.xlu0 %v3613_v39  ;;  %v3614_v49 = vmul.f32 %v12604_v34, %v12604_v34 }
 0xa68   :  { %v3558_v8 = vpop.xlane.xlu0 %3557 }
 0xa69   :  { %v3583_v13 = vmul.f32 0.0078125, %v3558_v8  ;;  %3635 = vadd.xlane.f32.xlu1 %v3614_v49 }
 0xa6a   :  { %v3560_v61 = vpop.xlane.xlu1 %3559 }
 0xa6b   :  { %v12611_v54 = vsub.f32 %v12521_v1, %v3583_v13  ;;  %v3584_v24 = vmul.f32 0.0078125, %v3560_v61  ;;  %v8998_v1 = vld [vmem:[%s15445_s20 + $0xf4] ss:$12 sps:$4 sm:$0xff]  }
 0xa6c   :  { %3956 = vmatprep.subr.bf16.mxu1 %v8998_v1 }
 0xa6d   :  { %v12614_v58 = vsub.f32 %v12525_v16, %v3584_v24  ;;  %v3615_v4 = vmul.f32 %v12611_v54, %v12611_v54  ;;  %v8999_v16 = vld [vmem:[%s15445_s20 + $0xc8] ss:$12 sps:$4 sm:$0xff]   ;;  %3957 = vmatpush1.bf16.msra.mxu1 %v8996_v28 }
 0xa6e   :  { %8444 = vmatprep.subr.bf16.mxu0 %v8999_v16  ;;  %3958 = vmatprep.subr.bf16.mxu1 %v9002_v62 }
 0xa6f   :  { %3637 = vadd.xlane.f32.xlu0 %v3615_v4  ;;  %v3616_v43 = vmul.f32 %v12614_v58, %v12614_v58  ;;  %8445 = vmatpush3.bf16.msra.mxu0 %v8999_v16 }
 0xa70   :  { %8446 = vmatprep.subr.bf16.mxu0 %v9003_v33 }
 0xa71   :  { %3639 = vadd.xlane.f32.xlu1 %v3616_v43  ;;  %3959 = vmatpush1.bf16.msra.mxu1 %v9000_v42 }
 0xa72   :  { %3960 = vmatprep.subr.bf16.mxu1 %v9006_v63 }
 0xa73   :  { %8447 = vmatpush3.bf16.msra.mxu0 %v9003_v33 }
 0xa74   :  { %8448 = vmatprep.subr.bf16.mxu0 %v9007_v26 }
 0xa75   :  { %3961 = vmatpush1.bf16.msra.mxu1 %v9004_v7 }
 0xa76   :  { %3962 = vmatprep.subr.bf16.mxu1 %v9010_v46 }
 0xa77   :  { %8449 = vmatpush3.bf16.msra.mxu0 %v9007_v26 }
 0xa78   :  { %8450 = vmatprep.subr.bf16.mxu0 %v9011_v14 }
 0xa79   :  { %3963 = vmatpush1.bf16.msra.mxu1 %v9008_v32 }
 0xa7a   :  { %3964 = vmatprep.subr.bf16.mxu1 %v9014_v56  ;;  %v12723_v56 = vld [vmem:[%s15182_s14] ss:$0 sm:$0xff] }
 0xa7b   :  { %8451 = vmatpush3.bf16.msra.mxu0 %v9011_v14 }
 0xa7c   :  { %8452 = vmatprep.subr.bf16.mxu0 %v9015_v17 }
 0xa7d   :  { %3965 = vmatpush1.bf16.msra.mxu1 %v9012_v3 }
 0xa7e   :  { %3966 = vmatprep.subr.bf16.mxu1 %v9018_v51 }
 0xa7f   :  { %8453 = vmatpush3.bf16.msra.mxu0 %v9015_v17 }
 0xa80   :  { %8454 = vmatprep.subr.bf16.mxu0 %v9019_v23 }
 0xa81   :  { %3967 = vmatpush1.bf16.msra.mxu1 %v9016_v5 }
 0xa83   :  { %8455 = vmatpush3.bf16.msra.mxu0 %v9019_v23 }
 0xa84   :  { %8456 = vmatprep.subr.bf16.mxu0 %v9020_v25 }
 0xa87   :  { %8457 = vmatpush3.bf16.msra.mxu0 %v9020_v25 }
 0xa88   :  { %8458 = vmatprep.subr.bf16.mxu0 %v9021_v36 }
 0xa8b   :  { %8459 = vmatpush3.bf16.msra.mxu0 %v9021_v36 }
 0xaa3   :  { %v3562_v48 = vpop.xlane.xlu0 %3561 }
 0xaa4   :  { %v3585_v20 = vmul.f32 0.0078125, %v3562_v48 }
 0xaa5   :  { %v3564_v29 = vpop.xlane.xlu1 %3563 }
 0xaa6   :  { %v12681_v44 = vsub.f32 %v12531_v59, %v3585_v20  ;;  %v3586_v40 = vmul.f32 0.0078125, %v3564_v29  ;;  %v12731_v29 = vld [vmem:[%s15183_s15] ss:$0 sm:$0xff] }
 0xaa8   :  { %v12684_v6 = vsub.f32 %v12535_v11, %v3586_v40  ;;  %v3617_v2 = vmul.f32 %v12681_v44, %v12681_v44 }
 0xaaa   :  { %3641 = vadd.xlane.f32.xlu0 %v3617_v2  ;;  %v3618_v12 = vmul.f32 %v12684_v6, %v12684_v6 }
 0xaac   :  { %3643 = vadd.xlane.f32.xlu1 %v3618_v12 }
 0xab0   :  { %v3566_v35 = vpop.xlane.xlu0 %3565 }
 0xab1   :  { %v3587_v37 = vmul.f32 0.0078125, %v3566_v35 }
 0xab2   :  { %v3568_v30 = vpop.xlane.xlu1 %3567 }
 0xab3   :  { %v12691_v0 = vsub.f32 %v12541_v21, %v3587_v37  ;;  %v3588_v59 = vmul.f32 0.0078125, %v3568_v30 }
 0xab5   :  { %v12694_v52 = vsub.f32 %v12545_v60, %v3588_v59  ;;  %v3619_v11 = vmul.f32 %v12691_v0, %v12691_v0 }
 0xab7   :  { %3645 = vadd.xlane.f32.xlu0 %v3619_v11  ;;  %v3620_v45 = vmul.f32 %v12694_v52, %v12694_v52 }
 0xab9   :  { %3647 = vadd.xlane.f32.xlu1 %v3620_v45 }
 0xabb   :  { %v3570_v19 = vpop.xlane.xlu0 %3569 }
 0xabc   :  { %v3589_v15 = vmul.f32 0.0078125, %v3570_v19 }
 0xabd   :  { %v3572_v10 = vpop.xlane.xlu1 %3571 }
 0xabe   :  { %v12701_v39 = vsub.f32 %v12551_v47, %v3589_v15  ;;  %v3590_v21 = vmul.f32 0.0078125, %v3572_v10 }
 0xac0   :  { %v12704_v49 = vsub.f32 %v12555_v57, %v3590_v21  ;;  %v3621_v60 = vmul.f32 %v12701_v39, %v12701_v39 }
 0xac2   :  { %3649 = vadd.xlane.f32.xlu0 %v3621_v60  ;;  %v3622_v8 = vmul.f32 %v12704_v49, %v12704_v49 }
 0xac3   :  { %v3574_v13 = vpop.xlane.xlu0 %3573 }
 0xac4   :  { %v3591_v61 = vmul.f32 0.0078125, %v3574_v13  ;;  %3651 = vadd.xlane.f32.xlu1 %v3622_v8 }
 0xac5   :  { %v3576_v24 = vpop.xlane.xlu1 %3575 }
 0xac6   :  { %v12711_v4 = vsub.f32 %v12561_v27, %v3591_v61  ;;  %v3592_v47 = vmul.f32 0.0078125, %v3576_v24 }
 0xac8   :  { %v12714_v43 = vsub.f32 %v12565_v31, %v3592_v47  ;;  %v3623_v57 = vmul.f32 %v12711_v4, %v12711_v4 }
 0xaca   :  { %3653 = vadd.xlane.f32.xlu0 %v3623_v57  ;;  %v3624_v28 = vmul.f32 %v12714_v43, %v12714_v43 }
 0xacc   :  { %3655 = vadd.xlane.f32.xlu1 %v3624_v28 }
 0xae4   :  { %v3626_v1 = vpop.xlane.xlu0 %3625 }
 0xae5   :  { %v3657_v16 = vmul.f32 0.0078125, %v3626_v1 }
 0xae6   :  { %v3628_v62 = vpop.xlane.xlu1 %3627 }
 0xae7   :  { %v3673_v33 = vadd.f32 1e-05, %v3657_v16  ;;  %v3658_v42 = vmul.f32 0.0078125, %v3628_v62 }
 0xae9   :  { %9462 = vrsqrt.f32 %v3673_v33  ;;  %v3674_v27 = vadd.f32 1e-05, %v3658_v42 }
 0xaeb   :  { %9464 = vrsqrt.f32 %v3674_v27 }
 0xaec   :  { %v3630_v63 = vpop.xlane.xlu0 %3629 }
 0xaed   :  { %v3659_v26 = vmul.f32 0.0078125, %v3630_v63 }
 0xaee   :  { %v3632_v31 = vpop.xlane.xlu1 %3631 }
 0xaef   :  { %v3675_v7 = vadd.f32 1e-05, %v3659_v26  ;;  %v3660_v46 = vmul.f32 0.0078125, %v3632_v31 }
 0xaf1   :  { %9466 = vrsqrt.f32 %v3675_v7  ;;  %v3676_v14 = vadd.f32 1e-05, %v3660_v46 }
 0xaf3   :  { %v9463_v32 = vpop.eup %9462  ;;  %9468 = vrsqrt.f32 %v3676_v14 }
 0xaf4   :  { %v3705_v17 = vmul.f32 %v9463_v32, %v12581_v38  ;;  %v3634_v3 = vpop.xlane.xlu0 %3633 }
 0xaf5   :  { %v9465_v51 = vpop.eup %9464  ;;  %v3661_v23 = vmul.f32 0.0078125, %v3634_v3 }
 0xaf6   :  { %v3727_v5 = vmul.f32 %v12723_v56, %v3705_v17  ;;  %v3706_v25 = vmul.f32 %v9465_v51, %v12584_v41  ;;  %v3636_v36 = vpop.xlane.xlu1 %3635 }
 0xaf7   :  { %v3677_v48 = vadd.f32 1e-05, %v3661_v23  ;;  %v3662_v20 = vmul.f32 0.0078125, %v3636_v36 }
 0xaf8   :  { %v3728_v40 = vmul.f32 %v12723_v56, %v3706_v25  ;;  %v12735_v38 = vadd.f32 %v12731_v29, %v3727_v5 }
 0xaf9   :  { %9470 = vrsqrt.f32 %v3677_v48  ;;  %v3678_v2 = vadd.f32 1e-05, %v3662_v20 }
 0xafa   :  { %15721 = vst [vmem:[#allocation47_spill] sm:$0xff] %v12735_v38  ;;  %v12738_v12 = vadd.f32 %v12731_v29, %v3728_v40 }
 0xafb   :  { %v9467_v35 = vpop.eup %9466  ;;  %9472 = vrsqrt.f32 %v3678_v2 }
 0xafc   :  { %15722 = vst [vmem:[#allocation44_spill] sm:$0xff] %v12738_v12  ;;  %v3638_v41 = vpop.xlane.xlu0 %3637  ;;  %v3765_v37 = vpack.c.bf16 %v12738_v12, %v12735_v38  ;;  %v3707_v30 = vmul.f32 %v9467_v35, %v12591_v55 }
 0xafd   :  { %v9469_v59 = vpop.eup %9468  ;;  %v3663_v11 = vmul.f32 0.0078125, %v3638_v41 }
 0xafe   :  { %v3640_v45 = vpop.xlane.xlu1 %3639  ;;  %3985 = vmatmul.mubr.bf16.vlgmr.msra.gmra.mrb[96].mxu1 %v3765_v37  ;;  %8460 = vmatprep.mubr.bf16.mxu0 %v3765_v37  ;;  %v3708_v19 = vmul.f32 %v9469_v59, %v12594_v53  ;;  %v3729_v15 = vmul.f32 %v12723_v56, %v3707_v30 }
 0xaff   :  { %v3679_v10 = vadd.f32 1e-05, %v3663_v11  ;;  %v3664_v21 = vmul.f32 0.0078125, %v3640_v45  ;;  %3994 = vmatprep.mubr.bf16.mxu1 %v15718_v18 }
 0xb00   :  { %v3730_v60 = vmul.f32 %v12723_v56, %v3708_v19  ;;  %v12748_v13 = vadd.f32 %v12731_v29, %v3729_v15 }
 0xb01   :  { %9474 = vrsqrt.f32 %v3679_v10  ;;  %v3680_v8 = vadd.f32 1e-05, %v3664_v21 }
 0xb02   :  { %15723 = vst [vmem:[#allocation54_spill] sm:$0xff] %v12748_v13  ;;  %v12751_v55 = vadd.f32 %v12731_v29, %v3730_v60 }
 0xb03   :  { %v9471_v61 = vpop.eup %9470  ;;  %9476 = vrsqrt.f32 %v3680_v8 }
 0xb04   :  { %15724 = vst [vmem:[#allocation52_spill] sm:$0xff] %v12751_v55  ;;  %v3766_v53 = vpack.c.bf16 %v12751_v55, %v12748_v13  ;;  %v3709_v24 = vmul.f32 %v9471_v61, %v12601_v22 }
 0xb05   :  { %v9473_v47 = vpop.eup %9472 }
 0xb06   :  { %3995 = vmatmul.mubr.bf16.gmra.mrb[100].mxu1 %v3766_v53  ;;  %8461 = vmatmul.mubr.bf16.vlgmr.msra.gmra.mrb[112].mxu0 %v3766_v53  ;;  %v3710_v57 = vmul.f32 %v9473_v47, %v12604_v34  ;;  %v3731_v28 = vmul.f32 %v12723_v56, %v3709_v24 }
 0xb07   :  { %4004 = vmatprep.mubr.bf16.mxu1 %v15718_v18 }
 0xb08   :  { %v3732_v1 = vmul.f32 %v12723_v56, %v3710_v57  ;;  %v12761_v16 = vadd.f32 %v12731_v29, %v3731_v28 }
 0xb0a   :  { %15725 = vst [vmem:[#allocation65_spill] sm:$0xff] %v12761_v16  ;;  %v12764_v62 = vadd.f32 %v12731_v29, %v3732_v1 }
 0xb0b   :  { %v9475_v33 = vpop.eup %9474 }
 0xb0c   :  { %15726 = vst [vmem:[#allocation60_spill] sm:$0xff] %v12764_v62  ;;  %v3767_v22 = vpack.c.bf16 %v12764_v62, %v12761_v16  ;;  %v3711_v42 = vmul.f32 %v9475_v33, %v12611_v54 }
 0xb0d   :  { %v9477_v27 = vpop.eup %9476 }
 0xb0e   :  { %4005 = vmatmul.mubr.bf16.gmra.mrb[104].mxu1 %v3767_v22  ;;  %8464 = vmatprep.mubr.bf16.mxu0 %v3767_v22  ;;  %v3712_v34 = vmul.f32 %v9477_v27, %v12614_v58  ;;  %v3733_v63 = vmul.f32 %v12723_v56, %v3711_v42 }
 0xb0f   :  { %4014 = vmatprep.mubr.bf16.mxu1 %v15718_v18 }
 0xb10   :  { %v3734_v26 = vmul.f32 %v12723_v56, %v3712_v34  ;;  %v12774_v31 = vadd.f32 %v12731_v29, %v3733_v63 }
 0xb12   :  { %15727 = vst [vmem:[#allocation78_spill] sm:$0xff] %v12774_v31  ;;  %v12777_v7 = vadd.f32 %v12731_v29, %v3734_v26 }
 0xb14   :  { %15728 = vst [vmem:[#allocation73_spill] sm:$0xff] %v12777_v7  ;;  %v3768_v54 = vpack.c.bf16 %v12777_v7, %v12774_v31 }
 0xb16   :  { %4015 = vmatmul.mubr.bf16.gmra.mrb[108].mxu1 %v3768_v54  ;;  %8465 = vmatmul.mubr.bf16.gmra.mrb[116].mxu0 %v3768_v54 }
 0xb17   :  { %4024 = vmatprep.mubr.bf16.mxu1 %v15718_v18 }
 0xb37   :  { %v3642_v58 = vpop.xlane.xlu0 %3641 }
 0xb38   :  { %v3665_v46 = vmul.f32 0.0078125, %v3642_v58 }
 0xb39   :  { %v3644_v14 = vpop.xlane.xlu1 %3643 }
 0xb3a   :  { %v3681_v32 = vadd.f32 1e-05, %v3665_v46  ;;  %v3666_v17 = vmul.f32 0.0078125, %v3644_v14 }
 0xb3c   :  { %9478 = vrsqrt.f32 %v3681_v32  ;;  %v3682_v3 = vadd.f32 1e-05, %v3666_v17 }
 0xb3e   :  { %9480 = vrsqrt.f32 %v3682_v3 }
 0xb44   :  { %v3646_v51 = vpop.xlane.xlu0 %3645 }
 0xb45   :  { %v3667_v23 = vmul.f32 0.0078125, %v3646_v51 }
 0xb46   :  { %v9479_v5 = vpop.eup %9478  ;;  %v3648_v25 = vpop.xlane.xlu1 %3647 }
 0xb47   :  { %v3683_v36 = vadd.f32 1e-05, %v3667_v23  ;;  %v3668_v48 = vmul.f32 0.0078125, %v3648_v25  ;;  %v3713_v20 = vmul.f32 %v9479_v5, %v12681_v44 }
 0xb48   :  { %v9481_v40 = vpop.eup %9480 }
 0xb49   :  { %9482 = vrsqrt.f32 %v3683_v36  ;;  %v3684_v2 = vadd.f32 1e-05, %v3668_v48  ;;  %v3714_v35 = vmul.f32 %v9481_v40, %v12684_v6  ;;  %v3735_v41 = vmul.f32 %v12723_v56, %v3713_v20 }
 0xb4b   :  { %9484 = vrsqrt.f32 %v3684_v2  ;;  %v3736_v37 = vmul.f32 %v12723_v56, %v3714_v35  ;;  %v12787_v30 = vadd.f32 %v12731_v29, %v3735_v41 }
 0xb4d   :  { %15729 = vst [vmem:[#allocation34_spill] sm:$0xff] %v12787_v30  ;;  %v12790_v59 = vadd.f32 %v12731_v29, %v3736_v37  ;;  %v15737_v37 = vld [vmem:[#allocation20_spill] sm:$0xff] }
 0xb4f   :  { %15730 = vst [vmem:[#allocation37_spill] sm:$0xff] %v12790_v59  ;;  %v3650_v11 = vpop.xlane.xlu0 %3649  ;;  %v3769_v44 = vpack.c.bf16 %v12790_v59, %v12787_v30 }
 0xb50   :  { %v3669_v45 = vmul.f32 0.0078125, %v3650_v11  ;;  %v15738_v11 = vsub.s32 2, %v15737_v37 }
 0xb51   :  { %v3652_v19 = vpop.xlane.xlu1 %3651  ;;  %4025 = vmatmul.mubr.bf16.gmra.mrb[112].mxu1 %v3769_v44  ;;  %8468 = vmatprep.mubr.bf16.mxu0 %v3769_v44 }
 0xb52   :  { %v3685_v6 = vadd.f32 1e-05, %v3669_v45  ;;  %v3670_v15 = vmul.f32 0.0078125, %v3652_v19  ;;  %4034 = vmatprep.mubr.bf16.mxu1 %v15718_v18  ;;  %v15739_v45 = vld [vmem:[#allocation23_spill] sm:$0xff] }
 0xb53   :  { %v9483_v10 = vpop.eup %9482 }
 0xb54   :  { %9486 = vrsqrt.f32 %v3685_v6  ;;  %v3686_v21 = vadd.f32 1e-05, %v3670_v15  ;;  %v3715_v60 = vmul.f32 %v9483_v10, %v12691_v0  ;;  %v15740_v15 = vld [vmem:[#allocation24_spill] sm:$0xff] }
 0xb55   :  { %v9485_v8 = vpop.eup %9484 }
 0xb56   :  { %9488 = vrsqrt.f32 %v3686_v21  ;;  %v3716_v61 = vmul.f32 %v9485_v8, %v12694_v52  ;;  %v3737_v53 = vmul.f32 %v12723_v56, %v3715_v60  ;;  %v15741_v21 = vld [vmem:[#allocation3_spill] sm:$0xff]  ;;  %v15742_v8 = vld [vmem:[#allocation2_spill] sm:$0xff] }
 0xb57   :  { %v3654_v24 = vpop.xlane.xlu0 %3653 }
 0xb58   :  { %v3671_v47 = vmul.f32 0.0078125, %v3654_v24  ;;  %v3738_v57 = vmul.f32 %v12723_v56, %v3716_v61  ;;  %v12800_v22 = vadd.f32 %v12731_v29, %v3737_v53 }
 0xb59   :  { %v3656_v28 = vpop.xlane.xlu1 %3655 }
 0xb5a   :  { %v3687_v1 = vadd.f32 1e-05, %v3671_v47  ;;  %v3672_v33 = vmul.f32 0.0078125, %v3656_v28  ;;  %15731 = vst [vmem:[#allocation58_spill] sm:$0xff] %v12800_v22  ;;  %v12803_v42 = vadd.f32 %v12731_v29, %v3738_v57 }
 0xb5c   :  { %15732 = vst [vmem:[#allocation70_spill] sm:$0xff] %v12803_v42  ;;  %9490 = vrsqrt.f32 %v3687_v1  ;;  %v3688_v0 = vadd.f32 1e-05, %v3672_v33  ;;  %v3770_v52 = vpack.c.bf16 %v12803_v42, %v12800_v22 }
 0xb5e   :  { %v9487_v27 = vpop.eup %9486  ;;  %9492 = vrsqrt.f32 %v3688_v0  ;;  %4035 = vmatmul.mubr.bf16.gmra.mrb[116].mxu1 %v3770_v52  ;;  %8469 = vmatmul.mubr.bf16.gmra.mrb[120].mxu0 %v3770_v52 }
 0xb5f   :  { %4044 = vmatprep.mubr.bf16.mxu1 %v15718_v18  ;;  %v3717_v34 = vmul.f32 %v9487_v27, %v12701_v39 }
 0xb60   :  { %v9489_v63 = vpop.eup %9488 }
 0xb61   :  { %v3718_v26 = vmul.f32 %v9489_v63, %v12704_v49  ;;  %v3739_v54 = vmul.f32 %v12723_v56, %v3717_v34 }
 0xb63   :  { %v3740_v58 = vmul.f32 %v12723_v56, %v3718_v26  ;;  %v12813_v46 = vadd.f32 %v12731_v29, %v3739_v54 }
 0xb65   :  { %15733 = vst [vmem:[#allocation42_spill] sm:$0xff] %v12813_v46  ;;  %v12816_v14 = vadd.f32 %v12731_v29, %v3740_v58 }
 0xb66   :  { %v9491_v32 = vpop.eup %9490 }
 0xb67   :  { %15734 = vst [vmem:[#allocation63_spill] sm:$0xff] %v12816_v14  ;;  %v3771_v17 = vpack.c.bf16 %v12816_v14, %v12813_v46  ;;  %v3719_v3 = vmul.f32 %v9491_v32, %v12711_v4 }
 0xb68   :  { %v9493_v39 = vpop.eup %9492 }
 0xb69   :  { %4045 = vmatmul.mubr.bf16.gmra.mrb[120].mxu1 %v3771_v17  ;;  %8472 = vmatprep.mubr.bf16.mxu0 %v3771_v17  ;;  %v3720_v49 = vmul.f32 %v9493_v39, %v12714_v43  ;;  %v3741_v51 = vmul.f32 %v12723_v56, %v3719_v3  ;;  %v7509_v43 = vld [vmem:[%s15172_s5 + $0x3] sm:$0x7] }
 0xb6a   :  { %4054 = vmatprep.mubr.bf16.mxu1 %v15718_v18  ;;  %v12837_v36 = vrot.slane %v7509_v43, %v15719_v50  ;;  %v12847_v44 = vrot.slane %v7509_v43, %v15738_v11 }
 0xb6b   :  { %v3742_v23 = vmul.f32 %v12723_v56, %v3720_v49  ;;  %v12826_v5 = vadd.f32 %v12731_v29, %v3741_v51  ;;  %v12840_v56 = vrot.slane %v7509_v43, %v15720_v9 }
 0xb6d   :  { %15735 = vst [vmem:[#allocation41_spill] sm:$0xff] %v12826_v5  ;;  %v12829_v25 = vadd.f32 %v12731_v29, %v3742_v23 }
 0xb6f   :  { %15736 = vst [vmem:[#allocation76_spill] sm:$0xff] %v12829_v25  ;;  %v3772_v4 = vpack.c.bf16 %v12829_v25, %v12826_v5 }
 0xb71   :  { %4055 = vmatmul.mubr.bf16.gmra.mrb[124].mxu1 %v3772_v4  ;;  %8473 = vmatmul.mubr.bf16.gmra.mrb[124].mxu0 %v3772_v4 }
 0xbd1   :  { %v3986_v48 = vpop.f32.mrb[96].mxu1 }
 0xbd2   :  { %v3987_v20 = vadd.f32 %v3986_v48, %v12837_v36  ;;  %v3988_v29 = vpop.f32.mrb[97].mxu1 }
 0xbd3   :  { %v3990_v40 = vpop.f32.mrb[98].mxu1  ;;  %v3989_v2 = vadd.f32 %v3988_v29, %v12840_v56 }
 0xbd4   :  { %v3991_v35 = vadd.f32 %v3990_v40, %v12837_v36  ;;  %v3992_v41 = vpop.f32.mrb[99].mxu1  ;;  %v4170_v19 = vmul.f32 %v15739_v45, %v3987_v20  ;;  %v4467_v10 = vmul.f32 %v15740_v15, %v3987_v20  ;;  %v12853_v60 = vmul.f32 %v15741_v21, %v3987_v20 }
 0xbd5   :  { %v3993_v6 = vadd.f32 %v3992_v41, %v12840_v56  ;;  %v12856_v61 = vmul.f32 %v15742_v8, %v3987_v20 }
 0xbd6   :  { %v4171_v53 = vmul.f32 %v15739_v45, %v3991_v35  ;;  %v4468_v24 = vmul.f32 %v15740_v15, %v3991_v35  ;;  %v12861_v47 = vmul.f32 %v15741_v21, %v3991_v35  ;;  %v12864_v57 = vmul.f32 %v15742_v8, %v3991_v35 }
 0xbd7   :  { %15743 = vst [vmem:[#allocation71_spill] sm:$0xff] %v12856_v61  ;;  %v12866_v28 = vpack.c.bf16 %v3993_v6, %v3989_v2 }
 0xbd8   :  { %15744 = vst [vmem:[#allocation50_spill] sm:$0xff] %v12864_v57  ;;  %v4186_v1 = vpack.c.bf16 %v4171_v53, %v4170_v19  ;;  %v4483_v33 = vpack.c.bf16 %v4468_v24, %v4467_v10 }
 0xbd9   :  { %v3996_v27 = vpop.f32.mrb[100].mxu1  ;;  %v8462_v34 = vpop.f32.mrb[112].mxu0  ;;  %8476 = vmatprep.subr.bf16.mxu1 %v12866_v28  ;;  %8508 = vmatprep.subr.bf16.mxu0 %v12866_v28 }
 0xbda   :  { %v3997_v63 = vadd.f32 %v3996_v27, %v12837_v36  ;;  %v12876_v26 = vadd.f32 %v8462_v34, %v12847_v44  ;;  %v3998_v54 = vpop.f32.mrb[101].mxu1  ;;  %v4099_v58 = vpop.f32.mrb[113].mxu0  ;;  %8477 = vmatpush3.bf16.xpose.msra.mxu1 %v12866_v28  ;;  %8492 = vmatprep.mubr.bf16.mxu1 %v4186_v1 }
 0xbdb   :  { %v3999_v32 = vadd.f32 %v3998_v54, %v12840_v56  ;;  %v12881_v17 = vadd.f32 %v4099_v58, %v12847_v44  ;;  %8509 = vmatpush3.bf16.xpose.msra.mxu0 %v12866_v28  ;;  %8524 = vmatprep.mubr.bf16.mxu0 %v4483_v33  ;;  %v4000_v3 = vpop.f32.mrb[102].mxu1  ;;  %v8463_v39 = vpop.f32.mrb[114].mxu0 }
 0xbdc   :  { %v12885_v49 = vmul.f32 %v15739_v45, %v3997_v63  ;;  %v12888_v51 = vmul.f32 %v15740_v15, %v3997_v63  ;;  %v12891_v23 = vmul.f32 %v15741_v21, %v3997_v63  ;;  %v12894_v4 = vmul.f32 %v15742_v8, %v3997_v63  ;;  %v4002_v43 = vpop.f32.mrb[103].mxu1  ;;  %v4102_v48 = vpop.f32.mrb[115].mxu0 }
 0xbdd   :  { %v4001_v20 = vadd.f32 %v4000_v3, %v12837_v36  ;;  %v12898_v29 = vadd.f32 %v8463_v39, %v12847_v44  ;;  %v4003_v40 = vadd.f32 %v4002_v43, %v12840_v56  ;;  %v4103_v2 = vadd.f32 %v4102_v48, %v12847_v44 }
 0xbde   :  { %15745 = vst [vmem:[#allocation46_spill] sm:$0xff] %v12891_v23  ;;  %15746 = vst [vmem:[#allocation26_spill] sm:$0xff] %v12894_v4  ;;  %v4732_v35 = vmul.f32 %v15740_v15, %v12881_v17  ;;  %v4734_v41 = vmul.f32 %v15740_v15, %v12876_v26  ;;  %v4435_v37 = vmul.f32 %v15739_v45, %v12881_v17 }
 0xbdf   :  { %v4437_v11 = vmul.f32 %v15739_v45, %v12876_v26  ;;  %v12911_v19 = vmul.f32 %v15739_v45, %v4001_v20  ;;  %v12914_v6 = vmul.f32 %v15740_v15, %v4001_v20  ;;  %v12917_v10 = vmul.f32 %v15741_v21, %v4001_v20 }
 0xbe0   :  { %v12920_v53 = vmul.f32 %v15742_v8, %v4001_v20  ;;  %v12922_v24 = vpack.c.bf16 %v4003_v40, %v3999_v32  ;;  %v4733_v1 = vmul.f32 %v15740_v15, %v4103_v2  ;;  %v4735_v33 = vmul.f32 %v15740_v15, %v12898_v29 }
 0xbe1   :  { %15747 = vst [vmem:[#allocation25_spill] sm:$0xff] %v12917_v10  ;;  %v4436_v27 = vmul.f32 %v15739_v45, %v4103_v2  ;;  %v4006_v32 = vpop.f32.mrb[104].mxu1  ;;  %v5633_v9 = vmul.f32 %v15742_v8, %v12881_v17  ;;  %v5635_v22 = vmul.f32 %v15742_v8, %v12876_v26 }
 0xbe2   :  { %15748 = vst [vmem:[#allocation55_spill] sm:$0xff] %v12920_v53  ;;  %v4007_v3 = vadd.f32 %v4006_v32, %v12837_v36  ;;  %8478 = vmatprep.subr.bf16.mxu1 %v12922_v24  ;;  %8510 = vmatprep.subr.bf16.mxu0 %v12922_v24  ;;  %v4008_v39 = vpop.f32.mrb[105].mxu1  ;;  %v12939_v43 = vpack.c.bf16 %v4733_v1, %v4732_v35 }
 0xbe3   :  { %v12941_v48 = vpack.c.bf16 %v4735_v33, %v4734_v41  ;;  %v4009_v20 = vadd.f32 %v4008_v39, %v12840_v56  ;;  %8479 = vmatpush3.bf16.xpose.msra.mxu1 %v12922_v24  ;;  %8511 = vmatpush3.bf16.xpose.msra.mxu0 %v12922_v24  ;;  %v4010_v40 = vpop.f32.mrb[106].mxu1  ;;  %v12946_v58 = vpack.c.bf16 %v4436_v27, %v4435_v37 }
 0xbe4   :  { %v4438_v32 = vmul.f32 %v15739_v45, %v12898_v29  ;;  %v4011_v52 = vadd.f32 %v4010_v40, %v12837_v36  ;;  %v4012_v54 = vpop.f32.mrb[107].mxu1  ;;  %v12952_v35 = vmul.f32 %v15739_v45, %v4007_v3  ;;  %v12955_v41 = vmul.f32 %v15740_v15, %v4007_v3 }
 0xbe5   :  { %15749 = vst [vmem:[#allocation49_spill] sm:$0xff] %v12946_v58  ;;  %v12958_v1 = vmul.f32 %v15741_v21, %v4007_v3  ;;  %v4013_v33 = vadd.f32 %v4012_v54, %v12840_v56  ;;  %v12962_v37 = vmul.f32 %v15742_v8, %v4007_v3  ;;  %v5223_v39 = vmul.f32 %v15741_v21, %v12881_v17 }
 0xbe6   :  { %v12964_v27 = vpack.c.bf16 %v4438_v32, %v4437_v11  ;;  %v12969_v40 = vmul.f32 %v15739_v45, %v4011_v52  ;;  %v12972_v0 = vmul.f32 %v15740_v15, %v4011_v52  ;;  %v12975_v63 = vmul.f32 %v15741_v21, %v4011_v52 }
 0xbe7   :  { %15750 = vst [vmem:[#allocation66_spill] sm:$0xff] %v12958_v1  ;;  %15751 = vst [vmem:[#allocation31_spill] sm:$0xff] %v12962_v37  ;;  %v12978_v34 = vmul.f32 %v15742_v8, %v4011_v52  ;;  %v12980_v54 = vpack.c.bf16 %v4013_v33, %v4009_v20  ;;  %v5224_v11 = vmul.f32 %v15741_v21, %v4103_v2 }
 0xbe8   :  { %15752 = vst [vmem:[#allocation40_spill] sm:$0xff] %v12964_v27  ;;  %15753 = vst [vmem:[#allocation48_spill] sm:$0xff] %v12975_v63  ;;  %v5225_v3 = vmul.f32 %v15741_v21, %v12876_v26  ;;  %v5226_v32 = vmul.f32 %v15741_v21, %v12898_v29  ;;  %v5634_v20 = vmul.f32 %v15742_v8, %v4103_v2 }
 0xbe9   :  { %15754 = vst [vmem:[#allocation56_spill] sm:$0xff] %v12978_v34  ;;  %v4016_v33 = vpop.f32.mrb[108].mxu1  ;;  %v8466_v25 = vpop.f32.mrb[116].mxu0  ;;  %8480 = vmatprep.subr.bf16.mxu1 %v12980_v54  ;;  %8512 = vmatprep.subr.bf16.mxu0 %v12980_v54  ;;  %v12997_v5 = vpack.c.bf16 %v5224_v11, %v5223_v39 }
 0xbea   :  { %v12999_v14 = vpack.c.bf16 %v5226_v32, %v5225_v3  ;;  %v4017_v50 = vadd.f32 %v4016_v33, %v12837_v36  ;;  %v4124_v52 = vadd.f32 %v8466_v25, %v12847_v44  ;;  %v4018_v46 = vpop.f32.mrb[109].mxu1  ;;  %v4115_v42 = vpop.f32.mrb[117].mxu0  ;;  %v5636_v25 = vmul.f32 %v15742_v8, %v12898_v29 }
 0xbeb   :  { %15755 = vst [vmem:[#allocation57_spill] sm:$0xff] %v12997_v5  ;;  %v4019_v59 = vadd.f32 %v4018_v46, %v12840_v56  ;;  %v4116_v39 = vadd.f32 %v4115_v42, %v12847_v44  ;;  %8481 = vmatpush3.bf16.xpose.msra.mxu1 %v12980_v54  ;;  %8513 = vmatpush3.bf16.xpose.msra.mxu0 %v12980_v54  ;;  %v4020_v17 = vpop.f32.mrb[110].mxu1  ;;  %v8467_v11 = vpop.f32.mrb[118].mxu0 }
 0xbec   :  { %15756 = vst [vmem:[#allocation61_spill] sm:$0xff] %v12999_v14  ;;  %v4021_v3 = vadd.f32 %v4020_v17, %v12837_v36  ;;  %v4127_v2 = vadd.f32 %v8467_v11, %v12847_v44  ;;  %v4022_v32 = vpop.f32.mrb[111].mxu1  ;;  %v4118_v33 = vpop.f32.mrb[119].mxu0  ;;  %v13017_v26 = vmul.f32 %v15739_v45, %v4017_v50  ;;  %v13020_v42 = vmul.f32 %v15740_v15, %v4017_v50 }
 0xbed   :  { %v4023_v46 = vadd.f32 %v4022_v32, %v12840_v56  ;;  %v4119_v30 = vadd.f32 %v4118_v33, %v12847_v44  ;;  %v4736_v7 = vmul.f32 %v15740_v15, %v4116_v39  ;;  %v4738_v29 = vmul.f32 %v15740_v15, %v4124_v52 }
 0xbee   :  { %v13027_v17 = vmul.f32 %v15739_v45, %v4021_v3  ;;  %v13030_v11 = vmul.f32 %v15740_v15, %v4021_v3  ;;  %v4739_v31 = vmul.f32 %v15740_v15, %v4127_v2  ;;  %v13034_v62 = vmul.f32 %v15741_v21, %v4017_v50 }
 0xbef   :  { %v13036_v16 = vpack.c.bf16 %v4023_v46, %v4019_v59  ;;  %v4737_v32 = vmul.f32 %v15740_v15, %v4119_v30  ;;  %v13040_v33 = vmul.f32 %v15741_v21, %v4021_v3  ;;  %v13043_v55 = vmul.f32 %v15742_v8, %v4017_v50 }
 0xbf0   :  { %15757 = vst [vmem:[#allocation62_spill] sm:$0xff] %v13034_v62  ;;  %v13049_v38 = vpack.c.bf16 %v4739_v31, %v4738_v29  ;;  %v13052_v14 = vmul.f32 %v15742_v8, %v4021_v3  ;;  %v4439_v46 = vmul.f32 %v15739_v45, %v4116_v39  ;;  %v4440_v31 = vmul.f32 %v15739_v45, %v4119_v30 }
 0xbf1   :  { %15758 = vst [vmem:[#allocation67_spill] sm:$0xff] %v13040_v33  ;;  %15759 = vst [vmem:[#allocation53_spill] sm:$0xff] %v13043_v55  ;;  %8482 = vmatprep.subr.bf16.mxu1 %v13036_v16  ;;  %8514 = vmatprep.subr.bf16.mxu0 %v13036_v16  ;;  %v13056_v59 = vpack.c.bf16 %v4737_v32, %v4736_v7  ;;  %v4441_v29 = vmul.f32 %v15739_v45, %v4124_v52 }
 0xbf2   :  { %15760 = vst [vmem:[#allocation51_spill] sm:$0xff] %v13052_v14  ;;  %v4442_v3 = vmul.f32 %v15739_v45, %v4127_v2  ;;  %v5227_v7 = vmul.f32 %v15741_v21, %v4116_v39  ;;  %v5228_v32 = vmul.f32 %v15741_v21, %v4119_v30  ;;  %v5229_v50 = vmul.f32 %v15741_v21, %v4124_v52 }
 0xbf3   :  { %8483 = vmatpush3.bf16.xpose.msra.mxu1 %v13036_v16  ;;  %8515 = vmatpush3.bf16.xpose.msra.mxu0 %v13036_v16  ;;  %v13071_v12 = vpack.c.bf16 %v4440_v31, %v4439_v46  ;;  %v5230_v13 = vmul.f32 %v15741_v21, %v4127_v2  ;;  %v13076_v27 = vpack.c.bf16 %v5634_v20, %v5633_v9 }
 0xbf4   :  { %v13073_v5 = vpack.c.bf16 %v4442_v3, %v4441_v29  ;;  %v13078_v18 = vpack.c.bf16 %v5228_v32, %v5227_v7  ;;  %v13080_v55 = vpack.c.bf16 %v5636_v25, %v5635_v22  ;;  %v5637_v14 = vmul.f32 %v15742_v8, %v4116_v39 }
 0xbf5   :  { %15761 = vst [vmem:[#allocation43_spill] sm:$0xff] %v13071_v12  ;;  %15763 = vst [vmem:[#allocation38_spill] sm:$0xff] %v13076_v27  ;;  %v5638_v37 = vmul.f32 %v15742_v8, %v4119_v30  ;;  %v13084_v34 = vpack.c.bf16 %v5230_v13, %v5229_v50  ;;  %v5639_v4 = vmul.f32 %v15742_v8, %v4124_v52 }
 0xbf6   :  { %15762 = vst [vmem:[#allocation68_spill] sm:$0xff] %v13073_v5  ;;  %15764 = vst [vmem:[#allocation29_spill] sm:$0xff] %v13078_v18  ;;  %v5640_v46 = vmul.f32 %v15742_v8, %v4127_v2 }
 0xbf7   :  { %15765 = vst [vmem:[#allocation32_spill] sm:$0xff] %v13080_v55  ;;  %15766 = vst [vmem:[#allocation45_spill] sm:$0xff] %v13084_v34  ;;  %v13088_v31 = vpack.c.bf16 %v5638_v37, %v5637_v14 }
 0xbf8   :  { %v13090_v29 = vpack.c.bf16 %v5640_v46, %v5639_v4 }
 0xbf9   :  { %15767 = vst [vmem:[#allocation79_spill] sm:$0xff] %v13088_v31 }
 0xbfa   :  { %15768 = vst [vmem:[#allocation35_spill] sm:$0xff] %v13090_v29 }
 0xc24   :  { %v4026_v9 = vpop.f32.mrb[112].mxu1 }
 0xc25   :  { %v4027_v20 = vadd.f32 %v4026_v9, %v12837_v36  ;;  %v4028_v3 = vpop.f32.mrb[113].mxu1 }
 0xc26   :  { %v4030_v22 = vpop.f32.mrb[114].mxu1  ;;  %v4029_v25 = vadd.f32 %v4028_v3, %v12840_v56 }
 0xc27   :  { %v4031_v39 = vadd.f32 %v4030_v22, %v12837_v36  ;;  %v4032_v30 = vpop.f32.mrb[115].mxu1  ;;  %v13096_v13 = vmul.f32 %v15739_v45, %v4027_v20  ;;  %v13100_v14 = vmul.f32 %v15740_v15, %v4027_v20  ;;  %v13103_v4 = vmul.f32 %v15741_v21, %v4027_v20 }
 0xc28   :  { %v4033_v52 = vadd.f32 %v4032_v30, %v12840_v56  ;;  %v13106_v37 = vmul.f32 %v15742_v8, %v4027_v20 }
 0xc29   :  { %15769 = vst [vmem:[#allocation69_spill] sm:$0xff] %v13103_v4  ;;  %v13109_v2 = vmul.f32 %v15739_v45, %v4031_v39  ;;  %v13112_v50 = vmul.f32 %v15740_v15, %v4031_v39  ;;  %v13115_v7 = vmul.f32 %v15741_v21, %v4031_v39  ;;  %v13118_v32 = vmul.f32 %v15742_v8, %v4031_v39 }
 0xc2a   :  { %15770 = vst [vmem:[#allocation74_spill] sm:$0xff] %v13106_v37  ;;  %v13120_v46 = vpack.c.bf16 %v4033_v52, %v4029_v25 }
 0xc2b   :  { %15771 = vst [vmem:[#allocation75_spill] sm:$0xff] %v13115_v7  ;;  %15772 = vst [vmem:[#allocation80_spill] sm:$0xff] %v13118_v32 }
 0xc2c   :  { %15773 = vst [vmem:[#allocation81_spill] sm:$0xff] %v13120_v46  ;;  %8484 = vmatprep.subr.bf16.mxu1 %v13120_v46  ;;  %8516 = vmatprep.subr.bf16.mxu0 %v13120_v46 }
 0xc2d   :  { %8485 = vmatpush3.bf16.xpose.msra.mxu1 %v13120_v46  ;;  %8517 = vmatpush3.bf16.xpose.msra.mxu0 %v13120_v46 }
 0xc31   :  { %v4036_v25 = vpop.f32.mrb[116].mxu1  ;;  %v8470_v39 = vpop.f32.mrb[120].mxu0 }
 0xc32   :  { %v4037_v30 = vadd.f32 %v4036_v25, %v12837_v36  ;;  %v4140_v52 = vadd.f32 %v8470_v39, %v12847_v44  ;;  %v4038_v20 = vpop.f32.mrb[117].mxu1  ;;  %v4131_v9 = vpop.f32.mrb[121].mxu0 }
 0xc33   :  { %v4039_v3 = vadd.f32 %v4038_v20, %v12840_v56  ;;  %v4132_v22 = vadd.f32 %v4131_v9, %v12847_v44  ;;  %v4040_v29 = vpop.f32.mrb[118].mxu1  ;;  %v8471_v31 = vpop.f32.mrb[122].mxu0 }
 0xc34   :  { %v4041_v55 = vadd.f32 %v4040_v29, %v12837_v36  ;;  %v4143_v27 = vadd.f32 %v8471_v31, %v12847_v44  ;;  %v4042_v34 = vpop.f32.mrb[119].mxu1  ;;  %v4134_v18 = vpop.f32.mrb[123].mxu0  ;;  %v13141_v5 = vmul.f32 %v15739_v45, %v4037_v30  ;;  %v13144_v25 = vmul.f32 %v15740_v15, %v4037_v30 }
 0xc35   :  { %v4043_v39 = vadd.f32 %v4042_v34, %v12840_v56  ;;  %v4135_v20 = vadd.f32 %v4134_v18, %v12847_v44  ;;  %v4740_v9 = vmul.f32 %v15740_v15, %v4132_v22  ;;  %v4742_v12 = vmul.f32 %v15740_v15, %v4140_v52 }
 0xc36   :  { %v13151_v29 = vmul.f32 %v15739_v45, %v4041_v55  ;;  %v13154_v31 = vmul.f32 %v15740_v15, %v4041_v55  ;;  %v4743_v37 = vmul.f32 %v15740_v15, %v4143_v27  ;;  %v13158_v32 = vmul.f32 %v15741_v21, %v4037_v30 }
 0xc37   :  { %v13160_v53 = vpack.c.bf16 %v4043_v39, %v4039_v3  ;;  %v4741_v34 = vmul.f32 %v15740_v15, %v4135_v20  ;;  %v13164_v18 = vmul.f32 %v15741_v21, %v4041_v55  ;;  %v13167_v61 = vmul.f32 %v15742_v8, %v4037_v30 }
 0xc38   :  { %15774 = vst [vmem:[#allocation82_spill] sm:$0xff] %v13158_v32  ;;  %v13173_v7 = vpack.c.bf16 %v4743_v37, %v4742_v12  ;;  %v13176_v62 = vmul.f32 %v15742_v8, %v4041_v55  ;;  %v4443_v39 = vmul.f32 %v15739_v45, %v4132_v22  ;;  %v4444_v55 = vmul.f32 %v15739_v45, %v4135_v20 }
 0xc39   :  { %15775 = vst [vmem:[#allocation83_spill] sm:$0xff] %v13160_v53  ;;  %15776 = vst [vmem:[#allocation84_spill] sm:$0xff] %v13164_v18  ;;  %8486 = vmatprep.subr.bf16.mxu1 %v13160_v53  ;;  %8518 = vmatprep.subr.bf16.mxu0 %v13160_v53  ;;  %v13180_v3 = vpack.c.bf16 %v4741_v34, %v4740_v9  ;;  %v4445_v37 = vmul.f32 %v15739_v45, %v4140_v52 }
 0xc3a   :  { %15777 = vst [vmem:[#allocation85_spill] sm:$0xff] %v13167_v61  ;;  %15778 = vst [vmem:[#allocation86_spill] sm:$0xff] %v13176_v62  ;;  %8487 = vmatpush3.bf16.xpose.msra.mxu1 %v13160_v53  ;;  %8519 = vmatpush3.bf16.xpose.msra.mxu0 %v13160_v53  ;;  %v4446_v4 = vmul.f32 %v15739_v45, %v4143_v27  ;;  %v5231_v9 = vmul.f32 %v15741_v21, %v4132_v22 }
 0xc3b   :  { %v5232_v34 = vmul.f32 %v15741_v21, %v4135_v20  ;;  %v5233_v30 = vmul.f32 %v15741_v21, %v4140_v52  ;;  %v13195_v32 = vpack.c.bf16 %v4444_v55, %v4443_v39  ;;  %v5234_v18 = vmul.f32 %v15741_v21, %v4143_v27 }
 0xc3c   :  { %v4046_v57 = vpop.f32.mrb[120].mxu1  ;;  %v5641_v33 = vmul.f32 %v15742_v8, %v4132_v22  ;;  %v5642_v12 = vmul.f32 %v15742_v8, %v4135_v20  ;;  %v13201_v1 = vpack.c.bf16 %v4446_v4, %v4445_v37  ;;  %v5643_v39 = vmul.f32 %v15742_v8, %v4140_v52 }
 0xc3d   :  { %15779 = vst [vmem:[#allocation87_spill] sm:$0xff] %v13195_v32  ;;  %v4047_v61 = vadd.f32 %v4046_v57, %v12837_v36  ;;  %v4048_v62 = vpop.f32.mrb[121].mxu1  ;;  %v13203_v63 = vpack.c.bf16 %v5232_v34, %v5231_v9  ;;  %v13205_v10 = vpack.c.bf16 %v5234_v18, %v5233_v30  ;;  %v5644_v55 = vmul.f32 %v15742_v8, %v4143_v27 }
 0xc3e   :  { %15780 = vst [vmem:[#allocation88_spill] sm:$0xff] %v13201_v1  ;;  %v4050_v23 = vpop.f32.mrb[122].mxu1  ;;  %v13207_v53 = vpack.c.bf16 %v5642_v12, %v5641_v33  ;;  %v4049_v22 = vadd.f32 %v4048_v62, %v12840_v56 }
 0xc3f   :  { %15781 = vst [vmem:[#allocation64_spill] sm:$0xff] %v13203_v63  ;;  %15782 = vst [vmem:[#allocation89_spill] sm:$0xff] %v13205_v10  ;;  %v4051_v20 = vadd.f32 %v4050_v23, %v12837_v36  ;;  %v4052_v32 = vpop.f32.mrb[123].mxu1  ;;  %v13214_v57 = vmul.f32 %v15739_v45, %v4047_v61  ;;  %v13217_v4 = vmul.f32 %v15740_v15, %v4047_v61 }
 0xc40   :  { %15783 = vst [vmem:[#allocation59_spill] sm:$0xff] %v13207_v53  ;;  %v4053_v18 = vadd.f32 %v4052_v32, %v12840_v56  ;;  %v13221_v33 = vmul.f32 %v15741_v21, %v4047_v61  ;;  %v13224_v52 = vmul.f32 %v15742_v8, %v4047_v61  ;;  %v13226_v27 = vpack.c.bf16 %v5644_v55, %v5643_v39 }
 0xc41   :  { %v13229_v62 = vmul.f32 %v15739_v45, %v4051_v20  ;;  %v13232_v23 = vmul.f32 %v15740_v15, %v4051_v20  ;;  %v13235_v30 = vmul.f32 %v15741_v21, %v4051_v20  ;;  %v13238_v12 = vmul.f32 %v15742_v8, %v4051_v20 }
 0xc42   :  { %15784 = vst [vmem:[#allocation90_spill] sm:$0xff] %v13221_v33  ;;  %15785 = vst [vmem:[#allocation91_spill] sm:$0xff] %v13224_v52  ;;  %v13240_v32 = vpack.c.bf16 %v4053_v18, %v4049_v22 }
 0xc43   :  { %15786 = vst [vmem:[#allocation77_spill] sm:$0xff] %v13226_v27  ;;  %15787 = vst [vmem:[#allocation72_spill] sm:$0xff] %v13235_v30 }
 0xc44   :  { %15788 = vst [vmem:[#allocation28_spill] sm:$0xff] %v13238_v12  ;;  %15789 = vst [vmem:[#allocation27_spill] sm:$0xff] %v13240_v32  ;;  %v4056_v39 = vpop.f32.mrb[124].mxu1  ;;  %v8474_v55 = vpop.f32.mrb[124].mxu0  ;;  %8488 = vmatprep.subr.bf16.mxu1 %v13240_v32  ;;  %8520 = vmatprep.subr.bf16.mxu0 %v13240_v32 }
 0xc45   :  { %v4057_v22 = vadd.f32 %v4056_v39, %v12837_v36  ;;  %v4156_v20 = vadd.f32 %v8474_v55, %v12847_v44  ;;  %v4058_v18 = vpop.f32.mrb[125].mxu1  ;;  %v4147_v61 = vpop.f32.mrb[125].mxu0  ;;  %8489 = vmatpush3.bf16.xpose.msra.mxu1 %v13240_v32  ;;  %8521 = vmatpush3.bf16.xpose.msra.mxu0 %v13240_v32 }
 0xc46   :  { %v4059_v9 = vadd.f32 %v4058_v18, %v12840_v56  ;;  %v4148_v34 = vadd.f32 %v4147_v61, %v12847_v44  ;;  %v4060_v37 = vpop.f32.mrb[126].mxu1  ;;  %v8475_v27 = vpop.f32.mrb[126].mxu0 }
 0xc47   :  { %v4061_v53 = vadd.f32 %v4060_v37, %v12837_v36  ;;  %v4159_v10 = vadd.f32 %v8475_v27, %v12847_v44  ;;  %v4062_v63 = vpop.f32.mrb[127].mxu1  ;;  %v4150_v39 = vpop.f32.mrb[127].mxu0  ;;  %v13261_v55 = vmul.f32 %v15739_v45, %v4057_v22  ;;  %v13264_v1 = vmul.f32 %v15740_v15, %v4057_v22 }
 0xc48   :  { %v4063_v52 = vadd.f32 %v4062_v63, %v12840_v56  ;;  %v4151_v18 = vadd.f32 %v4150_v39, %v12847_v44  ;;  %v4744_v61 = vmul.f32 %v15740_v15, %v4148_v34  ;;  %v4746_v12 = vmul.f32 %v15740_v15, %v4156_v20 }
 0xc49   :  { %v13271_v36 = vmul.f32 %v15739_v45, %v4061_v53  ;;  %v13274_v27 = vmul.f32 %v15740_v15, %v4061_v53  ;;  %v4747_v37 = vmul.f32 %v15740_v15, %v4159_v10  ;;  %v13278_v33 = vmul.f32 %v15741_v21, %v4057_v22 }
 0xc4a   :  { %v13280_v30 = vpack.c.bf16 %v4063_v52, %v4059_v9  ;;  %v4745_v56 = vmul.f32 %v15740_v15, %v4151_v18  ;;  %v13284_v44 = vmul.f32 %v15741_v21, %v4061_v53  ;;  %v13287_v63 = vmul.f32 %v15742_v8, %v4057_v22 }
 0xc4b   :  { %15790 = vst [vmem:[#allocation33_spill] sm:$0xff] %v13278_v33  ;;  %v4193_v39 = vpack.c.bf16 %v13271_v36, %v13261_v55  ;;  %v4490_v32 = vpack.c.bf16 %v13274_v27, %v13264_v1  ;;  %v13293_v58 = vpack.c.bf16 %v4747_v37, %v4746_v12  ;;  %v13296_v46 = vmul.f32 %v15742_v8, %v4061_v53 }
 0xc4c   :  { %15791 = vst [vmem:[#allocation30_spill] sm:$0xff] %v13287_v63  ;;  %8490 = vmatprep.subr.bf16.mxu1 %v13280_v30  ;;  %8522 = vmatprep.subr.bf16.mxu0 %v13280_v30  ;;  %v4754_v15 = vpack.c.bf16 %v4745_v56, %v4744_v61  ;;  %v4447_v9 = vmul.f32 %v15739_v45, %v4148_v34 }
 0xc4d   :  { %15792 = vst [vmem:[#allocation39_spill] sm:$0xff] %v13296_v46  ;;  %8491 = vmatpush3.bf16.xpose.msra.mxu1 %v13280_v30  ;;  %8523 = vmatpush3.bf16.xpose.msra.mxu0 %v13280_v30  ;;  %v4448_v53 = vmul.f32 %v15739_v45, %v4151_v18  ;;  %v4449_v12 = vmul.f32 %v15739_v45, %v4156_v20 }
 0xc4e   :  { %8540 = vmatprep.subr.bf16.mxu1 %v12939_v43  ;;  %8604 = vmatprep.subr.bf16.mxu0 %v12866_v28  ;;  %v4450_v22 = vmul.f32 %v15739_v45, %v4159_v10  ;;  %v5235_v55 = vmul.f32 %v15741_v21, %v4148_v34  ;;  %v5236_v61 = vmul.f32 %v15741_v21, %v4151_v18 }
 0xc4f   :  { %v13314_v36 = vpack.c.bf16 %v4448_v53, %v4447_v9  ;;  %v5237_v27 = vmul.f32 %v15741_v21, %v4156_v20  ;;  %v5238_v37 = vmul.f32 %v15741_v21, %v4159_v10  ;;  %v5645_v52 = vmul.f32 %v15742_v8, %v4148_v34 }
 0xc50   :  { %v13318_v56 = vpack.c.bf16 %v4450_v22, %v4449_v12  ;;  %v13320_v1 = vpack.c.bf16 %v5236_v61, %v5235_v55  ;;  %v5646_v63 = vmul.f32 %v15742_v8, %v4151_v18  ;;  %v5647_v45 = vmul.f32 %v15742_v8, %v4156_v20  ;;  %v15851_v55 = vld [vmem:[#allocation86_spill] sm:$0xff]  ;;  %v15852_v61 = vld [vmem:[#allocation85_spill] sm:$0xff] }
 0xc51   :  { %15793 = vst [vmem:[#allocation36_spill] sm:$0xff] %v13314_v36  ;;  %v13324_v46 = vpack.c.bf16 %v5238_v37, %v5237_v27  ;;  %v5648_v33 = vmul.f32 %v15742_v8, %v4159_v10  ;;  %v15799_v21 = vpack.c.bf16 %v12911_v19, %v12885_v49  ;;  %v15800_v12 = vpack.c.bf16 %v12914_v6, %v12888_v51  ;;  %v15855_v37 = vld [vmem:[#allocation91_spill] sm:$0xff] }
 0xc52   :  { %15794 = vst [vmem:[#allocation4_spill] sm:$0xff] %v13318_v56  ;;  %15795 = vst [vmem:[#allocation5_spill] sm:$0xff] %v13320_v1  ;;  %v13328_v9 = vpack.c.bf16 %v5646_v63, %v5645_v52  ;;  %v15801_v34 = vpack.c.bf16 %v12969_v40, %v12952_v35  ;;  %v15802_v20 = vpack.c.bf16 %v12972_v0, %v12955_v41  ;;  %v15814_v35 = vld [vmem:[#allocation83_spill] sm:$0xff]  ;;  %v15819_v40 = vld [vmem:[#allocation48_spill] sm:$0xff] }
 0xc53   :  { %15796 = vst [vmem:[#allocation6_spill] sm:$0xff] %v13324_v46  ;;  %v13330_v53 = vpack.c.bf16 %v5648_v33, %v5647_v45  ;;  %v15803_v8 = vpack.c.bf16 %v13027_v17, %v13017_v26  ;;  %v15804_v0 = vpack.c.bf16 %v13030_v11, %v13020_v42  ;;  %v15805_v49 = vpack.c.bf16 %v13109_v2, %v13096_v13  ;;  %v15815_v41 = vld [vmem:[#allocation27_spill] sm:$0xff]  ;;  %v15820_v26 = vld [vmem:[#allocation66_spill] sm:$0xff]  ;;  %v15846_v63 = vld [vmem:[#allocation53_spill] sm:$0xff] }
 0xc54   :  { %15797 = vst [vmem:[#allocation7_spill] sm:$0xff] %v13328_v9  ;;  %8493 = vmatmul.mubr.bf16.vlgmr.msra.gmra.mrb[128].mxu1 %v15799_v21  ;;  %8525 = vmatmul.mubr.bf16.vlgmr.msra.gmra.mrb[128].mxu0 %v15800_v12  ;;  %v15806_v51 = vpack.c.bf16 %v13112_v50, %v13100_v14  ;;  %v15807_v19 = vpack.c.bf16 %v13151_v29, %v13141_v5  ;;  %v15812_v5 = vld [vmem:[#allocation81_spill] sm:$0xff]  ;;  %v15822_v17 = vld [vmem:[#allocation67_spill] sm:$0xff]  ;;  %v15823_v11 = vld [vmem:[#allocation62_spill] sm:$0xff] }
 0xc55   :  { %15798 = vst [vmem:[#allocation8_spill] sm:$0xff] %v13330_v53  ;;  %8496 = vmatprep.mubr.bf16.mxu1 %v15801_v34  ;;  %8528 = vmatprep.mubr.bf16.mxu0 %v15802_v20  ;;  %v15808_v6 = vpack.c.bf16 %v13154_v31, %v13144_v25  ;;  %v15809_v10 = vpack.c.bf16 %v13229_v62, %v13214_v57  ;;  %v15825_v13 = vld [vmem:[#allocation75_spill] sm:$0xff]  ;;  %v15826_v14 = vld [vmem:[#allocation69_spill] sm:$0xff]  ;;  %v15828_v50 = vld [vmem:[#allocation84_spill] sm:$0xff]  ;;  %v15860_v20 = vmov 0  }
 0xc56   :  { %8541 = vmatpush3.bf16.msra.mxu1 %v12939_v43  ;;  %8605 = vmatpush3.bf16.xpose.msra.mxu0 %v12866_v28  ;;  %v15810_v43 = vpack.c.bf16 %v13232_v23, %v13217_v4  ;;  %v15821_v42 = vpack.c.bf16 %v15819_v40, %v15820_v26  ;;  %v15827_v2 = vpack.c.bf16 %v15825_v13, %v15826_v14  ;;  %v15831_v29 = vld [vmem:[#allocation72_spill] sm:$0xff]  ;;  %v15837_v4 = vld [vmem:[#allocation71_spill] sm:$0xff]  ;;  %v15849_v52 = vld [vmem:[#allocation74_spill] sm:$0xff] }
 0xc57   :  { %8542 = vmatprep.subr.bf16.mxu1 %v12941_v48  ;;  %8606 = vmatprep.subr.bf16.mxu0 %v12922_v24  ;;  %v15842_v23 = vld [vmem:[#allocation56_spill] sm:$0xff]  ;;  %v15853_v27 = vpack.c.bf16 %v15851_v55, %v15852_v61  ;;  %v15857_v21 = vld [vmem:[#allocation39_spill] sm:$0xff]  ;;  %v15858_v12 = vld [vmem:[#allocation30_spill] sm:$0xff] }
 0xc58   :  { %v15859_v34 = vpack.c.bf16 %v15857_v21, %v15858_v12  ;;  %v13490_v26 = vld [vmem:[%s15173_s1] sm:$0xff]  ;;  %v13499_v14 = vld [vmem:[%s15173_s1 + $0x8] sm:$0xff] }
 0xc5a   :  { %8543 = vmatpush3.bf16.msra.mxu1 %v12941_v48  ;;  %v15813_v48 = vld [vmem:[#allocation49_spill] sm:$0xff] }
 0xc5b   :  { %8544 = vmatprep.subr.bf16.mxu1 %v13056_v59 }
 0xc5c   :  { %8497 = vmatmul.mubr.bf16.gmra.mrb[132].mxu1 %v15803_v8  ;;  %8529 = vmatmul.mubr.bf16.gmra.mrb[132].mxu0 %v15804_v0 }
 0xc5d   :  { %8500 = vmatprep.mubr.bf16.mxu1 %v15805_v49  ;;  %8532 = vmatprep.mubr.bf16.mxu0 %v15806_v51  ;;  %v13465_v49 = vld [vmem:[%s15173_s1 + $0x10] sm:$0xff] }
 0xc5e   :  { %8545 = vmatpush3.bf16.msra.mxu1 %v13056_v59  ;;  %8607 = vmatpush3.bf16.xpose.msra.mxu0 %v12922_v24  ;;  %v15824_v59 = vpack.c.bf16 %v15822_v17, %v15823_v11 }
 0xc5f   :  { %8546 = vmatprep.subr.bf16.mxu1 %v13049_v38  ;;  %8608 = vmatprep.subr.bf16.mxu0 %v12980_v54 }
 0xc62   :  { %8547 = vmatpush3.bf16.msra.mxu1 %v13049_v38  ;;  %v15811_v38 = vpack.c.bf16 %v12861_v47, %v12853_v60  ;;  %v15816_v60 = vld [vmem:[#allocation25_spill] sm:$0xff]  ;;  %v15817_v47 = vld [vmem:[#allocation46_spill] sm:$0xff] }
 0xc63   :  { %8548 = vmatprep.subr.bf16.mxu1 %v13180_v3 }
 0xc64   :  { %8501 = vmatmul.mubr.bf16.gmra.mrb[136].mxu1 %v15807_v19  ;;  %8533 = vmatmul.mubr.bf16.gmra.mrb[136].mxu0 %v15808_v6 }
 0xc65   :  { %8504 = vmatprep.mubr.bf16.mxu1 %v15809_v10  ;;  %8536 = vmatprep.mubr.bf16.mxu0 %v15810_v43 }
 0xc66   :  { %8549 = vmatpush3.bf16.msra.mxu1 %v13180_v3  ;;  %8609 = vmatpush3.bf16.xpose.msra.mxu0 %v12980_v54  ;;  %v15834_v3 = vld [vmem:[#allocation33_spill] sm:$0xff] }
 0xc67   :  { %8550 = vmatprep.subr.bf16.mxu1 %v13173_v7  ;;  %8610 = vmatprep.subr.bf16.mxu0 %v13036_v16  ;;  %v15835_v57 = vpack.c.bf16 %v13284_v44, %v15834_v3  ;;  %v15845_v44 = vld [vmem:[#allocation51_spill] sm:$0xff]  ;;  %v13516_v3 = vld [vmem:[%s15173_s1 + $0x30] sm:$0xff] }
 0xc6a   :  { %8551 = vmatpush3.bf16.msra.mxu1 %v13173_v7  ;;  %v15829_v7 = vld [vmem:[#allocation82_spill] sm:$0xff] }
 0xc6b   :  { %8552 = vmatprep.subr.bf16.mxu1 %v4754_v15  ;;  %v15830_v25 = vpack.c.bf16 %v15828_v50, %v15829_v7 }
 0xc6c   :  { %8505 = vmatmul.mubr.bf16.gmra.mrb[140].mxu1 %v4193_v39  ;;  %8537 = vmatmul.mubr.bf16.gmra.mrb[140].mxu0 %v4490_v32  ;;  %v15843_v32 = vld [vmem:[#allocation31_spill] sm:$0xff]  ;;  %v15847_v39 = vpack.c.bf16 %v15845_v44, %v15846_v63 }
 0xc6d   :  { %8620 = vmatprep.mubr.bf16.mxu0 %v15811_v38  ;;  %v15844_v18 = vpack.c.bf16 %v15842_v23, %v15843_v32  ;;  %v13473_v38 = vld [vmem:[%s15173_s1 + $0x18] sm:$0xff] }
 0xc6e   :  { %8553 = vmatpush3.bf16.msra.mxu1 %v4754_v15  ;;  %8611 = vmatpush3.bf16.xpose.msra.mxu0 %v13036_v16  ;;  %v15848_v15 = vld [vmem:[#allocation80_spill] sm:$0xff] }
 0xc6f   :  { %8554 = vmatprep.subr.bf16.mxu1 %v13293_v58  ;;  %8612 = vmatprep.subr.bf16.mxu0 %v15812_v5  ;;  %v15850_v22 = vpack.c.bf16 %v15848_v15, %v15849_v52  ;;  %v13542_v15 = vld [vmem:[%s15173_s1 + $0x20] sm:$0xff] }
 0xc72   :  { %8555 = vmatpush3.bf16.msra.mxu1 %v13293_v58  ;;  %v15818_v58 = vpack.c.bf16 %v15816_v60, %v15817_v47 }
 0xc73   :  { %8572 = vmatprep.subr.bf16.mxu1 %v15813_v48 }
 0xc76   :  { %8613 = vmatpush3.bf16.xpose.msra.mxu0 %v15812_v5 }
 0xc77   :  { %8614 = vmatprep.subr.bf16.mxu0 %v15814_v35 }
 0xc7e   :  { %8615 = vmatpush3.bf16.xpose.msra.mxu0 %v15814_v35 }
 0xc7f   :  { %8616 = vmatprep.subr.bf16.mxu0 %v15815_v41 }
 0xc86   :  { %8617 = vmatpush3.bf16.xpose.msra.mxu0 %v15815_v41 }
 0xc87   :  { %8618 = vmatprep.subr.bf16.mxu0 %v13280_v30 }
 0xc8e   :  { %8619 = vmatpush3.bf16.xpose.msra.mxu0 %v13280_v30 }
 0xc8f   :  { %8668 = vmatprep.subr.bf16.mxu0 %v12866_v28 }
 0xc95   :  { %8621 = vmatmul.mubr.bf16.vlgmr.msra.gmra.mrb[144].mxu0 %v15818_v58 }
 0xc96   :  { %8624 = vmatprep.mubr.bf16.mxu0 %v15821_v42  ;;  %8669 = vmatpush3.bf16.xpose.msra.mxu0 %v12866_v28  ;;  %v15832_v28 = vld [vmem:[#allocation90_spill] sm:$0xff] }
 0xc97   :  { %8670 = vmatprep.subr.bf16.mxu0 %v12922_v24  ;;  %v15833_v31 = vpack.c.bf16 %v15831_v29, %v15832_v28 }
 0xc9d   :  { %8625 = vmatmul.mubr.bf16.gmra.mrb[148].mxu0 %v15824_v59 }
 0xc9e   :  { %8628 = vmatprep.mubr.bf16.mxu0 %v15827_v2  ;;  %8671 = vmatpush3.bf16.xpose.msra.mxu0 %v12922_v24  ;;  %v15836_v24 = vld [vmem:[#allocation50_spill] sm:$0xff] }
 0xc9f   :  { %8672 = vmatprep.subr.bf16.mxu0 %v12980_v54  ;;  %v15838_v33 = vpack.c.bf16 %v15836_v24, %v15837_v4 }
 0xca5   :  { %8629 = vmatmul.mubr.bf16.gmra.mrb[152].mxu0 %v15830_v25 }
 0xca6   :  { %8632 = vmatprep.mubr.bf16.mxu0 %v15833_v31  ;;  %8673 = vmatpush3.bf16.xpose.msra.mxu0 %v12980_v54  ;;  %v15840_v54 = vld [vmem:[#allocation26_spill] sm:$0xff] }
 0xca7   :  { %8674 = vmatprep.subr.bf16.mxu0 %v13036_v16 }
 0xcad   :  { %8633 = vmatmul.mubr.bf16.gmra.mrb[156].mxu0 %v15835_v57 }
 0xcae   :  { %8675 = vmatpush3.bf16.xpose.msra.mxu0 %v13036_v16  ;;  %8684 = vmatprep.mubr.bf16.mxu0 %v15838_v33  ;;  %v15839_v16 = vld [vmem:[#allocation55_spill] sm:$0xff] }
 0xcaf   :  { %8676 = vmatprep.subr.bf16.mxu0 %v15812_v5  ;;  %v15841_v62 = vpack.c.bf16 %v15839_v16, %v15840_v54  ;;  %v13525_v54 = vld [vmem:[%s15173_s1 + $0x38] sm:$0xff] }
 0xcb6   :  { %8677 = vmatpush3.bf16.xpose.msra.mxu0 %v15812_v5 }
 0xcb7   :  { %8678 = vmatprep.subr.bf16.mxu0 %v15814_v35 }
 0xcbe   :  { %8679 = vmatpush3.bf16.xpose.msra.mxu0 %v15814_v35 }
 0xcbf   :  { %8680 = vmatprep.subr.bf16.mxu0 %v15815_v41 }
 0xcc6   :  { %8681 = vmatpush3.bf16.xpose.msra.mxu0 %v15815_v41 }
 0xcc7   :  { %8682 = vmatprep.subr.bf16.mxu0 %v13280_v30 }
 0xcce   :  { %8683 = vmatpush3.bf16.xpose.msra.mxu0 %v13280_v30  ;;  %v15854_v30 = vld [vmem:[#allocation28_spill] sm:$0xff] }
 0xccf   :  { %v15856_v45 = vpack.c.bf16 %v15854_v30, %v15855_v37  ;;  %v13551_v30 = vld [vmem:[%s15173_s1 + $0x28] sm:$0xff] }
 0xcd5   :  { %8685 = vmatmul.mubr.bf16.vlgmr.msra.gmra.mrb[160].mxu0 %v15841_v62 }
 0xcd6   :  { %8688 = vmatprep.mubr.bf16.mxu0 %v15844_v18 }
 0xcdd   :  { %8689 = vmatmul.mubr.bf16.gmra.mrb[164].mxu0 %v15847_v39 }
 0xcde   :  { %8692 = vmatprep.mubr.bf16.mxu0 %v15850_v22 }
 0xce5   :  { %8693 = vmatmul.mubr.bf16.gmra.mrb[168].mxu0 %v15853_v27 }
 0xce6   :  { %8696 = vmatprep.mubr.bf16.mxu0 %v15856_v45 }
 0xced   :  { %8697 = vmatmul.mubr.bf16.gmra.mrb[172].mxu0 %v15859_v34 }
 0xcee   :  { %6346 = vmatprep.mubr.bf16.mxu0 %v15860_v20 }
 0xd27   :  { %v8494_v8 = vpop.f32.mrb[128].mxu1  ;;  %v8526_v0 = vpop.f32.mrb[128].mxu0 }
 0xd28   :  { %v13468_v51 = vadd.f32 %v13465_v49, %v8526_v0  ;;  %v4228_v19 = vpop.f32.mrb[129].mxu1  ;;  %v4525_v6 = vpop.f32.mrb[129].mxu0  ;;  %v13480_v60 = vadd.f32 %v13465_v49, %v8494_v8  ;;  %v13568_v8 = vld [vmem:[%s15173_s1 + $0x50] sm:$0xff] }
 0xd29   :  { %v8495_v10 = vpop.f32.mrb[130].mxu1  ;;  %v8527_v43 = vpop.f32.mrb[130].mxu0  ;;  %v13493_v42 = vadd.f32 %v13490_v26, %v4525_v6  ;;  %v13506_v25 = vadd.f32 %v13490_v26, %v4228_v19  ;;  %v13577_v19 = vld [vmem:[%s15173_s1 + $0x58] sm:$0xff] }
 0xd2a   :  { %v13476_v5 = vadd.f32 %v13473_v38, %v8527_v43  ;;  %4592 = vmax.xlane.f32.xlu0 %v13468_v51  ;;  %v4231_v35 = vpop.f32.mrb[131].mxu1  ;;  %v4528_v41 = vpop.f32.mrb[131].mxu0  ;;  %v13484_v47 = vadd.f32 %v13473_v38, %v8495_v10 }
 0xd2b   :  { %v13502_v2 = vadd.f32 %v13499_v14, %v4528_v41  ;;  %v13510_v29 = vadd.f32 %v13499_v14, %v4231_v35  ;;  %v13594_v35 = vld [vmem:[%s15173_s1 + $0x40] sm:$0xff] }
 0xd2c   :  { %4594 = vmax.xlane.f32.xlu1 %v13476_v5 }
 0xd2e   :  { %4295 = vmax.xlane.f32.xlu0 %v13480_v60 }
 0xd2f   :  { %v8498_v58 = vpop.f32.mrb[132].mxu1  ;;  %v8530_v40 = vpop.f32.mrb[132].mxu0 }
 0xd30   :  { %v4541_v17 = vpop.f32.mrb[133].mxu0  ;;  %4297 = vmax.xlane.f32.xlu1 %v13484_v47  ;;  %v4244_v11 = vpop.f32.mrb[133].mxu1  ;;  %v13519_v57 = vadd.f32 %v13516_v3, %v8530_v40  ;;  %v13532_v18 = vadd.f32 %v13516_v3, %v8498_v58  ;;  %v13603_v58 = vld [vmem:[%s15173_s1 + $0x48] sm:$0xff] }
 0xd31   :  { %v8499_v59 = vpop.f32.mrb[134].mxu1  ;;  %v8531_v13 = vpop.f32.mrb[134].mxu0  ;;  %v13545_v52 = vadd.f32 %v13542_v15, %v4541_v17  ;;  %v13558_v12 = vadd.f32 %v13542_v15, %v4244_v11 }
 0xd32   :  { %v4544_v50 = vpop.f32.mrb[135].mxu0  ;;  %4588 = vmax.xlane.f32.xlu0 %v13493_v42  ;;  %v4247_v7 = vpop.f32.mrb[135].mxu1  ;;  %v13528_v62 = vadd.f32 %v13525_v54, %v8531_v13  ;;  %v13536_v44 = vadd.f32 %v13525_v54, %v8499_v59  ;;  %v13620_v59 = vld [vmem:[%s15173_s1 + $0x70] sm:$0xff] }
 0xd33   :  { %v13554_v37 = vadd.f32 %v13551_v30, %v4544_v50  ;;  %v13562_v34 = vadd.f32 %v13551_v30, %v4247_v7  ;;  %v13629_v50 = vld [vmem:[%s15173_s1 + $0x78] sm:$0xff] }
 0xd34   :  { %4590 = vmax.xlane.f32.xlu1 %v13502_v2 }
 0xd36   :  { %4291 = vmax.xlane.f32.xlu0 %v13506_v25 }
 0xd37   :  { %v8502_v28 = vpop.f32.mrb[136].mxu1  ;;  %v8534_v31 = vpop.f32.mrb[136].mxu0 }
 0xd38   :  { %v4260_v24 = vpop.f32.mrb[137].mxu1  ;;  %v4557_v4 = vpop.f32.mrb[137].mxu0  ;;  %4293 = vmax.xlane.f32.xlu1 %v13510_v29  ;;  %v13571_v0 = vadd.f32 %v13568_v8, %v8534_v31  ;;  %v13584_v10 = vadd.f32 %v13568_v8, %v8502_v28 }
 0xd39   :  { %v8503_v33 = vpop.f32.mrb[138].mxu1  ;;  %v8535_v16 = vpop.f32.mrb[138].mxu0  ;;  %v13597_v41 = vadd.f32 %v13594_v35, %v4557_v4  ;;  %v13610_v17 = vadd.f32 %v13594_v35, %v4260_v24  ;;  %v13646_v24 = vld [vmem:[%s15173_s1 + $0x60] sm:$0xff] }
 0xd3a   :  { %v4263_v23 = vpop.f32.mrb[139].mxu1  ;;  %v4560_v32 = vpop.f32.mrb[139].mxu0  ;;  %4600 = vmax.xlane.f32.xlu0 %v13519_v57  ;;  %v13580_v6 = vadd.f32 %v13577_v19, %v8535_v16  ;;  %v13588_v43 = vadd.f32 %v13577_v19, %v8503_v33  ;;  %v13655_v33 = vld [vmem:[%s15173_s1 + $0x68] sm:$0xff] }
 0xd3b   :  { %v13606_v40 = vadd.f32 %v13603_v58, %v4560_v32  ;;  %v13614_v11 = vadd.f32 %v13603_v58, %v4263_v23 }
 0xd3c   :  { %4602 = vmax.xlane.f32.xlu1 %v13528_v62 }
 0xd3e   :  { %4303 = vmax.xlane.f32.xlu0 %v13532_v18 }
 0xd3f   :  { %v8506_v63 = vpop.f32.mrb[140].mxu1  ;;  %v8538_v39 = vpop.f32.mrb[140].mxu0 }
 0xd40   :  { %4305 = vmax.xlane.f32.xlu1 %v13536_v44  ;;  %v4276_v22 = vpop.f32.mrb[141].mxu1  ;;  %v4573_v55 = vpop.f32.mrb[141].mxu0  ;;  %v13623_v13 = vadd.f32 %v13620_v59, %v8538_v39  ;;  %v13636_v28 = vadd.f32 %v13620_v59, %v8506_v63 }
 0xd41   :  { %v8507_v61 = vpop.f32.mrb[142].mxu1  ;;  %v8539_v27 = vpop.f32.mrb[142].mxu0  ;;  %v13649_v4 = vadd.f32 %v13646_v24, %v4573_v55  ;;  %v13662_v23 = vadd.f32 %v13646_v24, %v4276_v22 }
 0xd42   :  { %4596 = vmax.xlane.f32.xlu0 %v13545_v52  ;;  %v4279_v45 = vpop.f32.mrb[143].mxu1  ;;  %v4576_v21 = vpop.f32.mrb[143].mxu0  ;;  %v13632_v7 = vadd.f32 %v13629_v50, %v8539_v27  ;;  %v13640_v31 = vadd.f32 %v13629_v50, %v8507_v61 }
 0xd43   :  { %v13658_v16 = vadd.f32 %v13655_v33, %v4576_v21  ;;  %v13666_v32 = vadd.f32 %v13655_v33, %v4279_v45 }
 0xd44   :  { %4598 = vmax.xlane.f32.xlu1 %v13554_v37 }
 0xd46   :  { %4299 = vmax.xlane.f32.xlu0 %v13558_v12 }
 0xd48   :  { %4301 = vmax.xlane.f32.xlu1 %v13562_v34 }
 0xd4a   :  { %4608 = vmax.xlane.f32.xlu0 %v13571_v0 }
 0xd4c   :  { %4610 = vmax.xlane.f32.xlu1 %v13580_v6 }
 0xd4e   :  { %4311 = vmax.xlane.f32.xlu0 %v13584_v10 }
 0xd50   :  { %4313 = vmax.xlane.f32.xlu1 %v13588_v43 }
 0xd52   :  { %4604 = vmax.xlane.f32.xlu0 %v13597_v41 }
 0xd54   :  { %4606 = vmax.xlane.f32.xlu1 %v13606_v40 }
 0xd56   :  { %4307 = vmax.xlane.f32.xlu0 %v13610_v17 }
 0xd58   :  { %4309 = vmax.xlane.f32.xlu1 %v13614_v11 }
 0xd5a   :  { %4616 = vmax.xlane.f32.xlu0 %v13623_v13 }
 0xd5c   :  { %4618 = vmax.xlane.f32.xlu1 %v13632_v7 }
 0xd5e   :  { %4319 = vmax.xlane.f32.xlu0 %v13636_v28 }
 0xd60   :  { %4321 = vmax.xlane.f32.xlu1 %v13640_v31 }
 0xd62   :  { %4612 = vmax.xlane.f32.xlu0 %v13649_v4 }
 0xd64   :  { %4614 = vmax.xlane.f32.xlu1 %v13658_v16 }
 0xd66   :  { %4315 = vmax.xlane.f32.xlu0 %v13662_v23 }
 0xd68   :  { %v8622_v63 = vpop.f32.mrb[144].mxu0  ;;  %4317 = vmax.xlane.f32.xlu1 %v13666_v32 }
 0xd69   :  { %v13671_v39 = vadd.f32 %v13465_v49, %v8622_v63  ;;  %v5016_v55 = vpop.f32.mrb[145].mxu0 }
 0xd6a   :  { %v8623_v61 = vpop.f32.mrb[146].mxu0  ;;  %v13678_v21 = vadd.f32 %v13490_v26, %v5016_v55 }
 0xd6b   :  { %v13674_v27 = vadd.f32 %v13473_v38, %v8623_v61  ;;  %v5019_v22 = vpop.f32.mrb[147].mxu0  ;;  %5083 = vmax.xlane.f32.xlu0 %v13671_v39 }
 0xd6c   :  { %v13682_v45 = vadd.f32 %v13499_v14, %v5019_v22 }
 0xd6d   :  { %5085 = vmax.xlane.f32.xlu1 %v13674_v27 }
 0xd6f   :  { %5079 = vmax.xlane.f32.xlu0 %v13678_v21 }
 0xd70   :  { %v8626_v63 = vpop.f32.mrb[148].mxu0 }
 0xd71   :  { %v13686_v20 = vadd.f32 %v13516_v3, %v8626_v63  ;;  %v5032_v53 = vpop.f32.mrb[149].mxu0  ;;  %5081 = vmax.xlane.f32.xlu1 %v13682_v45 }
 0xd72   :  { %v8627_v61 = vpop.f32.mrb[150].mxu0  ;;  %v13694_v46 = vadd.f32 %v13542_v15, %v5032_v53 }
 0xd73   :  { %15861 = vst [vmem:[#allocation9_spill] sm:$0xff] %v13686_v20  ;;  %v13690_v9 = vadd.f32 %v13525_v54, %v8627_v61  ;;  %v5035_v55 = vpop.f32.mrb[151].mxu0  ;;  %5091 = vmax.xlane.f32.xlu0 %v13686_v20 }
 0xd74   :  { %v13698_v22 = vadd.f32 %v13551_v30, %v5035_v55 }
 0xd75   :  { %15862 = vst [vmem:[#allocation10_spill] sm:$0xff] %v13690_v9  ;;  %5093 = vmax.xlane.f32.xlu1 %v13690_v9 }
 0xd77   :  { %5087 = vmax.xlane.f32.xlu0 %v13694_v46 }
 0xd78   :  { %v8630_v63 = vpop.f32.mrb[152].mxu0 }
 0xd79   :  { %v13702_v1 = vadd.f32 %v13568_v8, %v8630_v63  ;;  %v5048_v56 = vpop.f32.mrb[153].mxu0  ;;  %5089 = vmax.xlane.f32.xlu1 %v13698_v22 }
 0xd7a   :  { %v8631_v61 = vpop.f32.mrb[154].mxu0  ;;  %v13710_v48 = vadd.f32 %v13594_v35, %v5048_v56 }
 0xd7b   :  { %15863 = vst [vmem:[#allocation11_spill] sm:$0xff] %v13702_v1  ;;  %v13706_v36 = vadd.f32 %v13577_v19, %v8631_v61  ;;  %v5051_v53 = vpop.f32.mrb[155].mxu0  ;;  %5099 = vmax.xlane.f32.xlu0 %v13702_v1 }
 0xd7c   :  { %15865 = vst [vmem:[#allocation13_spill] sm:$0xff] %v13710_v48  ;;  %v13714_v55 = vadd.f32 %v13603_v58, %v5051_v53 }
 0xd7d   :  { %15864 = vst [vmem:[#allocation12_spill] sm:$0xff] %v13706_v36  ;;  %5101 = vmax.xlane.f32.xlu1 %v13706_v36 }
 0xd7e   :  { %15866 = vst [vmem:[#allocation14_spill] sm:$0xff] %v13714_v55 }
 0xd7f   :  { %5095 = vmax.xlane.f32.xlu0 %v13710_v48 }
 0xd80   :  { %v8634_v63 = vpop.f32.mrb[156].mxu0 }
 0xd81   :  { %v13718_v9 = vadd.f32 %v13620_v59, %v8634_v63  ;;  %v5064_v20 = vpop.f32.mrb[157].mxu0  ;;  %5097 = vmax.xlane.f32.xlu1 %v13714_v55 }
 0xd82   :  { %v8635_v61 = vpop.f32.mrb[158].mxu0  ;;  %v13726_v36 = vadd.f32 %v13646_v24, %v5064_v20 }
 0xd83   :  { %15867 = vst [vmem:[#allocation15_spill] sm:$0xff] %v13718_v9  ;;  %v13722_v1 = vadd.f32 %v13629_v50, %v8635_v61  ;;  %v5067_v56 = vpop.f32.mrb[159].mxu0  ;;  %5107 = vmax.xlane.f32.xlu0 %v13718_v9 }
 0xd84   :  { %v13730_v53 = vadd.f32 %v13655_v33, %v5067_v56 }
 0xd85   :  { %15868 = vst [vmem:[#allocation16_spill] sm:$0xff] %v13722_v1  ;;  %5109 = vmax.xlane.f32.xlu1 %v13722_v1 }
 0xd86   :  { %15869 = vst [vmem:[#allocation17_spill] sm:$0xff] %v13730_v53 }
 0xd87   :  { %5103 = vmax.xlane.f32.xlu0 %v13726_v36 }
 0xd89   :  { %5105 = vmax.xlane.f32.xlu1 %v13730_v53 }
 0xda8   :  { %v8686_v63 = vpop.f32.mrb[160].mxu0 }
 0xda9   :  { %v13735_v55 = vadd.f32 %v13465_v49, %v8686_v63  ;;  %v5426_v61 = vpop.f32.mrb[161].mxu0 }
 0xdaa   :  { %v8687_v48 = vpop.f32.mrb[162].mxu0  ;;  %v13742_v1 = vadd.f32 %v13490_v26, %v5426_v61 }
 0xdab   :  { %v13738_v9 = vadd.f32 %v13473_v38, %v8687_v48  ;;  %v5429_v20 = vpop.f32.mrb[163].mxu0  ;;  %5493 = vmax.xlane.f32.xlu0 %v13735_v55 }
 0xdac   :  { %15871 = vst [vmem:[#allocation19_spill] sm:$0xff] %v13742_v1  ;;  %v13746_v56 = vadd.f32 %v13499_v14, %v5429_v20 }
 0xdad   :  { %15870 = vst [vmem:[#allocation18_spill] sm:$0xff] %v13738_v9  ;;  %5495 = vmax.xlane.f32.xlu1 %v13738_v9 }
 0xdae   :  { %15872 = vst [vmem:[#allocation20_spill] sm:$0xff] %v13746_v56 }
 0xdaf   :  { %5489 = vmax.xlane.f32.xlu0 %v13742_v1 }
 0xdb0   :  { %v8690_v49 = vpop.f32.mrb[164].mxu0 }
 0xdb1   :  { %v13750_v63 = vadd.f32 %v13516_v3, %v8690_v49  ;;  %v5442_v53 = vpop.f32.mrb[165].mxu0  ;;  %5491 = vmax.xlane.f32.xlu1 %v13746_v56 }
 0xdb2   :  { %v8691_v48 = vpop.f32.mrb[166].mxu0  ;;  %v13758_v61 = vadd.f32 %v13542_v15, %v5442_v53 }
 0xdb3   :  { %15873 = vst [vmem:[#allocation23_spill] sm:$0xff] %v13750_v63  ;;  %v13754_v38 = vadd.f32 %v13525_v54, %v8691_v48  ;;  %v5445_v26 = vpop.f32.mrb[167].mxu0  ;;  %5501 = vmax.xlane.f32.xlu0 %v13750_v63 }
 0xdb4   :  { %15875 = vst [vmem:[#allocation3_spill] sm:$0xff] %v13758_v61  ;;  %v13762_v14 = vadd.f32 %v13551_v30, %v5445_v26 }
 0xdb5   :  { %15874 = vst [vmem:[#allocation24_spill] sm:$0xff] %v13754_v38  ;;  %5503 = vmax.xlane.f32.xlu1 %v13754_v38 }
 0xdb6   :  { %15876 = vst [vmem:[#allocation2_spill] sm:$0xff] %v13762_v14 }
 0xdb7   :  { %5497 = vmax.xlane.f32.xlu0 %v13758_v61  ;;  %v4593_v3 = vpop.xlane.xlu0 %4592 }
 0xdb8   :  { %v4622_v20 = vsub.f32 %v13468_v51, %v4593_v3  ;;  %v13766_v49 = vpop.f32.mrb[168].mxu0 }
 0xdb9   :  { %v13768_v54 = vpop.f32.mrb[169].mxu0  ;;  %5499 = vmax.xlane.f32.xlu1 %v13762_v14  ;;  %v4595_v48 = vpop.xlane.xlu1 %4594 }
 0xdba   :  { %v4640_v63 = vmul.f32 1.442695, %v4622_v20  ;;  %v4623_v15 = vsub.f32 %v13476_v5, %v4595_v48  ;;  %v13772_v53 = vpop.f32.mrb[170].mxu0 }
 0xdbb   :  { %v13774_v38 = vpop.f32.mrb[171].mxu0  ;;  %v4296_v30 = vpop.xlane.xlu0 %4295 }
 0xdbc   :  { %9494 = vpow2.f32 %v4640_v63  ;;  %v4642_v26 = vmul.f32 1.442695, %v4623_v15  ;;  %v4325_v61 = vsub.f32 %v13480_v60, %v4296_v30 }
 0xdbd   :  { %v4298_v51 = vpop.xlane.xlu1 %4297 }
 0xdbe   :  { %9496 = vpow2.f32 %v4642_v26  ;;  %v4343_v3 = vmul.f32 1.442695, %v4325_v61  ;;  %v4326_v56 = vsub.f32 %v13484_v47, %v4298_v51 }
 0xdbf   :  { %v4589_v9 = vpop.xlane.xlu0 %4588 }
 0xdc0   :  { %9498 = vpow2.f32 %v4343_v3  ;;  %v4345_v14 = vmul.f32 1.442695, %v4326_v56  ;;  %v4620_v20 = vsub.f32 %v13493_v42, %v4589_v9  ;;  %v13779_v5 = vpop.f32.mrb[172].mxu0 }
 0xdc1   :  { %v13781_v48 = vpop.f32.mrb[173].mxu0  ;;  %v4591_v1 = vpop.xlane.xlu1 %4590 }
 0xdc2   :  { %9500 = vpow2.f32 %v4345_v14  ;;  %v4636_v63 = vmul.f32 1.442695, %v4620_v20  ;;  %v4621_v15 = vsub.f32 %v13502_v2, %v4591_v1  ;;  %v13784_v60 = vpop.f32.mrb[174].mxu0 }
 0xdc3   :  { %v13786_v30 = vpop.f32.mrb[175].mxu0  ;;  %v4292_v61 = vpop.xlane.xlu0 %4291 }
 0xdc4   :  { %9502 = vpow2.f32 %v4636_v63  ;;  %v4638_v47 = vmul.f32 1.442695, %v4621_v15  ;;  %v4323_v56 = vsub.f32 %v13506_v25, %v4292_v61 }
 0xdc5   :  { %v4294_v26 = vpop.xlane.xlu1 %4293 }
 0xdc6   :  { %v13789_v9 = vpop.eup %9494  ;;  %9504 = vpow2.f32 %v4638_v47  ;;  %v4339_v42 = vmul.f32 1.442695, %v4323_v56  ;;  %v4324_v51 = vsub.f32 %v13510_v29, %v4294_v26 }
 0xdc7   :  { %v4601_v14 = vpop.xlane.xlu0 %4600  ;;  %4672 = vadd.xlane.f32.xlu0 %v13789_v9 }
 0xdc8   :  { %v13793_v1 = vpop.eup %9496  ;;  %9506 = vpow2.f32 %v4339_v42  ;;  %v4341_v2 = vmul.f32 1.442695, %v4324_v51  ;;  %v4626_v3 = vsub.f32 %v13519_v57, %v4601_v14 }
 0xdc9   :  { %v4603_v20 = vpop.xlane.xlu1 %4602  ;;  %4674 = vadd.xlane.f32.xlu1 %v13793_v1 }
 0xdca   :  { %v13797_v25 = vpop.eup %9498  ;;  %9508 = vpow2.f32 %v4341_v2  ;;  %v4648_v63 = vmul.f32 1.442695, %v4626_v3  ;;  %v4627_v15 = vsub.f32 %v13528_v62, %v4603_v20 }
 0xdcb   :  { %15877 = vst [vmem:[#allocation81_spill] sm:$0xff] %v13797_v25  ;;  %v13800_v61 = vpop.xlane.xlu0 %4303  ;;  %4375 = vadd.xlane.f32.xlu0 %v13797_v25 }
 0xdcc   :  { %v13803_v29 = vpop.eup %9500  ;;  %9510 = vpow2.f32 %v4648_v63  ;;  %v4650_v47 = vmul.f32 1.442695, %v4627_v15 }
 0xdcd   :  { %15878 = vst [vmem:[#allocation83_spill] sm:$0xff] %v13803_v29  ;;  %v13805_v56 = vpop.xlane.xlu1 %4305  ;;  %4377 = vadd.xlane.f32.xlu1 %v13803_v29 }
 0xdce   :  { %v13808_v57 = vpop.eup %9502  ;;  %9512 = vpow2.f32 %v4650_v47 }
 0xdcf   :  { %v4597_v26 = vpop.xlane.xlu0 %4596  ;;  %4668 = vadd.xlane.f32.xlu0 %v13808_v57 }
 0xdd0   :  { %v13811_v42 = vpop.eup %9504  ;;  %v4624_v62 = vsub.f32 %v13545_v52, %v4597_v26 }
 0xdd1   :  { %v4599_v51 = vpop.xlane.xlu1 %4598  ;;  %4670 = vadd.xlane.f32.xlu1 %v13811_v42 }
 0xdd2   :  { %v13815_v14 = vpop.eup %9506  ;;  %v4644_v2 = vmul.f32 1.442695, %v4624_v62  ;;  %v4625_v3 = vsub.f32 %v13554_v37, %v4599_v51 }
 0xdd3   :  { %15879 = vst [vmem:[#allocation27_spill] sm:$0xff] %v13815_v14  ;;  %v4300_v20 = vpop.xlane.xlu0 %4299  ;;  %4371 = vadd.xlane.f32.xlu0 %v13815_v14 }
 0xdd4   :  { %v13819_v63 = vpop.eup %9508  ;;  %9514 = vpow2.f32 %v4644_v2  ;;  %v4646_v15 = vmul.f32 1.442695, %v4625_v3  ;;  %v4327_v47 = vsub.f32 %v13558_v12, %v4300_v20 }
 0xdd5   :  { %15880 = vst [vmem:[#allocation25_spill] sm:$0xff] %v13819_v63  ;;  %v4302_v25 = vpop.xlane.xlu1 %4301  ;;  %4373 = vadd.xlane.f32.xlu1 %v13819_v63 }
 0xdd6   :  { %v13823_v52 = vpop.eup %9510  ;;  %9516 = vpow2.f32 %v4646_v15  ;;  %v4347_v26 = vmul.f32 1.442695, %v4327_v47  ;;  %v4328_v62 = vsub.f32 %v13562_v34, %v4302_v25 }
 0xdd7   :  { %v4609_v29 = vpop.xlane.xlu0 %4608  ;;  %4680 = vadd.xlane.f32.xlu0 %v13823_v52 }
 0xdd8   :  { %v13827_v37 = vpop.eup %9512  ;;  %9518 = vpow2.f32 %v4347_v26  ;;  %v4349_v51 = vmul.f32 1.442695, %v4328_v62  ;;  %v4630_v2 = vsub.f32 %v13571_v0, %v4609_v29 }
 0xdd9   :  { %v4611_v3 = vpop.xlane.xlu1 %4610  ;;  %4682 = vadd.xlane.f32.xlu1 %v13827_v37 }
 0xdda   :  { %9520 = vpow2.f32 %v4349_v51  ;;  %v4656_v12 = vmul.f32 1.442695, %v4630_v2  ;;  %v4631_v20 = vsub.f32 %v13580_v6, %v4611_v3 }
 0xddb   :  { %v13832_v15 = vpop.xlane.xlu0 %4311 }
 0xddc   :  { %9522 = vpow2.f32 %v4656_v12  ;;  %v4658_v34 = vmul.f32 1.442695, %v4631_v20 }
 0xddd   :  { %v13834_v25 = vpop.xlane.xlu1 %4313 }
 0xdde   :  { %v13836_v47 = vpop.eup %9514  ;;  %9524 = vpow2.f32 %v4658_v34 }
 0xddf   :  { %v4605_v26 = vpop.xlane.xlu0 %4604  ;;  %4676 = vadd.xlane.f32.xlu0 %v13836_v47 }
 0xde0   :  { %v13839_v0 = vpop.eup %9516  ;;  %v4628_v29 = vsub.f32 %v13597_v41, %v4605_v26 }
 0xde1   :  { %v4607_v62 = vpop.xlane.xlu1 %4606  ;;  %4678 = vadd.xlane.f32.xlu1 %v13839_v0 }
 0xde2   :  { %v13843_v6 = vpop.eup %9518  ;;  %v4652_v51 = vmul.f32 1.442695, %v4628_v29  ;;  %v4629_v2 = vsub.f32 %v13606_v40, %v4607_v62 }
 0xde3   :  { %15881 = vst [vmem:[#allocation46_spill] sm:$0xff] %v13843_v6  ;;  %v4308_v3 = vpop.xlane.xlu0 %4307  ;;  %4379 = vadd.xlane.f32.xlu0 %v13843_v6 }
 0xde4   :  { %v13847_v12 = vpop.eup %9520  ;;  %9526 = vpow2.f32 %v4652_v51  ;;  %v4654_v20 = vmul.f32 1.442695, %v4629_v2 }
 0xde5   :  { %15882 = vst [vmem:[#allocation48_spill] sm:$0xff] %v13847_v12  ;;  %v4310_v34 = vpop.xlane.xlu1 %4309  ;;  %4381 = vadd.xlane.f32.xlu1 %v13847_v12 }
 0xde6   :  { %v13850_v14 = vpop.eup %9522  ;;  %9528 = vpow2.f32 %v4654_v20 }
 0xde7   :  { %15883 = vst [vmem:[#allocation66_spill] sm:$0xff] %v13850_v14  ;;  %v4617_v41 = vpop.xlane.xlu0 %4616  ;;  %4688 = vadd.xlane.f32.xlu0 %v13850_v14 }
 0xde8   :  { %v13853_v26 = vpop.eup %9524  ;;  %v4634_v40 = vsub.f32 %v13623_v13, %v4617_v41  ;;  %v4329_v13 = vsub.f32 %v13532_v18, %v13800_v61  ;;  %v4331_v61 = vsub.f32 %v13610_v17, %v4308_v3  ;;  %v4334_v17 = vsub.f32 %v13588_v43, %v13834_v25 }
 0xde9   :  { %15884 = vst [vmem:[#allocation67_spill] sm:$0xff] %v13853_v26  ;;  %v4619_v29 = vpop.xlane.xlu1 %4618  ;;  %4690 = vadd.xlane.f32.xlu1 %v13853_v26  ;;  %v13908_v25 = vadd.f32 %v13603_v58, %v13774_v38  ;;  %v13920_v58 = vadd.f32 %v13577_v19, %v13772_v53 }
 0xdea   :  { %v4664_v62 = vmul.f32 1.442695, %v4634_v40  ;;  %v4635_v51 = vsub.f32 %v13632_v7, %v4619_v29  ;;  %v4330_v7 = vsub.f32 %v13536_v44, %v13805_v56  ;;  %v4332_v56 = vsub.f32 %v13614_v11, %v4310_v34 }
 0xdeb   :  { %v13858_v2 = vpop.xlane.xlu0 %4319 }
 0xdec   :  { %9530 = vpow2.f32 %v4664_v62  ;;  %v4666_v6 = vmul.f32 1.442695, %v4635_v51  ;;  %v4353_v26 = vmul.f32 1.442695, %v4330_v7  ;;  %v4357_v11 = vmul.f32 1.442695, %v4332_v56 }
 0xded   :  { %v4322_v12 = vpop.xlane.xlu1 %4321 }
 0xdee   :  { %v13860_v63 = vpop.eup %9526  ;;  %9532 = vpow2.f32 %v4666_v6  ;;  %v4351_v6 = vmul.f32 1.442695, %v4329_v13  ;;  %v4338_v43 = vsub.f32 %v13640_v31, %v4322_v12 }
 0xdef   :  { %15885 = vst [vmem:[#allocation62_spill] sm:$0xff] %v13860_v63  ;;  %v4613_v20 = vpop.xlane.xlu0 %4612  ;;  %4684 = vadd.xlane.f32.xlu0 %v13860_v63 }
 0xdf0   :  { %v13863_v14 = vpop.eup %9528  ;;  %v4632_v41 = vsub.f32 %v13649_v4, %v4613_v20  ;;  %v4369_v31 = vmul.f32 1.442695, %v4338_v43 }
 0xdf1   :  { %v4615_v40 = vpop.xlane.xlu1 %4614  ;;  %4686 = vadd.xlane.f32.xlu1 %v13863_v14 }
 0xdf2   :  { %v4660_v29 = vmul.f32 1.442695, %v4632_v41  ;;  %v4633_v62 = vsub.f32 %v13658_v16, %v4615_v40  ;;  %v4333_v41 = vsub.f32 %v13584_v10, %v13832_v15  ;;  %v4355_v40 = vmul.f32 1.442695, %v4331_v61 }
 0xdf3   :  { %v4316_v4 = vpop.xlane.xlu0 %4315  ;;  %v13902_v10 = vadd.f32 %v13594_v35, %v13768_v54  ;;  %v13915_v54 = vadd.f32 %v13568_v8, %v13766_v49 }
 0xdf4   :  { %9534 = vpow2.f32 %v4660_v29  ;;  %v4662_v51 = vmul.f32 1.442695, %v4633_v62  ;;  %v4359_v34 = vmul.f32 1.442695, %v4333_v41  ;;  %v4335_v29 = vsub.f32 %v13662_v23, %v4316_v4 }
 0xdf5   :  { %v4318_v44 = vpop.xlane.xlu1 %4317  ;;  %v4361_v62 = vmul.f32 1.442695, %v4334_v17  ;;  %v4337_v23 = vsub.f32 %v13636_v28, %v13858_v2 }
 0xdf6   :  { %v13872_v63 = vpop.eup %9530  ;;  %9536 = vpow2.f32 %v4662_v51  ;;  %v4363_v35 = vmul.f32 1.442695, %v4335_v29  ;;  %v4336_v8 = vsub.f32 %v13666_v32, %v4318_v44 }
 0xdf7   :  { %4696 = vadd.xlane.f32.xlu0 %v13872_v63  ;;  %9538 = vpow2.f32 %v4351_v6  ;;  %v4367_v12 = vmul.f32 1.442695, %v4337_v23 }
 0xdf8   :  { %v13875_v18 = vpop.eup %9532  ;;  %9540 = vpow2.f32 %v4353_v26  ;;  %v13882_v20 = vpop.xlane.xlu0 %5083  ;;  %v4365_v2 = vmul.f32 1.442695, %v4336_v8 }
 0xdf9   :  { %4698 = vadd.xlane.f32.xlu1 %v13875_v18  ;;  %9542 = vpow2.f32 %v4355_v40  ;;  %v5113_v17 = vsub.f32 %v13671_v39, %v13882_v20  ;;  %v13959_v20 = vadd.f32 %v13646_v24, %v13781_v48  ;;  %v13969_v24 = vadd.f32 %v13620_v59, %v13779_v5  ;;  %v15887_v48 = vld [vmem:[#allocation10_spill] sm:$0xff] }
 0xdfa   :  { %v13889_v7 = vpop.xlane.xlu1 %5085  ;;  %9544 = vpow2.f32 %v4357_v11 }
 0xdfb   :  { %9546 = vpow2.f32 %v4359_v34  ;;  %v5114_v29 = vsub.f32 %v13674_v27, %v13889_v7 }
 0xdfc   :  { %v5080_v15 = vpop.xlane.xlu0 %5079  ;;  %9548 = vpow2.f32 %v4361_v62  ;;  %v5131_v62 = vmul.f32 1.442695, %v5113_v17 }
 0xdfd   :  { %9550 = vpow2.f32 %v4363_v35  ;;  %v5111_v56 = vsub.f32 %v13678_v21, %v5080_v15 }
 0xdfe   :  { %v13879_v16 = vpop.eup %9534  ;;  %v5082_v6 = vpop.xlane.xlu1 %5081  ;;  %9552 = vpow2.f32 %v4369_v31 }
 0xdff   :  { %4692 = vadd.xlane.f32.xlu0 %v13879_v16  ;;  %9554 = vpow2.f32 %v4367_v12  ;;  %v5112_v44 = vsub.f32 %v13682_v45, %v5082_v6  ;;  %v5127_v11 = vmul.f32 1.442695, %v5111_v56  ;;  %v13953_v45 = vadd.f32 %v13655_v33, %v13786_v30  ;;  %v15886_v30 = vld [vmem:[#allocation9_spill] sm:$0xff] }
 0xe00   :  { %v13885_v13 = vpop.eup %9536  ;;  %v5092_v38 = vpop.xlane.xlu0 %5091  ;;  %9556 = vpow2.f32 %v4365_v2  ;;  %v5133_v6 = vmul.f32 1.442695, %v5114_v29  ;;  %v15891_v29 = vld [vmem:[#allocation12_spill] sm:$0xff] }
 0xe01   :  { %4694 = vadd.xlane.f32.xlu1 %v13885_v13  ;;  %v13892_v26 = vpop.eup %9538  ;;  %v5129_v15 = vmul.f32 1.442695, %v5112_v44  ;;  %9558 = vpow2.f32 %v5127_v11  ;;  %v5117_v23 = vsub.f32 %v15886_v30, %v5092_v38  ;;  %v15888_v38 = vld [vmem:[#allocation13_spill] sm:$0xff] }
 0xe02   :  { %v13897_v3 = vpop.eup %9540  ;;  %v5094_v51 = vpop.xlane.xlu1 %5093  ;;  %v15892_v30 = vld [vmem:[#allocation17_spill] sm:$0xff] }
 0xe03   :  { %4383 = vadd.xlane.f32.xlu0 %v13892_v26  ;;  %v13924_v28 = vpop.eup %9542  ;;  %9560 = vpow2.f32 %v5129_v15  ;;  %v5118_v35 = vsub.f32 %v15887_v48, %v5094_v51  ;;  %v5139_v8 = vmul.f32 1.442695, %v5117_v23  ;;  %v15889_v51 = vld [vmem:[#allocation14_spill] sm:$0xff] }
 0xe04   :  { %v13928_v49 = vpop.eup %9544  ;;  %v5088_v19 = vpop.xlane.xlu0 %5087  ;;  %9562 = vpow2.f32 %v5131_v62 }
 0xe05   :  { %4385 = vadd.xlane.f32.xlu1 %v13897_v3  ;;  %v13931_v53 = vpop.eup %9546  ;;  %v5115_v39 = vsub.f32 %v13694_v46, %v5088_v19  ;;  %9564 = vpow2.f32 %v5133_v6  ;;  %v5141_v5 = vmul.f32 1.442695, %v5118_v35 }
 0xe06   :  { %v5090_v4 = vpop.xlane.xlu1 %5089  ;;  %v13934_v61 = vpop.eup %9548 }
 0xe07   :  { %5505 = vmax.xlane.f32.xlu0 %v13902_v10  ;;  %v13938_v32 = vpop.eup %9550  ;;  %v5116_v27 = vsub.f32 %v13698_v22, %v5090_v4  ;;  %v5135_v46 = vmul.f32 1.442695, %v5115_v39  ;;  %v13975_v22 = vadd.f32 %v13629_v50, %v13784_v60  ;;  %v15890_v60 = vld [vmem:[#allocation11_spill] sm:$0xff] }
 0xe08   :  { %v5100_v41 = vpop.xlane.xlu0 %5099  ;;  %v13942_v40 = vpop.eup %9552 }
 0xe09   :  { %5507 = vmax.xlane.f32.xlu1 %v13908_v25  ;;  %v13947_v21 = vpop.eup %9554  ;;  %v5137_v31 = vmul.f32 1.442695, %v5116_v27  ;;  %9566 = vpow2.f32 %v5135_v46  ;;  %v5121_v56 = vsub.f32 %v15890_v60, %v5100_v41  ;;  %v15893_v46 = vld [vmem:[#allocation15_spill] sm:$0xff] }
 0xe0a   :  { %v5102_v34 = vpop.xlane.xlu1 %5101  ;;  %v13964_v33 = vpop.eup %9556 }
 0xe0b   :  { %5509 = vmax.xlane.f32.xlu0 %v13915_v54  ;;  %v13980_v59 = vpop.eup %9558  ;;  %9568 = vpow2.f32 %v5137_v31  ;;  %v5122_v15 = vsub.f32 %v15891_v29, %v5102_v34  ;;  %v5147_v6 = vmul.f32 1.442695, %v5121_v56 }
 0xe0c   :  { %v5096_v43 = vpop.xlane.xlu0 %5095  ;;  %9570 = vpow2.f32 %v5139_v8 }
 0xe0d   :  { %5511 = vmax.xlane.f32.xlu1 %v13920_v58  ;;  %v5119_v19 = vsub.f32 %v15888_v38, %v5096_v43  ;;  %v13984_v50 = vpop.eup %9560  ;;  %9572 = vpow2.f32 %v5141_v5 }
 0xe0e   :  { %v5098_v7 = vpop.xlane.xlu1 %5097  ;;  %v13988_v11 = vpop.eup %9562 }
 0xe0f   :  { %4387 = vadd.xlane.f32.xlu0 %v13924_v28  ;;  %v5120_v4 = vsub.f32 %v15889_v51, %v5098_v7  ;;  %v5143_v44 = vmul.f32 1.442695, %v5119_v19  ;;  %v13992_v43 = vpop.eup %9564  ;;  %v5149_v7 = vmul.f32 1.442695, %v5122_v15  ;;  %v15895_v15 = vld [vmem:[#allocation19_spill] sm:$0xff] }
 0xe10   :  { %v5108_v12 = vpop.xlane.xlu0 %5107 }
 0xe11   :  { %4389 = vadd.xlane.f32.xlu1 %v13928_v49  ;;  %v5145_v62 = vmul.f32 1.442695, %v5120_v4  ;;  %9574 = vpow2.f32 %v5143_v44  ;;  %v5125_v48 = vsub.f32 %v15893_v46, %v5108_v12 }
 0xe12   :  { %v5110_v2 = vpop.xlane.xlu1 %5109 }
 0xe13   :  { %4391 = vadd.xlane.f32.xlu0 %v13931_v53  ;;  %v13996_v41 = vpop.eup %9566  ;;  %9576 = vpow2.f32 %v5145_v62  ;;  %v5155_v5 = vmul.f32 1.442695, %v5125_v48 }
 0xe14   :  { %v5104_v17 = vpop.xlane.xlu0 %5103  ;;  %9578 = vpow2.f32 %v5147_v6 }
 0xe15   :  { %4393 = vadd.xlane.f32.xlu1 %v13934_v61  ;;  %v5123_v27 = vsub.f32 %v13726_v36, %v5104_v17  ;;  %v14000_v34 = vpop.eup %9568  ;;  %9580 = vpow2.f32 %v5149_v7  ;;  %v15894_v36 = vld [vmem:[#allocation16_spill] sm:$0xff] }
 0xe16   :  { %v5106_v39 = vpop.xlane.xlu1 %5105  ;;  %v14004_v31 = vpop.eup %9570  ;;  %v5126_v8 = vsub.f32 %v15894_v36, %v5110_v2 }
 0xe17   :  { %4395 = vadd.xlane.f32.xlu0 %v13938_v32  ;;  %v5124_v23 = vsub.f32 %v15892_v30, %v5106_v39  ;;  %v5151_v35 = vmul.f32 1.442695, %v5123_v27  ;;  %v14008_v19 = vpop.eup %9572  ;;  %v15896_v27 = vld [vmem:[#allocation18_spill] sm:$0xff] }
 0xe18   :  { %v5157_v12 = vmul.f32 1.442695, %v5126_v8 }
 0xe19   :  { %4401 = vadd.xlane.f32.xlu1 %v13942_v40  ;;  %v5153_v38 = vmul.f32 1.442695, %v5124_v23  ;;  %9582 = vpow2.f32 %v5151_v35  ;;  %v15897_v23 = vld [vmem:[#allocation20_spill] sm:$0xff] }
 0xe1b   :  { %4399 = vadd.xlane.f32.xlu0 %v13947_v21  ;;  %v14011_v51 = vpop.eup %9574  ;;  %9584 = vpow2.f32 %v5153_v38 }
 0xe1c   :  { %9586 = vpow2.f32 %v5155_v5 }
 0xe1d   :  { %5515 = vmax.xlane.f32.xlu1 %v13953_v45  ;;  %v14014_v4 = vpop.eup %9576  ;;  %9588 = vpow2.f32 %v5157_v12 }
 0xe1e   :  { %v14017_v2 = vpop.eup %9578 }
 0xe1f   :  { %5513 = vmax.xlane.f32.xlu0 %v13959_v20  ;;  %v14020_v44 = vpop.eup %9580 }
 0xe21   :  { %4397 = vadd.xlane.f32.xlu1 %v13964_v33 }
 0xe23   :  { %5517 = vmax.xlane.f32.xlu0 %v13969_v24  ;;  %v14025_v39 = vpop.eup %9582 }
 0xe25   :  { %5519 = vmax.xlane.f32.xlu1 %v13975_v22  ;;  %v14030_v48 = vpop.eup %9584 }
 0xe26   :  { %15898 = vst [vmem:[#allocation75_spill] sm:$0xff] %v14030_v48  ;;  %v14033_v8 = vpop.eup %9586 }
 0xe27   :  { %5159 = vadd.xlane.f32.xlu0 %v13980_v59  ;;  %15899 = vst [vmem:[#allocation69_spill] sm:$0xff] %v14033_v8  ;;  %v14036_v12 = vpop.eup %9588 }
 0xe29   :  { %5161 = vadd.xlane.f32.xlu1 %v13984_v50 }
 0xe2b   :  { %5163 = vadd.xlane.f32.xlu0 %v13988_v11 }
 0xe2d   :  { %5165 = vadd.xlane.f32.xlu1 %v13992_v43 }
 0xe2f   :  { %5167 = vadd.xlane.f32.xlu0 %v13996_v41 }
 0xe31   :  { %5169 = vadd.xlane.f32.xlu1 %v14000_v34 }
 0xe33   :  { %5171 = vadd.xlane.f32.xlu0 %v14004_v31 }
 0xe35   :  { %5173 = vadd.xlane.f32.xlu1 %v14008_v19 }
 0xe37   :  { %5175 = vadd.xlane.f32.xlu0 %v14011_v51 }
 0xe38   :  { %v5494_v60 = vpop.xlane.xlu0 %5493 }
 0xe39   :  { %5177 = vadd.xlane.f32.xlu1 %v14014_v4  ;;  %v5523_v29 = vsub.f32 %v13735_v55, %v5494_v60 }
 0xe3a   :  { %v5496_v56 = vpop.xlane.xlu1 %5495 }
 0xe3b   :  { %5179 = vadd.xlane.f32.xlu0 %v14017_v2  ;;  %v5524_v7 = vsub.f32 %v15896_v27, %v5496_v56  ;;  %v5541_v36 = vmul.f32 1.442695, %v5523_v29  ;;  %v15900_v56 = vld [vmem:[#allocation23_spill] sm:$0xff] }
 0xe3c   :  { %v5490_v17 = vpop.xlane.xlu0 %5489 }
 0xe3d   :  { %v5521_v62 = vsub.f32 %v15895_v15, %v5490_v17  ;;  %5181 = vadd.xlane.f32.xlu1 %v14020_v44  ;;  %v5543_v5 = vmul.f32 1.442695, %v5524_v7  ;;  %v15901_v15 = vld [vmem:[#allocation3_spill] sm:$0xff] }
 0xe3e   :  { %v5492_v6 = vpop.xlane.xlu1 %5491 }
 0xe3f   :  { %v5537_v30 = vmul.f32 1.442695, %v5521_v62  ;;  %v5522_v46 = vsub.f32 %v15897_v23, %v5492_v6  ;;  %5183 = vadd.xlane.f32.xlu0 %v14025_v39  ;;  %v15902_v6 = vld [vmem:[#allocation24_spill] sm:$0xff]  ;;  %v15903_v23 = vld [vmem:[#allocation2_spill] sm:$0xff] }
 0xe40   :  { %v5502_v35 = vpop.xlane.xlu0 %5501 }
 0xe41   :  { %9590 = vpow2.f32 %v5537_v30  ;;  %v5539_v55 = vmul.f32 1.442695, %v5522_v46  ;;  %5185 = vadd.xlane.f32.xlu1 %v14030_v48  ;;  %v5527_v17 = vsub.f32 %v15900_v56, %v5502_v35 }
 0xe42   :  { %v5504_v38 = vpop.xlane.xlu1 %5503 }
 0xe43   :  { %9592 = vpow2.f32 %v5539_v55  ;;  %5187 = vadd.xlane.f32.xlu0 %v14033_v8  ;;  %v5528_v27 = vsub.f32 %v15902_v6, %v5504_v38  ;;  %v5549_v46 = vmul.f32 1.442695, %v5527_v17 }
 0xe44   :  { %v5498_v60 = vpop.xlane.xlu0 %5497  ;;  %9594 = vpow2.f32 %v5541_v36 }
 0xe45   :  { %v5525_v62 = vsub.f32 %v15901_v15, %v5498_v60  ;;  %5189 = vadd.xlane.f32.xlu1 %v14036_v12  ;;  %9596 = vpow2.f32 %v5543_v5  ;;  %v5551_v48 = vmul.f32 1.442695, %v5528_v27 }
 0xe46   :  { %v5500_v29 = vpop.xlane.xlu1 %5499 }
 0xe47   :  { %v5545_v30 = vmul.f32 1.442695, %v5525_v62  ;;  %v5526_v7 = vsub.f32 %v15903_v23, %v5500_v29 }
 0xe49   :  { %9598 = vpow2.f32 %v5545_v30  ;;  %v5547_v55 = vmul.f32 1.442695, %v5526_v7 }
 0xe4b   :  { %v14043_v8 = vpop.eup %9590  ;;  %9600 = vpow2.f32 %v5547_v55 }
 0xe4c   :  { %15904 = vst [vmem:[#allocation84_spill] sm:$0xff] %v14043_v8  ;;  %5569 = vadd.xlane.f32.xlu0 %v14043_v8  ;;  %9602 = vpow2.f32 %v5549_v46  ;;  %v15912_v8 = vld [vmem:[#allocation49_spill] sm:$0xff] }
 0xe4d   :  { %v14046_v35 = vpop.eup %9592  ;;  %9604 = vpow2.f32 %v5551_v48 }
 0xe4e   :  { %15905 = vst [vmem:[#allocation82_spill] sm:$0xff] %v14046_v35  ;;  %5571 = vadd.xlane.f32.xlu1 %v14046_v35  ;;  %v14049_v36 = vpop.eup %9594 }
 0xe4f   :  { %15906 = vst [vmem:[#allocation72_spill] sm:$0xff] %v14049_v36  ;;  %v14052_v38 = vpop.eup %9596 }
 0xe50   :  { %5573 = vadd.xlane.f32.xlu0 %v14049_v36  ;;  %15907 = vst [vmem:[#allocation90_spill] sm:$0xff] %v14052_v38 }
 0xe52   :  { %5575 = vadd.xlane.f32.xlu1 %v14052_v38 }
 0xe53   :  { %v14055_v5 = vpop.eup %9598 }
 0xe54   :  { %15908 = vst [vmem:[#allocation33_spill] sm:$0xff] %v14055_v5  ;;  %5577 = vadd.xlane.f32.xlu0 %v14055_v5  ;;  %v4673_v60 = vpop.xlane.xlu0 %4672 }
 0xe55   :  { %v14058_v56 = vpop.eup %9600 }
 0xe56   :  { %15909 = vst [vmem:[#allocation50_spill] sm:$0xff] %v14058_v56  ;;  %5579 = vadd.xlane.f32.xlu1 %v14058_v56  ;;  %v4675_v17 = vpop.xlane.xlu1 %4674  ;;  %v14061_v15 = vpop.eup %9602 }
 0xe57   :  { %15910 = vst [vmem:[#allocation71_spill] sm:$0xff] %v14061_v15  ;;  %v14066_v62 = vpop.eup %9604  ;;  %9606 = vrcp.f32 %v4675_v17 }
 0xe58   :  { %5581 = vadd.xlane.f32.xlu0 %v14061_v15  ;;  %v14064_v48 = vpop.xlane.xlu0 %4375  ;;  %15911 = vst [vmem:[#allocation55_spill] sm:$0xff] %v14066_v62 }
 0xe5a   :  { %5583 = vadd.xlane.f32.xlu1 %v14066_v62  ;;  %v14069_v29 = vpop.xlane.xlu1 %4377 }
 0xe5c   :  { %v4669_v6 = vpop.xlane.xlu0 %4668 }
 0xe5d   :  { %9608 = vrcp.f32 %v4669_v6 }
 0xe5e   :  { %9610 = vrcp.f32 %v4673_v60  ;;  %v4671_v27 = vpop.xlane.xlu1 %4670 }
 0xe5f   :  { %9612 = vrcp.f32 %v4671_v27 }
 0xe60   :  { %v14071_v30 = vpop.xlane.xlu0 %4371 }
 0xe61   :  { %v9607_v7 = vpop.eup %9606 }
 0xe62   :  { %v14073_v23 = vpop.xlane.xlu1 %4373  ;;  %v4719_v5 = vmul.f32 %v9607_v7, %v13793_v1  ;;  %v15913_v1 = vld [vmem:[#allocation40_spill] sm:$0xff] }
 0xe64   :  { %v4681_v15 = vpop.xlane.xlu0 %4680 }
 0xe66   :  { %v4683_v62 = vpop.xlane.xlu1 %4682 }
 0xe67   :  { %v9609_v46 = vpop.eup %9608  ;;  %9614 = vrcp.f32 %v4683_v62 }
 0xe68   :  { %v9611_v55 = vpop.eup %9610  ;;  %v4716_v38 = vmul.f32 %v9609_v46, %v13808_v57 }
 0xe69   :  { %v9613_v56 = vpop.eup %9612  ;;  %v4718_v60 = vmul.f32 %v9611_v55, %v13789_v9  ;;  %v15914_v9 = vld [vmem:[#allocation43_spill] sm:$0xff] }
 0xe6a   :  { %v4717_v17 = vmul.f32 %v9613_v56, %v13811_v42 }
 0xe6b   :  { %v4757_v36 = vpack.c.bf16 %v4719_v5, %v4718_v60 }
 0xe6c   :  { %v4677_v6 = vpop.xlane.xlu0 %4676  ;;  %v4756_v27 = vpack.c.bf16 %v4717_v17, %v4716_v38 }
 0xe6d   :  { %9616 = vrcp.f32 %v4677_v6  ;;  %v15916_v6 = vld [vmem:[#allocation87_spill] sm:$0xff] }
 0xe6e   :  { %9618 = vrcp.f32 %v4681_v15  ;;  %v4679_v35 = vpop.xlane.xlu1 %4678  ;;  %8556 = vmatprep.mubr.bf16.mxu1 %v4756_v27 }
 0xe6f   :  { %9620 = vrcp.f32 %v4679_v35  ;;  %8557 = vmatmul.mubr.bf16.vlgmr.msra.gmra.mrb[144].mxu1 %v4757_v36  ;;  %v15915_v36 = vld [vmem:[#allocation68_spill] sm:$0xff] }
 0xe70   :  { %8573 = vmatpush3.bf16.msra.mxu1 %v15912_v8  ;;  %v14081_v7 = vpop.xlane.xlu0 %4379 }
 0xe71   :  { %8574 = vmatprep.subr.bf16.mxu1 %v15913_v1  ;;  %v9615_v42 = vpop.eup %9614 }
 0xe72   :  { %v4382_v57 = vpop.xlane.xlu1 %4381  ;;  %v4723_v8 = vmul.f32 %v9615_v42, %v13827_v37  ;;  %v15917_v37 = vld [vmem:[#allocation88_spill] sm:$0xff] }
 0xe74   :  { %8575 = vmatpush3.bf16.msra.mxu1 %v15913_v1  ;;  %v4689_v5 = vpop.xlane.xlu0 %4688 }
 0xe75   :  { %8576 = vmatprep.subr.bf16.mxu1 %v15914_v9 }
 0xe76   :  { %v4691_v35 = vpop.xlane.xlu1 %4690 }
 0xe77   :  { %v9617_v38 = vpop.eup %9616  ;;  %9622 = vrcp.f32 %v4691_v35 }
 0xe78   :  { %v9619_v56 = vpop.eup %9618  ;;  %8577 = vmatpush3.bf16.msra.mxu1 %v15914_v9  ;;  %v4720_v62 = vmul.f32 %v9617_v38, %v13836_v47 }
 0xe79   :  { %v9621_v15 = vpop.eup %9620  ;;  %8578 = vmatprep.subr.bf16.mxu1 %v15915_v36  ;;  %v4722_v55 = vmul.f32 %v9619_v56, %v13823_v52  ;;  %v15918_v52 = vld [vmem:[#allocation36_spill] sm:$0xff] }
 0xe7a   :  { %v4721_v46 = vmul.f32 %v9621_v15, %v13839_v0  ;;  %v15920_v15 = vld [vmem:[#allocation67_spill] sm:$0xff] }
 0xe7b   :  { %v4759_v27 = vpack.c.bf16 %v4723_v8, %v4722_v55 }
 0xe7c   :  { %8579 = vmatpush3.bf16.msra.mxu1 %v15915_v36  ;;  %v4685_v17 = vpop.xlane.xlu0 %4684  ;;  %v4758_v60 = vpack.c.bf16 %v4721_v46, %v4720_v62  ;;  %v15921_v36 = vld [vmem:[#allocation62_spill] sm:$0xff] }
 0xe7d   :  { %8580 = vmatprep.subr.bf16.mxu1 %v15916_v6  ;;  %9624 = vrcp.f32 %v4685_v17  ;;  %v15922_v46 = vld [vmem:[#allocation66_spill] sm:$0xff] }
 0xe7e   :  { %9626 = vrcp.f32 %v4689_v5  ;;  %v4687_v1 = vpop.xlane.xlu1 %4686  ;;  %8560 = vmatprep.mubr.bf16.mxu1 %v4758_v60  ;;  %v15919_v5 = vld [vmem:[#allocation4_spill] sm:$0xff] }
 0xe7f   :  { %9628 = vrcp.f32 %v4687_v1  ;;  %8561 = vmatmul.mubr.bf16.gmra.mrb[148].mxu1 %v4759_v27 }
 0xe80   :  { %8581 = vmatpush3.bf16.msra.mxu1 %v15916_v6  ;;  %9630 = vrcp.f32 %v14071_v30  ;;  %v15923_v6 = vld [vmem:[#allocation57_spill] sm:$0xff] }
 0xe81   :  { %8582 = vmatprep.subr.bf16.mxu1 %v15917_v37  ;;  %v9623_v47 = vpop.eup %9622  ;;  %9632 = vrcp.f32 %v14073_v23 }
 0xe82   :  { %v4727_v35 = vmul.f32 %v9623_v47, %v15920_v15 }
 0xe84   :  { %8583 = vmatpush3.bf16.msra.mxu1 %v15917_v37  ;;  %v4697_v42 = vpop.xlane.xlu0 %4696 }
 0xe85   :  { %8584 = vmatprep.subr.bf16.mxu1 %v15918_v52 }
 0xe86   :  { %v4699_v56 = vpop.xlane.xlu1 %4698 }
 0xe87   :  { %v9625_v0 = vpop.eup %9624  ;;  %9634 = vrcp.f32 %v4699_v56 }
 0xe88   :  { %v9627_v9 = vpop.eup %9626  ;;  %8585 = vmatpush3.bf16.msra.mxu1 %v15918_v52  ;;  %v4724_v8 = vmul.f32 %v9625_v0, %v15921_v36 }
 0xe89   :  { %v9629_v38 = vpop.eup %9628  ;;  %8586 = vmatprep.subr.bf16.mxu1 %v15919_v5  ;;  %v4726_v55 = vmul.f32 %v9627_v9, %v15922_v46 }
 0xe8a   :  { %v4725_v62 = vmul.f32 %v9629_v38, %v13863_v14  ;;  %v9631_v37 = vpop.eup %9630 }
 0xe8b   :  { %v4761_v27 = vpack.c.bf16 %v4727_v35, %v4726_v55  ;;  %v9633_v52 = vpop.eup %9632 }
 0xe8c   :  { %8587 = vmatpush3.bf16.msra.mxu1 %v15919_v5  ;;  %v4693_v17 = vpop.xlane.xlu0 %4692  ;;  %v4760_v60 = vpack.c.bf16 %v4725_v62, %v4724_v8  ;;  %v15924_v62 = vld [vmem:[#allocation25_spill] sm:$0xff] }
 0xe8d   :  { %8636 = vmatprep.subr.bf16.mxu1 %v15923_v6  ;;  %9636 = vrcp.f32 %v4693_v17 }
 0xe8e   :  { %9638 = vrcp.f32 %v4697_v42  ;;  %v4695_v1 = vpop.xlane.xlu1 %4694  ;;  %8564 = vmatprep.mubr.bf16.mxu1 %v4760_v60 }
 0xe8f   :  { %9640 = vrcp.f32 %v4695_v1  ;;  %8565 = vmatmul.mubr.bf16.gmra.mrb[152].mxu1 %v4761_v27 }
 0xe90   :  { %v4384_v30 = vpop.xlane.xlu0 %4383  ;;  %9642 = vrcp.f32 %v14069_v29 }
 0xe91   :  { %9644 = vrcp.f32 %v4382_v57  ;;  %v9635_v0 = vpop.eup %9634 }
 0xe92   :  { %v4386_v14 = vpop.xlane.xlu1 %4385  ;;  %9646 = vrcp.f32 %v14064_v48  ;;  %v4731_v57 = vmul.f32 %v9635_v0, %v13875_v18 }
 0xe93   :  { %9648 = vrcp.f32 %v14081_v7  ;;  %v4420_v7 = vmul.f32 %v9633_v52, %v15924_v62 }
 0xe94   :  { %v5506_v23 = vpop.xlane.xlu0 %5505 }
 0xe95   :  { %v5529_v47 = vsub.f32 %v13902_v10, %v5506_v23 }
 0xe96   :  { %v5508_v9 = vpop.xlane.xlu1 %5507 }
 0xe97   :  { %v9637_v38 = vpop.eup %9636  ;;  %v5553_v42 = vmul.f32 1.442695, %v5529_v47  ;;  %v5530_v56 = vsub.f32 %v13908_v25, %v5508_v9 }
 0xe98   :  { %v9639_v5 = vpop.eup %9638  ;;  %v5510_v15 = vpop.xlane.xlu0 %5509  ;;  %v4728_v48 = vmul.f32 %v9637_v38, %v13879_v16 }
 0xe99   :  { %v9641_v35 = vpop.eup %9640  ;;  %9650 = vpow2.f32 %v5553_v42  ;;  %v5555_v29 = vmul.f32 1.442695, %v5530_v56  ;;  %v5531_v36 = vsub.f32 %v13915_v54, %v5510_v15  ;;  %v4730_v55 = vmul.f32 %v9639_v5, %v13872_v63  ;;  %v15925_v54 = vld [vmem:[#allocation27_spill] sm:$0xff]  ;;  %v15928_v42 = vld [vmem:[#allocation81_spill] sm:$0xff] }
 0xe9a   :  { %9652 = vrcp.f32 %v4384_v30  ;;  %v5512_v10 = vpop.xlane.xlu1 %5511  ;;  %v4729_v8 = vmul.f32 %v9641_v35, %v13885_v13  ;;  %v4419_v27 = vmul.f32 %v9631_v37, %v15925_v54  ;;  %v9643_v30 = vpop.eup %9642  ;;  %v15927_v37 = vld [vmem:[#allocation48_spill] sm:$0xff]  ;;  %v15929_v35 = vld [vmem:[#allocation46_spill] sm:$0xff] }
 0xe9b   :  { %9654 = vpow2.f32 %v5555_v29  ;;  %v5557_v46 = vmul.f32 1.442695, %v5531_v36  ;;  %v5532_v25 = vsub.f32 %v13920_v58, %v5512_v10  ;;  %v4763_v1 = vpack.c.bf16 %v4731_v57, %v4730_v55  ;;  %v9645_v23 = vpop.eup %9644  ;;  %v15930_v55 = vld [vmem:[#allocation61_spill] sm:$0xff] }
 0xe9c   :  { %9656 = vrcp.f32 %v4386_v14  ;;  %v4388_v17 = vpop.xlane.xlu0 %4387  ;;  %v4762_v60 = vpack.c.bf16 %v4729_v8, %v4728_v48  ;;  %v4459_v13 = vpack.c.bf16 %v4420_v7, %v4419_v27  ;;  %v9647_v52 = vpop.eup %9646  ;;  %v15926_v14 = vld [vmem:[#allocation83_spill] sm:$0xff]  ;;  %v4424_v9 = vmul.f32 %v9645_v23, %v15927_v37 }
 0xe9d   :  { %9658 = vpow2.f32 %v5557_v46  ;;  %v5559_v18 = vmul.f32 1.442695, %v5532_v25  ;;  %v9649_v58 = vpop.eup %9648  ;;  %v4422_v47 = vmul.f32 %v9643_v30, %v15926_v14  ;;  %v4421_v56 = vmul.f32 %v9647_v52, %v15928_v42 }
 0xe9e   :  { %9660 = vrcp.f32 %v4388_v17  ;;  %v4390_v16 = vpop.xlane.xlu1 %4389  ;;  %8568 = vmatprep.mubr.bf16.mxu1 %v4762_v60  ;;  %v4423_v29 = vmul.f32 %v9649_v58, %v15929_v35  ;;  %v15932_v58 = vld [vmem:[#allocation45_spill] sm:$0xff] }
 0xe9f   :  { %9662 = vpow2.f32 %v5559_v18  ;;  %8569 = vmatmul.mubr.bf16.gmra.mrb[156].mxu1 %v4763_v1  ;;  %v4460_v57 = vpack.c.bf16 %v4422_v47, %v4421_v56 }
 0xea0   :  { %9664 = vrcp.f32 %v4390_v16  ;;  %8588 = vmatprep.mubr.bf16.mxu1 %v4459_v13  ;;  %v4392_v63 = vpop.xlane.xlu0 %4391  ;;  %v4461_v8 = vpack.c.bf16 %v4424_v9, %v4423_v29  ;;  %v15931_v13 = vld [vmem:[#allocation29_spill] sm:$0xff] }
 0xea2   :  { %v4394_v0 = vpop.xlane.xlu1 %4393 }
 0xea3   :  { %v14122_v38 = vpop.eup %9650  ;;  %9666 = vrcp.f32 %v4394_v0 }
 0xea4   :  { %v9653_v5 = vpop.eup %9652  ;;  %5585 = vadd.xlane.f32.xlu0 %v14122_v38  ;;  %v4396_v15 = vpop.xlane.xlu0 %4395  ;;  %9668 = vrcp.f32 %v4392_v63 }
 0xea5   :  { %v14127_v36 = vpop.eup %9654  ;;  %v4425_v18 = vmul.f32 %v9653_v5, %v13892_v26  ;;  %9670 = vrcp.f32 %v4396_v15  ;;  %v15933_v5 = vld [vmem:[#allocation64_spill] sm:$0xff] }
 0xea6   :  { %v9657_v10 = vpop.eup %9656  ;;  %5587 = vadd.xlane.f32.xlu1 %v14127_v36  ;;  %v4402_v48 = vpop.xlane.xlu1 %4401 }
 0xea7   :  { %v14130_v62 = vpop.eup %9658  ;;  %8589 = vmatmul.mubr.bf16.vlgmr.msra.gmra.mrb[144].mxu1 %v4460_v57  ;;  %v4426_v17 = vmul.f32 %v9657_v10, %v13897_v3  ;;  %v15934_v57 = vld [vmem:[#allocation89_spill] sm:$0xff] }
 0xea8   :  { %v9661_v7 = vpop.eup %9660  ;;  %8637 = vmatpush3.bf16.msra.mxu1 %v15923_v6  ;;  %8592 = vmatprep.mubr.bf16.mxu1 %v4461_v8  ;;  %v4400_v46 = vpop.xlane.xlu0 %4399 }
 0xea9   :  { %v14133_v25 = vpop.eup %9662  ;;  %8638 = vmatprep.subr.bf16.mxu1 %v15930_v55  ;;  %5589 = vadd.xlane.f32.xlu0 %v14130_v62  ;;  %v4427_v30 = vmul.f32 %v9661_v7, %v13924_v28  ;;  %9672 = vrcp.f32 %v4400_v46  ;;  %v4462_v23 = vpack.c.bf16 %v4426_v17, %v4425_v18 }
 0xeaa   :  { %v9665_v60 = vpop.eup %9664  ;;  %5591 = vadd.xlane.f32.xlu1 %v14133_v25  ;;  %v5516_v54 = vpop.xlane.xlu1 %5515  ;;  %9674 = vrcp.f32 %v4402_v48 }
 0xeab   :  { %v5534_v27 = vsub.f32 %v13953_v45, %v5516_v54  ;;  %v4428_v6 = vmul.f32 %v9665_v60, %v13928_v49  ;;  %v15935_v54 = vld [vmem:[#allocation5_spill] sm:$0xff] }
 0xeac   :  { %8639 = vmatpush3.bf16.msra.mxu1 %v15930_v55  ;;  %v5514_v1 = vpop.xlane.xlu0 %5513 }
 0xead   :  { %v5563_v16 = vmul.f32 1.442695, %v5534_v27  ;;  %8640 = vmatprep.subr.bf16.mxu1 %v15931_v13  ;;  %v5533_v3 = vsub.f32 %v13959_v20, %v5514_v1  ;;  %v9667_v52 = vpop.eup %9666  ;;  %v4463_v63 = vpack.c.bf16 %v4428_v6, %v4427_v30  ;;  %v15936_v30 = vld [vmem:[#allocation6_spill] sm:$0xff] }
 0xeae   :  { %v4398_v45 = vpop.xlane.xlu1 %4397  ;;  %v9669_v49 = vpop.eup %9668  ;;  %v4430_v20 = vmul.f32 %v9667_v52, %v13934_v61 }
 0xeaf   :  { %9676 = vpow2.f32 %v5563_v16  ;;  %v5561_v26 = vmul.f32 1.442695, %v5533_v3  ;;  %8593 = vmatmul.mubr.bf16.gmra.mrb[148].mxu1 %v4462_v23  ;;  %v4429_v9 = vmul.f32 %v9669_v49, %v13931_v53  ;;  %v9671_v35 = vpop.eup %9670 }
 0xeb0   :  { %9678 = vrcp.f32 %v4398_v45  ;;  %8641 = vmatpush3.bf16.msra.mxu1 %v15931_v13  ;;  %8596 = vmatprep.mubr.bf16.mxu1 %v4463_v63  ;;  %v5518_v28 = vpop.xlane.xlu0 %5517  ;;  %v4431_v46 = vmul.f32 %v9671_v35, %v13938_v32 }
 0xeb1   :  { %9680 = vpow2.f32 %v5561_v26  ;;  %8642 = vmatprep.subr.bf16.mxu1 %v15932_v58  ;;  %v5535_v14 = vsub.f32 %v13969_v24, %v5518_v28  ;;  %v4464_v15 = vpack.c.bf16 %v4430_v20, %v4429_v9  ;;  %v15937_v28 = vld [vmem:[#allocation38_spill] sm:$0xff] }
 0xeb2   :  { %v5520_v47 = vpop.xlane.xlu1 %5519 }
 0xeb3   :  { %v5565_v0 = vmul.f32 1.442695, %v5535_v14  ;;  %v5536_v37 = vsub.f32 %v13975_v22, %v5520_v47  ;;  %v9673_v24 = vpop.eup %9672 }
 0xeb4   :  { %8643 = vmatpush3.bf16.msra.mxu1 %v15932_v58  ;;  %v5160_v42 = vpop.xlane.xlu0 %5159  ;;  %v9675_v61 = vpop.eup %9674  ;;  %v4433_v8 = vmul.f32 %v9673_v24, %v13947_v21 }
 0xeb5   :  { %9682 = vpow2.f32 %v5565_v0  ;;  %v5567_v56 = vmul.f32 1.442695, %v5536_v37  ;;  %8644 = vmatprep.subr.bf16.mxu1 %v15933_v5  ;;  %v4434_v60 = vmul.f32 %v9675_v61, %v13942_v40 }
 0xeb6   :  { %9684 = vrcp.f32 %v5160_v42  ;;  %v5162_v29 = vpop.xlane.xlu1 %5161 }
 0xeb7   :  { %9686 = vpow2.f32 %v5567_v56  ;;  %8597 = vmatmul.mubr.bf16.gmra.mrb[152].mxu1 %v4464_v15  ;;  %v4466_v21 = vpack.c.bf16 %v4434_v60, %v4433_v8  ;;  %v15941_v60 = vld [vmem:[#allocation59_spill] sm:$0xff] }
 0xeb8   :  { %9688 = vrcp.f32 %v5162_v29  ;;  %8645 = vmatpush3.bf16.msra.mxu1 %v15933_v5  ;;  %v5164_v22 = vpop.xlane.xlu0 %5163 }
 0xeb9   :  { %v14155_v53 = vpop.eup %9676  ;;  %8646 = vmatprep.subr.bf16.mxu1 %v15934_v57  ;;  %9690 = vrcp.f32 %v5164_v22 }
 0xeba   :  { %v9679_v10 = vpop.eup %9678  ;;  %5595 = vadd.xlane.f32.xlu1 %v14155_v53  ;;  %v5166_v48 = vpop.xlane.xlu1 %5165 }
 0xebb   :  { %v14160_v7 = vpop.eup %9680  ;;  %9692 = vrcp.f32 %v5166_v48  ;;  %v4432_v55 = vmul.f32 %v9679_v10, %v13964_v33 }
 0xebc   :  { %8647 = vmatpush3.bf16.msra.mxu1 %v15934_v57  ;;  %5593 = vadd.xlane.f32.xlu0 %v14160_v7  ;;  %v5168_v17 = vpop.xlane.xlu0 %5167 }
 0xebd   :  { %8648 = vmatprep.subr.bf16.mxu1 %v15935_v54  ;;  %9694 = vrcp.f32 %v5168_v17  ;;  %v4465_v27 = vpack.c.bf16 %v4432_v55, %v4431_v46 }
 0xebe   :  { %v5170_v18 = vpop.xlane.xlu1 %5169 }
 0xebf   :  { %v14168_v6 = vpop.eup %9682  ;;  %9696 = vrcp.f32 %v5170_v18  ;;  %8600 = vmatprep.mubr.bf16.mxu1 %v4465_v27  ;;  %v15942_v18 = vld [vmem:[#allocation75_spill] sm:$0xff] }
 0xec0   :  { %v9685_v32 = vpop.eup %9684  ;;  %8601 = vmatmul.mubr.bf16.gmra.mrb[156].mxu1 %v4466_v21  ;;  %5597 = vadd.xlane.f32.xlu0 %v14168_v6  ;;  %v5172_v33 = vpop.xlane.xlu0 %5171 }
 0xec1   :  { %v14171_v1 = vpop.eup %9686  ;;  %8649 = vmatpush3.bf16.msra.mxu1 %v15935_v54  ;;  %9698 = vrcp.f32 %v5172_v33  ;;  %v5207_v3 = vmul.f32 %v9685_v32, %v13980_v59 }
 0xec2   :  { %v9689_v40 = vpop.eup %9688  ;;  %8650 = vmatprep.subr.bf16.mxu1 %v15936_v30  ;;  %5599 = vadd.xlane.f32.xlu1 %v14171_v1  ;;  %v5174_v16 = vpop.xlane.xlu1 %5173 }
 0xec3   :  { %v9691_v13 = vpop.eup %9690  ;;  %9700 = vrcp.f32 %v5174_v16  ;;  %v5208_v23 = vmul.f32 %v9689_v40, %v13984_v50  ;;  %v15944_v16 = vld [vmem:[#allocation69_spill] sm:$0xff] }
 0xec4   :  { %v5176_v52 = vpop.xlane.xlu0 %5175  ;;  %v5209_v26 = vmul.f32 %v9691_v13, %v13988_v11  ;;  %v15938_v11 = vld [vmem:[#allocation32_spill] sm:$0xff] }
 0xec5   :  { %v9693_v45 = vpop.eup %9692  ;;  %8651 = vmatpush3.bf16.msra.mxu1 %v15936_v30  ;;  %9702 = vrcp.f32 %v5176_v52  ;;  %v5247_v63 = vpack.c.bf16 %v5208_v23, %v5207_v3 }
 0xec6   :  { %v5210_v49 = vmul.f32 %v9693_v45, %v13992_v43  ;;  %8700 = vmatprep.subr.bf16.mxu1 %v15937_v28  ;;  %v5178_v58 = vpop.xlane.xlu1 %5177 }
 0xec7   :  { %v9695_v14 = vpop.eup %9694  ;;  %9704 = vrcp.f32 %v5178_v58  ;;  %8652 = vmatprep.mubr.bf16.mxu1 %v5247_v63 }
 0xec8   :  { %v5180_v20 = vpop.xlane.xlu0 %5179  ;;  %v5248_v59 = vpack.c.bf16 %v5210_v49, %v5209_v26  ;;  %v5211_v0 = vmul.f32 %v9695_v14, %v13996_v41  ;;  %v15939_v41 = vld [vmem:[#allocation79_spill] sm:$0xff]  ;;  %v15946_v49 = vld [vmem:[#allocation8_spill] sm:$0xff] }
 0xec9   :  { %v9697_v47 = vpop.eup %9696  ;;  %9706 = vrcp.f32 %v5180_v20  ;;  %v15947_v20 = vld [vmem:[#allocation84_spill] sm:$0xff] }
 0xeca   :  { %v5182_v50 = vpop.xlane.xlu1 %5181  ;;  %8653 = vmatmul.mubr.bf16.vlgmr.msra.gmra.mrb[144].mxu1 %v5248_v59  ;;  %v5212_v37 = vmul.f32 %v9697_v47, %v14000_v34  ;;  %v15948_v47 = vld [vmem:[#allocation82_spill] sm:$0xff] }
 0xecb   :  { %v9699_v9 = vpop.eup %9698  ;;  %9708 = vrcp.f32 %v5182_v50  ;;  %8701 = vmatpush3.bf16.msra.mxu1 %v15937_v28 }
 0xecc   :  { %8702 = vmatprep.subr.bf16.mxu1 %v15938_v11  ;;  %v5184_v43 = vpop.xlane.xlu0 %5183  ;;  %v5249_v42 = vpack.c.bf16 %v5212_v37, %v5211_v0  ;;  %v5213_v15 = vmul.f32 %v9699_v9, %v14004_v31  ;;  %v15940_v31 = vld [vmem:[#allocation35_spill] sm:$0xff] }
 0xecd   :  { %v9701_v56 = vpop.eup %9700  ;;  %9710 = vrcp.f32 %v5184_v43 }
 0xece   :  { %v5186_v5 = vpop.xlane.xlu1 %5185  ;;  %8656 = vmatprep.mubr.bf16.mxu1 %v5249_v42  ;;  %v5214_v35 = vmul.f32 %v9701_v56, %v14008_v19  ;;  %v15950_v42 = vld [vmem:[#allocation90_spill] sm:$0xff] }
 0xecf   :  { %v9703_v29 = vpop.eup %9702  ;;  %9712 = vrcp.f32 %v5186_v5  ;;  %8703 = vmatpush3.bf16.msra.mxu1 %v15938_v11  ;;  %v15949_v11 = vld [vmem:[#allocation72_spill] sm:$0xff] }
 0xed0   :  { %8704 = vmatprep.subr.bf16.mxu1 %v15939_v41  ;;  %v5188_v34 = vpop.xlane.xlu0 %5187  ;;  %v5250_v24 = vpack.c.bf16 %v5214_v35, %v5213_v15  ;;  %v5215_v57 = vmul.f32 %v9703_v29, %v14011_v51  ;;  %v9023_v35 = vld [vmem:[%s15174_s6 + $0x48] sm:$0xff]  }
 0xed1   :  { %v9705_v61 = vpop.eup %9704  ;;  %9714 = vrcp.f32 %v5188_v34 }
 0xed2   :  { %v5190_v22 = vpop.xlane.xlu1 %5189  ;;  %8657 = vmatmul.mubr.bf16.gmra.mrb[148].mxu1 %v5250_v24  ;;  %v5216_v10 = vmul.f32 %v9705_v61, %v14014_v4  ;;  %v15952_v24 = vld [vmem:[#allocation50_spill] sm:$0xff] }
 0xed3   :  { %v9707_v48 = vpop.eup %9706  ;;  %9716 = vrcp.f32 %v5190_v22  ;;  %8705 = vmatpush3.bf16.msra.mxu1 %v15939_v41  ;;  %v15951_v41 = vld [vmem:[#allocation33_spill] sm:$0xff] }
 0xed4   :  { %8706 = vmatprep.subr.bf16.mxu1 %v15940_v31  ;;  %v5251_v19 = vpack.c.bf16 %v5216_v10, %v5215_v57  ;;  %v5217_v46 = vmul.f32 %v9707_v48, %v14017_v2  ;;  %v15943_v2 = vld [vmem:[#allocation77_spill] sm:$0xff]  ;;  %v9024_v10 = vld [vmem:[%s15174_s6 + $0x50] sm:$0xff]  }
 0xed5   :  { %v9709_v8 = vpop.eup %9708 }
 0xed6   :  { %8660 = vmatprep.mubr.bf16.mxu1 %v5251_v19  ;;  %v5218_v55 = vmul.f32 %v9709_v8, %v14020_v44  ;;  %v15954_v8 = vld [vmem:[#allocation55_spill] sm:$0xff] }
 0xed7   :  { %v9711_v17 = vpop.eup %9710  ;;  %8707 = vmatpush3.bf16.msra.mxu1 %v15940_v31  ;;  %v15953_v31 = vld [vmem:[#allocation71_spill] sm:$0xff] }
 0xed8   :  { %8708 = vmatprep.subr.bf16.mxu1 %v15941_v60  ;;  %v5252_v51 = vpack.c.bf16 %v5218_v55, %v5217_v46  ;;  %v5219_v27 = vmul.f32 %v9711_v17, %v14025_v39  ;;  %v15945_v39 = vld [vmem:[#allocation7_spill] sm:$0xff]  ;;  %v9025_v17 = vld [vmem:[%s15174_s6 + $0x58] sm:$0xff]  }
 0xed9   :  { %v9713_v4 = vpop.eup %9712  ;;  %v5570_v54 = vpop.xlane.xlu0 %5569 }
 0xeda   :  { %9718 = vrcp.f32 %v5570_v54  ;;  %8661 = vmatmul.mubr.bf16.gmra.mrb[152].mxu1 %v5252_v51  ;;  %v5220_v21 = vmul.f32 %v9713_v4, %v15942_v18  ;;  %v9027_v51 = vld [vmem:[%s15174_s6 + $0x68] sm:$0xff]   ;;  %v9028_v4 = vld [vmem:[%s15174_s6 + $0x70] sm:$0xff]  }
 0xedb   :  { %v9715_v32 = vpop.eup %9714  ;;  %v5572_v33 = vpop.xlane.xlu1 %5571  ;;  %8709 = vmatpush3.bf16.msra.mxu1 %v15941_v60  ;;  %v9026_v60 = vld [vmem:[%s15174_s6 + $0x60] sm:$0xff]  }
 0xedc   :  { %9720 = vrcp.f32 %v5572_v33  ;;  %8710 = vmatprep.subr.bf16.mxu1 %v15943_v2  ;;  %v5253_v44 = vpack.c.bf16 %v5220_v21, %v5219_v27  ;;  %v5221_v13 = vmul.f32 %v9715_v32, %v15944_v16 }
 0xedd   :  { %v9717_v40 = vpop.eup %9716  ;;  %v5574_v30 = vpop.xlane.xlu0 %5573 }
 0xede   :  { %9722 = vrcp.f32 %v5574_v30  ;;  %8664 = vmatprep.mubr.bf16.mxu1 %v5253_v44  ;;  %v5222_v3 = vmul.f32 %v9717_v40, %v14036_v12  ;;  %v9022_v12 = vld [vmem:[%s15174_s6 + $0x40] sm:$0xff]  }
 0xedf   :  { %v5576_v23 = vpop.xlane.xlu1 %5575  ;;  %8711 = vmatpush3.bf16.msra.mxu1 %v15943_v2 }
 0xee0   :  { %9724 = vrcp.f32 %v5576_v23  ;;  %8712 = vmatprep.subr.bf16.mxu1 %v15945_v39  ;;  %v5254_v52 = vpack.c.bf16 %v5222_v3, %v5221_v13 }
 0xee1   :  { %v5578_v45 = vpop.xlane.xlu0 %5577 }
 0xee2   :  { %9726 = vrcp.f32 %v5578_v45  ;;  %8665 = vmatmul.mubr.bf16.gmra.mrb[156].mxu1 %v5254_v52 }
 0xee3   :  { %v5580_v63 = vpop.xlane.xlu1 %5579  ;;  %8713 = vmatpush3.bf16.msra.mxu1 %v15945_v39  ;;  %v9029_v39 = vld [vmem:[%s15174_s6 + $0x78] sm:$0xff]  }
 0xee4   :  { %v9719_v26 = vpop.eup %9718  ;;  %9728 = vrcp.f32 %v5580_v63  ;;  %8714 = vmatprep.subr.bf16.mxu1 %v15946_v49 }
 0xee5   :  { %v5582_v28 = vpop.xlane.xlu0 %5581  ;;  %v5617_v59 = vmul.f32 %v9719_v26, %v15947_v20 }
 0xee6   :  { %v9721_v58 = vpop.eup %9720  ;;  %9730 = vrcp.f32 %v5582_v28 }
 0xee7   :  { %v5584_v14 = vpop.xlane.xlu1 %5583  ;;  %8715 = vmatpush3.bf16.msra.mxu1 %v15946_v49  ;;  %v5618_v50 = vmul.f32 %v9721_v58, %v15948_v47 }
 0xee8   :  { %v9723_v0 = vpop.eup %9722  ;;  %9732 = vrcp.f32 %v5584_v14  ;;  %8732 = vmatprep.subr.bf16.mxu1 %v9022_v12 }
 0xee9   :  { %v5657_v37 = vpack.c.bf16 %v5618_v50, %v5617_v59  ;;  %v5619_v43 = vmul.f32 %v9723_v0, %v15949_v11 }
 0xeea   :  { %v9725_v9 = vpop.eup %9724 }
 0xeeb   :  { %v5620_v56 = vmul.f32 %v9725_v9, %v15950_v42  ;;  %8716 = vmatprep.mubr.bf16.mxu1 %v5657_v37 }
 0xeec   :  { %v9727_v5 = vpop.eup %9726 }
 0xeed   :  { %v5658_v15 = vpack.c.bf16 %v5620_v56, %v5619_v43  ;;  %v5621_v34 = vmul.f32 %v9727_v5, %v15951_v41 }
 0xeee   :  { %v9729_v29 = vpop.eup %9728 }
 0xeef   :  { %8717 = vmatmul.mubr.bf16.vlgmr.msra.gmra.mrb[144].mxu1 %v5658_v15  ;;  %v5622_v61 = vmul.f32 %v9729_v29, %v15952_v24 }
 0xef0   :  { %v9731_v22 = vpop.eup %9730  ;;  %8733 = vmatpush3.bf16.msra.mxu1 %v9022_v12 }
 0xef1   :  { %v5659_v57 = vpack.c.bf16 %v5622_v61, %v5621_v34  ;;  %8734 = vmatprep.subr.bf16.mxu1 %v9023_v35  ;;  %v5623_v19 = vmul.f32 %v9731_v22, %v15953_v31 }
 0xef2   :  { %v9733_v48 = vpop.eup %9732 }
 0xef3   :  { %8720 = vmatprep.mubr.bf16.mxu1 %v5659_v57  ;;  %v5624_v46 = vmul.f32 %v9733_v48, %v15954_v8 }
 0xef4   :  { %8735 = vmatpush3.bf16.msra.mxu1 %v9023_v35 }
 0xef5   :  { %v5660_v55 = vpack.c.bf16 %v5624_v46, %v5623_v19  ;;  %8736 = vmatprep.subr.bf16.mxu1 %v9024_v10 }
 0xef7   :  { %8721 = vmatmul.mubr.bf16.gmra.mrb[148].mxu1 %v5660_v55 }
 0xef8   :  { %8737 = vmatpush3.bf16.msra.mxu1 %v9024_v10  ;;  %v7551_v10 = vld [vmem:[%s15175_s7 + $0x1] ss:$0 sm:$0xff] }
 0xef9   :  { %8738 = vmatprep.subr.bf16.mxu1 %v9025_v17 }
 0xefc   :  { %8739 = vmatpush3.bf16.msra.mxu1 %v9025_v17  ;;  %v15955_v17 = vld [vmem:[#allocation47_spill] sm:$0xff] }
 0xefd   :  { %8740 = vmatprep.subr.bf16.mxu1 %v9026_v60 }
 0xf00   :  { %8741 = vmatpush3.bf16.msra.mxu1 %v9026_v60 }
 0xf01   :  { %8742 = vmatprep.subr.bf16.mxu1 %v9027_v51 }
 0xf04   :  { %8743 = vmatpush3.bf16.msra.mxu1 %v9027_v51 }
 0xf05   :  { %8744 = vmatprep.subr.bf16.mxu1 %v9028_v4 }
 0xf08   :  { %8745 = vmatpush3.bf16.msra.mxu1 %v9028_v4 }
 0xf09   :  { %8746 = vmatprep.subr.bf16.mxu1 %v9029_v39 }
 0xf0c   :  { %8747 = vmatpush3.bf16.msra.mxu1 %v9029_v39 }
 0xf31   :  { %v5586_v54 = vpop.xlane.xlu0 %5585 }
 0xf32   :  { %9734 = vrcp.f32 %v5586_v54  ;;  %v15956_v54 = vld [vmem:[#allocation44_spill] sm:$0xff] }
 0xf33   :  { %v5588_v27 = vpop.xlane.xlu1 %5587 }
 0xf34   :  { %9736 = vrcp.f32 %v5588_v27 }
 0xf36   :  { %v5590_v18 = vpop.xlane.xlu0 %5589 }
 0xf37   :  { %9738 = vrcp.f32 %v5590_v18  ;;  %v5592_v21 = vpop.xlane.xlu1 %5591  ;;  %v15957_v18 = vld [vmem:[#allocation54_spill] sm:$0xff] }
 0xf38   :  { %9740 = vrcp.f32 %v5592_v21 }
 0xf3c   :  { %v9735_v32 = vpop.eup %9734 }
 0xf3d   :  { %v5625_v2 = vmul.f32 %v9735_v32, %v14122_v38 }
 0xf3e   :  { %v9737_v33 = vpop.eup %9736 }
 0xf3f   :  { %v5626_v44 = vmul.f32 %v9737_v33, %v14127_v36 }
 0xf41   :  { %v9739_v40 = vpop.eup %9738  ;;  %v5661_v30 = vpack.c.bf16 %v5626_v44, %v5625_v2  ;;  %v15958_v2 = vld [vmem:[#allocation52_spill] sm:$0xff] }
 0xf42   :  { %v9741_v16 = vpop.eup %9740  ;;  %v5627_v13 = vmul.f32 %v9739_v40, %v14130_v62 }
 0xf43   :  { %8724 = vmatprep.mubr.bf16.mxu1 %v5661_v30  ;;  %v5628_v3 = vmul.f32 %v9741_v16, %v14133_v25 }
 0xf45   :  { %v5662_v23 = vpack.c.bf16 %v5628_v3, %v5627_v13  ;;  %v15959_v3 = vld [vmem:[#allocation65_spill] sm:$0xff] }
 0xf47   :  { %v5596_v52 = vpop.xlane.xlu1 %5595  ;;  %8725 = vmatmul.mubr.bf16.gmra.mrb[152].mxu1 %v5662_v23 }
 0xf48   :  { %9742 = vrcp.f32 %v5596_v52 }
 0xf49   :  { %v5594_v38 = vpop.xlane.xlu0 %5593 }
 0xf4a   :  { %9744 = vrcp.f32 %v5594_v38  ;;  %v15960_v38 = vld [vmem:[#allocation60_spill] sm:$0xff] }
 0xf4d   :  { %v5598_v36 = vpop.xlane.xlu0 %5597 }
 0xf4e   :  { %9746 = vrcp.f32 %v5598_v36 }
 0xf4f   :  { %v5600_v45 = vpop.xlane.xlu1 %5599 }
 0xf50   :  { %9748 = vrcp.f32 %v5600_v45  ;;  %v15961_v45 = vld [vmem:[#allocation78_spill] sm:$0xff] }
 0xf52   :  { %v9743_v63 = vpop.eup %9742 }
 0xf53   :  { %v5630_v26 = vmul.f32 %v9743_v63, %v14155_v53 }
 0xf54   :  { %v9745_v62 = vpop.eup %9744 }
 0xf55   :  { %v5629_v25 = vmul.f32 %v9745_v62, %v14160_v7  ;;  %v15962_v62 = vld [vmem:[#allocation73_spill] sm:$0xff] }
 0xf57   :  { %v5663_v49 = vpack.c.bf16 %v5630_v26, %v5629_v25 }
 0xf58   :  { %v9747_v12 = vpop.eup %9746 }
 0xf59   :  { %8728 = vmatprep.mubr.bf16.mxu1 %v5663_v49  ;;  %v5631_v58 = vmul.f32 %v9747_v12, %v14168_v6 }
 0xf5a   :  { %v9749_v28 = vpop.eup %9748 }
 0xf5b   :  { %v5632_v14 = vmul.f32 %v9749_v28, %v14171_v1 }
 0xf5d   :  { %v5664_v20 = vpack.c.bf16 %v5632_v14, %v5631_v58 }
 0xf5f   :  { %8729 = vmatmul.mubr.bf16.gmra.mrb[156].mxu1 %v5664_v20  ;;  %v15963_v20 = vld [vmem:[#allocation34_spill] sm:$0xff] }
 0xfc2   :  { %v8718_v59 = vpop.f32.mrb[144].mxu1 }
 0xfc3   :  { %v5699_v47 = vpop.f32.mrb[145].mxu1 }
 0xfc4   :  { %v8719_v50 = vpop.f32.mrb[146].mxu1 }
 0xfc5   :  { %v5779_v0 = vpack.c.bf16 %v8719_v50, %v8718_v59  ;;  %v5702_v37 = vpop.f32.mrb[147].mxu1 }
 0xfc6   :  { %v5778_v9 = vpack.c.bf16 %v5702_v37, %v5699_v47 }
 0xfc8   :  { %8748 = vmatprep.mubr.bf16.mxu1 %v5778_v9  ;;  %v15965_v9 = vld [vmem:[#allocation58_spill] sm:$0xff] }
 0xfc9   :  { %8749 = vmatmul.mubr.bf16.vlgmr.msra.gmra.mrb[160].mxu1 %v5779_v0  ;;  %v15964_v0 = vld [vmem:[#allocation37_spill] sm:$0xff] }
 0xfca   :  { %v8722_v7 = vpop.f32.mrb[148].mxu1 }
 0xfcb   :  { %v5715_v53 = vpop.f32.mrb[149].mxu1 }
 0xfcc   :  { %v8723_v11 = vpop.f32.mrb[150].mxu1 }
 0xfcd   :  { %v5781_v43 = vpack.c.bf16 %v8723_v11, %v8722_v7  ;;  %v5718_v42 = vpop.f32.mrb[151].mxu1 }
 0xfce   :  { %v5780_v56 = vpack.c.bf16 %v5718_v42, %v5715_v53  ;;  %v15966_v53 = vld [vmem:[#allocation70_spill] sm:$0xff] }
 0xfd0   :  { %8752 = vmatprep.mubr.bf16.mxu1 %v5780_v56 }
 0xfd1   :  { %8753 = vmatmul.mubr.bf16.gmra.mrb[164].mxu1 %v5781_v43 }
0x101a   :  { %v8726_v6 = vpop.f32.mrb[152].mxu1 }
0x101b   :  { %v5731_v1 = vpop.f32.mrb[153].mxu1 }
0x101c   :  { %v8727_v5 = vpop.f32.mrb[154].mxu1 }
0x101d   :  { %v5783_v15 = vpack.c.bf16 %v8727_v5, %v8726_v6  ;;  %v5734_v35 = vpop.f32.mrb[155].mxu1 }
0x101e   :  { %v5782_v29 = vpack.c.bf16 %v5734_v35, %v5731_v1 }
0x1020   :  { %8756 = vmatprep.mubr.bf16.mxu1 %v5782_v29 }
0x1021   :  { %8757 = vmatmul.mubr.bf16.gmra.mrb[168].mxu1 %v5783_v15  ;;  %v15967_v15 = vld [vmem:[#allocation42_spill] sm:$0xff] }
0x1032   :  { %v8730_v41 = vpop.f32.mrb[156].mxu1 }
0x1033   :  { %v5747_v34 = vpop.f32.mrb[157].mxu1 }
0x1034   :  { %v8731_v24 = vpop.f32.mrb[158].mxu1 }
0x1035   :  { %v5785_v61 = vpack.c.bf16 %v8731_v24, %v8730_v41  ;;  %v5750_v22 = vpop.f32.mrb[159].mxu1 }
0x1036   :  { %v5784_v57 = vpack.c.bf16 %v5750_v22, %v5747_v34  ;;  %v15968_v34 = vld [vmem:[#allocation63_spill] sm:$0xff] }
0x1038   :  { %8760 = vmatprep.mubr.bf16.mxu1 %v5784_v57  ;;  %v15970_v57 = vld [vmem:[#allocation76_spill] sm:$0xff] }
0x1039   :  { %8761 = vmatmul.mubr.bf16.gmra.mrb[172].mxu1 %v5785_v61  ;;  %v15969_v61 = vld [vmem:[#allocation41_spill] sm:$0xff] }
0x109c   :  { %v8750_v48 = vpop.f32.mrb[160].mxu1 }
0x109d   :  { %v5893_v31 = vpop.f32.mrb[161].mxu1  ;;  %v5902_v55 = vadd.f32 %v8750_v48, %v7551_v10 }
0x109e   :  { %v5894_v19 = vadd.f32 %v7551_v10, %v5893_v31  ;;  %v8751_v8 = vpop.f32.mrb[162].mxu1  ;;  %v9032_v31 = vld [vmem:[%s15176_s10 + $0x84] ss:$8 sps:$4 sm:$0xff]  }
0x109f   :  { %v5896_v46 = vpop.f32.mrb[163].mxu1  ;;  %v5905_v4 = vadd.f32 %v8751_v8, %v7551_v10  ;;  %v14260_v21 = vadd.f32 %v5902_v55, %v15957_v18  ;;  %6314 = vmatprep.subr.bf16.mxu0 %v9032_v31 }
0x10a0   :  { %v14253_v60 = vadd.f32 %v5894_v19, %v15955_v17  ;;  %v5897_v51 = vadd.f32 %v7551_v10, %v5896_v46  ;;  %v9035_v19 = vld [vmem:[%s15176_s10 + $0x94] ss:$8 sps:$4 sm:$0xff]   ;;  %v9033_v46 = vld [vmem:[%s15176_s10 + $0x90] ss:$8 sps:$4 sm:$0xff]  }
0x10a1   :  { %v14264_v44 = vadd.f32 %v5905_v4, %v15958_v2 }
0x10a2   :  { %v14256_v27 = vadd.f32 %v5897_v51, %v15956_v54  ;;  %5976 = vadd.xlane.f32.xlu0 %v14253_v60 }
0x10a4   :  { %v8754_v32 = vpop.f32.mrb[164].mxu1  ;;  %5978 = vadd.xlane.f32.xlu1 %v14256_v27 }
0x10a5   :  { %v5909_v33 = vpop.f32.mrb[165].mxu1  ;;  %v5918_v13 = vadd.f32 %v8754_v32, %v7551_v10 }
0x10a6   :  { %v5910_v40 = vadd.f32 %v7551_v10, %v5909_v33  ;;  %v8755_v30 = vpop.f32.mrb[166].mxu1  ;;  %5980 = vadd.xlane.f32.xlu0 %v14260_v21 }
0x10a7   :  { %v5912_v16 = vpop.f32.mrb[167].mxu1  ;;  %v5921_v52 = vadd.f32 %v8755_v30, %v7551_v10  ;;  %v14276_v63 = vadd.f32 %v5918_v13, %v15961_v45 }
0x10a8   :  { %v14268_v23 = vadd.f32 %v5910_v40, %v15959_v3  ;;  %v5913_v39 = vadd.f32 %v7551_v10, %v5912_v16  ;;  %5982 = vadd.xlane.f32.xlu1 %v14264_v44 }
0x10a9   :  { %v14280_v25 = vadd.f32 %v5921_v52, %v15962_v62 }
0x10aa   :  { %v14272_v36 = vadd.f32 %v5913_v39, %v15960_v38  ;;  %5984 = vadd.xlane.f32.xlu0 %v14268_v23 }
0x10ac   :  { %5986 = vadd.xlane.f32.xlu1 %v14272_v36 }
0x10ae   :  { %5988 = vadd.xlane.f32.xlu0 %v14276_v63 }
0x10b0   :  { %5990 = vadd.xlane.f32.xlu1 %v14280_v25 }
0x10f4   :  { %v8758_v26 = vpop.f32.mrb[168].mxu1 }
0x10f5   :  { %v5925_v49 = vpop.f32.mrb[169].mxu1  ;;  %v5934_v14 = vadd.f32 %v8758_v26, %v7551_v10 }
0x10f6   :  { %v5926_v12 = vadd.f32 %v7551_v10, %v5925_v49  ;;  %v8759_v28 = vpop.f32.mrb[170].mxu1 }
0x10f7   :  { %v5928_v58 = vpop.f32.mrb[171].mxu1  ;;  %v5937_v50 = vadd.f32 %v8759_v28, %v7551_v10  ;;  %v14292_v7 = vadd.f32 %v5934_v14, %v15965_v9  ;;  %v9047_v9 = vld [vmem:[%s15176_s10 + $0xd4] ss:$8 sps:$4 sm:$0xff]  }
0x10f8   :  { %v14285_v59 = vadd.f32 %v5926_v12, %v15963_v20  ;;  %v5929_v47 = vadd.f32 %v7551_v10, %v5928_v58  ;;  %v9038_v20 = vld [vmem:[%s15176_s10 + $0xa4] ss:$8 sps:$4 sm:$0xff]  }
0x10f9   :  { %v14296_v11 = vadd.f32 %v5937_v50, %v15966_v53  ;;  %v9044_v50 = vld [vmem:[%s15176_s10 + $0xc4] ss:$8 sps:$4 sm:$0xff]   ;;  %v9045_v53 = vld [vmem:[%s15176_s10 + $0xd0] ss:$8 sps:$4 sm:$0xff]  }
0x10fa   :  { %v14288_v37 = vadd.f32 %v5929_v47, %v15964_v0  ;;  %5992 = vadd.xlane.f32.xlu0 %v14285_v59  ;;  %v9039_v47 = vld [vmem:[%s15176_s10 + $0xb0] ss:$8 sps:$4 sm:$0xff]   ;;  %v9042_v0 = vld [vmem:[%s15176_s10 + $0xc0] ss:$8 sps:$4 sm:$0xff]  }
0x10fc   :  { %5994 = vadd.xlane.f32.xlu1 %v14288_v37 }
0x10fe   :  { %5996 = vadd.xlane.f32.xlu0 %v14292_v7 }
0x1100   :  { %5998 = vadd.xlane.f32.xlu1 %v14296_v11 }
0x110c   :  { %v8762_v43 = vpop.f32.mrb[172].mxu1 }
0x110d   :  { %v5941_v42 = vpop.f32.mrb[173].mxu1  ;;  %v5950_v5 = vadd.f32 %v8762_v43, %v7551_v10  ;;  %v9050_v43 = vld [vmem:[%s15176_s10 + $0xe4] ss:$8 sps:$4 sm:$0xff]  }
0x110e   :  { %v5942_v56 = vadd.f32 %v7551_v10, %v5941_v42  ;;  %v8763_v6 = vpop.f32.mrb[174].mxu1  ;;  %v9048_v42 = vld [vmem:[%s15176_s10 + $0xe0] ss:$8 sps:$4 sm:$0xff]  }
0x110f   :  { %v5944_v1 = vpop.f32.mrb[175].mxu1  ;;  %v5953_v41 = vadd.f32 %v8763_v6, %v7551_v10  ;;  %v14308_v22 = vadd.f32 %v5950_v5, %v15969_v61  ;;  %v9051_v6 = vld [vmem:[%s15176_s10 + $0xf0] ss:$8 sps:$4 sm:$0xff]  }
0x1110   :  { %v14301_v35 = vadd.f32 %v5942_v56, %v15967_v15  ;;  %v5945_v29 = vadd.f32 %v7551_v10, %v5944_v1  ;;  %v9030_v10 = vld [vmem:[%s15176_s10 + $0x80] ss:$8 sps:$4 sm:$0xff]   ;;  %v9053_v56 = vld [vmem:[%s15176_s10 + $0xf4] ss:$8 sps:$4 sm:$0xff]  }
0x1111   :  { %v14312_v48 = vadd.f32 %v5953_v41, %v15970_v57  ;;  %6315 = vmatpush1.bf16.msra.mxu0 %v9030_v10 }
0x1112   :  { %v14304_v24 = vadd.f32 %v5945_v29, %v15968_v34  ;;  %6000 = vadd.xlane.f32.xlu0 %v14301_v35  ;;  %6316 = vmatprep.subr.bf16.mxu0 %v9035_v19 }
0x1114   :  { %6002 = vadd.xlane.f32.xlu1 %v14304_v24 }
0x1115   :  { %6317 = vmatpush1.bf16.msra.mxu0 %v9033_v46 }
0x1116   :  { %6004 = vadd.xlane.f32.xlu0 %v14308_v22  ;;  %6318 = vmatprep.subr.bf16.mxu0 %v9038_v20 }
0x1118   :  { %6006 = vadd.xlane.f32.xlu1 %v14312_v48 }
0x112f   :  { %v5977_v8 = vpop.xlane.xlu0 %5976 }
0x1130   :  { %v6008_v55 = vmul.f32 0.0078125, %v5977_v8 }
0x1131   :  { %v5979_v17 = vpop.xlane.xlu1 %5978 }
0x1132   :  { %v14329_v51 = vsub.f32 %v14253_v60, %v6008_v55  ;;  %v6009_v4 = vmul.f32 0.0078125, %v5979_v17 }
0x1133   :  { %v5981_v54 = vpop.xlane.xlu0 %5980 }
0x1134   :  { %v14332_v18 = vsub.f32 %v14256_v27, %v6009_v4  ;;  %v6010_v32 = vmul.f32 0.0078125, %v5981_v54  ;;  %v6040_v33 = vmul.f32 %v14329_v51, %v14329_v51 }
0x1135   :  { %v5983_v2 = vpop.xlane.xlu1 %5982 }
0x1136   :  { %v14337_v40 = vsub.f32 %v14260_v21, %v6010_v32  ;;  %v6011_v30 = vmul.f32 0.0078125, %v5983_v2  ;;  %6056 = vadd.xlane.f32.xlu0 %v6040_v33  ;;  %v6041_v60 = vmul.f32 %v14332_v18, %v14332_v18 }
0x1137   :  { %v5985_v16 = vpop.xlane.xlu0 %5984 }
0x1138   :  { %v14342_v13 = vsub.f32 %v14264_v44, %v6011_v30  ;;  %v6012_v3 = vmul.f32 0.0078125, %v5985_v16  ;;  %6058 = vadd.xlane.f32.xlu1 %v6041_v60  ;;  %v6042_v27 = vmul.f32 %v14337_v40, %v14337_v40 }
0x1139   :  { %v5987_v39 = vpop.xlane.xlu1 %5986 }
0x113a   :  { %v14347_v52 = vsub.f32 %v14268_v23, %v6012_v3  ;;  %v6013_v21 = vmul.f32 0.0078125, %v5987_v39  ;;  %6060 = vadd.xlane.f32.xlu0 %v6042_v27  ;;  %v6043_v38 = vmul.f32 %v14342_v13, %v14342_v13 }
0x113b   :  { %v5989_v45 = vpop.xlane.xlu0 %5988 }
0x113c   :  { %v14352_v62 = vsub.f32 %v14272_v36, %v6013_v21  ;;  %v6014_v44 = vmul.f32 0.0078125, %v5989_v45  ;;  %6062 = vadd.xlane.f32.xlu1 %v6043_v38  ;;  %v6044_v26 = vmul.f32 %v14347_v52, %v14347_v52 }
0x113d   :  { %v5991_v49 = vpop.xlane.xlu1 %5990 }
0x113e   :  { %v14357_v12 = vsub.f32 %v14276_v63, %v6014_v44  ;;  %v6015_v23 = vmul.f32 0.0078125, %v5991_v49  ;;  %6064 = vadd.xlane.f32.xlu0 %v6044_v26  ;;  %v6045_v28 = vmul.f32 %v14352_v62, %v14352_v62  ;;  %v9036_v63 = vld [vmem:[%s15176_s10 + $0xa0] ss:$8 sps:$4 sm:$0xff]  }
0x113f   :  { %6319 = vmatpush1.bf16.msra.mxu0 %v9036_v63 }
0x1140   :  { %v14362_v58 = vsub.f32 %v14280_v25, %v6015_v23  ;;  %6066 = vadd.xlane.f32.xlu1 %v6045_v28  ;;  %v6046_v36 = vmul.f32 %v14357_v12, %v14357_v12  ;;  %v9041_v25 = vld [vmem:[%s15176_s10 + $0xb4] ss:$8 sps:$4 sm:$0xff]  }
0x1141   :  { %6320 = vmatprep.subr.bf16.mxu0 %v9041_v25 }
0x1142   :  { %6068 = vadd.xlane.f32.xlu0 %v6046_v36  ;;  %v6047_v14 = vmul.f32 %v14362_v58, %v14362_v58 }
0x1143   :  { %6321 = vmatpush1.bf16.msra.mxu0 %v9039_v47 }
0x1144   :  { %6070 = vadd.xlane.f32.xlu1 %v6047_v14  ;;  %6322 = vmatprep.subr.bf16.mxu0 %v9044_v50 }
0x1147   :  { %6323 = vmatpush1.bf16.msra.mxu0 %v9042_v0 }
0x1148   :  { %6324 = vmatprep.subr.bf16.mxu0 %v9047_v9 }
0x114b   :  { %6325 = vmatpush1.bf16.msra.mxu0 %v9045_v53 }
0x114c   :  { %6326 = vmatprep.subr.bf16.mxu0 %v9050_v43 }
0x114f   :  { %6327 = vmatpush1.bf16.msra.mxu0 %v9048_v42  ;;  %v14447_v42 = vld [vmem:[%s15177_s8 + $0x1] ss:$0 sm:$0xff] }
0x1150   :  { %6328 = vmatprep.subr.bf16.mxu0 %v9053_v56 }
0x1153   :  { %6329 = vmatpush1.bf16.msra.mxu0 %v9051_v6 }
0x1187   :  { %v5993_v1 = vpop.xlane.xlu0 %5992 }
0x1188   :  { %v6016_v5 = vmul.f32 0.0078125, %v5993_v1 }
0x1189   :  { %v5995_v15 = vpop.xlane.xlu1 %5994 }
0x118a   :  { %v14405_v29 = vsub.f32 %v14285_v59, %v6016_v5  ;;  %v6017_v41 = vmul.f32 0.0078125, %v5995_v15 }
0x118b   :  { %v5997_v34 = vpop.xlane.xlu0 %5996 }
0x118c   :  { %v14408_v61 = vsub.f32 %v14288_v37, %v6017_v41  ;;  %v6018_v57 = vmul.f32 0.0078125, %v5997_v34  ;;  %v6048_v10 = vmul.f32 %v14405_v29, %v14405_v29 }
0x118d   :  { %v5999_v31 = vpop.xlane.xlu1 %5998 }
0x118e   :  { %v14413_v19 = vsub.f32 %v14292_v7, %v6018_v57  ;;  %v6019_v8 = vmul.f32 0.0078125, %v5999_v31  ;;  %6072 = vadd.xlane.f32.xlu0 %v6048_v10  ;;  %v6049_v46 = vmul.f32 %v14408_v61, %v14408_v61  ;;  %v14455_v10 = vld [vmem:[%s15178_s9 + $0x1] ss:$0 sm:$0xff] }
0x1190   :  { %v14418_v59 = vsub.f32 %v14296_v11, %v6019_v8  ;;  %6074 = vadd.xlane.f32.xlu1 %v6049_v46  ;;  %v6050_v37 = vmul.f32 %v14413_v19, %v14413_v19 }
0x1192   :  { %6076 = vadd.xlane.f32.xlu0 %v6050_v37  ;;  %v6051_v55 = vmul.f32 %v14418_v59, %v14418_v59 }
0x1194   :  { %6078 = vadd.xlane.f32.xlu1 %v6051_v55 }
0x119f   :  { %v6001_v17 = vpop.xlane.xlu0 %6000 }
0x11a0   :  { %v6020_v7 = vmul.f32 0.0078125, %v6001_v17 }
0x11a1   :  { %v6003_v4 = vpop.xlane.xlu1 %6002 }
0x11a2   :  { %v14425_v54 = vsub.f32 %v14301_v35, %v6020_v7  ;;  %v6021_v32 = vmul.f32 0.0078125, %v6003_v4 }
0x11a3   :  { %v6005_v33 = vpop.xlane.xlu0 %6004 }
0x11a4   :  { %v14428_v11 = vsub.f32 %v14304_v24, %v6021_v32  ;;  %v6022_v2 = vmul.f32 0.0078125, %v6005_v33  ;;  %v6052_v30 = vmul.f32 %v14425_v54, %v14425_v54 }
0x11a5   :  { %v6007_v60 = vpop.xlane.xlu1 %6006 }
0x11a6   :  { %v14433_v16 = vsub.f32 %v14308_v22, %v6022_v2  ;;  %v6023_v3 = vmul.f32 0.0078125, %v6007_v60  ;;  %6080 = vadd.xlane.f32.xlu0 %v6052_v30  ;;  %v6053_v27 = vmul.f32 %v14428_v11, %v14428_v11  ;;  %v15971_v2 = vmov 0  }
0x11a8   :  { %v14438_v35 = vsub.f32 %v14312_v48, %v6023_v3  ;;  %6082 = vadd.xlane.f32.xlu1 %v6053_v27  ;;  %v6054_v24 = vmul.f32 %v14433_v16, %v14433_v16 }
0x11aa   :  { %6084 = vadd.xlane.f32.xlu0 %v6054_v24  ;;  %v6055_v39 = vmul.f32 %v14438_v35, %v14438_v35 }
0x11ac   :  { %6086 = vadd.xlane.f32.xlu1 %v6055_v39 }
0x11c3   :  { %v6057_v21 = vpop.xlane.xlu0 %6056 }
0x11c4   :  { %v6088_v22 = vmul.f32 0.0078125, %v6057_v21 }
0x11c5   :  { %v6059_v38 = vpop.xlane.xlu1 %6058 }
0x11c6   :  { %v6104_v45 = vadd.f32 1e-05, %v6088_v22  ;;  %v6089_v44 = vmul.f32 0.0078125, %v6059_v38 }
0x11c7   :  { %v6061_v26 = vpop.xlane.xlu0 %6060 }
0x11c8   :  { %9750 = vrsqrt.f32 %v6104_v45  ;;  %v6105_v49 = vadd.f32 1e-05, %v6089_v44  ;;  %v6090_v23 = vmul.f32 0.0078125, %v6061_v26 }
0x11c9   :  { %v6063_v48 = vpop.xlane.xlu1 %6062 }
0x11ca   :  { %9752 = vrsqrt.f32 %v6105_v49  ;;  %v6106_v28 = vadd.f32 1e-05, %v6090_v23  ;;  %v6091_v36 = vmul.f32 0.0078125, %v6063_v48 }
0x11cb   :  { %v6065_v14 = vpop.xlane.xlu0 %6064 }
0x11cc   :  { %9754 = vrsqrt.f32 %v6106_v28  ;;  %v6107_v63 = vadd.f32 1e-05, %v6091_v36  ;;  %v6092_v20 = vmul.f32 0.0078125, %v6065_v14 }
0x11cd   :  { %v6067_v25 = vpop.xlane.xlu1 %6066 }
0x11ce   :  { %9756 = vrsqrt.f32 %v6107_v63  ;;  %v6093_v47 = vmul.f32 0.0078125, %v6067_v25  ;;  %v6108_v50 = vadd.f32 1e-05, %v6092_v20 }
0x11cf   :  { %v6069_v9 = vpop.xlane.xlu0 %6068 }
0x11d0   :  { %v6109_v0 = vadd.f32 1e-05, %v6093_v47  ;;  %v6094_v5 = vmul.f32 0.0078125, %v6069_v9 }
0x11d1   :  { %v6071_v53 = vpop.xlane.xlu1 %6070 }
0x11d2   :  { %v9751_v43 = vpop.eup %9750  ;;  %9758 = vrsqrt.f32 %v6109_v0  ;;  %v6095_v56 = vmul.f32 0.0078125, %v6071_v53  ;;  %v6110_v46 = vadd.f32 1e-05, %v6094_v5 }
0x11d3   :  { %v6136_v6 = vmul.f32 %v9751_v43, %v14329_v51  ;;  %9760 = vrsqrt.f32 %v6108_v50 }
0x11d4   :  { %v9753_v1 = vpop.eup %9752  ;;  %v6111_v57 = vadd.f32 1e-05, %v6095_v56 }
0x11d5   :  { %v6158_v15 = vmul.f32 %v14447_v42, %v6136_v6  ;;  %v6137_v41 = vmul.f32 %v9753_v1, %v14332_v18 }
0x11d6   :  { %v9755_v34 = vpop.eup %9754  ;;  %9762 = vrsqrt.f32 %v6111_v57 }
0x11d7   :  { %v6159_v31 = vmul.f32 %v14447_v42, %v6137_v41  ;;  %v14459_v51 = vadd.f32 %v14455_v10, %v6158_v15  ;;  %v6138_v55 = vmul.f32 %v9755_v34, %v14337_v40  ;;  %9764 = vrsqrt.f32 %v6110_v46 }
0x11d8   :  { %v9757_v8 = vpop.eup %9756 }
0x11d9   :  { %v14462_v37 = vadd.f32 %v14455_v10, %v6159_v31  ;;  %v6139_v18 = vmul.f32 %v9757_v8, %v14342_v13  ;;  %v6160_v32 = vmul.f32 %v14447_v42, %v6138_v55 }
0x11db   :  { %v6196_v17 = vpack.c.bf16 %v14462_v37, %v14459_v51  ;;  %v6161_v7 = vmul.f32 %v14447_v42, %v6139_v18  ;;  %v14476_v13 = vadd.f32 %v14455_v10, %v6160_v32 }
0x11dc   :  { %v9759_v4 = vpop.eup %9758 }
0x11dd   :  { %6347 = vmatmul.mubr.bf16.vlgmr.msra.gmra.mrb[176].mxu0 %v6196_v17  ;;  %v9761_v33 = vpop.eup %9760  ;;  %v14472_v30 = vadd.f32 %v14455_v10, %v6161_v7  ;;  %v6141_v40 = vmul.f32 %v9759_v4, %v14352_v62 }
0x11de   :  { %6356 = vmatprep.mubr.bf16.mxu0 %v15971_v2  ;;  %v6140_v60 = vmul.f32 %v9761_v33, %v14347_v52 }
0x11df   :  { %v6197_v3 = vpack.c.bf16 %v14472_v30, %v14476_v13  ;;  %v6163_v27 = vmul.f32 %v14447_v42, %v6141_v40 }
0x11e0   :  { %v9763_v24 = vpop.eup %9762  ;;  %v6162_v39 = vmul.f32 %v14447_v42, %v6140_v60 }
0x11e1   :  { %v9765_v21 = vpop.eup %9764  ;;  %v14485_v22 = vadd.f32 %v14455_v10, %v6163_v27  ;;  %v6143_v62 = vmul.f32 %v9763_v24, %v14362_v58 }
0x11e2   :  { %v14489_v38 = vadd.f32 %v14455_v10, %v6162_v39  ;;  %v6142_v52 = vmul.f32 %v9765_v21, %v14357_v12 }
0x11e3   :  { %v6165_v44 = vmul.f32 %v14447_v42, %v6143_v62 }
0x11e4   :  { %v6198_v45 = vpack.c.bf16 %v14485_v22, %v14489_v38  ;;  %v6164_v26 = vmul.f32 %v14447_v42, %v6142_v52 }
0x11e5   :  { %6357 = vmatmul.mubr.bf16.gmra.mrb[180].mxu0 %v6197_v3  ;;  %v14498_v49 = vadd.f32 %v14455_v10, %v6165_v44 }
0x11e6   :  { %6366 = vmatprep.mubr.bf16.mxu0 %v15971_v2  ;;  %v14501_v58 = vadd.f32 %v14455_v10, %v6164_v26 }
0x11e8   :  { %v6199_v23 = vpack.c.bf16 %v14498_v49, %v14501_v58 }
0x11ed   :  { %6367 = vmatmul.mubr.bf16.gmra.mrb[184].mxu0 %v6198_v45 }
0x11ee   :  { %6376 = vmatprep.mubr.bf16.mxu0 %v15971_v2 }
0x11f5   :  { %6377 = vmatmul.mubr.bf16.gmra.mrb[188].mxu0 %v6199_v23 }
0x11f6   :  { %6386 = vmatprep.mubr.bf16.mxu0 %v15971_v2 }
0x121b   :  { %v6073_v12 = vpop.xlane.xlu0 %6072 }
0x121c   :  { %v6096_v48 = vmul.f32 0.0078125, %v6073_v12 }
0x121d   :  { %v6075_v28 = vpop.xlane.xlu1 %6074 }
0x121e   :  { %v6112_v36 = vadd.f32 1e-05, %v6096_v48  ;;  %v6097_v14 = vmul.f32 0.0078125, %v6075_v28 }
0x121f   :  { %v6077_v63 = vpop.xlane.xlu0 %6076 }
0x1220   :  { %9766 = vrsqrt.f32 %v6112_v36  ;;  %v6113_v20 = vadd.f32 1e-05, %v6097_v14  ;;  %v6098_v25 = vmul.f32 0.0078125, %v6077_v63 }
0x1221   :  { %v6079_v47 = vpop.xlane.xlu1 %6078 }
0x1222   :  { %9768 = vrsqrt.f32 %v6113_v20  ;;  %v6114_v50 = vadd.f32 1e-05, %v6098_v25  ;;  %v6099_v0 = vmul.f32 0.0078125, %v6079_v47  ;;  %v9054_v25 = vld [vmem:[%s15179_s12 + $0xc0] sm:$0xff]  }
0x1223   :  { %8044 = vmatprep.subr.bf16.mxu1 %v9054_v25 }
0x1224   :  { %9770 = vrsqrt.f32 %v6114_v50  ;;  %v6115_v9 = vadd.f32 1e-05, %v6099_v0  ;;  %v9058_v50 = vld [vmem:[%s15179_s12 + $0xd0] sm:$0xff]   ;;  %v9060_v0 = vld [vmem:[%s15179_s12 + $0xd8] sm:$0xff]  }
0x1226   :  { %9772 = vrsqrt.f32 %v6115_v9  ;;  %v9061_v9 = vld [vmem:[%s15179_s12 + $0x98] sm:$0xff]  }
0x122a   :  { %v9767_v53 = vpop.eup %9766 }
0x122b   :  { %v6144_v43 = vmul.f32 %v9767_v53, %v14405_v29  ;;  %v9062_v53 = vld [vmem:[%s15179_s12 + $0xe0] sm:$0xff]  }
0x122c   :  { %v9769_v56 = vpop.eup %9768 }
0x122d   :  { %v6145_v6 = vmul.f32 %v9769_v56, %v14408_v61  ;;  %v6166_v1 = vmul.f32 %v14447_v42, %v6144_v43  ;;  %v9063_v43 = vld [vmem:[%s15179_s12 + $0xa0] sm:$0xff]   ;;  %v9064_v56 = vld [vmem:[%s15179_s12 + $0xe8] sm:$0xff]  }
0x122e   :  { %v9771_v5 = vpop.eup %9770 }
0x122f   :  { %v6167_v15 = vmul.f32 %v14447_v42, %v6145_v6  ;;  %v14511_v34 = vadd.f32 %v14455_v10, %v6166_v1  ;;  %v6146_v31 = vmul.f32 %v9771_v5, %v14413_v19  ;;  %v9065_v6 = vld [vmem:[%s15179_s12 + $0xa8] sm:$0xff]   ;;  %v9066_v1 = vld [vmem:[%s15179_s12 + $0xf0] sm:$0xff]  }
0x1230   :  { %v9773_v41 = vpop.eup %9772  ;;  %v9067_v5 = vld [vmem:[%s15179_s12 + $0xb0] sm:$0xff]  }
0x1231   :  { %v14514_v57 = vadd.f32 %v14455_v10, %v6167_v15  ;;  %v6147_v8 = vmul.f32 %v9773_v41, %v14418_v59  ;;  %v6168_v17 = vmul.f32 %v14447_v42, %v6146_v31  ;;  %v9068_v15 = vld [vmem:[%s15179_s12 + $0xf8] sm:$0xff]   ;;  %v7580_v31 = vld [vmem:[%s15180_s11 + $0x2] sm:$0x3] }
0x1232   :  { %v9069_v41 = vld [vmem:[%s15179_s12 + $0xb8] sm:$0xff]  }
0x1233   :  { %v6081_v29 = vpop.xlane.xlu0 %6080  ;;  %v6200_v61 = vpack.c.bf16 %v14514_v57, %v14511_v34  ;;  %v6169_v46 = vmul.f32 %v14447_v42, %v6147_v8  ;;  %v14527_v60 = vadd.f32 %v14455_v10, %v6168_v17  ;;  %v15972_v8 = vld [vmem:[#allocation21_spill] sm:$0xff] }
0x1234   :  { %v6100_v55 = vmul.f32 0.0078125, %v6081_v29  ;;  %v14609_v29 = vrot.slane %v7580_v31, %v15972_v8 }
0x1235   :  { %v6083_v18 = vpop.xlane.xlu1 %6082  ;;  %6387 = vmatmul.mubr.bf16.gmra.mrb[192].mxu0 %v6200_v61  ;;  %v14524_v19 = vadd.f32 %v14455_v10, %v6169_v46  ;;  %v15973_v61 = vld [vmem:[#allocation22_spill] sm:$0xff] }
0x1236   :  { %v6116_v7 = vadd.f32 1e-05, %v6100_v55  ;;  %v6101_v4 = vmul.f32 0.0078125, %v6083_v18  ;;  %6396 = vmatprep.mubr.bf16.mxu0 %v15971_v2  ;;  %v14612_v46 = vrot.slane %v7580_v31, %v15973_v61 }
0x1237   :  { %v6085_v32 = vpop.xlane.xlu0 %6084  ;;  %v6201_v24 = vpack.c.bf16 %v14524_v19, %v14527_v60 }
0x1238   :  { %9774 = vrsqrt.f32 %v6116_v7  ;;  %v6117_v59 = vadd.f32 1e-05, %v6101_v4  ;;  %v6102_v33 = vmul.f32 0.0078125, %v6085_v32 }
0x1239   :  { %v6087_v40 = vpop.xlane.xlu1 %6086 }
0x123a   :  { %9776 = vrsqrt.f32 %v6117_v59  ;;  %v6118_v3 = vadd.f32 1e-05, %v6102_v33  ;;  %v6103_v27 = vmul.f32 0.0078125, %v6087_v40 }
0x123c   :  { %9778 = vrsqrt.f32 %v6118_v3  ;;  %v6119_v39 = vadd.f32 1e-05, %v6103_v27 }
0x123d   :  { %6397 = vmatmul.mubr.bf16.gmra.mrb[196].mxu0 %v6201_v24 }
0x123e   :  { %9780 = vrsqrt.f32 %v6119_v39  ;;  %6406 = vmatprep.mubr.bf16.mxu0 %v15971_v2 }
0x1242   :  { %v9775_v21 = vpop.eup %9774 }
0x1243   :  { %v6148_v62 = vmul.f32 %v9775_v21, %v14425_v54 }
0x1244   :  { %v9777_v52 = vpop.eup %9776 }
0x1245   :  { %v6149_v45 = vmul.f32 %v9777_v52, %v14428_v11  ;;  %v6170_v44 = vmul.f32 %v14447_v42, %v6148_v62 }
0x1246   :  { %v9779_v26 = vpop.eup %9778 }
0x1247   :  { %v6171_v23 = vmul.f32 %v14447_v42, %v6149_v45  ;;  %v14537_v48 = vadd.f32 %v14455_v10, %v6170_v44  ;;  %v6150_v36 = vmul.f32 %v9779_v26, %v14433_v16  ;;  %v9055_v16 = vld [vmem:[%s15179_s12 + $0x80] sm:$0xff]  }
0x1248   :  { %v9781_v12 = vpop.eup %9780  ;;  %8045 = vmatpush3.bf16.msra.mxu1 %v9055_v16 }
0x1249   :  { %v14540_v28 = vadd.f32 %v14455_v10, %v6171_v23  ;;  %v6151_v14 = vmul.f32 %v9781_v12, %v14438_v35  ;;  %v6172_v63 = vmul.f32 %v14447_v42, %v6150_v36  ;;  %v9056_v35 = vld [vmem:[%s15179_s12 + $0xc8] sm:$0xff]  }
0x124a   :  { %8046 = vmatprep.subr.bf16.mxu1 %v9056_v35 }
0x124b   :  { %v6202_v54 = vpack.c.bf16 %v14540_v28, %v14537_v48  ;;  %v6173_v11 = vmul.f32 %v14447_v42, %v6151_v14  ;;  %v14562_v47 = vadd.f32 %v14455_v10, %v6172_v63 }
0x124d   :  { %6407 = vmatmul.mubr.bf16.gmra.mrb[200].mxu0 %v6202_v54  ;;  %v14550_v20 = vadd.f32 %v14455_v10, %v6173_v11  ;;  %v9059_v10 = vld [vmem:[%s15179_s12 + $0x90] sm:$0xff]  }
0x124e   :  { %6416 = vmatprep.mubr.bf16.mxu0 %v15971_v2  ;;  %v9057_v2 = vld [vmem:[%s15179_s12 + $0x88] sm:$0xff]  }
0x124f   :  { %v6203_v42 = vpack.c.bf16 %v14550_v20, %v14562_v47  ;;  %8047 = vmatpush3.bf16.msra.mxu1 %v9057_v2 }
0x1250   :  { %8048 = vmatprep.subr.bf16.mxu1 %v9058_v50 }
0x1253   :  { %8049 = vmatpush3.bf16.msra.mxu1 %v9059_v10 }
0x1254   :  { %8050 = vmatprep.subr.bf16.mxu1 %v9060_v0 }
0x1255   :  { %6417 = vmatmul.mubr.bf16.gmra.mrb[204].mxu0 %v6203_v42 }
0x1257   :  { %8051 = vmatpush3.bf16.msra.mxu1 %v9061_v9 }
0x1258   :  { %8052 = vmatprep.subr.bf16.mxu1 %v9062_v53 }
0x125b   :  { %8053 = vmatpush3.bf16.msra.mxu1 %v9063_v43 }
0x125c   :  { %8054 = vmatprep.subr.bf16.mxu1 %v9064_v56 }
0x125f   :  { %8055 = vmatpush3.bf16.msra.mxu1 %v9065_v6 }
0x1260   :  { %8056 = vmatprep.subr.bf16.mxu1 %v9066_v1 }
0x1263   :  { %8057 = vmatpush3.bf16.msra.mxu1 %v9067_v5 }
0x1264   :  { %8058 = vmatprep.subr.bf16.mxu1 %v9068_v15 }
0x1267   :  { %8059 = vmatpush3.bf16.msra.mxu1 %v9069_v41 }
0x12b0   :  { %v6348_v55 = vpop.f32.mrb[176].mxu0 }
0x12b1   :  { %v14615_v18 = vadd.f32 %v6348_v55, %v14609_v29  ;;  %v6350_v17 = vpop.f32.mrb[177].mxu0 }
0x12b2   :  { %v14618_v7 = vadd.f32 %v6350_v17, %v14612_v46  ;;  %v6352_v4 = vpop.f32.mrb[178].mxu0 }
0x12b3   :  { %v6427_v32 = vmul.f32 %v14615_v18, %v14615_v18  ;;  %v14623_v59 = vadd.f32 %v6352_v4, %v14609_v29  ;;  %v6354_v33 = vpop.f32.mrb[179].mxu0 }
0x12b4   :  { %v6428_v40 = vmul.f32 %v14618_v7, %v14618_v7  ;;  %v14628_v3 = vadd.f32 %v6354_v33, %v14612_v46 }
0x12b5   :  { %v6459_v27 = vmul.f32 %v6427_v32, %v14615_v18  ;;  %v6429_v24 = vmul.f32 %v14623_v59, %v14623_v59 }
0x12b6   :  { %v6460_v39 = vmul.f32 %v6428_v40, %v14618_v7  ;;  %v6430_v21 = vmul.f32 %v14628_v3, %v14628_v3 }
0x12b7   :  { %v6491_v62 = vmul.f32 0.044715, %v6459_v27  ;;  %v6461_v52 = vmul.f32 %v6429_v24, %v14623_v59 }
0x12b8   :  { %v6492_v45 = vmul.f32 0.044715, %v6460_v39  ;;  %v6462_v44 = vmul.f32 %v6430_v21, %v14628_v3  ;;  %v6358_v26 = vpop.f32.mrb[180].mxu0 }
0x12b9   :  { %v6523_v23 = vadd.f32 %v6491_v62, %v14615_v18  ;;  %v6493_v12 = vmul.f32 0.044715, %v6461_v52  ;;  %v14640_v36 = vadd.f32 %v6358_v26, %v14609_v29  ;;  %v6360_v14 = vpop.f32.mrb[181].mxu0 }
0x12ba   :  { %v6524_v54 = vadd.f32 %v6492_v45, %v14618_v7  ;;  %v6494_v11 = vmul.f32 0.044715, %v6462_v44  ;;  %v14644_v63 = vadd.f32 %v6360_v14, %v14612_v46  ;;  %v6362_v25 = vpop.f32.mrb[182].mxu0 }
0x12bb   :  { %v6555_v16 = vmul.f32 0.7978846, %v6523_v23  ;;  %v6525_v35 = vadd.f32 %v6493_v12, %v14623_v59  ;;  %v6431_v42 = vmul.f32 %v14640_v36, %v14640_v36  ;;  %v14650_v2 = vadd.f32 %v6362_v25, %v14609_v29  ;;  %v6364_v50 = vpop.f32.mrb[183].mxu0 }
0x12bc   :  { %v6556_v10 = vmul.f32 0.7978846, %v6524_v54  ;;  %v6526_v0 = vadd.f32 %v6494_v11, %v14628_v3  ;;  %v6432_v9 = vmul.f32 %v14644_v63, %v14644_v63  ;;  %v14656_v53 = vadd.f32 %v6364_v50, %v14612_v46 }
0x12bd   :  { %9782 = vtanh.f32 %v6555_v16  ;;  %v6557_v43 = vmul.f32 0.7978846, %v6525_v35  ;;  %v6463_v56 = vmul.f32 %v6431_v42, %v14640_v36  ;;  %v6433_v6 = vmul.f32 %v14650_v2, %v14650_v2 }
0x12be   :  { %9784 = vtanh.f32 %v6556_v10  ;;  %v6558_v1 = vmul.f32 0.7978846, %v6526_v0  ;;  %v6464_v5 = vmul.f32 %v6432_v9, %v14644_v63  ;;  %v6434_v15 = vmul.f32 %v14656_v53, %v14656_v53 }
0x12bf   :  { %9786 = vtanh.f32 %v6557_v43  ;;  %v6495_v41 = vmul.f32 0.044715, %v6463_v56  ;;  %v6465_v31 = vmul.f32 %v6433_v6, %v14650_v2 }
0x12c0   :  { %v6496_v8 = vmul.f32 0.044715, %v6464_v5  ;;  %v6466_v61 = vmul.f32 %v6434_v15, %v14656_v53  ;;  %v6368_v55 = vpop.f32.mrb[184].mxu0  ;;  %9788 = vtanh.f32 %v6558_v1 }
0x12c1   :  { %v6527_v17 = vadd.f32 %v6495_v41, %v14640_v36  ;;  %v6497_v4 = vmul.f32 0.044715, %v6465_v31  ;;  %v14668_v32 = vadd.f32 %v6368_v55, %v14609_v29  ;;  %v6370_v33 = vpop.f32.mrb[185].mxu0 }
0x12c2   :  { %v6528_v40 = vadd.f32 %v6496_v8, %v14644_v63  ;;  %v6498_v27 = vmul.f32 0.044715, %v6466_v61  ;;  %v14672_v24 = vadd.f32 %v6370_v33, %v14612_v46  ;;  %v6372_v39 = vpop.f32.mrb[186].mxu0 }
0x12c3   :  { %v6559_v21 = vmul.f32 0.7978846, %v6527_v17  ;;  %v6529_v62 = vadd.f32 %v6497_v4, %v14650_v2  ;;  %v6435_v52 = vmul.f32 %v14668_v32, %v14668_v32  ;;  %v14678_v45 = vadd.f32 %v6372_v39, %v14609_v29  ;;  %v6374_v44 = vpop.f32.mrb[187].mxu0 }
0x12c4   :  { %v6560_v26 = vmul.f32 0.7978846, %v6528_v40  ;;  %v6530_v23 = vadd.f32 %v6498_v27, %v14656_v53  ;;  %v6436_v12 = vmul.f32 %v14672_v24, %v14672_v24  ;;  %v14684_v14 = vadd.f32 %v6374_v44, %v14612_v46 }
0x12c5   :  { %9790 = vtanh.f32 %v6559_v21  ;;  %v6561_v54 = vmul.f32 0.7978846, %v6529_v62  ;;  %v6467_v11 = vmul.f32 %v6435_v52, %v14668_v32  ;;  %v6437_v25 = vmul.f32 %v14678_v45, %v14678_v45 }
0x12c6   :  { %9792 = vtanh.f32 %v6560_v26  ;;  %v6562_v16 = vmul.f32 0.7978846, %v6530_v23  ;;  %v6468_v35 = vmul.f32 %v6436_v12, %v14672_v24  ;;  %v6438_v42 = vmul.f32 %v14684_v14, %v14684_v14 }
0x12c7   :  { %v9783_v50 = vpop.eup %9782  ;;  %9794 = vtanh.f32 %v6561_v54  ;;  %v6499_v10 = vmul.f32 0.044715, %v6467_v11  ;;  %v6469_v0 = vmul.f32 %v6437_v25, %v14678_v45 }
0x12c8   :  { %v9785_v9 = vpop.eup %9784  ;;  %v6619_v43 = vadd.f32 1.0, %v9783_v50  ;;  %9796 = vtanh.f32 %v6562_v16  ;;  %v6500_v56 = vmul.f32 0.044715, %v6468_v35  ;;  %v6470_v6 = vmul.f32 %v6438_v42, %v14684_v14  ;;  %v6378_v1 = vpop.f32.mrb[188].mxu0 }
0x12c9   :  { %v9787_v5 = vpop.eup %9786  ;;  %v6531_v15 = vadd.f32 %v6499_v10, %v14668_v32  ;;  %v6501_v41 = vmul.f32 0.044715, %v6469_v0  ;;  %v14696_v31 = vadd.f32 %v6378_v1, %v14609_v29  ;;  %v6380_v8 = vpop.f32.mrb[189].mxu0  ;;  %v6620_v61 = vadd.f32 1.0, %v9785_v9 }
0x12ca   :  { %v6651_v55 = vmul.f32 0.5, %v6619_v43  ;;  %v6621_v17 = vadd.f32 1.0, %v9787_v5  ;;  %v6532_v4 = vadd.f32 %v6500_v56, %v14672_v24  ;;  %v6502_v33 = vmul.f32 0.044715, %v6470_v6  ;;  %v6382_v40 = vpop.f32.mrb[190].mxu0  ;;  %v9789_v44 = vpop.eup %9788 }
0x12cb   :  { %v6563_v27 = vmul.f32 0.7978846, %v6531_v15  ;;  %v6533_v39 = vadd.f32 %v6501_v41, %v14678_v45  ;;  %v6439_v21 = vmul.f32 %v14696_v31, %v14696_v31  ;;  %v14703_v62 = vadd.f32 %v6380_v8, %v14612_v46  ;;  %v6384_v52 = vpop.f32.mrb[191].mxu0 }
0x12cc   :  { %v6683_v26 = vmul.f32 %v6651_v55, %v14615_v18  ;;  %v6653_v23 = vmul.f32 0.5, %v6621_v17  ;;  %v6564_v12 = vmul.f32 0.7978846, %v6532_v4  ;;  %v6534_v54 = vadd.f32 %v6502_v33, %v14684_v14 }
0x12cd   :  { %9798 = vtanh.f32 %v6563_v27  ;;  %v6565_v11 = vmul.f32 0.7978846, %v6533_v39  ;;  %v6471_v25 = vmul.f32 %v6439_v21, %v14696_v31  ;;  %v6440_v16 = vmul.f32 %v14703_v62, %v14703_v62 }
0x12ce   :  { %v6685_v35 = vmul.f32 %v6653_v23, %v14623_v59  ;;  %9800 = vtanh.f32 %v6564_v12  ;;  %v6566_v42 = vmul.f32 0.7978846, %v6534_v54  ;;  %v14712_v50 = vadd.f32 %v6382_v40, %v14609_v29 }
0x12cf   :  { %v9791_v10 = vpop.eup %9790  ;;  %9802 = vtanh.f32 %v6565_v11  ;;  %v6503_v18 = vmul.f32 0.044715, %v6471_v25  ;;  %v6472_v0 = vmul.f32 %v6440_v16, %v14703_v62  ;;  %v14716_v9 = vadd.f32 %v6384_v52, %v14612_v46 }
0x12d0   :  { %v9793_v43 = vpop.eup %9792  ;;  %v6715_v56 = vpack.c.bf16 %v6685_v35, %v6683_v26  ;;  %9804 = vtanh.f32 %v6566_v42  ;;  %v6441_v6 = vmul.f32 %v14712_v50, %v14712_v50  ;;  %v6622_v59 = vadd.f32 1.0, %v9789_v44 }
0x12d1   :  { %v9795_v1 = vpop.eup %9794  ;;  %v6535_v5 = vadd.f32 %v6503_v18, %v14696_v31  ;;  %v6504_v15 = vmul.f32 0.044715, %v6472_v0  ;;  %v6442_v41 = vmul.f32 %v14716_v9, %v14716_v9  ;;  %v6652_v8 = vmul.f32 0.5, %v6620_v61 }
0x12d2   :  { %v9797_v55 = vpop.eup %9796  ;;  %v6473_v17 = vmul.f32 %v6441_v6, %v14712_v50  ;;  %v6654_v4 = vmul.f32 0.5, %v6622_v59  ;;  %v6624_v33 = vadd.f32 1.0, %v9793_v43  ;;  %v6623_v40 = vadd.f32 1.0, %v9791_v10 }
0x12d3   :  { %v6567_v27 = vmul.f32 0.7978846, %v6535_v5  ;;  %v6536_v39 = vadd.f32 %v6504_v15, %v14703_v62  ;;  %v6474_v21 = vmul.f32 %v6442_v41, %v14716_v9  ;;  %v6684_v52 = vmul.f32 %v6652_v8, %v14618_v7 }
0x12d4   :  { %v6505_v44 = vmul.f32 0.044715, %v6473_v17  ;;  %v6686_v26 = vmul.f32 %v6654_v4, %v14628_v3  ;;  %v6626_v23 = vadd.f32 1.0, %v9797_v55  ;;  %v6656_v12 = vmul.f32 0.5, %v6624_v33 }
0x12d5   :  { %9806 = vtanh.f32 %v6567_v27  ;;  %v6568_v61 = vmul.f32 0.7978846, %v6536_v39  ;;  %v6506_v54 = vmul.f32 0.044715, %v6474_v21  ;;  %v6625_v11 = vadd.f32 1.0, %v9795_v1 }
0x12d6   :  { %v6537_v25 = vadd.f32 %v6505_v44, %v14712_v50  ;;  %v6716_v16 = vpack.c.bf16 %v6686_v26, %v6684_v52  ;;  %v6658_v35 = vmul.f32 0.5, %v6626_v23  ;;  %v6655_v18 = vmul.f32 0.5, %v6623_v40 }
0x12d7   :  { %v9799_v42 = vpop.eup %9798  ;;  %9808 = vtanh.f32 %v6568_v61  ;;  %v6538_v10 = vadd.f32 %v6506_v54, %v14716_v9  ;;  %v6657_v0 = vmul.f32 0.5, %v6625_v11  ;;  %v6688_v3 = vmul.f32 %v6656_v12, %v14644_v63 }
0x12d8   :  { %v9801_v7 = vpop.eup %9800  ;;  %v6569_v43 = vmul.f32 0.7978846, %v6537_v25  ;;  %6900 = vmatprep.mubr.bf16.mxu1 %v6716_v16  ;;  %v6690_v6 = vmul.f32 %v6658_v35, %v14656_v53  ;;  %v6627_v59 = vadd.f32 1.0, %v9799_v42  ;;  %v6687_v15 = vmul.f32 %v6655_v18, %v14640_v36 }
0x12d9   :  { %v9803_v5 = vpop.eup %9802  ;;  %v6570_v1 = vmul.f32 0.7978846, %v6538_v10  ;;  %6901 = vmatmul.mubr.bf16.vlgmr.msra.gmra.mrb[176].mxu1 %v6715_v56  ;;  %v6689_v41 = vmul.f32 %v6657_v0, %v14650_v2  ;;  %v6628_v8 = vadd.f32 1.0, %v9801_v7 }
0x12da   :  { %v9805_v55 = vpop.eup %9804  ;;  %9810 = vtanh.f32 %v6569_v43  ;;  %v6718_v17 = vpack.c.bf16 %v6690_v6, %v6688_v3  ;;  %v6629_v4 = vadd.f32 1.0, %v9803_v5  ;;  %v6659_v33 = vmul.f32 0.5, %v6627_v59 }
0x12db   :  { %9812 = vtanh.f32 %v6570_v1  ;;  %v6717_v40 = vpack.c.bf16 %v6689_v41, %v6687_v15  ;;  %v6630_v27 = vadd.f32 1.0, %v9805_v55  ;;  %v6660_v63 = vmul.f32 0.5, %v6628_v8 }
0x12dc   :  { %6908 = vmatprep.mubr.bf16.mxu1 %v6718_v17  ;;  %v6661_v53 = vmul.f32 0.5, %v6629_v4  ;;  %v6691_v21 = vmul.f32 %v6659_v33, %v14668_v32 }
0x12dd   :  { %v6662_v39 = vmul.f32 0.5, %v6630_v27  ;;  %v6692_v2 = vmul.f32 %v6660_v63, %v14672_v24 }
0x12de   :  { %v6693_v56 = vmul.f32 %v6661_v53, %v14678_v45 }
0x12df   :  { %v9807_v36 = vpop.eup %9806  ;;  %v6694_v52 = vmul.f32 %v6662_v39, %v14684_v14 }
0x12e0   :  { %v6719_v44 = vpack.c.bf16 %v6693_v56, %v6691_v21  ;;  %v6631_v12 = vadd.f32 1.0, %v9807_v36 }
0x12e1   :  { %v9809_v26 = vpop.eup %9808  ;;  %6909 = vmatmul.mubr.bf16.gmra.mrb[180].mxu1 %v6717_v40  ;;  %v6720_v23 = vpack.c.bf16 %v6694_v52, %v6692_v2 }
0x12e2   :  { %v6632_v61 = vadd.f32 1.0, %v9809_v26  ;;  %v6663_v16 = vmul.f32 0.5, %v6631_v12 }
0x12e3   :  { %6916 = vmatprep.mubr.bf16.mxu1 %v6720_v23 }
0x12e4   :  { %v9811_v54 = vpop.eup %9810  ;;  %v6664_v32 = vmul.f32 0.5, %v6632_v61  ;;  %v6695_v24 = vmul.f32 %v6663_v16, %v14696_v31 }
0x12e5   :  { %v9813_v11 = vpop.eup %9812  ;;  %v6633_v25 = vadd.f32 1.0, %v9811_v54 }
0x12e6   :  { %v6634_v35 = vadd.f32 1.0, %v9813_v11  ;;  %v6696_v10 = vmul.f32 %v6664_v32, %v14703_v62 }
0x12e7   :  { %v6665_v42 = vmul.f32 0.5, %v6633_v25 }
0x12e8   :  { %v6666_v45 = vmul.f32 0.5, %v6634_v35 }
0x12e9   :  { %6917 = vmatmul.mubr.bf16.gmra.mrb[184].mxu1 %v6719_v44  ;;  %v6697_v14 = vmul.f32 %v6665_v42, %v14712_v50 }
0x12ea   :  { %v6698_v18 = vmul.f32 %v6666_v45, %v14716_v9 }
0x12eb   :  { %v6721_v0 = vpack.c.bf16 %v6697_v14, %v6695_v24 }
0x12ec   :  { %v6722_v7 = vpack.c.bf16 %v6698_v18, %v6696_v10 }
0x12ee   :  { %6924 = vmatprep.mubr.bf16.mxu1 %v6722_v7 }
0x12f1   :  { %6925 = vmatmul.mubr.bf16.gmra.mrb[188].mxu1 %v6721_v0 }
0x1308   :  { %v6388_v43 = vpop.f32.mrb[192].mxu0 }
0x1309   :  { %v14743_v3 = vadd.f32 %v6388_v43, %v14609_v29  ;;  %v6390_v6 = vpop.f32.mrb[193].mxu0 }
0x130a   :  { %v14746_v59 = vadd.f32 %v6390_v6, %v14612_v46  ;;  %v6392_v5 = vpop.f32.mrb[194].mxu0 }
0x130b   :  { %v6443_v31 = vmul.f32 %v14743_v3, %v14743_v3  ;;  %v14751_v62 = vadd.f32 %v6392_v5, %v14609_v29  ;;  %v6394_v50 = vpop.f32.mrb[195].mxu0 }
0x130c   :  { %v6444_v9 = vmul.f32 %v14746_v59, %v14746_v59  ;;  %v14756_v1 = vadd.f32 %v6394_v50, %v14612_v46 }
0x130d   :  { %v6475_v15 = vmul.f32 %v6443_v31, %v14743_v3  ;;  %v6445_v41 = vmul.f32 %v14751_v62, %v14751_v62 }
0x130e   :  { %v6476_v8 = vmul.f32 %v6444_v9, %v14746_v59  ;;  %v6446_v55 = vmul.f32 %v14756_v1, %v14756_v1 }
0x130f   :  { %v6507_v17 = vmul.f32 0.044715, %v6475_v15  ;;  %v6477_v4 = vmul.f32 %v6445_v41, %v14751_v62 }
0x1310   :  { %v6508_v33 = vmul.f32 0.044715, %v6476_v8  ;;  %v6478_v40 = vmul.f32 %v6446_v55, %v14756_v1  ;;  %v6398_v27 = vpop.f32.mrb[196].mxu0 }
0x1311   :  { %v6539_v63 = vadd.f32 %v6507_v17, %v14743_v3  ;;  %v6509_v53 = vmul.f32 0.044715, %v6477_v4  ;;  %v14768_v39 = vadd.f32 %v6398_v27, %v14609_v29  ;;  %v6400_v21 = vpop.f32.mrb[197].mxu0 }
0x1312   :  { %v6540_v56 = vadd.f32 %v6508_v33, %v14746_v59  ;;  %v6510_v36 = vmul.f32 0.044715, %v6478_v40  ;;  %v14772_v2 = vadd.f32 %v6400_v21, %v14612_v46  ;;  %v6402_v52 = vpop.f32.mrb[198].mxu0 }
0x1313   :  { %v6571_v44 = vmul.f32 0.7978846, %v6539_v63  ;;  %v6541_v26 = vadd.f32 %v6509_v53, %v14751_v62  ;;  %v6447_v23 = vmul.f32 %v14768_v39, %v14768_v39  ;;  %v14778_v12 = vadd.f32 %v6402_v52, %v14609_v29  ;;  %v6404_v61 = vpop.f32.mrb[199].mxu0 }
0x1314   :  { %v6572_v54 = vmul.f32 0.7978846, %v6540_v56  ;;  %v6542_v11 = vadd.f32 %v6510_v36, %v14756_v1  ;;  %v6448_v25 = vmul.f32 %v14772_v2, %v14772_v2  ;;  %v14784_v16 = vadd.f32 %v6404_v61, %v14612_v46 }
0x1315   :  { %9814 = vtanh.f32 %v6571_v44  ;;  %v6573_v35 = vmul.f32 0.7978846, %v6541_v26  ;;  %v6479_v32 = vmul.f32 %v6447_v23, %v14768_v39  ;;  %v6449_v42 = vmul.f32 %v14778_v12, %v14778_v12 }
0x1316   :  { %9816 = vtanh.f32 %v6572_v54  ;;  %v6574_v45 = vmul.f32 0.7978846, %v6542_v11  ;;  %v6480_v24 = vmul.f32 %v6448_v25, %v14772_v2  ;;  %v6450_v14 = vmul.f32 %v14784_v16, %v14784_v16 }
0x1317   :  { %9818 = vtanh.f32 %v6573_v35  ;;  %v6511_v10 = vmul.f32 0.044715, %v6479_v32  ;;  %v6481_v18 = vmul.f32 %v6449_v42, %v14778_v12 }
0x1318   :  { %9820 = vtanh.f32 %v6574_v45  ;;  %v6512_v0 = vmul.f32 0.044715, %v6480_v24  ;;  %v6482_v7 = vmul.f32 %v6450_v14, %v14784_v16 }
0x1319   :  { %v6543_v43 = vadd.f32 %v6511_v10, %v14768_v39  ;;  %v6513_v6 = vmul.f32 0.044715, %v6481_v18 }
0x131a   :  { %v6544_v5 = vadd.f32 %v6512_v0, %v14772_v2  ;;  %v6514_v31 = vmul.f32 0.044715, %v6482_v7 }
0x131b   :  { %v6575_v50 = vmul.f32 0.7978846, %v6543_v43  ;;  %v6545_v15 = vadd.f32 %v6513_v6, %v14778_v12 }
0x131c   :  { %v6576_v9 = vmul.f32 0.7978846, %v6544_v5  ;;  %v6546_v41 = vadd.f32 %v6514_v31, %v14784_v16 }
0x131d   :  { %9822 = vtanh.f32 %v6575_v50  ;;  %v6577_v4 = vmul.f32 0.7978846, %v6545_v15 }
0x131e   :  { %9824 = vtanh.f32 %v6576_v9  ;;  %v6578_v8 = vmul.f32 0.7978846, %v6546_v41 }
0x131f   :  { %v9815_v55 = vpop.eup %9814 }
0x1320   :  { %v9817_v17 = vpop.eup %9816  ;;  %v6408_v33 = vpop.f32.mrb[200].mxu0  ;;  %v6635_v40 = vadd.f32 1.0, %v9815_v55  ;;  %9826 = vtanh.f32 %v6578_v8 }
0x1321   :  { %v9819_v27 = vpop.eup %9818  ;;  %v14799_v63 = vadd.f32 %v6408_v33, %v14609_v29  ;;  %v6410_v53 = vpop.f32.mrb[201].mxu0  ;;  %v6636_v21 = vadd.f32 1.0, %v9817_v17  ;;  %9828 = vtanh.f32 %v6577_v4 }
0x1322   :  { %v9821_v56 = vpop.eup %9820  ;;  %v14802_v36 = vadd.f32 %v6410_v53, %v14612_v46  ;;  %v6412_v52 = vpop.f32.mrb[202].mxu0  ;;  %v6637_v44 = vadd.f32 1.0, %v9819_v27  ;;  %v6667_v26 = vmul.f32 0.5, %v6635_v40 }
0x1323   :  { %v6451_v23 = vmul.f32 %v14799_v63, %v14799_v63  ;;  %v14807_v61 = vadd.f32 %v6412_v52, %v14609_v29  ;;  %v6414_v54 = vpop.f32.mrb[203].mxu0  ;;  %v6638_v11 = vadd.f32 1.0, %v9821_v56  ;;  %v6668_v25 = vmul.f32 0.5, %v6636_v21 }
0x1324   :  { %v6452_v35 = vmul.f32 %v14802_v36, %v14802_v36  ;;  %v14812_v32 = vadd.f32 %v6414_v54, %v14612_v46  ;;  %v6669_v42 = vmul.f32 0.5, %v6637_v44  ;;  %v6699_v0 = vmul.f32 %v6667_v26, %v14743_v3 }
0x1325   :  { %v6483_v45 = vmul.f32 %v6451_v23, %v14799_v63  ;;  %v6453_v24 = vmul.f32 %v14807_v61, %v14807_v61  ;;  %v6670_v14 = vmul.f32 0.5, %v6638_v11  ;;  %v6700_v31 = vmul.f32 %v6668_v25, %v14746_v59 }
0x1326   :  { %v6484_v10 = vmul.f32 %v6452_v35, %v14802_v36  ;;  %v6454_v18 = vmul.f32 %v14812_v32, %v14812_v32  ;;  %v6701_v7 = vmul.f32 %v6669_v42, %v14751_v62 }
0x1327   :  { %v9823_v43 = vpop.eup %9822  ;;  %v6515_v6 = vmul.f32 0.044715, %v6483_v45  ;;  %v6485_v5 = vmul.f32 %v6453_v24, %v14807_v61  ;;  %v6702_v50 = vmul.f32 %v6670_v14, %v14756_v1 }
0x1328   :  { %v9825_v9 = vpop.eup %9824  ;;  %v6516_v15 = vmul.f32 0.044715, %v6484_v10  ;;  %v6486_v41 = vmul.f32 %v6454_v18, %v14812_v32  ;;  %v6418_v8 = vpop.f32.mrb[204].mxu0  ;;  %v6723_v55 = vpack.c.bf16 %v6701_v7, %v6699_v0  ;;  %v6639_v17 = vadd.f32 1.0, %v9823_v43 }
0x1329   :  { %v6547_v4 = vadd.f32 %v6515_v6, %v14799_v63  ;;  %v6517_v3 = vmul.f32 0.044715, %v6485_v5  ;;  %v14828_v62 = vadd.f32 %v6418_v8, %v14609_v29  ;;  %v6420_v33 = vpop.f32.mrb[205].mxu0  ;;  %v6724_v40 = vpack.c.bf16 %v6702_v50, %v6700_v31 }
0x132a   :  { %v6548_v27 = vadd.f32 %v6516_v15, %v14802_v36  ;;  %v6518_v59 = vmul.f32 0.044715, %v6486_v41  ;;  %v14832_v1 = vadd.f32 %v6420_v33, %v14612_v46  ;;  %v6422_v53 = vpop.f32.mrb[206].mxu0  ;;  %v6640_v21 = vadd.f32 1.0, %v9825_v9  ;;  %v9827_v54 = vpop.eup %9826 }
0x132b   :  { %v6579_v56 = vmul.f32 0.7978846, %v6547_v4  ;;  %v6549_v52 = vadd.f32 %v6517_v3, %v14807_v61  ;;  %v6455_v44 = vmul.f32 %v14828_v62, %v14828_v62  ;;  %v14838_v26 = vadd.f32 %v6422_v53, %v14609_v29  ;;  %v6424_v23 = vpop.f32.mrb[207].mxu0  ;;  %6932 = vmatprep.mubr.bf16.mxu1 %v6724_v40  ;;  %v9829_v14 = vpop.eup %9828 }
0x132c   :  { %v6580_v11 = vmul.f32 0.7978846, %v6548_v27  ;;  %v6550_v25 = vadd.f32 %v6518_v59, %v14812_v32  ;;  %v6456_v35 = vmul.f32 %v14832_v1, %v14832_v1  ;;  %v14844_v42 = vadd.f32 %v6424_v23, %v14612_v46  ;;  %6933 = vmatmul.mubr.bf16.gmra.mrb[192].mxu1 %v6723_v55 }
0x132d   :  { %9830 = vtanh.f32 %v6579_v56  ;;  %v6581_v45 = vmul.f32 0.7978846, %v6549_v52  ;;  %v6487_v24 = vmul.f32 %v6455_v44, %v14828_v62  ;;  %v6457_v29 = vmul.f32 %v14838_v26, %v14838_v26 }
0x132e   :  { %9832 = vtanh.f32 %v6580_v11  ;;  %v6582_v10 = vmul.f32 0.7978846, %v6550_v25  ;;  %v6488_v18 = vmul.f32 %v6456_v35, %v14832_v1  ;;  %v6458_v0 = vmul.f32 %v14844_v42, %v14844_v42 }
0x132f   :  { %9834 = vtanh.f32 %v6581_v45  ;;  %v6519_v7 = vmul.f32 0.044715, %v6487_v24  ;;  %v6489_v46 = vmul.f32 %v6457_v29, %v14838_v26  ;;  %v6642_v43 = vadd.f32 1.0, %v9827_v54 }
0x1330   :  { %9836 = vtanh.f32 %v6582_v10  ;;  %v6520_v6 = vmul.f32 0.044715, %v6488_v18  ;;  %v6490_v5 = vmul.f32 %v6458_v0, %v14844_v42  ;;  %v6672_v31 = vmul.f32 0.5, %v6640_v21 }
0x1331   :  { %v6551_v50 = vadd.f32 %v6519_v7, %v14828_v62  ;;  %v6521_v9 = vmul.f32 0.044715, %v6489_v46  ;;  %v6674_v15 = vmul.f32 0.5, %v6642_v43  ;;  %v6641_v41 = vadd.f32 1.0, %v9829_v14 }
0x1332   :  { %v6552_v8 = vadd.f32 %v6520_v6, %v14832_v1  ;;  %v6522_v55 = vmul.f32 0.044715, %v6490_v5  ;;  %v6704_v4 = vmul.f32 %v6672_v31, %v14772_v2  ;;  %v6671_v3 = vmul.f32 0.5, %v6639_v17 }
0x1333   :  { %v6583_v33 = vmul.f32 0.7978846, %v6551_v50  ;;  %v6553_v40 = vadd.f32 %v6521_v9, %v14838_v26  ;;  %v6706_v27 = vmul.f32 %v6674_v15, %v14784_v16  ;;  %v6673_v59 = vmul.f32 0.5, %v6641_v41 }
0x1334   :  { %v6584_v53 = vmul.f32 0.7978846, %v6552_v8  ;;  %v6554_v21 = vadd.f32 %v6522_v55, %v14844_v42  ;;  %v6703_v56 = vmul.f32 %v6671_v3, %v14768_v39 }
0x1335   :  { %9838 = vtanh.f32 %v6583_v33  ;;  %v6585_v52 = vmul.f32 0.7978846, %v6553_v40  ;;  %v6726_v44 = vpack.c.bf16 %v6706_v27, %v6704_v4  ;;  %v6705_v23 = vmul.f32 %v6673_v59, %v14778_v12 }
0x1336   :  { %9840 = vtanh.f32 %v6584_v53  ;;  %v6586_v54 = vmul.f32 0.7978846, %v6554_v21  ;;  %v14873_v21 = vld [vmem:[%s15181_s13 + $0x1] ss:$0 sm:$0xff] }
0x1337   :  { %v9831_v2 = vpop.eup %9830  ;;  %9842 = vtanh.f32 %v6585_v52  ;;  %6940 = vmatprep.mubr.bf16.mxu1 %v6726_v44  ;;  %v6725_v17 = vpack.c.bf16 %v6705_v23, %v6703_v56 }
0x1338   :  { %v9833_v11 = vpop.eup %9832  ;;  %9844 = vtanh.f32 %v6586_v54  ;;  %v6643_v16 = vadd.f32 1.0, %v9831_v2 }
0x1339   :  { %v9835_v25 = vpop.eup %9834  ;;  %6941 = vmatmul.mubr.bf16.gmra.mrb[196].mxu1 %v6725_v17  ;;  %v6644_v35 = vadd.f32 1.0, %v9833_v11 }
0x133a   :  { %v9837_v45 = vpop.eup %9836  ;;  %v6645_v24 = vadd.f32 1.0, %v9835_v25  ;;  %v6675_v39 = vmul.f32 0.5, %v6643_v16 }
0x133b   :  { %v6646_v29 = vadd.f32 1.0, %v9837_v45  ;;  %v6676_v14 = vmul.f32 0.5, %v6644_v35 }
0x133c   :  { %v6677_v10 = vmul.f32 0.5, %v6645_v24  ;;  %v6707_v12 = vmul.f32 %v6675_v39, %v14799_v63 }
0x133d   :  { %v6678_v18 = vmul.f32 0.5, %v6646_v29  ;;  %v6708_v46 = vmul.f32 %v6676_v14, %v14802_v36 }
0x133e   :  { %v6709_v0 = vmul.f32 %v6677_v10, %v14807_v61 }
0x133f   :  { %v9839_v7 = vpop.eup %9838  ;;  %v6710_v43 = vmul.f32 %v6678_v18, %v14812_v32 }
0x1340   :  { %v9841_v6 = vpop.eup %9840  ;;  %v6727_v5 = vpack.c.bf16 %v6709_v0, %v6707_v12  ;;  %v6647_v31 = vadd.f32 1.0, %v9839_v7 }
0x1341   :  { %v9843_v50 = vpop.eup %9842  ;;  %v6728_v9 = vpack.c.bf16 %v6710_v43, %v6708_v46  ;;  %v6648_v15 = vadd.f32 1.0, %v9841_v6 }
0x1342   :  { %v9845_v41 = vpop.eup %9844  ;;  %v6649_v8 = vadd.f32 1.0, %v9843_v50  ;;  %v6679_v55 = vmul.f32 0.5, %v6647_v31 }
0x1343   :  { %6948 = vmatprep.mubr.bf16.mxu1 %v6728_v9  ;;  %v6650_v4 = vadd.f32 1.0, %v9845_v41  ;;  %v6680_v3 = vmul.f32 0.5, %v6648_v15 }
0x1344   :  { %6949 = vmatmul.mubr.bf16.gmra.mrb[200].mxu1 %v6727_v5  ;;  %v6681_v63 = vmul.f32 0.5, %v6649_v8  ;;  %v6711_v33 = vmul.f32 %v6679_v55, %v14828_v62 }
0x1345   :  { %v6682_v61 = vmul.f32 0.5, %v6650_v4  ;;  %v6712_v32 = vmul.f32 %v6680_v3, %v14832_v1 }
0x1346   :  { %v6713_v36 = vmul.f32 %v6681_v63, %v14838_v26 }
0x1347   :  { %v6714_v40 = vmul.f32 %v6682_v61, %v14844_v42 }
0x1348   :  { %v6729_v27 = vpack.c.bf16 %v6713_v36, %v6711_v33 }
0x1349   :  { %v6730_v59 = vpack.c.bf16 %v6714_v40, %v6712_v32 }
0x134b   :  { %6956 = vmatprep.mubr.bf16.mxu1 %v6730_v59 }
0x134c   :  { %6957 = vmatmul.mubr.bf16.gmra.mrb[204].mxu1 %v6729_v27 }
0x13ac   :  { %v8060_v53 = vpop.f32.mrb[176].mxu1 }
0x13ad   :  { %v8061_v56 = vpop.f32.mrb[177].mxu1 }
0x13ae   :  { %v8062_v52 = vadd.f32 %v8061_v56, %v8060_v53  ;;  %v8063_v44 = vpop.f32.mrb[178].mxu1 }
0x13af   :  { %v8064_v62 = vpop.f32.mrb[179].mxu1 }
0x13b0   :  { %v6903_v26 = vadd.f32 %v8062_v52, %v14873_v21  ;;  %v8065_v23 = vadd.f32 %v8064_v62, %v8063_v44 }
0x13b2   :  { %v6906_v1 = vadd.f32 %v8065_v23, %v14873_v21  ;;  %v14878_v42 = vadd.f32 %v6903_v26, %v14459_v51 }
0x13b4   :  { %6985 = vadd.xlane.f32.xlu0 %v14878_v42  ;;  %v8066_v54 = vpop.f32.mrb[180].mxu1  ;;  %v14882_v2 = vadd.f32 %v6906_v1, %v14462_v37 }
0x13b5   :  { %v8067_v17 = vpop.f32.mrb[181].mxu1 }
0x13b6   :  { %v8068_v11 = vadd.f32 %v8067_v17, %v8066_v54  ;;  %6987 = vadd.xlane.f32.xlu1 %v14882_v2  ;;  %v8069_v16 = vpop.f32.mrb[182].mxu1 }
0x13b7   :  { %v8070_v25 = vpop.f32.mrb[183].mxu1 }
0x13b8   :  { %v6911_v35 = vadd.f32 %v8068_v11, %v14873_v21  ;;  %v8071_v45 = vadd.f32 %v8070_v25, %v8069_v16 }
0x13ba   :  { %v6914_v24 = vadd.f32 %v8071_v45, %v14873_v21  ;;  %v14888_v51 = vadd.f32 %v6911_v35, %v14476_v13 }
0x13bc   :  { %6989 = vadd.xlane.f32.xlu0 %v14888_v51  ;;  %v8072_v39 = vpop.f32.mrb[184].mxu1  ;;  %v14892_v37 = vadd.f32 %v6914_v24, %v14472_v30 }
0x13bd   :  { %v8073_v29 = vpop.f32.mrb[185].mxu1 }
0x13be   :  { %v8074_v14 = vadd.f32 %v8073_v29, %v8072_v39  ;;  %6991 = vadd.xlane.f32.xlu1 %v14892_v37  ;;  %v8075_v10 = vpop.f32.mrb[186].mxu1 }
0x13bf   :  { %v8076_v18 = vpop.f32.mrb[187].mxu1 }
0x13c0   :  { %v6919_v12 = vadd.f32 %v8074_v14, %v14873_v21  ;;  %v8077_v0 = vadd.f32 %v8076_v18, %v8075_v10 }
0x13c2   :  { %v6922_v7 = vadd.f32 %v8077_v0, %v14873_v21  ;;  %v14898_v13 = vadd.f32 %v6919_v12, %v14489_v38 }
0x13c4   :  { %6993 = vadd.xlane.f32.xlu0 %v14898_v13  ;;  %v8078_v46 = vpop.f32.mrb[188].mxu1  ;;  %v14902_v30 = vadd.f32 %v6922_v7, %v14485_v22 }
0x13c5   :  { %v8079_v43 = vpop.f32.mrb[189].mxu1 }
0x13c6   :  { %v8080_v6 = vadd.f32 %v8079_v43, %v8078_v46  ;;  %6995 = vadd.xlane.f32.xlu1 %v14902_v30  ;;  %v8081_v5 = vpop.f32.mrb[190].mxu1 }
0x13c7   :  { %v8082_v31 = vpop.f32.mrb[191].mxu1 }
0x13c8   :  { %v6927_v50 = vadd.f32 %v8080_v6, %v14873_v21  ;;  %v8083_v9 = vadd.f32 %v8082_v31, %v8081_v5 }
0x13ca   :  { %v6930_v15 = vadd.f32 %v8083_v9, %v14873_v21  ;;  %v14908_v38 = vadd.f32 %v6927_v50, %v14501_v58 }
0x13cc   :  { %6997 = vadd.xlane.f32.xlu0 %v14908_v38  ;;  %v14912_v41 = vadd.f32 %v6930_v15, %v14498_v49 }
0x13ce   :  { %6999 = vadd.xlane.f32.xlu1 %v14912_v41 }
0x13ff   :  { %v8084_v22 = vpop.f32.mrb[192].mxu1 }
0x1400   :  { %v8085_v8 = vpop.f32.mrb[193].mxu1 }
0x1401   :  { %v8086_v55 = vadd.f32 %v8085_v8, %v8084_v22  ;;  %v8087_v4 = vpop.f32.mrb[194].mxu1 }
0x1402   :  { %v8088_v3 = vpop.f32.mrb[195].mxu1 }
0x1403   :  { %v6935_v63 = vadd.f32 %v8086_v55, %v14873_v21  ;;  %v8089_v61 = vadd.f32 %v8088_v3, %v8087_v4 }
0x1405   :  { %v6938_v33 = vadd.f32 %v8089_v61, %v14873_v21  ;;  %v14918_v58 = vadd.f32 %v6935_v63, %v14511_v34 }
0x1407   :  { %7001 = vadd.xlane.f32.xlu0 %v14918_v58  ;;  %v14922_v49 = vadd.f32 %v6938_v33, %v14514_v57 }
0x1409   :  { %7003 = vadd.xlane.f32.xlu1 %v14922_v49 }
0x140c   :  { %v8090_v36 = vpop.f32.mrb[196].mxu1 }
0x140d   :  { %v8091_v32 = vpop.f32.mrb[197].mxu1 }
0x140e   :  { %v8092_v40 = vadd.f32 %v8091_v32, %v8090_v36  ;;  %v8093_v27 = vpop.f32.mrb[198].mxu1  ;;  %v9071_v36 = vld [vmem:[%s15184_s16 + $0x8] sm:$0xff]  }
0x140f   :  { %v8094_v59 = vpop.f32.mrb[199].mxu1 }
0x1410   :  { %v6943_v53 = vadd.f32 %v8092_v40, %v14873_v21  ;;  %v8095_v56 = vadd.f32 %v8094_v59, %v8093_v27  ;;  %v9072_v27 = vld [vmem:[%s15184_s16 + $0x10] sm:$0xff]   ;;  %v9074_v59 = vld [vmem:[%s15184_s16 + $0x20] sm:$0xff]  }
0x1412   :  { %v6946_v52 = vadd.f32 %v8095_v56, %v14873_v21  ;;  %v14928_v34 = vadd.f32 %v6943_v53, %v14527_v60  ;;  %v9075_v53 = vld [vmem:[%s15184_s16 + $0x28] sm:$0xff]   ;;  %v9076_v56 = vld [vmem:[%s15184_s16 + $0x30] sm:$0xff]  }
0x1414   :  { %7005 = vadd.xlane.f32.xlu0 %v14928_v34  ;;  %v14932_v57 = vadd.f32 %v6946_v52, %v14524_v19  ;;  %v9077_v52 = vld [vmem:[%s15184_s16 + $0x38] sm:$0xff]  }
0x1416   :  { %7007 = vadd.xlane.f32.xlu1 %v14932_v57 }
0x1417   :  { %v8096_v44 = vpop.f32.mrb[200].mxu1 }
0x1418   :  { %v8097_v62 = vpop.f32.mrb[201].mxu1 }
0x1419   :  { %v8098_v26 = vadd.f32 %v8097_v62, %v8096_v44  ;;  %v8099_v23 = vpop.f32.mrb[202].mxu1 }
0x141a   :  { %v8100_v1 = vpop.f32.mrb[203].mxu1 }
0x141b   :  { %v6951_v54 = vadd.f32 %v8098_v26, %v14873_v21  ;;  %v8101_v17 = vadd.f32 %v8100_v1, %v8099_v23 }
0x141d   :  { %v6954_v11 = vadd.f32 %v8101_v17, %v14873_v21  ;;  %v14938_v60 = vadd.f32 %v6951_v54, %v14537_v48 }
0x141f   :  { %7009 = vadd.xlane.f32.xlu0 %v14938_v60  ;;  %v8102_v16 = vpop.f32.mrb[204].mxu1  ;;  %v14942_v19 = vadd.f32 %v6954_v11, %v14540_v28 }
0x1420   :  { %v8103_v25 = vpop.f32.mrb[205].mxu1 }
0x1421   :  { %v8104_v35 = vadd.f32 %v8103_v25, %v8102_v16  ;;  %7011 = vadd.xlane.f32.xlu1 %v14942_v19  ;;  %v8105_v45 = vpop.f32.mrb[206].mxu1 }
0x1422   :  { %v8106_v24 = vpop.f32.mrb[207].mxu1 }
0x1423   :  { %v6959_v39 = vadd.f32 %v8104_v35, %v14873_v21  ;;  %v8107_v29 = vadd.f32 %v8106_v24, %v8105_v45 }
0x1425   :  { %v6962_v14 = vadd.f32 %v8107_v29, %v14873_v21  ;;  %v14948_v48 = vadd.f32 %v6959_v39, %v14562_v47 }
0x1427   :  { %7013 = vadd.xlane.f32.xlu0 %v14948_v48  ;;  %v14952_v10 = vadd.f32 %v6962_v14, %v14550_v20 }
0x1429   :  { %7015 = vadd.xlane.f32.xlu1 %v14952_v10 }
0x1441   :  { %v6986_v28 = vpop.xlane.xlu0 %6985 }
0x1442   :  { %v7017_v18 = vmul.f32 0.0078125, %v6986_v28 }
0x1443   :  { %v6988_v12 = vpop.xlane.xlu1 %6987 }
0x1444   :  { %v14956_v0 = vsub.f32 %v14878_v42, %v7017_v18  ;;  %v7018_v7 = vmul.f32 0.0078125, %v6988_v12 }
0x1446   :  { %v14959_v46 = vsub.f32 %v14882_v2, %v7018_v7  ;;  %v7049_v47 = vmul.f32 %v14956_v0, %v14956_v0 }
0x1448   :  { %7065 = vadd.xlane.f32.xlu0 %v7049_v47  ;;  %v7050_v20 = vmul.f32 %v14959_v46, %v14959_v46 }
0x1449   :  { %v6990_v21 = vpop.xlane.xlu0 %6989 }
0x144a   :  { %v7019_v43 = vmul.f32 0.0078125, %v6990_v21  ;;  %7067 = vadd.xlane.f32.xlu1 %v7050_v20 }
0x144b   :  { %v6992_v6 = vpop.xlane.xlu1 %6991 }
0x144c   :  { %v14966_v5 = vsub.f32 %v14888_v51, %v7019_v43  ;;  %v7020_v42 = vmul.f32 0.0078125, %v6992_v6 }
0x144e   :  { %v14969_v31 = vsub.f32 %v14892_v37, %v7020_v42  ;;  %v7051_v2 = vmul.f32 %v14966_v5, %v14966_v5 }
0x1450   :  { %7069 = vadd.xlane.f32.xlu0 %v7051_v2  ;;  %v7052_v50 = vmul.f32 %v14969_v31, %v14969_v31 }
0x1451   :  { %v6994_v9 = vpop.xlane.xlu0 %6993 }
0x1452   :  { %v7021_v15 = vmul.f32 0.0078125, %v6994_v9  ;;  %7071 = vadd.xlane.f32.xlu1 %v7052_v50 }
0x1453   :  { %v6996_v22 = vpop.xlane.xlu1 %6995 }
0x1454   :  { %v14976_v8 = vsub.f32 %v14898_v13, %v7021_v15  ;;  %v7022_v51 = vmul.f32 0.0078125, %v6996_v22  ;;  %v9070_v13 = vld [vmem:[%s15184_s16] sm:$0xff]  }
0x1455   :  { %8764 = vmatprep.subr.bf16.mxu0 %v9070_v13  ;;  %8796 = vmatprep.subr.bf16.mxu1 %v9070_v13 }
0x1456   :  { %v14979_v55 = vsub.f32 %v14902_v30, %v7022_v51  ;;  %v7053_v37 = vmul.f32 %v14976_v8, %v14976_v8  ;;  %8765 = vmatpush3.bf16.msra.mxu0 %v9070_v13  ;;  %8804 = vmatpush3.bf16.msra.mxu1 %v9070_v13  ;;  %v15062_v13 = vld [vmem:[%s15182_s14 + $0x1] ss:$0 sm:$0xff] }
0x1457   :  { %8766 = vmatprep.subr.bf16.mxu0 %v9071_v36  ;;  %8797 = vmatprep.subr.bf16.mxu1 %v9071_v36 }
0x1458   :  { %7073 = vadd.xlane.f32.xlu0 %v7053_v37  ;;  %v7054_v4 = vmul.f32 %v14979_v55, %v14979_v55 }
0x1459   :  { %v6998_v3 = vpop.xlane.xlu0 %6997 }
0x145a   :  { %v7023_v63 = vmul.f32 0.0078125, %v6998_v3  ;;  %7075 = vadd.xlane.f32.xlu1 %v7054_v4  ;;  %8767 = vmatpush3.bf16.msra.mxu0 %v9071_v36 }
0x145b   :  { %v7000_v61 = vpop.xlane.xlu1 %6999  ;;  %8805 = vmatpush3.bf16.msra.mxu1 %v9071_v36  ;;  %8768 = vmatprep.subr.bf16.mxu0 %v9072_v27 }
0x145c   :  { %v14989_v33 = vsub.f32 %v14908_v38, %v7023_v63  ;;  %v7024_v30 = vmul.f32 0.0078125, %v7000_v61  ;;  %8798 = vmatprep.subr.bf16.mxu1 %v9072_v27 }
0x145e   :  { %v14995_v32 = vsub.f32 %v14912_v41, %v7024_v30  ;;  %v7055_v40 = vmul.f32 %v14989_v33, %v14989_v33  ;;  %v9073_v41 = vld [vmem:[%s15184_s16 + $0x18] sm:$0xff]   ;;  %8769 = vmatpush3.bf16.msra.mxu0 %v9072_v27 }
0x145f   :  { %8806 = vmatpush3.bf16.msra.mxu1 %v9072_v27  ;;  %8770 = vmatprep.subr.bf16.mxu0 %v9073_v41 }
0x1460   :  { %7077 = vadd.xlane.f32.xlu0 %v7055_v40  ;;  %v7056_v38 = vmul.f32 %v14995_v32, %v14995_v32  ;;  %8799 = vmatprep.subr.bf16.mxu1 %v9073_v41 }
0x1462   :  { %7079 = vadd.xlane.f32.xlu1 %v7056_v38  ;;  %8771 = vmatpush3.bf16.msra.mxu0 %v9073_v41 }
0x1463   :  { %8807 = vmatpush3.bf16.msra.mxu1 %v9073_v41  ;;  %8772 = vmatprep.subr.bf16.mxu0 %v9074_v59 }
0x1464   :  { %8800 = vmatprep.subr.bf16.mxu1 %v9074_v59 }
0x1466   :  { %8773 = vmatpush3.bf16.msra.mxu0 %v9074_v59 }
0x1467   :  { %8808 = vmatpush3.bf16.msra.mxu1 %v9074_v59  ;;  %8774 = vmatprep.subr.bf16.mxu0 %v9075_v53 }
0x1468   :  { %8801 = vmatprep.subr.bf16.mxu1 %v9075_v53 }
0x146a   :  { %8775 = vmatpush3.bf16.msra.mxu0 %v9075_v53 }
0x146b   :  { %8809 = vmatpush3.bf16.msra.mxu1 %v9075_v53  ;;  %8776 = vmatprep.subr.bf16.mxu0 %v9076_v56 }
0x146c   :  { %8802 = vmatprep.subr.bf16.mxu1 %v9076_v56 }
0x146e   :  { %8777 = vmatpush3.bf16.msra.mxu0 %v9076_v56 }
0x146f   :  { %8810 = vmatpush3.bf16.msra.mxu1 %v9076_v56  ;;  %8778 = vmatprep.subr.bf16.mxu0 %v9077_v52 }
0x1470   :  { %8803 = vmatprep.subr.bf16.mxu1 %v9077_v52 }
0x1472   :  { %8779 = vmatpush3.bf16.msra.mxu0 %v9077_v52 }
0x1473   :  { %8811 = vmatpush3.bf16.msra.mxu1 %v9077_v52  ;;  %v15070_v52 = vld [vmem:[%s15183_s15 + $0x1] ss:$0 sm:$0xff] }
0x1494   :  { %v7002_v44 = vpop.xlane.xlu0 %7001 }
0x1495   :  { %v7025_v62 = vmul.f32 0.0078125, %v7002_v44 }
0x1496   :  { %v7004_v26 = vpop.xlane.xlu1 %7003 }
0x1497   :  { %v15020_v23 = vsub.f32 %v14918_v58, %v7025_v62  ;;  %v7026_v1 = vmul.f32 0.0078125, %v7004_v26 }
0x1499   :  { %v15023_v54 = vsub.f32 %v14922_v49, %v7026_v1  ;;  %v7057_v17 = vmul.f32 %v15020_v23, %v15020_v23 }
0x149b   :  { %7081 = vadd.xlane.f32.xlu0 %v7057_v17  ;;  %v7058_v11 = vmul.f32 %v15023_v54, %v15023_v54 }
0x149d   :  { %7083 = vadd.xlane.f32.xlu1 %v7058_v11 }
0x14a1   :  { %v7006_v16 = vpop.xlane.xlu0 %7005 }
0x14a2   :  { %v7027_v25 = vmul.f32 0.0078125, %v7006_v16 }
0x14a3   :  { %v7008_v35 = vpop.xlane.xlu1 %7007 }
0x14a4   :  { %v15030_v45 = vsub.f32 %v14928_v34, %v7027_v25  ;;  %v7028_v58 = vmul.f32 0.0078125, %v7008_v35 }
0x14a6   :  { %v15033_v24 = vsub.f32 %v14932_v57, %v7028_v58  ;;  %v7059_v49 = vmul.f32 %v15030_v45, %v15030_v45 }
0x14a8   :  { %7085 = vadd.xlane.f32.xlu0 %v7059_v49  ;;  %v7060_v39 = vmul.f32 %v15033_v24, %v15033_v24 }
0x14aa   :  { %7087 = vadd.xlane.f32.xlu1 %v7060_v39 }
0x14ac   :  { %v7010_v29 = vpop.xlane.xlu0 %7009 }
0x14ad   :  { %v7029_v14 = vmul.f32 0.0078125, %v7010_v29 }
0x14ae   :  { %v7012_v28 = vpop.xlane.xlu1 %7011 }
0x14af   :  { %v15040_v18 = vsub.f32 %v14938_v60, %v7029_v14  ;;  %v7030_v34 = vmul.f32 0.0078125, %v7012_v28 }
0x14b1   :  { %v15043_v12 = vsub.f32 %v14942_v19, %v7030_v34  ;;  %v7061_v57 = vmul.f32 %v15040_v18, %v15040_v18 }
0x14b3   :  { %7089 = vadd.xlane.f32.xlu0 %v7061_v57  ;;  %v7062_v7 = vmul.f32 %v15043_v12, %v15043_v12 }
0x14b4   :  { %v7014_v47 = vpop.xlane.xlu0 %7013 }
0x14b5   :  { %v7031_v20 = vmul.f32 0.0078125, %v7014_v47  ;;  %7091 = vadd.xlane.f32.xlu1 %v7062_v7 }
0x14b6   :  { %v7016_v21 = vpop.xlane.xlu1 %7015 }
0x14b7   :  { %v15050_v43 = vsub.f32 %v14948_v48, %v7031_v20  ;;  %v7032_v60 = vmul.f32 0.0078125, %v7016_v21 }
0x14b9   :  { %v15053_v6 = vsub.f32 %v14952_v10, %v7032_v60  ;;  %v7063_v19 = vmul.f32 %v15050_v43, %v15050_v43 }
0x14bb   :  { %7093 = vadd.xlane.f32.xlu0 %v7063_v19  ;;  %v7064_v42 = vmul.f32 %v15053_v6, %v15053_v6 }
0x14bd   :  { %7095 = vadd.xlane.f32.xlu1 %v7064_v42 }
0x14d5   :  { %v7066_v2 = vpop.xlane.xlu0 %7065 }
0x14d6   :  { %v7097_v50 = vmul.f32 0.0078125, %v7066_v2 }
0x14d7   :  { %v7068_v9 = vpop.xlane.xlu1 %7067 }
0x14d8   :  { %v7113_v15 = vadd.f32 1e-05, %v7097_v50  ;;  %v7098_v22 = vmul.f32 0.0078125, %v7068_v9 }
0x14da   :  { %9846 = vrsqrt.f32 %v7113_v15  ;;  %v7114_v48 = vadd.f32 1e-05, %v7098_v22 }
0x14dc   :  { %9848 = vrsqrt.f32 %v7114_v48 }
0x14dd   :  { %v7070_v51 = vpop.xlane.xlu0 %7069 }
0x14de   :  { %v7099_v37 = vmul.f32 0.0078125, %v7070_v51 }
0x14df   :  { %v7072_v10 = vpop.xlane.xlu1 %7071 }
0x14e0   :  { %v7115_v4 = vadd.f32 1e-05, %v7099_v37  ;;  %v7100_v3 = vmul.f32 0.0078125, %v7072_v10 }
0x14e2   :  { %9850 = vrsqrt.f32 %v7115_v4  ;;  %v7116_v63 = vadd.f32 1e-05, %v7100_v3 }
0x14e4   :  { %v9847_v61 = vpop.eup %9846  ;;  %9852 = vrsqrt.f32 %v7116_v63 }
0x14e5   :  { %v7074_v30 = vpop.xlane.xlu0 %7073  ;;  %v7145_v36 = vmul.f32 %v9847_v61, %v14956_v0 }
0x14e6   :  { %v9849_v40 = vpop.eup %9848  ;;  %v7101_v38 = vmul.f32 0.0078125, %v7074_v30 }
0x14e7   :  { %v7076_v27 = vpop.xlane.xlu1 %7075  ;;  %v7146_v41 = vmul.f32 %v9849_v40, %v14959_v46  ;;  %v7167_v59 = vmul.f32 %v15062_v13, %v7145_v36 }
0x14e8   :  { %v7117_v53 = vadd.f32 1e-05, %v7101_v38  ;;  %v7102_v56 = vmul.f32 0.0078125, %v7076_v27 }
0x14e9   :  { %v7168_v44 = vmul.f32 %v15062_v13, %v7146_v41  ;;  %v7189_v0 = vadd.f32 %v15070_v52, %v7167_v59 }
0x14ea   :  { %9854 = vrsqrt.f32 %v7117_v53  ;;  %v7118_v62 = vadd.f32 1e-05, %v7102_v56 }
0x14eb   :  { %v7190_v26 = vadd.f32 %v15070_v52, %v7168_v44 }
0x14ec   :  { %v9851_v1 = vpop.eup %9850  ;;  %9856 = vrsqrt.f32 %v7118_v62 }
0x14ed   :  { %v7147_v46 = vmul.f32 %v9851_v1, %v14966_v5  ;;  %v7078_v17 = vpop.xlane.xlu0 %7077  ;;  %v7205_v11 = vpack.c.bf16 %v7190_v26, %v7189_v0 }
0x14ee   :  { %v9853_v16 = vpop.eup %9852  ;;  %v7103_v25 = vmul.f32 0.0078125, %v7078_v17 }
0x14ef   :  { %v7169_v35 = vmul.f32 %v15062_v13, %v7147_v46  ;;  %v7148_v58 = vmul.f32 %v9853_v16, %v14969_v31  ;;  %v7080_v49 = vpop.xlane.xlu1 %7079  ;;  %8780 = vmatprep.mubr.bf16.mxu0 %v7205_v11 }
0x14f0   :  { %v7119_v39 = vadd.f32 1e-05, %v7103_v25  ;;  %v7104_v29 = vmul.f32 0.0078125, %v7080_v49 }
0x14f1   :  { %v7170_v14 = vmul.f32 %v15062_v13, %v7148_v58  ;;  %v7191_v34 = vadd.f32 %v15070_v52, %v7169_v35 }
0x14f2   :  { %9858 = vrsqrt.f32 %v7119_v39  ;;  %v7120_v28 = vadd.f32 1e-05, %v7104_v29 }
0x14f3   :  { %v7192_v5 = vadd.f32 %v15070_v52, %v7170_v14 }
0x14f4   :  { %v9855_v57 = vpop.eup %9854  ;;  %9860 = vrsqrt.f32 %v7120_v28 }
0x14f5   :  { %v7206_v7 = vpack.c.bf16 %v7192_v5, %v7191_v34  ;;  %v7149_v47 = vmul.f32 %v9855_v57, %v14976_v8 }
0x14f6   :  { %v9857_v20 = vpop.eup %9856 }
0x14f7   :  { %8781 = vmatmul.mubr.bf16.vlgmr.msra.gmra.mrb[208].mxu0 %v7206_v7  ;;  %v7150_v31 = vmul.f32 %v9857_v20, %v14979_v55  ;;  %v7171_v21 = vmul.f32 %v15062_v13, %v7149_v47 }
0x14f9   :  { %v7172_v60 = vmul.f32 %v15062_v13, %v7150_v31  ;;  %v7193_v19 = vadd.f32 %v15070_v52, %v7171_v21 }
0x14fb   :  { %v7194_v42 = vadd.f32 %v15070_v52, %v7172_v60 }
0x14fc   :  { %v9859_v2 = vpop.eup %9858 }
0x14fd   :  { %v7207_v50 = vpack.c.bf16 %v7194_v42, %v7193_v19  ;;  %v7151_v9 = vmul.f32 %v9859_v2, %v14989_v33 }
0x14fe   :  { %v9861_v15 = vpop.eup %9860 }
0x14ff   :  { %8784 = vmatprep.mubr.bf16.mxu0 %v7207_v50  ;;  %v7152_v8 = vmul.f32 %v9861_v15, %v14995_v32  ;;  %v7173_v22 = vmul.f32 %v15062_v13, %v7151_v9 }
0x1501   :  { %v7174_v55 = vmul.f32 %v15062_v13, %v7152_v8  ;;  %v7195_v48 = vadd.f32 %v15070_v52, %v7173_v22 }
0x1503   :  { %v7196_v51 = vadd.f32 %v15070_v52, %v7174_v55 }
0x1505   :  { %v7208_v37 = vpack.c.bf16 %v7196_v51, %v7195_v48 }
0x1507   :  { %8785 = vmatmul.mubr.bf16.gmra.mrb[212].mxu0 %v7208_v37 }
0x1528   :  { %v7082_v10 = vpop.xlane.xlu0 %7081 }
0x1529   :  { %v7105_v4 = vmul.f32 0.0078125, %v7082_v10  ;;  %v7651_v10 = vld [vmem:[%s15185_s17] ss:$0 sm:$0xff] }
0x152a   :  { %v7084_v3 = vpop.xlane.xlu1 %7083 }
0x152b   :  { %v7121_v63 = vadd.f32 1e-05, %v7105_v4  ;;  %v7106_v61 = vmul.f32 0.0078125, %v7084_v3 }
0x152d   :  { %9862 = vrsqrt.f32 %v7121_v63  ;;  %v7122_v33 = vadd.f32 1e-05, %v7106_v61 }
0x152f   :  { %9864 = vrsqrt.f32 %v7122_v33 }
0x1535   :  { %v7086_v30 = vpop.xlane.xlu0 %7085 }
0x1536   :  { %v7107_v32 = vmul.f32 0.0078125, %v7086_v30 }
0x1537   :  { %v9863_v36 = vpop.eup %9862  ;;  %v7088_v40 = vpop.xlane.xlu1 %7087 }
0x1538   :  { %v7123_v38 = vadd.f32 1e-05, %v7107_v32  ;;  %v7108_v27 = vmul.f32 0.0078125, %v7088_v40  ;;  %v7153_v41 = vmul.f32 %v9863_v36, %v15020_v23 }
0x1539   :  { %v9865_v59 = vpop.eup %9864 }
0x153a   :  { %9866 = vrsqrt.f32 %v7123_v38  ;;  %v7124_v53 = vadd.f32 1e-05, %v7108_v27  ;;  %v7154_v56 = vmul.f32 %v9865_v59, %v15023_v54  ;;  %v7175_v44 = vmul.f32 %v15062_v13, %v7153_v41 }
0x153c   :  { %9868 = vrsqrt.f32 %v7124_v53  ;;  %v7176_v62 = vmul.f32 %v15062_v13, %v7154_v56  ;;  %v7197_v0 = vadd.f32 %v15070_v52, %v7175_v44 }
0x153e   :  { %v7198_v26 = vadd.f32 %v15070_v52, %v7176_v62 }
0x1540   :  { %v7090_v1 = vpop.xlane.xlu0 %7089  ;;  %v7209_v46 = vpack.c.bf16 %v7198_v26, %v7197_v0 }
0x1541   :  { %v7109_v17 = vmul.f32 0.0078125, %v7090_v1 }
0x1542   :  { %v7092_v11 = vpop.xlane.xlu1 %7091  ;;  %8788 = vmatprep.mubr.bf16.mxu1 %v7209_v46 }
0x1543   :  { %v7125_v23 = vadd.f32 1e-05, %v7109_v17  ;;  %v7110_v16 = vmul.f32 0.0078125, %v7092_v11 }
0x1544   :  { %v9867_v25 = vpop.eup %9866 }
0x1545   :  { %v7155_v35 = vmul.f32 %v9867_v25, %v15030_v45  ;;  %9870 = vrsqrt.f32 %v7125_v23  ;;  %v7126_v54 = vadd.f32 1e-05, %v7110_v16 }
0x1546   :  { %v9869_v58 = vpop.eup %9868 }
0x1547   :  { %v7177_v49 = vmul.f32 %v15062_v13, %v7155_v35  ;;  %v7156_v39 = vmul.f32 %v9869_v58, %v15033_v24  ;;  %9872 = vrsqrt.f32 %v7126_v54 }
0x1548   :  { %v7094_v29 = vpop.xlane.xlu0 %7093 }
0x1549   :  { %v7178_v14 = vmul.f32 %v15062_v13, %v7156_v39  ;;  %v7111_v28 = vmul.f32 0.0078125, %v7094_v29  ;;  %v7199_v7 = vadd.f32 %v15070_v52, %v7177_v49 }
0x154a   :  { %v7096_v34 = vpop.xlane.xlu1 %7095 }
0x154b   :  { %v7127_v5 = vadd.f32 1e-05, %v7111_v28  ;;  %v7112_v57 = vmul.f32 0.0078125, %v7096_v34  ;;  %v7200_v47 = vadd.f32 %v15070_v52, %v7178_v14 }
0x154d   :  { %9874 = vrsqrt.f32 %v7127_v5  ;;  %v7128_v45 = vadd.f32 1e-05, %v7112_v57  ;;  %v7210_v20 = vpack.c.bf16 %v7200_v47, %v7199_v7 }
0x154f   :  { %v9871_v31 = vpop.eup %9870  ;;  %9876 = vrsqrt.f32 %v7128_v45  ;;  %8789 = vmatmul.mubr.bf16.vlgmr.msra.gmra.mrb[208].mxu1 %v7210_v20 }
0x1550   :  { %v7157_v24 = vmul.f32 %v9871_v31, %v15040_v18 }
0x1551   :  { %v9873_v21 = vpop.eup %9872 }
0x1552   :  { %v7158_v60 = vmul.f32 %v9873_v21, %v15043_v12  ;;  %v7179_v19 = vmul.f32 %v15062_v13, %v7157_v24 }
0x1554   :  { %v7180_v42 = vmul.f32 %v15062_v13, %v7158_v60  ;;  %v7201_v2 = vadd.f32 %v15070_v52, %v7179_v19 }
0x1556   :  { %v7202_v50 = vadd.f32 %v15070_v52, %v7180_v42 }
0x1557   :  { %v9875_v9 = vpop.eup %9874 }
0x1558   :  { %v7211_v15 = vpack.c.bf16 %v7202_v50, %v7201_v2  ;;  %v7159_v8 = vmul.f32 %v9875_v9, %v15050_v43 }
0x1559   :  { %v9877_v22 = vpop.eup %9876 }
0x155a   :  { %8792 = vmatprep.mubr.bf16.mxu1 %v7211_v15  ;;  %v7160_v55 = vmul.f32 %v9877_v22, %v15053_v6  ;;  %v7181_v18 = vmul.f32 %v15062_v13, %v7159_v8 }
0x155c   :  { %v7182_v12 = vmul.f32 %v15062_v13, %v7160_v55  ;;  %v7203_v48 = vadd.f32 %v15070_v52, %v7181_v18 }
0x155e   :  { %v7204_v51 = vadd.f32 %v15070_v52, %v7182_v12 }
0x1560   :  { %v7212_v37 = vpack.c.bf16 %v7204_v51, %v7203_v48 }
0x1562   :  { %8793 = vmatmul.mubr.bf16.gmra.mrb[212].mxu1 %v7212_v37 }
0x15ca   :  { %v8782_v4 = vpop.f32.mrb[208].mxu0 }
0x15cb   :  { %v7327_v43 = vadd.f32 %v8782_v4, %v7651_v10  ;;  %v7318_v3 = vpop.f32.mrb[209].mxu0 }
0x15cc   :  { %v7319_v63 = vadd.f32 %v7651_v10, %v7318_v3  ;;  %v8783_v61 = vpop.f32.mrb[210].mxu0 }
0x15cd   :  { %7383 = vst [vmem:[%s15186_s18 + $0x10] sm:$0xff] %v7327_v43  ;;  %v7330_v6 = vadd.f32 %v8783_v61, %v7651_v10  ;;  %v7321_v13 = vpop.f32.mrb[211].mxu0 }
0x15ce   :  { %7381 = vst [vmem:[%s15186_s18] sm:$0xff] %v7319_v63  ;;  %v7322_v52 = vadd.f32 %v7651_v10, %v7321_v13 }
0x15cf   :  { %7384 = vst [vmem:[%s15186_s18 + $0x18] sm:$0xff] %v7330_v6 }
0x15d0   :  { %7382 = vst [vmem:[%s15186_s18 + $0x8] sm:$0xff] %v7322_v52 }
0x15da   :  { %v8786_v33 = vpop.f32.mrb[212].mxu0 }
0x15db   :  { %v7343_v30 = vadd.f32 %v8786_v33, %v7651_v10  ;;  %v7334_v32 = vpop.f32.mrb[213].mxu0 }
0x15dc   :  { %v7335_v36 = vadd.f32 %v7651_v10, %v7334_v32  ;;  %v8787_v40 = vpop.f32.mrb[214].mxu0 }
0x15dd   :  { %7387 = vst [vmem:[%s15186_s18 + $0x30] sm:$0xff] %v7343_v30  ;;  %v7346_v38 = vadd.f32 %v8787_v40, %v7651_v10  ;;  %v7337_v27 = vpop.f32.mrb[215].mxu0 }
0x15de   :  { %7385 = vst [vmem:[%s15186_s18 + $0x20] sm:$0xff] %v7335_v36  ;;  %v7338_v41 = vadd.f32 %v7651_v10, %v7337_v27 }
0x15df   :  { %7388 = vst [vmem:[%s15186_s18 + $0x38] sm:$0xff] %v7346_v38 }
0x15e0   :  { %7386 = vst [vmem:[%s15186_s18 + $0x28] sm:$0xff] %v7338_v41 }
0x1622   :  { %v8790_v59 = vpop.f32.mrb[208].mxu1 }
0x1623   :  { %v7359_v53 = vadd.f32 %v8790_v59, %v7651_v10  ;;  %v7350_v56 = vpop.f32.mrb[209].mxu1 }
0x1624   :  { %v7351_v44 = vadd.f32 %v7651_v10, %v7350_v56  ;;  %v8791_v62 = vpop.f32.mrb[210].mxu1 }
0x1625   :  { %7391 = vst [vmem:[%s15186_s18 + $0x50] sm:$0xff] %v7359_v53  ;;  %v7362_v0 = vadd.f32 %v8791_v62, %v7651_v10  ;;  %v7353_v26 = vpop.f32.mrb[211].mxu1 }
0x1626   :  { %7389 = vst [vmem:[%s15186_s18 + $0x40] sm:$0xff] %v7351_v44  ;;  %v7354_v1 = vadd.f32 %v7651_v10, %v7353_v26 }
0x1627   :  { %7392 = vst [vmem:[%s15186_s18 + $0x58] sm:$0xff] %v7362_v0 }
0x1628   :  { %7390 = vst [vmem:[%s15186_s18 + $0x48] sm:$0xff] %v7354_v1 }
0x1635   :  { %v8794_v46 = vpop.f32.mrb[212].mxu1 }
0x1636   :  { %v7375_v17 = vadd.f32 %v8794_v46, %v7651_v10  ;;  %v7366_v11 = vpop.f32.mrb[213].mxu1 }
0x1637   :  { %v7367_v23 = vadd.f32 %v7651_v10, %v7366_v11  ;;  %v8795_v16 = vpop.f32.mrb[214].mxu1 }
0x1638   :  { %7395 = vst [vmem:[%s15186_s18 + $0x70] sm:$0xff] %v7375_v17  ;;  %v7378_v25 = vadd.f32 %v8795_v16, %v7651_v10  ;;  %v7369_v35 = vpop.f32.mrb[215].mxu1 }
0x1639   :  { %7393 = vst [vmem:[%s15186_s18 + $0x60] sm:$0xff] %v7367_v23  ;;  %v7370_v54 = vadd.f32 %v7651_v10, %v7369_v35 }
0x163a   :  { %7396 = vst [vmem:[%s15186_s18 + $0x78] sm:$0xff] %v7378_v25 }
0x163b   :  { %7394 = vst [vmem:[%s15186_s18 + $0x68] sm:$0xff] %v7370_v54 }

</bundles_post_ra>
